<compile_context>
chip_gen: v7x
topology: tpu7x:2x2x1
jax: 0.10.0
libtpu: 0.0.40
codegen_flags: <defaults>
</compile_context>

<pallas_src>
import jax
import jax.numpy as jnp
from jax import lax
from jax.experimental import pallas as pl
from jax.experimental.pallas import tpu as pltpu

HIDDEN_SIZE = 64
NUM_CLASSES = 19
NUM_FEATURES = 3
WINDOW_SIZE = 128
POOLED = WINDOW_SIZE // 2                 # 64
FC1_IN = HIDDEN_SIZE * POOLED             # 4096
FC1_OUT = 128
LOGIT_PAD = 128                           # lane-dense logits, sliced to 19 later
BATCH_TILE = 8                            # batch elements per conv grid step
MAX_FC_TILE = 128                         # batch rows per fc grid step


def conv_pool_kernel(x9_ref, w1_ref, b1_ref, w2_ref, b2_ref, out_ref, h2_scr):
    # x9_ref : (BT*128, 9)   im2col'd conv1 input: [x[t-1] | x[t] | x[t+1]] (3 ch each)
    # w1_ref : (9, 64)       fused conv1 weights  (rows = k*3 + ci)
    # b1_ref : (1, 64)
    # w2_ref : (192, 64)     fused conv2 weights  (rows = k*64 + ci)
    # b2_ref : (1, 64)
    # out_ref: (BT*64, 64)   pooled activations, rows = (batch, pooled_time), lanes = channel
    # h2_scr : (BT*128, 64)  VMEM scratch for the strided (even-row) pooling read
    M = x9_ref.shape[0]                     # BATCH_TILE * 128
    T = WINDOW_SIZE

    # ---- conv1 + ReLU: single fused MXU matmul ----
    h1 = jnp.dot(x9_ref[...], w1_ref[...], preferred_element_type=jnp.float32)
    h1 = jnp.maximum(h1 + b1_ref[...], 0.0)                         # (M, 64)

    # ---- shifted taps for conv2: sublane roll (XLU) + window-boundary masking ----
    t_in_win = lax.broadcasted_iota(jnp.int32, (M, HIDDEN_SIZE), 0) % T
    h1_prev = jnp.where(t_in_win == 0, 0.0, pltpu.roll(h1, 1, axis=0))       # h1[t-1]
    h1_next = jnp.where(t_in_win == T - 1, 0.0, pltpu.roll(h1, M - 1, axis=0))  # h1[t+1]

    # ---- conv2 + ReLU: single fused (M,192)@(192,64) MXU matmul ----
    h1cat = jnp.concatenate([h1_prev, h1, h1_next], axis=-1)        # (M, 192)
    h2 = jnp.dot(h1cat, w2_ref[...], preferred_element_type=jnp.float32)
    h2 = jnp.maximum(h2 + b2_ref[...], 0.0)                         # (M, 64)

    # ---- MaxPool1d(2): pairwise max via roll, then keep even rows (stride-2 read) ----
    m = jnp.maximum(h2, pltpu.roll(h2, M - 1, axis=0))              # m[t] = max(h2[t], h2[t+1])
    h2_scr[...] = m
    out_ref[...] = h2_scr[pl.ds(0, M // 2, stride=2), :]            # rows 0,2,4,...


def fc_kernel(x_ref, w1_ref, b1_ref, w2_ref, b2_ref, out_ref):
    # x_ref: (BTfc, 4096), w1_ref: (4096, 128), b1_ref: (1, 128),
    # w2_ref: (128, 128 padded), b2_ref: (1, 128), out_ref: (BTfc, 128)
    h = jnp.dot(x_ref[...], w1_ref[...], preferred_element_type=jnp.float32)
    h = jnp.maximum(h + b1_ref[...], 0.0)
    out_ref[...] = jnp.dot(h, w2_ref[...], preferred_element_type=jnp.float32) + b2_ref[...]


def prepare_params(params):
    """One-time conversion of PyTorch-layout weights to kernel layouts.

    Hoisted out of the forward so no per-call weight relayouts remain."""
    w1f = jnp.transpose(params["conv1_w"], (2, 1, 0)).reshape(3 * NUM_FEATURES, HIDDEN_SIZE)
    w2f = jnp.transpose(params["conv2_w"], (2, 1, 0)).reshape(3 * HIDDEN_SIZE, HIDDEN_SIZE)
    b1 = params["conv1_b"].reshape(1, HIDDEN_SIZE)
    b2 = params["conv2_b"].reshape(1, HIDDEN_SIZE)
    # Reindex fc1's 4096 input dim so the conv kernel's natural flatten order
    # (pooled_time-major, channel-minor) matches PyTorch's channel-major flatten.
    a = params["fc1_w"].reshape(FC1_OUT, HIDDEN_SIZE, POOLED)        # [j, c, p]
    fc1_w = jnp.transpose(a, (2, 1, 0)).reshape(FC1_IN, FC1_OUT)     # [p*64 + c, j]
    fc1_b = params["fc1_b"].reshape(1, FC1_OUT)
    # Pad fc2 to 128 output lanes so the fc kernel writes lane-dense stores.
    fc2_w = jnp.zeros((FC1_OUT, LOGIT_PAD), jnp.float32).at[:, :NUM_CLASSES].set(
        jnp.transpose(params["fc2_w"]))
    fc2_b = jnp.zeros((1, LOGIT_PAD), jnp.float32).at[:, :NUM_CLASSES].set(
        params["fc2_b"].reshape(1, NUM_CLASSES))
    return {"w1f": w1f, "b1": b1, "w2f": w2f, "b2": b2,
            "fc1_w": fc1_w, "fc1_b": fc1_b, "fc2_w": fc2_w, "fc2_b": fc2_b}


def exercise_classifier_forward(x_ncw, prepped):
    """x_ncw: (B, NUM_FEATURES, WINDOW_SIZE) float32 (PyTorch NCW layout)."""
    B = x_ncw.shape[0]
    Bc = ((B + BATCH_TILE - 1) // BATCH_TILE) * BATCH_TILE

    # Time-major layout + zero batch padding (padded rows are discarded at the end).
    xt = jnp.transpose(x_ncw, (0, 2, 1))                            # (B, 128, 3)
    if Bc != B:
        xt = jnp.pad(xt, ((0, Bc - B), (0, 0), (0, 0)))
    # Tiny wrapper-side im2col for conv1: taps [t-1, t, t+1], zero padded.
    zero = jnp.zeros_like(xt[:, :1, :])
    x9 = jnp.concatenate(
        [jnp.concatenate([zero, xt[:, :-1, :]], axis=1),
         xt,
         jnp.concatenate([xt[:, 1:, :], zero], axis=1)], axis=-1)   # (Bc, 128, 9)
    x9 = x9.reshape(Bc * WINDOW_SIZE, 3 * NUM_FEATURES)

    M = BATCH_TILE * WINDOW_SIZE
    pooled = pl.pallas_call(
        conv_pool_kernel,
        out_shape=jax.ShapeDtypeStruct((Bc * POOLED, HIDDEN_SIZE), jnp.float32),
        grid=(Bc // BATCH_TILE,),
        in_specs=[
            pl.BlockSpec((M, 3 * NUM_FEATURES), lambda i: (i, 0)),
            pl.BlockSpec((3 * NUM_FEATURES, HIDDEN_SIZE), lambda i: (0, 0)),
            pl.BlockSpec((1, HIDDEN_SIZE), lambda i: (0, 0)),
            pl.BlockSpec((3 * HIDDEN_SIZE, HIDDEN_SIZE), lambda i: (0, 0)),
            pl.BlockSpec((1, HIDDEN_SIZE), lambda i: (0, 0)),
        ],
        out_specs=pl.BlockSpec((BATCH_TILE * POOLED, HIDDEN_SIZE), lambda i: (i, 0)),
        scratch_shapes=[pltpu.VMEM((M, HIDDEN_SIZE), jnp.float32)],
        compiler_params=pltpu.CompilerParams(dimension_semantics=("parallel",)),
    )(x9, prepped["w1f"], prepped["b1"], prepped["w2f"], prepped["b2"])

    # Free reshape: rows are (batch, pooled_time) so (Bc*64, 64) == (Bc, 4096)
    # in (p, c)-minor order, which prepare_params already baked into fc1_w.
    feat = pooled.reshape(Bc, FC1_IN)

    fc_tile = min(MAX_FC_TILE, Bc)
    Bf = ((Bc + fc_tile - 1) // fc_tile) * fc_tile
    if Bf != Bc:
        feat = jnp.pad(feat, ((0, Bf - Bc), (0, 0)))

    logits = pl.pallas_call(
        fc_kernel,
        out_shape=jax.ShapeDtypeStruct((Bf, LOGIT_PAD), jnp.float32),
        grid=(Bf // fc_tile,),
        in_specs=[
            pl.BlockSpec((fc_tile, FC1_IN), lambda i: (i, 0)),
            pl.BlockSpec((FC1_IN, FC1_OUT), lambda i: (0, 0)),
            pl.BlockSpec((1, FC1_OUT), lambda i: (0, 0)),
            pl.BlockSpec((FC1_OUT, LOGIT_PAD), lambda i: (0, 0)),
            pl.BlockSpec((1, LOGIT_PAD), lambda i: (0, 0)),
        ],
        out_specs=pl.BlockSpec((fc_tile, LOGIT_PAD), lambda i: (i, 0)),
        compiler_params=pltpu.CompilerParams(dimension_semantics=("parallel",)),
    )(feat, prepped["fc1_w"], prepped["fc1_b"], prepped["fc2_w"], prepped["fc2_b"])

    return logits[:B, :NUM_CLASSES]


def reference_forward(x, params):
    """Pure-JAX reference reproducing the PyTorch forward (for validation)."""
    def conv1d(h, w, b):
        y = lax.conv_general_dilated(h, w, window_strides=(1,), padding=[(1, 1)],
                                     dimension_numbers=("NCH", "OIH", "NCH"))
        return y + b[None, :, None]
    h = jax.nn.relu(conv1d(x, params["conv1_w"], params["conv1_b"]))
    h = jax.nn.relu(conv1d(h, params["conv2_w"], params["conv2_b"]))
    B = x.shape[0]
    h = h.reshape(B, HIDDEN_SIZE, WINDOW_SIZE // 2, 2).max(axis=-1)
    h = h.reshape(B, -1)
    h = jax.nn.relu(h @ params["fc1_w"].T + params["fc1_b"])
    return h @ params["fc2_w"].T + params["fc2_b"]


def init_params(key):
    ks = jax.random.split(key, 8)

    def u(k, shape, fan_in):
        bound = 1.0 / jnp.sqrt(jnp.float32(fan_in))
        return jax.random.uniform(k, shape, jnp.float32, -bound, bound)

    return {
        "conv1_w": u(ks[0], (HIDDEN_SIZE, NUM_FEATURES, 3), NUM_FEATURES * 3),
        "conv1_b": u(ks[1], (HIDDEN_SIZE,), NUM_FEATURES * 3),
        "conv2_w": u(ks[2], (HIDDEN_SIZE, HIDDEN_SIZE, 3), HIDDEN_SIZE * 3),
        "conv2_b": u(ks[3], (HIDDEN_SIZE,), HIDDEN_SIZE * 3),
        "fc1_w": u(ks[4], (FC1_OUT, FC1_IN), FC1_IN),
        "fc1_b": u(ks[5], (FC1_OUT,), FC1_IN),
        "fc2_w": u(ks[6], (NUM_CLASSES, FC1_OUT), FC1_OUT),
        "fc2_b": u(ks[7], (NUM_CLASSES,), FC1_OUT),
    }


if __name__ == "__main__":
    key = jax.random.PRNGKey(0)
    pkey, xkey = jax.random.split(key)
    params = init_params(pkey)
    prepped = prepare_params(params)     # one-time weight relayout (hoisted out of forward)

    B = 2
    x = jax.random.normal(xkey, (B, NUM_FEATURES, WINDOW_SIZE), jnp.float32)  # NCW

    fwd = jax.jit(exercise_classifier_forward)
    out = jax.block_until_ready(fwd(x, prepped))
    assert out.shape == (B, NUM_CLASSES), out.shape

    ref = reference_forward(x, params)
    max_err = float(jnp.max(jnp.abs(out - ref)))
    assert max_err < 1e-3, f"mismatch vs reference: {max_err}"

    print("KERNEL_OK")
</pallas_src>

<mosaic_0001>
module attributes {stable_mosaic.version = 11 : i64} {
  func.func @conv_pool_kernel(%arg0: i32, %arg1: memref<1024x9xf32, #tpu.memory_space<vmem>>, %arg2: memref<9x64xf32, #tpu.memory_space<vmem>>, %arg3: memref<1x64xf32, #tpu.memory_space<vmem>>, %arg4: memref<192x64xf32, #tpu.memory_space<vmem>>, %arg5: memref<1x64xf32, #tpu.memory_space<vmem>>, %arg6: memref<512x64xf32, #tpu.memory_space<vmem>>, %arg7: memref<1024x64xf32, #tpu.memory_space<vmem>>) attributes {dimension_semantics = [#tpu.dimension_semantics<parallel>], iteration_bounds = array<i64: 1>, scalar_prefetch = 0 : i64, scratch_operands = 1 : i64, tpu.core_type = #tpu.core_type<tc>, window_params = [{transform_indices = @transform_0, window_bounds = array<i64: 1024, 9>}, {pipeline_mode = #tpu.pipeline_mode<synchronous>, transform_indices = @transform_1, window_bounds = array<i64: 9, 64>}, {pipeline_mode = #tpu.pipeline_mode<synchronous>, transform_indices = @transform_2, window_bounds = array<i64: 1, 64>}, {pipeline_mode = #tpu.pipeline_mode<synchronous>, transform_indices = @transform_3, window_bounds = array<i64: 192, 64>}, {pipeline_mode = #tpu.pipeline_mode<synchronous>, transform_indices = @transform_4, window_bounds = array<i64: 1, 64>}, {transform_indices = @transform_5, window_bounds = array<i64: 512, 64>}]} {
    %c0 = arith.constant 0 : index
    %c0_0 = arith.constant 0 : index
    %0 = vector.load %arg1[%c0, %c0_0] : memref<1024x9xf32, #tpu.memory_space<vmem>>, vector<1024x9xf32>
    %c0_1 = arith.constant 0 : index
    %c0_2 = arith.constant 0 : index
    %1 = vector.load %arg2[%c0_1, %c0_2] : memref<9x64xf32, #tpu.memory_space<vmem>>, vector<9x64xf32>
    %cst = arith.constant dense<0.000000e+00> : vector<1024x64xf32>
    %2 = tpu.matmul %0, %1, %cst {dimension_numbers = #tpu.dot_dimension_numbers<[1], [0], [0], [1], [0, 0, 1, 1], [], []>} : vector<1024x9xf32>, vector<9x64xf32>, vector<1024x64xf32> -> vector<1024x64xf32>
    %c0_3 = arith.constant 0 : index
    %c0_4 = arith.constant 0 : index
    %3 = vector.load %arg3[%c0_3, %c0_4] : memref<1x64xf32, #tpu.memory_space<vmem>>, vector<1x64xf32>
    %4 = vector.broadcast %3 : vector<1x64xf32> to vector<1024x64xf32>
    %5 = arith.addf %2, %4 : vector<1024x64xf32>
    %cst_5 = arith.constant 0.000000e+00 : f32
    %6 = vector.broadcast %cst_5 : f32 to vector<1024x64xf32>
    %7 = arith.maximumf %5, %6 : vector<1024x64xf32>
    %8 = tpu.iota {dimensions = array<i32: 0>} : vector<1024x64xi32>
    %c128_i32 = arith.constant 128 : i32
    %c0_i32 = arith.constant 0 : i32
    %9 = arith.cmpi eq, %c128_i32, %c0_i32 : i32
    %c1_i32 = arith.constant 1 : i32
    %10 = arith.select %9, %c1_i32, %c128_i32 : i32
    %11 = vector.broadcast %10 : i32 to vector<1024x64xi32>
    %12 = arith.remsi %8, %11 : vector<1024x64xi32>
    %c0_i32_6 = arith.constant 0 : i32
    %13 = vector.broadcast %c0_i32_6 : i32 to vector<1024x64xi32>
    %14 = arith.cmpi ne, %12, %13 : vector<1024x64xi32>
    %c0_i32_7 = arith.constant 0 : i32
    %15 = vector.broadcast %c0_i32_7 : i32 to vector<1024x64xi32>
    %16 = arith.cmpi slt, %12, %15 : vector<1024x64xi32>
    %c0_i32_8 = arith.constant 0 : i32
    %17 = arith.cmpi slt, %10, %c0_i32_8 : i32
    %18 = vector.broadcast %17 : i1 to vector<1024x64xi1>
    %19 = vector.broadcast %18 : vector<1024x64xi1> to vector<1024x64xi1>
    %20 = arith.xori %16, %19 : vector<1024x64xi1>
    %21 = arith.andi %20, %14 : vector<1024x64xi1>
    %22 = vector.broadcast %10 : i32 to vector<1024x64xi32>
    %23 = arith.addi %12, %22 : vector<1024x64xi32>
    %24 = arith.select %21, %23, %12 : vector<1024x64xi1>, vector<1024x64xi32>
    %c0_i32_9 = arith.constant 0 : i32
    %25 = vector.broadcast %c0_i32_9 : i32 to vector<1024x64xi32>
    %26 = arith.cmpi eq, %24, %25 : vector<1024x64xi32>
    %c1_i32_10 = arith.constant 1 : i32
    %27 = tpu.dynamic_rotate %7 by %c1_i32_10 dim 0 : vector<1024x64xf32>, i32 -> vector<1024x64xf32>
    %cst_11 = arith.constant 0.000000e+00 : f32
    %28 = vector.broadcast %cst_11 : f32 to vector<1024x64xf32>
    %29 = arith.select %26, %28, %27 : vector<1024x64xi1>, vector<1024x64xf32>
    %c127_i32 = arith.constant 127 : i32
    %30 = vector.broadcast %c127_i32 : i32 to vector<1024x64xi32>
    %31 = arith.cmpi eq, %24, %30 : vector<1024x64xi32>
    %c1023_i32 = arith.constant 1023 : i32
    %32 = tpu.dynamic_rotate %7 by %c1023_i32 dim 0 : vector<1024x64xf32>, i32 -> vector<1024x64xf32>
    %cst_12 = arith.constant 0.000000e+00 : f32
    %33 = vector.broadcast %cst_12 : f32 to vector<1024x64xf32>
    %34 = arith.select %31, %33, %32 : vector<1024x64xi1>, vector<1024x64xf32>
    %35 = tpu.concatenate %29, %7, %34 in 1 : vector<1024x64xf32>, vector<1024x64xf32>, vector<1024x64xf32> -> vector<1024x192xf32>
    %c0_13 = arith.constant 0 : index
    %c0_14 = arith.constant 0 : index
    %36 = vector.load %arg4[%c0_13, %c0_14] : memref<192x64xf32, #tpu.memory_space<vmem>>, vector<192x64xf32>
    %cst_15 = arith.constant dense<0.000000e+00> : vector<1024x64xf32>
    %37 = tpu.matmul %35, %36, %cst_15 {dimension_numbers = #tpu.dot_dimension_numbers<[1], [0], [0], [1], [0, 0, 1, 1], [], []>} : vector<1024x192xf32>, vector<192x64xf32>, vector<1024x64xf32> -> vector<1024x64xf32>
    %c0_16 = arith.constant 0 : index
    %c0_17 = arith.constant 0 : index
    %38 = vector.load %arg5[%c0_16, %c0_17] : memref<1x64xf32, #tpu.memory_space<vmem>>, vector<1x64xf32>
    %39 = vector.broadcast %38 : vector<1x64xf32> to vector<1024x64xf32>
    %40 = arith.addf %37, %39 : vector<1024x64xf32>
    %cst_18 = arith.constant 0.000000e+00 : f32
    %41 = vector.broadcast %cst_18 : f32 to vector<1024x64xf32>
    %42 = arith.maximumf %40, %41 : vector<1024x64xf32>
    %c1023_i32_19 = arith.constant 1023 : i32
    %43 = tpu.dynamic_rotate %42 by %c1023_i32_19 dim 0 : vector<1024x64xf32>, i32 -> vector<1024x64xf32>
    %44 = arith.maximumf %42, %43 : vector<1024x64xf32>
    %c0_20 = arith.constant 0 : index
    %c0_21 = arith.constant 0 : index
    %45 = vector.load %arg7[%c0_20, %c0_21] : memref<1024x64xf32, #tpu.memory_space<vmem>>, vector<1024x64xf32>
    tpu.vector_store %arg7[%c0_20, %c0_21], %44 {strides = array<i32>} : memref<1024x64xf32, #tpu.memory_space<vmem>>, vector<1024x64xf32>,
    %c0_22 = arith.constant 0 : index
    %c0_23 = arith.constant 0 : index
    %46 = tpu.strided_load %arg7[%c0_22, %c0_23] {strides = array<i32: 2, 1>} : memref<1024x64xf32, #tpu.memory_space<vmem>>, vector<512x64xf32>
    %c0_24 = arith.constant 0 : index
    %c0_25 = arith.constant 0 : index
    %47 = vector.load %arg6[%c0_24, %c0_25] : memref<512x64xf32, #tpu.memory_space<vmem>>, vector<512x64xf32>
    tpu.vector_store %arg6[%c0_24, %c0_25], %46 {strides = array<i32>} : memref<512x64xf32, #tpu.memory_space<vmem>>, vector<512x64xf32>,
    return
  }
  func.func @transform_0(%arg0: i32) -> (i32, i32) {
    %c0_i32 = arith.constant 0 : i32
    %c0_i32_0 = arith.constant 0 : i32
    return %arg0, %c0_i32 : i32, i32
  }
  func.func @transform_1(%arg0: i32) -> (i32, i32) {
    %c0_i32 = arith.constant 0 : i32
    %c0_i32_0 = arith.constant 0 : i32
    %c0_i32_1 = arith.constant 0 : i32
    return %c0_i32, %c0_i32_0 : i32, i32
  }
  func.func @transform_2(%arg0: i32) -> (i32, i32) {
    %c0_i32 = arith.constant 0 : i32
    %c0_i32_0 = arith.constant 0 : i32
    %c0_i32_1 = arith.constant 0 : i32
    return %c0_i32, %c0_i32_0 : i32, i32
  }
  func.func @transform_3(%arg0: i32) -> (i32, i32) {
    %c0_i32 = arith.constant 0 : i32
    %c0_i32_0 = arith.constant 0 : i32
    %c0_i32_1 = arith.constant 0 : i32
    return %c0_i32, %c0_i32_0 : i32, i32
  }
  func.func @transform_4(%arg0: i32) -> (i32, i32) {
    %c0_i32 = arith.constant 0 : i32
    %c0_i32_0 = arith.constant 0 : i32
    %c0_i32_1 = arith.constant 0 : i32
    return %c0_i32, %c0_i32_0 : i32, i32
  }
  func.func @transform_5(%arg0: i32) -> (i32, i32) {
    %c0_i32 = arith.constant 0 : i32
    %c0_i32_0 = arith.constant 0 : i32
    return %arg0, %c0_i32 : i32, i32
  }
}

module attributes {stable_mosaic.version = 11 : i64} {
  func.func @fc_kernel(%arg0: i32, %arg1: memref<8x4096xf32, #tpu.memory_space<vmem>>, %arg2: memref<4096x128xf32, #tpu.memory_space<vmem>>, %arg3: memref<1x128xf32, #tpu.memory_space<vmem>>, %arg4: memref<128x128xf32, #tpu.memory_space<vmem>>, %arg5: memref<1x128xf32, #tpu.memory_space<vmem>>, %arg6: memref<8x128xf32, #tpu.memory_space<vmem>>) attributes {dimension_semantics = [#tpu.dimension_semantics<parallel>], iteration_bounds = array<i64: 1>, scalar_prefetch = 0 : i64, scratch_operands = 0 : i64, tpu.core_type = #tpu.core_type<tc>, window_params = [{transform_indices = @transform_0, window_bounds = array<i64: 8, 4096>}, {pipeline_mode = #tpu.pipeline_mode<synchronous>, transform_indices = @transform_1, window_bounds = array<i64: 4096, 128>}, {pipeline_mode = #tpu.pipeline_mode<synchronous>, transform_indices = @transform_2, window_bounds = array<i64: 1, 128>}, {pipeline_mode = #tpu.pipeline_mode<synchronous>, transform_indices = @transform_3, window_bounds = array<i64: 128, 128>}, {pipeline_mode = #tpu.pipeline_mode<synchronous>, transform_indices = @transform_4, window_bounds = array<i64: 1, 128>}, {transform_indices = @transform_5, window_bounds = array<i64: 8, 128>}]} {
    %c0 = arith.constant 0 : index
    %c0_0 = arith.constant 0 : index
    %0 = vector.load %arg1[%c0, %c0_0] : memref<8x4096xf32, #tpu.memory_space<vmem>>, vector<8x4096xf32>
    %c0_1 = arith.constant 0 : index
    %c0_2 = arith.constant 0 : index
    %1 = vector.load %arg2[%c0_1, %c0_2] : memref<4096x128xf32, #tpu.memory_space<vmem>>, vector<4096x128xf32>
    %cst = arith.constant dense<0.000000e+00> : vector<8x128xf32>
    %2 = tpu.matmul %0, %1, %cst {dimension_numbers = #tpu.dot_dimension_numbers<[1], [0], [0], [1], [0, 0, 1, 1], [], []>} : vector<8x4096xf32>, vector<4096x128xf32>, vector<8x128xf32> -> vector<8x128xf32>
    %c0_3 = arith.constant 0 : index
    %c0_4 = arith.constant 0 : index
    %3 = vector.load %arg3[%c0_3, %c0_4] : memref<1x128xf32, #tpu.memory_space<vmem>>, vector<1x128xf32>
    %4 = vector.broadcast %3 : vector<1x128xf32> to vector<8x128xf32>
    %5 = arith.addf %2, %4 : vector<8x128xf32>
    %cst_5 = arith.constant 0.000000e+00 : f32
    %6 = vector.broadcast %cst_5 : f32 to vector<8x128xf32>
    %7 = arith.maximumf %5, %6 : vector<8x128xf32>
    %c0_6 = arith.constant 0 : index
    %c0_7 = arith.constant 0 : index
    %8 = vector.load %arg4[%c0_6, %c0_7] : memref<128x128xf32, #tpu.memory_space<vmem>>, vector<128x128xf32>
    %cst_8 = arith.constant dense<0.000000e+00> : vector<8x128xf32>
    %9 = tpu.matmul %7, %8, %cst_8 {dimension_numbers = #tpu.dot_dimension_numbers<[1], [0], [0], [1], [0, 0, 1, 1], [], []>} : vector<8x128xf32>, vector<128x128xf32>, vector<8x128xf32> -> vector<8x128xf32>
    %c0_9 = arith.constant 0 : index
    %c0_10 = arith.constant 0 : index
    %10 = vector.load %arg5[%c0_9, %c0_10] : memref<1x128xf32, #tpu.memory_space<vmem>>, vector<1x128xf32>
    %11 = vector.broadcast %10 : vector<1x128xf32> to vector<8x128xf32>
    %12 = arith.addf %9, %11 : vector<8x128xf32>
    %c0_11 = arith.constant 0 : index
    %c0_12 = arith.constant 0 : index
    %13 = vector.load %arg6[%c0_11, %c0_12] : memref<8x128xf32, #tpu.memory_space<vmem>>, vector<8x128xf32>
    tpu.vector_store %arg6[%c0_11, %c0_12], %12 {strides = array<i32>} : memref<8x128xf32, #tpu.memory_space<vmem>>, vector<8x128xf32>,
    return
  }
  func.func @transform_0(%arg0: i32) -> (i32, i32) {
    %c0_i32 = arith.constant 0 : i32
    %c0_i32_0 = arith.constant 0 : i32
    return %arg0, %c0_i32 : i32, i32
  }
  func.func @transform_1(%arg0: i32) -> (i32, i32) {
    %c0_i32 = arith.constant 0 : i32
    %c0_i32_0 = arith.constant 0 : i32
    %c0_i32_1 = arith.constant 0 : i32
    return %c0_i32, %c0_i32_0 : i32, i32
  }
  func.func @transform_2(%arg0: i32) -> (i32, i32) {
    %c0_i32 = arith.constant 0 : i32
    %c0_i32_0 = arith.constant 0 : i32
    %c0_i32_1 = arith.constant 0 : i32
    return %c0_i32, %c0_i32_0 : i32, i32
  }
  func.func @transform_3(%arg0: i32) -> (i32, i32) {
    %c0_i32 = arith.constant 0 : i32
    %c0_i32_0 = arith.constant 0 : i32
    %c0_i32_1 = arith.constant 0 : i32
    return %c0_i32, %c0_i32_0 : i32, i32
  }
  func.func @transform_4(%arg0: i32) -> (i32, i32) {
    %c0_i32 = arith.constant 0 : i32
    %c0_i32_0 = arith.constant 0 : i32
    %c0_i32_1 = arith.constant 0 : i32
    return %c0_i32, %c0_i32_0 : i32, i32
  }
  func.func @transform_5(%arg0: i32) -> (i32, i32) {
    %c0_i32 = arith.constant 0 : i32
    %c0_i32_0 = arith.constant 0 : i32
    return %arg0, %c0_i32 : i32, i32
  }
}

</mosaic_0001>

<bundles_post_ra>
// kernel: exercise_classifier_forward.3
= control target key start
LH: loop header
LB: loop body
LE: loop exit
PB: predicated region body
PF: predicated region fallthrough
CT: control target
= control target key end

     0   :  { %10 = vsyncpa [#allocation3], 0  ;;  %s2985_s18 = smov [#allocation2]   ;;  %s4674_s0 = inlined_call_operand.vmem [shape: f32[8,4096], index: 0, kind: input, shape index: {}]   ;;  %s4675_s1 = inlined_call_operand.vmem [shape: f32[4096,128], index: 1, kind: input, shape index: {}]   ;;  %s4676_s2 = inlined_call_operand.vmem [shape: f32[1,128], index: 2, kind: input, shape index: {}]   ;;  %s4677_s3 = inlined_call_operand.hbm [shape: f32[128,128], index: 3, kind: input, shape index: {}]   ;;  %s4678_s4 = inlined_call_operand.vmem [shape: f32[1,128], index: 4, kind: input, shape index: {}]   ;;  %s4679_s5 = inlined_call_operand.vmem [shape: f32[8,128], index: 5, kind: output, shape index: {}]  }
   0x1   :  { %s22_s19 = sshll.u32 %s2985_s18, 4  ;;  %s2961_s22 = scalar_lea.hbm %s4677_s3, 2048  ;;  %s23_s19 = int_to_ptr.vmem [resolvable:$true] %s22_s19 }
   0x2   :  { %p2962_p0 = scmp.ne.s32.totalorder %s4677_s3, %s2961_s22  ;;  %p2965_p1 = scmp.lt.u32.totalorder %s2961_s22, %s4677_s3 }
   0x4   :  { %p2967_p2 = pnand %p2965_p1, %p2962_p0 }
   0x6   :  { %2970 = shalt.err (!%p2967_p2)
}
   0x7   :  { %s2971_s27 = scalar_lea.vmem %s23_s19, 2048  ;;  %p2976_p4 = scmp.lt.s32.totalorder %s23_s19, %s23_s19 }
   0x8   :  { %p2972_p3 = scmp.ne.s32.totalorder %s23_s19, %s2971_s27  ;;  %p2977_p5 = scmp.lt.s32.totalorder %s2971_s27, %s2971_s27 }
   0xa   :  { %p2978_p6 = por %p2977_p5, %p2976_p4 }
   0xc   :  { %p2979_p7 = pnand %p2978_p6, %p2972_p3 }
   0xe   :  { %2982 = shalt.err (!%p2979_p7)
}
   0xf   :  { %s2986_s28 = smov 128   ;;  %s2987_s29 = smov 8  }
  0x10   :  { %28 = dma.hbm_to_vmem [thread:$0]  %s4677_s3, 2048, %s23_s19, [#allocation3], %s2986_s28, %s2986_s28, %s2987_s29  }
  0x11   :  { %2983 = dma.done.wait [#allocation3], 2048  }
  0x12   :  { %2984 = vsyncadd [#allocation3], 4294965248  ;;  %v82_v0 = vld [vmem:[%s4675_s1 + $0x80] sm:$0xff]  ;;  %v83_v1 = vld [vmem:[%s4675_s1 + $0x88] sm:$0xff]  ;;  %vm2989_vm0 = vmmov 0  }
  0x13   :  { %v66_v2 = vld [vmem:[%s4675_s1] sm:$0xff]  ;;  %v2419_v3 = vpack.c.bf16 %v83_v1, %v82_v0  ;;  %v67_v4 = vld [vmem:[%s4675_s1 + $0x8] sm:$0xff]  ;;  %v84_v11 = vld [vmem:[%s4675_s1 + $0x90] sm:$0xff] }
  0x14   :  { %v114_v5 = vld [vmem:[%s4675_s1 + $0x180] sm:$0xff]  ;;  %v115_v6 = vld [vmem:[%s4675_s1 + $0x188] sm:$0xff]  ;;  %v2421_v7 = vpack.c.bf16 %v67_v4, %v66_v2  ;;  %v85_v13 = vld [vmem:[%s4675_s1 + $0x98] sm:$0xff] }
  0x15   :  { %v2451_v8 = vpack.c.bf16 %v115_v6, %v114_v5  ;;  %v98_v9 = vld [vmem:[%s4675_s1 + $0x100] sm:$0xff]  ;;  %v99_v10 = vld [vmem:[%s4675_s1 + $0x108] sm:$0xff]  ;;  %2420 = vmatprep.subr.bf16.mxu0 %v2419_v3  ;;  %v68_v14 = vld [vmem:[%s4675_s1 + $0x10] sm:$0xff]  ;;  %v2423_v16 = vpack.c.bf16 %v85_v13, %v84_v11 }
  0x16   :  { %v2453_v12 = vpack.c.bf16 %v99_v10, %v98_v9  ;;  %v69_v15 = vld [vmem:[%s4675_s1 + $0x18] sm:$0xff]  ;;  %2422 = vmatpush3.bf16.msra.mxu0 %v2421_v7  ;;  %v116_v18 = vld [vmem:[%s4675_s1 + $0x190] sm:$0xff]  ;;  %v86_v23 = vld [vmem:[%s4675_s1 + $0xa0] sm:$0xff] }
  0x17   :  { %2452 = vmatprep.subr.bf16.mxu1 %v2451_v8  ;;  %v2425_v17 = vpack.c.bf16 %v69_v15, %v68_v14  ;;  %v117_v19 = vld [vmem:[%s4675_s1 + $0x198] sm:$0xff]  ;;  %v100_v20 = vld [vmem:[%s4675_s1 + $0x110] sm:$0xff]  ;;  %v87_v24 = vld [vmem:[%s4675_s1 + $0xa8] sm:$0xff]  ;;  %2424 = vmatprep.subr.bf16.mxu0 %v2423_v16 }
  0x18   :  { %2454 = vmatpush3.bf16.msra.mxu1 %v2453_v12  ;;  %v2455_v21 = vpack.c.bf16 %v117_v19, %v116_v18  ;;  %v101_v22 = vld [vmem:[%s4675_s1 + $0x118] sm:$0xff]  ;;  %v2427_v26 = vpack.c.bf16 %v87_v24, %v86_v23  ;;  %v70_v27 = vld [vmem:[%s4675_s1 + $0x20] sm:$0xff]  ;;  %v71_v28 = vld [vmem:[%s4675_s1 + $0x28] sm:$0xff] }
  0x19   :  { %v2457_v25 = vpack.c.bf16 %v101_v22, %v100_v20  ;;  %v118_v29 = vld [vmem:[%s4675_s1 + $0x1a0] sm:$0xff]  ;;  %v119_v30 = vld [vmem:[%s4675_s1 + $0x1a8] sm:$0xff]  ;;  %v2429_v33 = vpack.c.bf16 %v71_v28, %v70_v27  ;;  %v88_v35 = vld [vmem:[%s4675_s1 + $0xb0] sm:$0xff] }
  0x1a   :  { %2456 = vmatprep.subr.bf16.mxu1 %v2455_v21  ;;  %v102_v31 = vld [vmem:[%s4675_s1 + $0x120] sm:$0xff]  ;;  %v103_v32 = vld [vmem:[%s4675_s1 + $0x128] sm:$0xff]  ;;  %2426 = vmatpush3.bf16.msra.mxu0 %v2425_v17  ;;  %v2459_v34 = vpack.c.bf16 %v119_v30, %v118_v29  ;;  %v89_v36 = vld [vmem:[%s4675_s1 + $0xb8] sm:$0xff] }
  0x1b   :  { %v72_v37 = vld [vmem:[%s4675_s1 + $0x30] sm:$0xff]  ;;  %2428 = vmatprep.subr.bf16.mxu0 %v2427_v26  ;;  %v2461_v38 = vpack.c.bf16 %v103_v32, %v102_v31  ;;  %v2431_v39 = vpack.c.bf16 %v89_v36, %v88_v35  ;;  %v73_v40 = vld [vmem:[%s4675_s1 + $0x38] sm:$0xff]  ;;  %v90_v46 = vld [vmem:[%s4675_s1 + $0xc0] sm:$0xff] }
  0x1c   :  { %2458 = vmatpush3.bf16.msra.mxu1 %v2457_v25  ;;  %v120_v41 = vld [vmem:[%s4675_s1 + $0x1b0] sm:$0xff]  ;;  %v121_v42 = vld [vmem:[%s4675_s1 + $0x1b8] sm:$0xff]  ;;  %v91_v47 = vld [vmem:[%s4675_s1 + $0xc8] sm:$0xff]  ;;  %v2433_v48 = vpack.c.bf16 %v73_v40, %v72_v37 }
  0x1d   :  { %2460 = vmatprep.subr.bf16.mxu1 %v2459_v34  ;;  %v2463_v43 = vpack.c.bf16 %v121_v42, %v120_v41  ;;  %v104_v44 = vld [vmem:[%s4675_s1 + $0x130] sm:$0xff]  ;;  %v105_v45 = vld [vmem:[%s4675_s1 + $0x138] sm:$0xff]  ;;  %v122_v49 = vld [vmem:[%s4675_s1 + $0x1c0] sm:$0xff]  ;;  %v2435_v52 = vpack.c.bf16 %v91_v47, %v90_v46 }
  0x1e   :  { %2430 = vmatpush3.bf16.msra.mxu0 %v2429_v33  ;;  %v123_v50 = vld [vmem:[%s4675_s1 + $0x1c8] sm:$0xff]  ;;  %v2465_v51 = vpack.c.bf16 %v105_v45, %v104_v44  ;;  %v74_v53 = vld [vmem:[%s4675_s1 + $0x40] sm:$0xff]  ;;  %v92_v58 = vld [vmem:[%s4675_s1 + $0xd0] sm:$0xff] }
  0x1f   :  { %2432 = vmatprep.subr.bf16.mxu0 %v2431_v39  ;;  %v75_v54 = vld [vmem:[%s4675_s1 + $0x48] sm:$0xff]  ;;  %v106_v55 = vld [vmem:[%s4675_s1 + $0x140] sm:$0xff]  ;;  %v2467_v56 = vpack.c.bf16 %v123_v50, %v122_v49  ;;  %v93_v59 = vld [vmem:[%s4675_s1 + $0xd8] sm:$0xff] }
  0x20   :  { %2462 = vmatpush3.bf16.msra.mxu1 %v2461_v38  ;;  %v107_v57 = vld [vmem:[%s4675_s1 + $0x148] sm:$0xff]  ;;  %v124_v60 = vld [vmem:[%s4675_s1 + $0x1d0] sm:$0xff]  ;;  %v125_v61 = vld [vmem:[%s4675_s1 + $0x1d8] sm:$0xff]  ;;  %v2437_v62 = vpack.c.bf16 %v75_v54, %v74_v53  ;;  %v2439_v0 = vpack.c.bf16 %v93_v59, %v92_v58 }
  0x21   :  { %2464 = vmatprep.subr.bf16.mxu1 %v2463_v43  ;;  %v2469_v63 = vpack.c.bf16 %v107_v57, %v106_v55  ;;  %v76_v1 = vld [vmem:[%s4675_s1 + $0x50] sm:$0xff]  ;;  %v77_v2 = vld [vmem:[%s4675_s1 + $0x58] sm:$0xff]  ;;  %v2471_v4 = vpack.c.bf16 %v125_v61, %v124_v60  ;;  %v94_v6 = vld [vmem:[%s4675_s1 + $0xe0] sm:$0xff] }
  0x22   :  { %2434 = vmatpush3.bf16.msra.mxu0 %v2433_v48  ;;  %v108_v3 = vld [vmem:[%s4675_s1 + $0x150] sm:$0xff]  ;;  %v109_v5 = vld [vmem:[%s4675_s1 + $0x158] sm:$0xff]  ;;  %v95_v7 = vld [vmem:[%s4675_s1 + $0xe8] sm:$0xff]  ;;  %v2441_v10 = vpack.c.bf16 %v77_v2, %v76_v1 }
  0x23   :  { %2436 = vmatprep.subr.bf16.mxu0 %v2435_v52  ;;  %v126_v8 = vld [vmem:[%s4675_s1 + $0x1e0] sm:$0xff]  ;;  %v127_v9 = vld [vmem:[%s4675_s1 + $0x1e8] sm:$0xff]  ;;  %v2473_v13 = vpack.c.bf16 %v109_v5, %v108_v3  ;;  %v2443_v14 = vpack.c.bf16 %v95_v7, %v94_v6  ;;  %v96_v19 = vld [vmem:[%s4675_s1 + $0xf0] sm:$0xff] }
  0x24   :  { %2466 = vmatpush3.bf16.msra.mxu1 %v2465_v51  ;;  %v78_v11 = vld [vmem:[%s4675_s1 + $0x60] sm:$0xff]  ;;  %v79_v12 = vld [vmem:[%s4675_s1 + $0x68] sm:$0xff]  ;;  %v2475_v18 = vpack.c.bf16 %v127_v9, %v126_v8  ;;  %v97_v20 = vld [vmem:[%s4675_s1 + $0xf8] sm:$0xff] }
  0x25   :  { %2468 = vmatprep.subr.bf16.mxu1 %v2467_v56  ;;  %v110_v15 = vld [vmem:[%s4675_s1 + $0x160] sm:$0xff]  ;;  %v111_v16 = vld [vmem:[%s4675_s1 + $0x168] sm:$0xff]  ;;  %v37_v21 = vld [vmem:[%s4674_s0 + $0x18] sm:$0xff]  ;;  %v2445_v24 = vpack.c.bf16 %v79_v12, %v78_v11  ;;  %v2447_v26 = vpack.c.bf16 %v97_v20, %v96_v19 }
  0x26   :  { %2438 = vmatpush3.bf16.msra.mxu0 %v2437_v62  ;;  %v35_v17 = vld [vmem:[%s4674_s0 + $0x8] sm:$0xff]  ;;  %v128_v22 = vld [vmem:[%s4675_s1 + $0x1f0] sm:$0xff]  ;;  %v129_v23 = vld [vmem:[%s4675_s1 + $0x1f8] sm:$0xff]  ;;  %719 = vmatprep.mubr.f32.mxu1 %v37_v21  ;;  %v2477_v25 = vpack.c.bf16 %v111_v16, %v110_v15 }
  0x27   :  { %2440 = vmatprep.subr.bf16.mxu0 %v2439_v0  ;;  %649 = vmatprep.mubr.f32.mxu0 %v35_v17  ;;  %v80_v27 = vld [vmem:[%s4675_s1 + $0x70] sm:$0xff]  ;;  %v81_v28 = vld [vmem:[%s4675_s1 + $0x78] sm:$0xff]  ;;  %v2479_v30 = vpack.c.bf16 %v129_v23, %v128_v22  ;;  %v146_v32 = vld [vmem:[%s4675_s1 + $0x280] sm:$0xff] }
  0x28   :  { %2470 = vmatpush3.bf16.msra.mxu1 %v2469_v63  ;;  %v112_v29 = vld [vmem:[%s4675_s1 + $0x170] sm:$0xff]  ;;  %v113_v31 = vld [vmem:[%s4675_s1 + $0x178] sm:$0xff]  ;;  %v147_v33 = vld [vmem:[%s4675_s1 + $0x288] sm:$0xff]  ;;  %v2449_v36 = vpack.c.bf16 %v81_v28, %v80_v27 }
  0x29   :  { %2472 = vmatprep.subr.bf16.mxu1 %v2471_v4  ;;  %v178_v34 = vld [vmem:[%s4675_s1 + $0x380] sm:$0xff]  ;;  %v179_v35 = vld [vmem:[%s4675_s1 + $0x388] sm:$0xff]  ;;  %v2481_v37 = vpack.c.bf16 %v113_v31, %v112_v29  ;;  %v2483_v38 = vpack.c.bf16 %v147_v33, %v146_v32  ;;  %v148_v44 = vld [vmem:[%s4675_s1 + $0x290] sm:$0xff] }
  0x2a   :  { %2442 = vmatpush3.bf16.msra.mxu0 %v2441_v10  ;;  %v130_v39 = vld [vmem:[%s4675_s1 + $0x200] sm:$0xff]  ;;  %v131_v40 = vld [vmem:[%s4675_s1 + $0x208] sm:$0xff]  ;;  %v2515_v42 = vpack.c.bf16 %v179_v35, %v178_v34  ;;  %v149_v45 = vld [vmem:[%s4675_s1 + $0x298] sm:$0xff] }
  0x2b   :  { %2444 = vmatprep.subr.bf16.mxu0 %v2443_v14  ;;  %v162_v41 = vld [vmem:[%s4675_s1 + $0x300] sm:$0xff]  ;;  %v163_v43 = vld [vmem:[%s4675_s1 + $0x308] sm:$0xff]  ;;  %v180_v46 = vld [vmem:[%s4675_s1 + $0x390] sm:$0xff]  ;;  %v2485_v49 = vpack.c.bf16 %v131_v40, %v130_v39  ;;  %v2487_v52 = vpack.c.bf16 %v149_v45, %v148_v44 }
  0x2c   :  { %2474 = vmatpush3.bf16.msra.mxu1 %v2473_v13  ;;  %v181_v47 = vld [vmem:[%s4675_s1 + $0x398] sm:$0xff]  ;;  %v34_v48 = vld [vmem:[%s4674_s0] sm:$0xff]  ;;  %v36_v50 = vld [vmem:[%s4674_s0 + $0x10] sm:$0xff]  ;;  %v2517_v51 = vpack.c.bf16 %v163_v43, %v162_v41 }
  0x2d   :  { %2476 = vmatprep.subr.bf16.mxu1 %v2475_v18  ;;  %v132_v53 = vld [vmem:[%s4675_s1 + $0x210] sm:$0xff]  ;;  %v133_v54 = vld [vmem:[%s4675_s1 + $0x218] sm:$0xff]  ;;  %v2519_v56 = vpack.c.bf16 %v181_v47, %v180_v46  ;;  %v150_v58 = vld [vmem:[%s4675_s1 + $0x2a0] sm:$0xff] }
  0x2e   :  { %2446 = vmatpush3.bf16.msra.mxu0 %v2445_v24  ;;  %v164_v55 = vld [vmem:[%s4675_s1 + $0x310] sm:$0xff]  ;;  %v165_v57 = vld [vmem:[%s4675_s1 + $0x318] sm:$0xff]  ;;  %v151_v59 = vld [vmem:[%s4675_s1 + $0x2a8] sm:$0xff]  ;;  %v2489_v62 = vpack.c.bf16 %v133_v54, %v132_v53 }
  0x2f   :  { %2448 = vmatprep.subr.bf16.mxu0 %v2447_v26  ;;  %v182_v60 = vld [vmem:[%s4675_s1 + $0x3a0] sm:$0xff]  ;;  %v183_v61 = vld [vmem:[%s4675_s1 + $0x3a8] sm:$0xff]  ;;  %v2521_v63 = vpack.c.bf16 %v165_v57, %v164_v55  ;;  %v2491_v0 = vpack.c.bf16 %v151_v59, %v150_v58  ;;  %v152_v6 = vld [vmem:[%s4675_s1 + $0x2b0] sm:$0xff] }
  0x30   :  { %2478 = vmatpush3.bf16.msra.mxu1 %v2477_v25  ;;  %v134_v1 = vld [vmem:[%s4675_s1 + $0x220] sm:$0xff]  ;;  %v135_v2 = vld [vmem:[%s4675_s1 + $0x228] sm:$0xff]  ;;  %v2523_v4 = vpack.c.bf16 %v183_v61, %v182_v60  ;;  %v153_v7 = vld [vmem:[%s4675_s1 + $0x2b8] sm:$0xff] }
  0x31   :  { %2480 = vmatprep.subr.bf16.mxu1 %v2479_v30  ;;  %v166_v3 = vld [vmem:[%s4675_s1 + $0x320] sm:$0xff]  ;;  %v167_v5 = vld [vmem:[%s4675_s1 + $0x328] sm:$0xff]  ;;  %v184_v8 = vld [vmem:[%s4675_s1 + $0x3b0] sm:$0xff]  ;;  %v2493_v10 = vpack.c.bf16 %v135_v2, %v134_v1  ;;  %v2495_v12 = vpack.c.bf16 %v153_v7, %v152_v6 }
  0x32   :  { %2450 = vmatpush3.bf16.msra.mxu0 %v2449_v36  ;;  %v185_v9 = vld [vmem:[%s4675_s1 + $0x3b8] sm:$0xff]  ;;  %v2525_v11 = vpack.c.bf16 %v167_v5, %v166_v3  ;;  %v136_v13 = vld [vmem:[%s4675_s1 + $0x230] sm:$0xff]  ;;  %v154_v18 = vld [vmem:[%s4675_s1 + $0x2c0] sm:$0xff] }
  0x33   :  { %2484 = vmatprep.subr.bf16.mxu0 %v2483_v38  ;;  %v137_v14 = vld [vmem:[%s4675_s1 + $0x238] sm:$0xff]  ;;  %v168_v15 = vld [vmem:[%s4675_s1 + $0x330] sm:$0xff]  ;;  %v2527_v16 = vpack.c.bf16 %v185_v9, %v184_v8  ;;  %v155_v19 = vld [vmem:[%s4675_s1 + $0x2c8] sm:$0xff] }
  0x34   :  { %2482 = vmatpush3.bf16.msra.mxu1 %v2481_v37  ;;  %v169_v17 = vld [vmem:[%s4675_s1 + $0x338] sm:$0xff]  ;;  %v186_v20 = vld [vmem:[%s4675_s1 + $0x3c0] sm:$0xff]  ;;  %v187_v21 = vld [vmem:[%s4675_s1 + $0x3c8] sm:$0xff]  ;;  %v2497_v22 = vpack.c.bf16 %v137_v14, %v136_v13  ;;  %v2499_v26 = vpack.c.bf16 %v155_v19, %v154_v18 }
  0x35   :  { %2516 = vmatprep.subr.bf16.mxu1 %v2515_v42  ;;  %650 = vmatmul.mubr.f32.vlgmr.msra.gmra.mrb[0].mxu0 %v34_v48  ;;  %v138_v23 = vld [vmem:[%s4675_s1 + $0x240] sm:$0xff]  ;;  %v39_v24 = vld [vmem:[%s4674_s0 + $0x28] sm:$0xff]  ;;  %v2529_v25 = vpack.c.bf16 %v169_v17, %v168_v15  ;;  %v41_v29 = vld [vmem:[%s4674_s0 + $0x38] sm:$0xff]  ;;  %v2531_v30 = vpack.c.bf16 %v187_v21, %v186_v20 }
  0x36   :  { %2486 = vmatpush3.bf16.msra.mxu0 %v2485_v49  ;;  %v139_v27 = vld [vmem:[%s4675_s1 + $0x248] sm:$0xff]  ;;  %v170_v28 = vld [vmem:[%s4675_s1 + $0x340] sm:$0xff]  ;;  %v156_v32 = vld [vmem:[%s4675_s1 + $0x2d0] sm:$0xff]  ;;  %789 = vmatprep.mubr.f32.mxu0 %v39_v24 }
  0x37   :  { %720 = vmatmul.mubr.f32.vlgmr.msra.gmra.mrb[0].mxu1 %v36_v50  ;;  %2488 = vmatprep.subr.bf16.mxu0 %v2487_v52  ;;  %v171_v31 = vld [vmem:[%s4675_s1 + $0x348] sm:$0xff]  ;;  %v157_v33 = vld [vmem:[%s4675_s1 + $0x2d8] sm:$0xff]  ;;  %v188_v34 = vld [vmem:[%s4675_s1 + $0x3d0] sm:$0xff]  ;;  %v2501_v36 = vpack.c.bf16 %v139_v27, %v138_v23 }
  0x38   :  { %2518 = vmatpush3.bf16.msra.mxu1 %v2517_v51  ;;  %v189_v35 = vld [vmem:[%s4675_s1 + $0x3d8] sm:$0xff]  ;;  %859 = vmatprep.mubr.f32.mxu1 %v41_v29  ;;  %v2533_v37 = vpack.c.bf16 %v171_v31, %v170_v28  ;;  %v2503_v38 = vpack.c.bf16 %v157_v33, %v156_v32  ;;  %v140_v39 = vld [vmem:[%s4675_s1 + $0x250] sm:$0xff]  ;;  %v158_v44 = vld [vmem:[%s4675_s1 + $0x2e0] sm:$0xff] }
  0x39   :  { %2520 = vmatprep.subr.bf16.mxu1 %v2519_v56  ;;  %v141_v40 = vld [vmem:[%s4675_s1 + $0x258] sm:$0xff]  ;;  %v172_v41 = vld [vmem:[%s4675_s1 + $0x350] sm:$0xff]  ;;  %v2535_v42 = vpack.c.bf16 %v189_v35, %v188_v34  ;;  %v159_v45 = vld [vmem:[%s4675_s1 + $0x2e8] sm:$0xff] }
  0x3a   :  { %2490 = vmatpush3.bf16.msra.mxu0 %v2489_v62  ;;  %v173_v43 = vld [vmem:[%s4675_s1 + $0x358] sm:$0xff]  ;;  %v190_v46 = vld [vmem:[%s4675_s1 + $0x3e0] sm:$0xff]  ;;  %v191_v47 = vld [vmem:[%s4675_s1 + $0x3e8] sm:$0xff]  ;;  %v2505_v48 = vpack.c.bf16 %v141_v40, %v140_v39  ;;  %v2507_v50 = vpack.c.bf16 %v159_v45, %v158_v44 }
  0x3b   :  { %2492 = vmatprep.subr.bf16.mxu0 %v2491_v0  ;;  %v2537_v49 = vpack.c.bf16 %v173_v43, %v172_v41  ;;  %v142_v51 = vld [vmem:[%s4675_s1 + $0x260] sm:$0xff]  ;;  %v143_v52 = vld [vmem:[%s4675_s1 + $0x268] sm:$0xff]  ;;  %v2539_v54 = vpack.c.bf16 %v191_v47, %v190_v46  ;;  %v160_v56 = vld [vmem:[%s4675_s1 + $0x2f0] sm:$0xff] }
  0x3c   :  { %2522 = vmatpush3.bf16.msra.mxu1 %v2521_v63  ;;  %v174_v53 = vld [vmem:[%s4675_s1 + $0x360] sm:$0xff]  ;;  %v175_v55 = vld [vmem:[%s4675_s1 + $0x368] sm:$0xff]  ;;  %v161_v57 = vld [vmem:[%s4675_s1 + $0x2f8] sm:$0xff]  ;;  %v2509_v60 = vpack.c.bf16 %v143_v52, %v142_v51 }
  0x3d   :  { %2524 = vmatprep.subr.bf16.mxu1 %v2523_v4  ;;  %v192_v58 = vld [vmem:[%s4675_s1 + $0x3f0] sm:$0xff]  ;;  %v193_v59 = vld [vmem:[%s4675_s1 + $0x3f8] sm:$0xff]  ;;  %v2541_v61 = vpack.c.bf16 %v175_v55, %v174_v53  ;;  %v2511_v62 = vpack.c.bf16 %v161_v57, %v160_v56  ;;  %v210_v4 = vld [vmem:[%s4675_s1 + $0x480] sm:$0xff] }
  0x3e   :  { %2494 = vmatpush3.bf16.msra.mxu0 %v2493_v10  ;;  %v144_v63 = vld [vmem:[%s4675_s1 + $0x270] sm:$0xff]  ;;  %v145_v0 = vld [vmem:[%s4675_s1 + $0x278] sm:$0xff]  ;;  %v2543_v2 = vpack.c.bf16 %v193_v59, %v192_v58  ;;  %v211_v5 = vld [vmem:[%s4675_s1 + $0x488] sm:$0xff] }
  0x3f   :  { %2496 = vmatprep.subr.bf16.mxu0 %v2495_v12  ;;  %v176_v1 = vld [vmem:[%s4675_s1 + $0x370] sm:$0xff]  ;;  %v177_v3 = vld [vmem:[%s4675_s1 + $0x378] sm:$0xff]  ;;  %v242_v6 = vld [vmem:[%s4675_s1 + $0x580] sm:$0xff]  ;;  %v2513_v8 = vpack.c.bf16 %v145_v0, %v144_v63  ;;  %v2547_v10 = vpack.c.bf16 %v211_v5, %v210_v4 }
  0x40   :  { %2526 = vmatpush3.bf16.msra.mxu1 %v2525_v11  ;;  %v243_v7 = vld [vmem:[%s4675_s1 + $0x588] sm:$0xff]  ;;  %v2545_v9 = vpack.c.bf16 %v177_v3, %v176_v1  ;;  %v194_v11 = vld [vmem:[%s4675_s1 + $0x400] sm:$0xff]  ;;  %v213_v17 = vld [vmem:[%s4675_s1 + $0x498] sm:$0xff] }
  0x41   :  { %2528 = vmatprep.subr.bf16.mxu1 %v2527_v16  ;;  %v195_v12 = vld [vmem:[%s4675_s1 + $0x408] sm:$0xff]  ;;  %v226_v13 = vld [vmem:[%s4675_s1 + $0x500] sm:$0xff]  ;;  %v2579_v14 = vpack.c.bf16 %v243_v7, %v242_v6  ;;  %v212_v16 = vld [vmem:[%s4675_s1 + $0x490] sm:$0xff] }
  0x42   :  { %2498 = vmatpush3.bf16.msra.mxu0 %v2497_v22  ;;  %v227_v15 = vld [vmem:[%s4675_s1 + $0x508] sm:$0xff]  ;;  %v244_v18 = vld [vmem:[%s4675_s1 + $0x590] sm:$0xff]  ;;  %v245_v19 = vld [vmem:[%s4675_s1 + $0x598] sm:$0xff]  ;;  %v2549_v21 = vpack.c.bf16 %v195_v12, %v194_v11  ;;  %v2551_v24 = vpack.c.bf16 %v213_v17, %v212_v16 }
  0x43   :  { %2500 = vmatprep.subr.bf16.mxu0 %v2499_v26  ;;  %v38_v20 = vld [vmem:[%s4674_s0 + $0x20] sm:$0xff]  ;;  %v40_v22 = vld [vmem:[%s4674_s0 + $0x30] sm:$0xff]  ;;  %v2581_v23 = vpack.c.bf16 %v227_v15, %v226_v13  ;;  %v197_v26 = vld [vmem:[%s4675_s1 + $0x418] sm:$0xff]  ;;  %v2583_v28 = vpack.c.bf16 %v245_v19, %v244_v18 }
  0x44   :  { %2530 = vmatpush3.bf16.msra.mxu1 %v2529_v25  ;;  %v196_v25 = vld [vmem:[%s4675_s1 + $0x410] sm:$0xff]  ;;  %v229_v29 = vld [vmem:[%s4675_s1 + $0x518] sm:$0xff]  ;;  %v215_v31 = vld [vmem:[%s4675_s1 + $0x4a8] sm:$0xff] }
  0x45   :  { %2532 = vmatprep.subr.bf16.mxu1 %v2531_v30  ;;  %v228_v27 = vld [vmem:[%s4675_s1 + $0x510] sm:$0xff]  ;;  %v214_v30 = vld [vmem:[%s4675_s1 + $0x4a0] sm:$0xff]  ;;  %v247_v33 = vld [vmem:[%s4675_s1 + $0x5a8] sm:$0xff]  ;;  %v2553_v35 = vpack.c.bf16 %v197_v26, %v196_v25 }
  0x46   :  { %2502 = vmatpush3.bf16.msra.mxu0 %v2501_v36  ;;  %v246_v32 = vld [vmem:[%s4675_s1 + $0x5a0] sm:$0xff]  ;;  %v43_v34 = vld [vmem:[%s4674_s0 + $0x48] sm:$0xff]  ;;  %v45_v36 = vld [vmem:[%s4674_s0 + $0x58] sm:$0xff] }
  0x47   :  { %2504 = vmatprep.subr.bf16.mxu0 %v2503_v38  ;;  %v2555_v38 = vpack.c.bf16 %v215_v31, %v214_v30  ;;  %v198_v39 = vld [vmem:[%s4675_s1 + $0x420] sm:$0xff]  ;;  %v199_v40 = vld [vmem:[%s4675_s1 + $0x428] sm:$0xff]  ;;  %v216_v44 = vld [vmem:[%s4675_s1 + $0x4b0] sm:$0xff] }
  0x48   :  { %2534 = vmatpush3.bf16.msra.mxu1 %v2533_v37  ;;  %v2585_v37 = vpack.c.bf16 %v229_v29, %v228_v27  ;;  %v230_v41 = vld [vmem:[%s4675_s1 + $0x520] sm:$0xff]  ;;  %v231_v43 = vld [vmem:[%s4675_s1 + $0x528] sm:$0xff]  ;;  %v217_v45 = vld [vmem:[%s4675_s1 + $0x4b8] sm:$0xff] }
  0x49   :  { %2536 = vmatprep.subr.bf16.mxu1 %v2535_v42  ;;  %v2587_v42 = vpack.c.bf16 %v247_v33, %v246_v32  ;;  %v248_v46 = vld [vmem:[%s4675_s1 + $0x5b0] sm:$0xff]  ;;  %v249_v47 = vld [vmem:[%s4675_s1 + $0x5b8] sm:$0xff]  ;;  %v218_v56 = vld [vmem:[%s4675_s1 + $0x4c0] sm:$0xff] }
  0x4a   :  { %2506 = vmatpush3.bf16.msra.mxu0 %v2505_v48  ;;  %v2557_v48 = vpack.c.bf16 %v199_v40, %v198_v39  ;;  %v200_v51 = vld [vmem:[%s4675_s1 + $0x430] sm:$0xff]  ;;  %v201_v52 = vld [vmem:[%s4675_s1 + $0x438] sm:$0xff]  ;;  %v219_v57 = vld [vmem:[%s4675_s1 + $0x4c8] sm:$0xff] }
  0x4b   :  { %2508 = vmatprep.subr.bf16.mxu0 %v2507_v50  ;;  %v2559_v50 = vpack.c.bf16 %v217_v45, %v216_v44  ;;  %v232_v53 = vld [vmem:[%s4675_s1 + $0x530] sm:$0xff]  ;;  %v233_v55 = vld [vmem:[%s4675_s1 + $0x538] sm:$0xff]  ;;  %v250_v58 = vld [vmem:[%s4675_s1 + $0x5c0] sm:$0xff] }
  0x4c   :  { %2538 = vmatpush3.bf16.msra.mxu1 %v2537_v49  ;;  %v2589_v49 = vpack.c.bf16 %v231_v43, %v230_v41  ;;  %v251_v59 = vld [vmem:[%s4675_s1 + $0x5c8] sm:$0xff]  ;;  %v202_v63 = vld [vmem:[%s4675_s1 + $0x440] sm:$0xff]  ;;  %v220_v4 = vld [vmem:[%s4675_s1 + $0x4d0] sm:$0xff] }
  0x4d   :  { %2540 = vmatprep.subr.bf16.mxu1 %v2539_v54  ;;  %v2591_v54 = vpack.c.bf16 %v249_v47, %v248_v46  ;;  %v203_v0 = vld [vmem:[%s4675_s1 + $0x448] sm:$0xff]  ;;  %v234_v1 = vld [vmem:[%s4675_s1 + $0x540] sm:$0xff]  ;;  %v221_v5 = vld [vmem:[%s4675_s1 + $0x4d8] sm:$0xff] }
  0x4e   :  { %2510 = vmatpush3.bf16.msra.mxu0 %v2509_v60  ;;  %v2561_v60 = vpack.c.bf16 %v201_v52, %v200_v51  ;;  %v235_v3 = vld [vmem:[%s4675_s1 + $0x548] sm:$0xff]  ;;  %v252_v6 = vld [vmem:[%s4675_s1 + $0x5d0] sm:$0xff]  ;;  %v253_v7 = vld [vmem:[%s4675_s1 + $0x5d8] sm:$0xff] }
  0x4f   :  { %2512 = vmatprep.subr.bf16.mxu0 %v2511_v62  ;;  %v2563_v62 = vpack.c.bf16 %v219_v57, %v218_v56  ;;  %v204_v11 = vld [vmem:[%s4675_s1 + $0x450] sm:$0xff]  ;;  %v205_v12 = vld [vmem:[%s4675_s1 + $0x458] sm:$0xff]  ;;  %v222_v16 = vld [vmem:[%s4675_s1 + $0x4e0] sm:$0xff] }
  0x50   :  { %2542 = vmatpush3.bf16.msra.mxu1 %v2541_v61  ;;  %v2593_v61 = vpack.c.bf16 %v233_v55, %v232_v53  ;;  %v236_v13 = vld [vmem:[%s4675_s1 + $0x550] sm:$0xff]  ;;  %v237_v15 = vld [vmem:[%s4675_s1 + $0x558] sm:$0xff]  ;;  %v223_v17 = vld [vmem:[%s4675_s1 + $0x4e8] sm:$0xff] }
  0x51   :  { %2544 = vmatprep.subr.bf16.mxu1 %v2543_v2  ;;  %v2595_v2 = vpack.c.bf16 %v251_v59, %v250_v58  ;;  %v254_v18 = vld [vmem:[%s4675_s1 + $0x5e0] sm:$0xff]  ;;  %v255_v19 = vld [vmem:[%s4675_s1 + $0x5e8] sm:$0xff]  ;;  %v225_v29 = vld [vmem:[%s4675_s1 + $0x4f8] sm:$0xff] }
  0x52   :  { %2514 = vmatpush3.bf16.msra.mxu0 %v2513_v8  ;;  %v2565_v8 = vpack.c.bf16 %v203_v0, %v202_v63  ;;  %v238_v25 = vld [vmem:[%s4675_s1 + $0x560] sm:$0xff]  ;;  %v2603_v26 = vpack.c.bf16 %v255_v19, %v254_v18  ;;  %v239_v27 = vld [vmem:[%s4675_s1 + $0x568] sm:$0xff]  ;;  %v256_v30 = vld [vmem:[%s4675_s1 + $0x5f0] sm:$0xff] }
  0x53   :  { %2548 = vmatprep.subr.bf16.mxu0 %v2547_v10  ;;  %v2567_v10 = vpack.c.bf16 %v221_v5, %v220_v4  ;;  %v257_v31 = vld [vmem:[%s4675_s1 + $0x5f8] sm:$0xff]  ;;  %v2605_v33 = vpack.c.bf16 %v239_v27, %v238_v25  ;;  %v274_v40 = vld [vmem:[%s4675_s1 + $0x680] sm:$0xff]  ;;  %v275_v41 = vld [vmem:[%s4675_s1 + $0x688] sm:$0xff] }
  0x54   :  { %2546 = vmatpush3.bf16.msra.mxu1 %v2545_v9  ;;  %v2597_v9 = vpack.c.bf16 %v235_v3, %v234_v1  ;;  %v241_v39 = vld [vmem:[%s4675_s1 + $0x578] sm:$0xff]  ;;  %v307_v43 = vld [vmem:[%s4675_s1 + $0x788] sm:$0xff]  ;;  %v2611_v46 = vpack.c.bf16 %v275_v41, %v274_v40  ;;  %v258_v47 = vld [vmem:[%s4675_s1 + $0x600] sm:$0xff] }
  0x55   :  { %2580 = vmatprep.subr.bf16.mxu1 %v2579_v14  ;;  %790 = vmatmul.mubr.f32.vlgmr.msra.gmra.mrb[2].mxu0 %v38_v20  ;;  %v2599_v14 = vpack.c.bf16 %v253_v7, %v252_v6  ;;  %v2569_v20 = vpack.c.bf16 %v205_v12, %v204_v11  ;;  %v291_v51 = vld [vmem:[%s4675_s1 + $0x708] sm:$0xff]  ;;  %v276_v52 = vld [vmem:[%s4675_s1 + $0x690] sm:$0xff]  ;;  %v277_v53 = vld [vmem:[%s4675_s1 + $0x698] sm:$0xff] }
  0x56   :  { %2550 = vmatpush3.bf16.msra.mxu0 %v2549_v21  ;;  %929 = vmatprep.mubr.f32.mxu0 %v43_v34  ;;  %v2601_v21 = vpack.c.bf16 %v237_v15, %v236_v13  ;;  %v309_v55 = vld [vmem:[%s4675_s1 + $0x798] sm:$0xff]  ;;  %v42_v56 = vld [vmem:[%s4674_s0 + $0x40] sm:$0xff]  ;;  %v44_v58 = vld [vmem:[%s4674_s0 + $0x50] sm:$0xff] }
  0x57   :  { %860 = vmatmul.mubr.f32.vlgmr.msra.gmra.mrb[2].mxu1 %v40_v22  ;;  %2552 = vmatprep.subr.bf16.mxu0 %v2551_v24  ;;  %v2571_v22 = vpack.c.bf16 %v223_v17, %v222_v16  ;;  %v207_v24 = vld [vmem:[%s4675_s1 + $0x468] sm:$0xff]  ;;  %v292_v63 = vld [vmem:[%s4675_s1 + $0x710] sm:$0xff]  ;;  %v293_v1 = vld [vmem:[%s4675_s1 + $0x718] sm:$0xff] }
  0x58   :  { %2582 = vmatpush3.bf16.msra.mxu1 %v2581_v23  ;;  %999 = vmatprep.mubr.f32.mxu1 %v45_v36  ;;  %v206_v23 = vld [vmem:[%s4675_s1 + $0x460] sm:$0xff]  ;;  %v209_v36 = vld [vmem:[%s4675_s1 + $0x478] sm:$0xff]  ;;  %v279_v3 = vld [vmem:[%s4675_s1 + $0x6a8] sm:$0xff] }
  0x59   :  { %2584 = vmatprep.subr.bf16.mxu1 %v2583_v28  ;;  %v224_v28 = vld [vmem:[%s4675_s1 + $0x4f0] sm:$0xff]  ;;  %v2573_v32 = vpack.c.bf16 %v207_v24, %v206_v23  ;;  %v310_v4 = vld [vmem:[%s4675_s1 + $0x7a0] sm:$0xff]  ;;  %v311_v5 = vld [vmem:[%s4675_s1 + $0x7a8] sm:$0xff] }
  0x5a   :  { %2554 = vmatpush3.bf16.msra.mxu0 %v2553_v35  ;;  %v2575_v34 = vpack.c.bf16 %v225_v29, %v224_v28  ;;  %v208_v35 = vld [vmem:[%s4675_s1 + $0x470] sm:$0xff]  ;;  %v47_v6 = vld [vmem:[%s4674_s0 + $0x68] sm:$0xff]  ;;  %v262_v11 = vld [vmem:[%s4675_s1 + $0x620] sm:$0xff] }
  0x5b   :  { %2556 = vmatprep.subr.bf16.mxu0 %v2555_v38  ;;  %v2607_v38 = vpack.c.bf16 %v257_v31, %v256_v30  ;;  %v2577_v44 = vpack.c.bf16 %v209_v36, %v208_v35  ;;  %v263_v12 = vld [vmem:[%s4675_s1 + $0x628] sm:$0xff]  ;;  %v294_v13 = vld [vmem:[%s4675_s1 + $0x720] sm:$0xff]  ;;  %v280_v16 = vld [vmem:[%s4675_s1 + $0x6b0] sm:$0xff] }
  0x5c   :  { %2586 = vmatpush3.bf16.msra.mxu1 %v2585_v37  ;;  %v240_v37 = vld [vmem:[%s4675_s1 + $0x570] sm:$0xff]  ;;  %v295_v15 = vld [vmem:[%s4675_s1 + $0x728] sm:$0xff]  ;;  %v281_v17 = vld [vmem:[%s4675_s1 + $0x6b8] sm:$0xff] }
  0x5d   :  { %2588 = vmatprep.subr.bf16.mxu1 %v2587_v42  ;;  %v306_v42 = vld [vmem:[%s4675_s1 + $0x780] sm:$0xff]  ;;  %v2609_v45 = vpack.c.bf16 %v241_v39, %v240_v37  ;;  %v312_v18 = vld [vmem:[%s4675_s1 + $0x7b0] sm:$0xff]  ;;  %v313_v19 = vld [vmem:[%s4675_s1 + $0x7b8] sm:$0xff] }
  0x5e   :  { %2558 = vmatpush3.bf16.msra.mxu0 %v2557_v48  ;;  %v259_v48 = vld [vmem:[%s4675_s1 + $0x608] sm:$0xff]  ;;  %v264_v23 = vld [vmem:[%s4675_s1 + $0x630] sm:$0xff]  ;;  %v265_v24 = vld [vmem:[%s4675_s1 + $0x638] sm:$0xff] }
  0x5f   :  { %2560 = vmatprep.subr.bf16.mxu0 %v2559_v50  ;;  %v2643_v50 = vpack.c.bf16 %v307_v43, %v306_v42  ;;  %v2613_v57 = vpack.c.bf16 %v259_v48, %v258_v47  ;;  %v296_v25 = vld [vmem:[%s4675_s1 + $0x730] sm:$0xff]  ;;  %v297_v27 = vld [vmem:[%s4675_s1 + $0x738] sm:$0xff]  ;;  %v282_v28 = vld [vmem:[%s4675_s1 + $0x6c0] sm:$0xff] }
  0x60   :  { %2590 = vmatpush3.bf16.msra.mxu1 %v2589_v49  ;;  %v290_v49 = vld [vmem:[%s4675_s1 + $0x700] sm:$0xff]  ;;  %v283_v29 = vld [vmem:[%s4675_s1 + $0x6c8] sm:$0xff]  ;;  %v284_v40 = vld [vmem:[%s4675_s1 + $0x6d0] sm:$0xff] }
  0x61   :  { %2592 = vmatprep.subr.bf16.mxu1 %v2591_v54  ;;  %v308_v54 = vld [vmem:[%s4675_s1 + $0x790] sm:$0xff]  ;;  %v2645_v59 = vpack.c.bf16 %v291_v51, %v290_v49  ;;  %v314_v30 = vld [vmem:[%s4675_s1 + $0x7c0] sm:$0xff]  ;;  %v315_v31 = vld [vmem:[%s4675_s1 + $0x7c8] sm:$0xff] }
  0x62   :  { %2562 = vmatpush3.bf16.msra.mxu0 %v2561_v60  ;;  %v2615_v60 = vpack.c.bf16 %v277_v53, %v276_v52  ;;  %v2647_v0 = vpack.c.bf16 %v309_v55, %v308_v54  ;;  %v266_v35 = vld [vmem:[%s4675_s1 + $0x640] sm:$0xff]  ;;  %v267_v36 = vld [vmem:[%s4675_s1 + $0x648] sm:$0xff]  ;;  %v285_v41 = vld [vmem:[%s4675_s1 + $0x6d8] sm:$0xff] }
  0x63   :  { %2564 = vmatprep.subr.bf16.mxu0 %v2563_v62  ;;  %v261_v62 = vld [vmem:[%s4675_s1 + $0x618] sm:$0xff]  ;;  %v298_v37 = vld [vmem:[%s4675_s1 + $0x740] sm:$0xff]  ;;  %v299_v39 = vld [vmem:[%s4675_s1 + $0x748] sm:$0xff] }
  0x64   :  { %2594 = vmatpush3.bf16.msra.mxu1 %v2593_v61  ;;  %v260_v61 = vld [vmem:[%s4675_s1 + $0x610] sm:$0xff]  ;;  %v317_v43 = vld [vmem:[%s4675_s1 + $0x7d8] sm:$0xff]  ;;  %v286_v52 = vld [vmem:[%s4675_s1 + $0x6e0] sm:$0xff] }
  0x65   :  { %2596 = vmatprep.subr.bf16.mxu1 %v2595_v2  ;;  %v278_v2 = vld [vmem:[%s4675_s1 + $0x6a0] sm:$0xff]  ;;  %v2617_v7 = vpack.c.bf16 %v261_v62, %v260_v61  ;;  %v316_v42 = vld [vmem:[%s4675_s1 + $0x7d0] sm:$0xff]  ;;  %v269_v48 = vld [vmem:[%s4675_s1 + $0x658] sm:$0xff] }
  0x66   :  { %2566 = vmatpush3.bf16.msra.mxu0 %v2565_v8  ;;  %v49_v8 = vld [vmem:[%s4674_s0 + $0x78] sm:$0xff]  ;;  %v268_v47 = vld [vmem:[%s4675_s1 + $0x650] sm:$0xff]  ;;  %v287_v53 = vld [vmem:[%s4675_s1 + $0x6e8] sm:$0xff] }
  0x67   :  { %2568 = vmatprep.subr.bf16.mxu0 %v2567_v10  ;;  %v2619_v10 = vpack.c.bf16 %v279_v3, %v278_v2  ;;  %v300_v49 = vld [vmem:[%s4675_s1 + $0x750] sm:$0xff]  ;;  %v301_v51 = vld [vmem:[%s4675_s1 + $0x758] sm:$0xff]  ;;  %v318_v54 = vld [vmem:[%s4675_s1 + $0x7e0] sm:$0xff] }
  0x68   :  { %2598 = vmatpush3.bf16.msra.mxu1 %v2597_v9  ;;  %v2649_v9 = vpack.c.bf16 %v293_v1, %v292_v63  ;;  %v319_v55 = vld [vmem:[%s4675_s1 + $0x7e8] sm:$0xff]  ;;  %v302_v61 = vld [vmem:[%s4675_s1 + $0x760] sm:$0xff]  ;;  %v289_v1 = vld [vmem:[%s4675_s1 + $0x6f8] sm:$0xff] }
  0x69   :  { %2600 = vmatprep.subr.bf16.mxu1 %v2599_v14  ;;  %v2651_v14 = vpack.c.bf16 %v311_v5, %v310_v4  ;;  %v2667_v62 = vpack.c.bf16 %v319_v55, %v318_v54  ;;  %v303_v63 = vld [vmem:[%s4675_s1 + $0x768] sm:$0xff]  ;;  %v320_v2 = vld [vmem:[%s4675_s1 + $0x7f0] sm:$0xff]  ;;  %v321_v3 = vld [vmem:[%s4675_s1 + $0x7f8] sm:$0xff] }
  0x6a   :  { %2570 = vmatpush3.bf16.msra.mxu0 %v2569_v20  ;;  %v2621_v20 = vpack.c.bf16 %v263_v12, %v262_v11  ;;  %v2669_v5 = vpack.c.bf16 %v303_v63, %v302_v61  ;;  %v305_v11 = vld [vmem:[%s4675_s1 + $0x778] sm:$0xff]  ;;  %v338_v12 = vld [vmem:[%s4675_s1 + $0x880] sm:$0xff]  ;;  %v376_v54 = vld [vmem:[%s4675_s1 + $0x9b0] sm:$0xff] }
  0x6b   :  { %2572 = vmatprep.subr.bf16.mxu0 %v2571_v22  ;;  %v2623_v22 = vpack.c.bf16 %v281_v17, %v280_v16  ;;  %v377_v55 = vld [vmem:[%s4675_s1 + $0x9b8] sm:$0xff]  ;;  %v360_v61 = vld [vmem:[%s4675_s1 + $0x930] sm:$0xff] }
  0x6c   :  { %2602 = vmatpush3.bf16.msra.mxu1 %v2601_v21  ;;  %v2653_v21 = vpack.c.bf16 %v295_v15, %v294_v13  ;;  %v339_v13 = vld [vmem:[%s4675_s1 + $0x888] sm:$0xff]  ;;  %v361_v63 = vld [vmem:[%s4675_s1 + $0x938] sm:$0xff] }
  0x6d   :  { %2604 = vmatprep.subr.bf16.mxu1 %v2603_v26  ;;  %v2655_v26 = vpack.c.bf16 %v313_v19, %v312_v18  ;;  %v371_v15 = vld [vmem:[%s4675_s1 + $0x988] sm:$0xff]  ;;  %v2675_v18 = vpack.c.bf16 %v339_v13, %v338_v12  ;;  %v322_v19 = vld [vmem:[%s4675_s1 + $0x800] sm:$0xff]  ;;  %v348_v12 = vld [vmem:[%s4675_s1 + $0x8d0] sm:$0xff] }
  0x6e   :  { %2574 = vmatpush3.bf16.msra.mxu0 %v2573_v32  ;;  %v2625_v32 = vpack.c.bf16 %v265_v24, %v264_v23  ;;  %v355_v23 = vld [vmem:[%s4675_s1 + $0x908] sm:$0xff]  ;;  %v340_v24 = vld [vmem:[%s4675_s1 + $0x890] sm:$0xff]  ;;  %v349_v13 = vld [vmem:[%s4675_s1 + $0x8d8] sm:$0xff] }
  0x6f   :  { %2576 = vmatprep.subr.bf16.mxu0 %v2575_v34  ;;  %v2627_v34 = vpack.c.bf16 %v283_v29, %v282_v28  ;;  %v46_v28 = vld [vmem:[%s4674_s0 + $0x60] sm:$0xff] }
  0x70   :  { %2606 = vmatpush3.bf16.msra.mxu1 %v2605_v33  ;;  %v2657_v33 = vpack.c.bf16 %v297_v27, %v296_v25  ;;  %v341_v25 = vld [vmem:[%s4675_s1 + $0x898] sm:$0xff] }
  0x71   :  { %2608 = vmatprep.subr.bf16.mxu1 %v2607_v38  ;;  %v2659_v38 = vpack.c.bf16 %v315_v31, %v314_v30  ;;  %v373_v27 = vld [vmem:[%s4675_s1 + $0x998] sm:$0xff]  ;;  %v48_v30 = vld [vmem:[%s4674_s0 + $0x70] sm:$0xff] }
  0x72   :  { %2578 = vmatpush3.bf16.msra.mxu0 %v2577_v44  ;;  %v2629_v44 = vpack.c.bf16 %v267_v36, %v266_v35  ;;  %v356_v35 = vld [vmem:[%s4675_s1 + $0x910] sm:$0xff] }
  0x73   :  { %2612 = vmatprep.subr.bf16.mxu0 %v2611_v46  ;;  %v2631_v46 = vpack.c.bf16 %v285_v41, %v284_v40  ;;  %v374_v40 = vld [vmem:[%s4675_s1 + $0x9a0] sm:$0xff]  ;;  %v375_v41 = vld [vmem:[%s4675_s1 + $0x9a8] sm:$0xff] }
  0x74   :  { %2610 = vmatpush3.bf16.msra.mxu1 %v2609_v45  ;;  %v2661_v45 = vpack.c.bf16 %v299_v39, %v298_v37  ;;  %v357_v37 = vld [vmem:[%s4675_s1 + $0x918] sm:$0xff]  ;;  %v343_v39 = vld [vmem:[%s4675_s1 + $0x8a8] sm:$0xff] }
  0x75   :  { %2644 = vmatprep.subr.bf16.mxu1 %v2643_v50  ;;  %930 = vmatmul.mubr.f32.vlgmr.msra.gmra.mrb[4].mxu0 %v42_v56  ;;  %v2663_v50 = vpack.c.bf16 %v317_v43, %v316_v42  ;;  %v2633_v56 = vpack.c.bf16 %v269_v48, %v268_v47  ;;  %v51_v42 = vld [vmem:[%s4674_s0 + $0x88] sm:$0xff]  ;;  %v326_v47 = vld [vmem:[%s4675_s1 + $0x820] sm:$0xff] }
  0x76   :  { %2614 = vmatpush3.bf16.msra.mxu0 %v2613_v57  ;;  %1069 = vmatprep.mubr.f32.mxu0 %v47_v6  ;;  %v2665_v57 = vpack.c.bf16 %v301_v51, %v300_v49  ;;  %v327_v48 = vld [vmem:[%s4675_s1 + $0x828] sm:$0xff]  ;;  %v358_v49 = vld [vmem:[%s4675_s1 + $0x920] sm:$0xff] }
  0x77   :  { %1000 = vmatmul.mubr.f32.vlgmr.msra.gmra.mrb[4].mxu1 %v44_v58  ;;  %2616 = vmatprep.subr.bf16.mxu0 %v2615_v60  ;;  %v2635_v58 = vpack.c.bf16 %v287_v53, %v286_v52  ;;  %v271_v60 = vld [vmem:[%s4675_s1 + $0x668] sm:$0xff]  ;;  %v344_v52 = vld [vmem:[%s4675_s1 + $0x8b0] sm:$0xff]  ;;  %v345_v53 = vld [vmem:[%s4675_s1 + $0x8b8] sm:$0xff] }
  0x78   :  { %2646 = vmatpush3.bf16.msra.mxu1 %v2645_v59  ;;  %1139 = vmatprep.mubr.f32.mxu1 %v49_v8  ;;  %v270_v59 = vld [vmem:[%s4675_s1 + $0x660] sm:$0xff]  ;;  %v273_v8 = vld [vmem:[%s4675_s1 + $0x678] sm:$0xff]  ;;  %v359_v51 = vld [vmem:[%s4675_s1 + $0x928] sm:$0xff] }
  0x79   :  { %2648 = vmatprep.subr.bf16.mxu1 %v2647_v0  ;;  %v288_v0 = vld [vmem:[%s4675_s1 + $0x6f0] sm:$0xff]  ;;  %v2637_v4 = vpack.c.bf16 %v271_v60, %v270_v59  ;;  %v329_v60 = vld [vmem:[%s4675_s1 + $0x838] sm:$0xff] }
  0x7a   :  { %2618 = vmatpush3.bf16.msra.mxu0 %v2617_v7  ;;  %v2639_v6 = vpack.c.bf16 %v289_v1, %v288_v0  ;;  %v272_v7 = vld [vmem:[%s4675_s1 + $0x670] sm:$0xff]  ;;  %v346_v0 = vld [vmem:[%s4675_s1 + $0x8c0] sm:$0xff]  ;;  %v347_v1 = vld [vmem:[%s4675_s1 + $0x8c8] sm:$0xff] }
  0x7b   :  { %2620 = vmatprep.subr.bf16.mxu0 %v2619_v10  ;;  %v2671_v10 = vpack.c.bf16 %v321_v3, %v320_v2  ;;  %v2641_v16 = vpack.c.bf16 %v273_v8, %v272_v7  ;;  %v328_v59 = vld [vmem:[%s4675_s1 + $0x830] sm:$0xff]  ;;  %v378_v2 = vld [vmem:[%s4675_s1 + $0x9c0] sm:$0xff]  ;;  %v379_v3 = vld [vmem:[%s4675_s1 + $0x9c8] sm:$0xff] }
  0x7c   :  { %2650 = vmatpush3.bf16.msra.mxu1 %v2649_v9  ;;  %v304_v9 = vld [vmem:[%s4675_s1 + $0x770] sm:$0xff]  ;;  %v330_v7 = vld [vmem:[%s4675_s1 + $0x840] sm:$0xff]  ;;  %v331_v8 = vld [vmem:[%s4675_s1 + $0x848] sm:$0xff] }
  0x7d   :  { %2652 = vmatprep.subr.bf16.mxu1 %v2651_v14  ;;  %v370_v14 = vld [vmem:[%s4675_s1 + $0x980] sm:$0xff]  ;;  %v2673_v17 = vpack.c.bf16 %v305_v11, %v304_v9  ;;  %v363_v11 = vld [vmem:[%s4675_s1 + $0x948] sm:$0xff] }
  0x7e   :  { %2622 = vmatpush3.bf16.msra.mxu0 %v2621_v20  ;;  %v323_v20 = vld [vmem:[%s4675_s1 + $0x808] sm:$0xff]  ;;  %v362_v9 = vld [vmem:[%s4675_s1 + $0x940] sm:$0xff] }
  0x7f   :  { %2624 = vmatprep.subr.bf16.mxu0 %v2623_v22  ;;  %v2707_v22 = vpack.c.bf16 %v371_v15, %v370_v14  ;;  %v2677_v29 = vpack.c.bf16 %v323_v20, %v322_v19  ;;  %v380_v14 = vld [vmem:[%s4675_s1 + $0x9d0] sm:$0xff]  ;;  %v381_v15 = vld [vmem:[%s4675_s1 + $0x9d8] sm:$0xff] }
  0x80   :  { %2654 = vmatpush3.bf16.msra.mxu1 %v2653_v21  ;;  %v354_v21 = vld [vmem:[%s4675_s1 + $0x900] sm:$0xff]  ;;  %v332_v19 = vld [vmem:[%s4675_s1 + $0x850] sm:$0xff]  ;;  %v333_v20 = vld [vmem:[%s4675_s1 + $0x858] sm:$0xff] }
  0x81   :  { %2656 = vmatprep.subr.bf16.mxu1 %v2655_v26  ;;  %v372_v26 = vld [vmem:[%s4675_s1 + $0x990] sm:$0xff]  ;;  %v2709_v31 = vpack.c.bf16 %v355_v23, %v354_v21  ;;  %v365_v23 = vld [vmem:[%s4675_s1 + $0x958] sm:$0xff] }
  0x82   :  { %2626 = vmatpush3.bf16.msra.mxu0 %v2625_v32  ;;  %v2679_v32 = vpack.c.bf16 %v341_v25, %v340_v24  ;;  %v2711_v36 = vpack.c.bf16 %v373_v27, %v372_v26  ;;  %v364_v21 = vld [vmem:[%s4675_s1 + $0x950] sm:$0xff]  ;;  %v350_v24 = vld [vmem:[%s4675_s1 + $0x8e0] sm:$0xff]  ;;  %v351_v25 = vld [vmem:[%s4675_s1 + $0x8e8] sm:$0xff] }
  0x83   :  { %2628 = vmatprep.subr.bf16.mxu0 %v2627_v34  ;;  %v325_v34 = vld [vmem:[%s4675_s1 + $0x818] sm:$0xff]  ;;  %v382_v26 = vld [vmem:[%s4675_s1 + $0x9e0] sm:$0xff]  ;;  %v383_v27 = vld [vmem:[%s4675_s1 + $0x9e8] sm:$0xff] }
  0x84   :  { %2658 = vmatpush3.bf16.msra.mxu1 %v2657_v33  ;;  %v324_v33 = vld [vmem:[%s4675_s1 + $0x810] sm:$0xff] }
  0x85   :  { %2660 = vmatprep.subr.bf16.mxu1 %v2659_v38  ;;  %v342_v38 = vld [vmem:[%s4675_s1 + $0x8a0] sm:$0xff]  ;;  %v2681_v43 = vpack.c.bf16 %v325_v34, %v324_v33  ;;  %v2731_v34 = vpack.c.bf16 %v383_v27, %v382_v26  ;;  %v440_v26 = vld [vmem:[%s4675_s1 + $0xbb0] sm:$0xff]  ;;  %v441_v27 = vld [vmem:[%s4675_s1 + $0xbb8] sm:$0xff] }
  0x86   :  { %2630 = vmatpush3.bf16.msra.mxu0 %v2629_v44  ;;  %v53_v44 = vld [vmem:[%s4674_s0 + $0x98] sm:$0xff]  ;;  %v366_v33 = vld [vmem:[%s4675_s1 + $0x960] sm:$0xff] }
  0x87   :  { %2632 = vmatprep.subr.bf16.mxu0 %v2631_v46  ;;  %v2683_v46 = vpack.c.bf16 %v343_v39, %v342_v38  ;;  %v384_v38 = vld [vmem:[%s4675_s1 + $0x9f0] sm:$0xff]  ;;  %v385_v39 = vld [vmem:[%s4675_s1 + $0x9f8] sm:$0xff] }
  0x88   :  { %2662 = vmatpush3.bf16.msra.mxu1 %v2661_v45  ;;  %v2713_v45 = vpack.c.bf16 %v357_v37, %v356_v35  ;;  %v367_v35 = vld [vmem:[%s4675_s1 + $0x968] sm:$0xff]  ;;  %v353_v37 = vld [vmem:[%s4675_s1 + $0x8f8] sm:$0xff] }
  0x89   :  { %2664 = vmatprep.subr.bf16.mxu1 %v2663_v50  ;;  %v2715_v50 = vpack.c.bf16 %v375_v41, %v374_v40  ;;  %v2733_v41 = vpack.c.bf16 %v367_v35, %v366_v33  ;;  %v424_v33 = vld [vmem:[%s4675_s1 + $0xb30] sm:$0xff]  ;;  %v425_v35 = vld [vmem:[%s4675_s1 + $0xb38] sm:$0xff] }
  0x8a   :  { %2634 = vmatpush3.bf16.msra.mxu0 %v2633_v56  ;;  %v2685_v56 = vpack.c.bf16 %v327_v48, %v326_v47  ;;  %v369_v47 = vld [vmem:[%s4675_s1 + $0x978] sm:$0xff]  ;;  %v402_v48 = vld [vmem:[%s4675_s1 + $0xa80] sm:$0xff] }
  0x8b   :  { %2636 = vmatprep.subr.bf16.mxu0 %v2635_v58  ;;  %v2687_v58 = vpack.c.bf16 %v345_v53, %v344_v52 }
  0x8c   :  { %2666 = vmatpush3.bf16.msra.mxu1 %v2665_v57  ;;  %v2717_v57 = vpack.c.bf16 %v359_v51, %v358_v49  ;;  %v403_v49 = vld [vmem:[%s4675_s1 + $0xa88] sm:$0xff] }
  0x8d   :  { %2668 = vmatprep.subr.bf16.mxu1 %v2667_v62  ;;  %v2719_v62 = vpack.c.bf16 %v377_v55, %v376_v54  ;;  %v435_v51 = vld [vmem:[%s4675_s1 + $0xb88] sm:$0xff]  ;;  %v2739_v54 = vpack.c.bf16 %v403_v49, %v402_v48  ;;  %v386_v55 = vld [vmem:[%s4675_s1 + $0xa00] sm:$0xff]  ;;  %v412_v48 = vld [vmem:[%s4675_s1 + $0xad0] sm:$0xff] }
  0x8e   :  { %2638 = vmatpush3.bf16.msra.mxu0 %v2637_v4  ;;  %v2689_v4 = vpack.c.bf16 %v329_v60, %v328_v59  ;;  %v419_v59 = vld [vmem:[%s4675_s1 + $0xb08] sm:$0xff]  ;;  %v404_v60 = vld [vmem:[%s4675_s1 + $0xa90] sm:$0xff]  ;;  %v413_v49 = vld [vmem:[%s4675_s1 + $0xad8] sm:$0xff] }
  0x8f   :  { %2640 = vmatprep.subr.bf16.mxu0 %v2639_v6  ;;  %v2691_v6 = vpack.c.bf16 %v347_v1, %v346_v0  ;;  %v50_v0 = vld [vmem:[%s4674_s0 + $0x80] sm:$0xff] }
  0x90   :  { %2670 = vmatpush3.bf16.msra.mxu1 %v2669_v5  ;;  %v2721_v5 = vpack.c.bf16 %v361_v63, %v360_v61  ;;  %v405_v61 = vld [vmem:[%s4675_s1 + $0xa98] sm:$0xff] }
  0x91   :  { %2672 = vmatprep.subr.bf16.mxu1 %v2671_v10  ;;  %v2723_v10 = vpack.c.bf16 %v379_v3, %v378_v2  ;;  %v437_v63 = vld [vmem:[%s4675_s1 + $0xb98] sm:$0xff]  ;;  %v52_v2 = vld [vmem:[%s4674_s0 + $0x90] sm:$0xff] }
  0x92   :  { %2642 = vmatpush3.bf16.msra.mxu0 %v2641_v16  ;;  %v2693_v16 = vpack.c.bf16 %v331_v8, %v330_v7  ;;  %v420_v7 = vld [vmem:[%s4675_s1 + $0xb10] sm:$0xff] }
  0x93   :  { %2676 = vmatprep.subr.bf16.mxu0 %v2675_v18  ;;  %v2695_v18 = vpack.c.bf16 %v349_v13, %v348_v12  ;;  %v438_v12 = vld [vmem:[%s4675_s1 + $0xba0] sm:$0xff]  ;;  %v439_v13 = vld [vmem:[%s4675_s1 + $0xba8] sm:$0xff] }
  0x94   :  { %2674 = vmatpush3.bf16.msra.mxu1 %v2673_v17  ;;  %v2725_v17 = vpack.c.bf16 %v363_v11, %v362_v9  ;;  %v421_v9 = vld [vmem:[%s4675_s1 + $0xb18] sm:$0xff]  ;;  %v407_v11 = vld [vmem:[%s4675_s1 + $0xaa8] sm:$0xff] }
  0x95   :  { %2708 = vmatprep.subr.bf16.mxu1 %v2707_v22  ;;  %1070 = vmatmul.mubr.f32.vlgmr.msra.gmra.mrb[6].mxu0 %v46_v28  ;;  %v2727_v22 = vpack.c.bf16 %v381_v15, %v380_v14  ;;  %v2697_v28 = vpack.c.bf16 %v333_v20, %v332_v19  ;;  %v55_v14 = vld [vmem:[%s4674_s0 + $0xa8] sm:$0xff]  ;;  %v390_v19 = vld [vmem:[%s4675_s1 + $0xa20] sm:$0xff] }
  0x96   :  { %2678 = vmatpush3.bf16.msra.mxu0 %v2677_v29  ;;  %1209 = vmatprep.mubr.f32.mxu0 %v51_v42  ;;  %v2729_v29 = vpack.c.bf16 %v365_v23, %v364_v21  ;;  %v391_v20 = vld [vmem:[%s4675_s1 + $0xa28] sm:$0xff]  ;;  %v422_v21 = vld [vmem:[%s4675_s1 + $0xb20] sm:$0xff] }
  0x97   :  { %1140 = vmatmul.mubr.f32.vlgmr.msra.gmra.mrb[6].mxu1 %v48_v30  ;;  %2680 = vmatprep.subr.bf16.mxu0 %v2679_v32  ;;  %v2699_v30 = vpack.c.bf16 %v351_v25, %v350_v24  ;;  %v335_v32 = vld [vmem:[%s4675_s1 + $0x868] sm:$0xff]  ;;  %v408_v24 = vld [vmem:[%s4675_s1 + $0xab0] sm:$0xff]  ;;  %v409_v25 = vld [vmem:[%s4675_s1 + $0xab8] sm:$0xff] }
  0x98   :  { %2710 = vmatpush3.bf16.msra.mxu1 %v2709_v31  ;;  %1279 = vmatprep.mubr.f32.mxu1 %v53_v44  ;;  %v334_v31 = vld [vmem:[%s4675_s1 + $0x860] sm:$0xff]  ;;  %v337_v44 = vld [vmem:[%s4675_s1 + $0x878] sm:$0xff]  ;;  %v423_v23 = vld [vmem:[%s4675_s1 + $0xb28] sm:$0xff] }
  0x99   :  { %2712 = vmatprep.subr.bf16.mxu1 %v2711_v36  ;;  %v352_v36 = vld [vmem:[%s4675_s1 + $0x8f0] sm:$0xff]  ;;  %v2701_v40 = vpack.c.bf16 %v335_v32, %v334_v31  ;;  %v393_v32 = vld [vmem:[%s4675_s1 + $0xa38] sm:$0xff] }
  0x9a   :  { %2682 = vmatpush3.bf16.msra.mxu0 %v2681_v43  ;;  %v2703_v42 = vpack.c.bf16 %v353_v37, %v352_v36  ;;  %v336_v43 = vld [vmem:[%s4675_s1 + $0x870] sm:$0xff]  ;;  %v410_v36 = vld [vmem:[%s4675_s1 + $0xac0] sm:$0xff]  ;;  %v411_v37 = vld [vmem:[%s4675_s1 + $0xac8] sm:$0xff] }
  0x9b   :  { %2684 = vmatprep.subr.bf16.mxu0 %v2683_v46  ;;  %v2735_v46 = vpack.c.bf16 %v385_v39, %v384_v38  ;;  %v2705_v52 = vpack.c.bf16 %v337_v44, %v336_v43  ;;  %v392_v31 = vld [vmem:[%s4675_s1 + $0xa30] sm:$0xff]  ;;  %v442_v38 = vld [vmem:[%s4675_s1 + $0xbc0] sm:$0xff]  ;;  %v443_v39 = vld [vmem:[%s4675_s1 + $0xbc8] sm:$0xff] }
  0x9c   :  { %2714 = vmatpush3.bf16.msra.mxu1 %v2713_v45  ;;  %v368_v45 = vld [vmem:[%s4675_s1 + $0x970] sm:$0xff]  ;;  %v394_v43 = vld [vmem:[%s4675_s1 + $0xa40] sm:$0xff]  ;;  %v395_v44 = vld [vmem:[%s4675_s1 + $0xa48] sm:$0xff] }
  0x9d   :  { %2716 = vmatprep.subr.bf16.mxu1 %v2715_v50  ;;  %v434_v50 = vld [vmem:[%s4675_s1 + $0xb80] sm:$0xff]  ;;  %v2737_v53 = vpack.c.bf16 %v369_v47, %v368_v45  ;;  %v427_v47 = vld [vmem:[%s4675_s1 + $0xb48] sm:$0xff] }
  0x9e   :  { %2686 = vmatpush3.bf16.msra.mxu0 %v2685_v56  ;;  %v387_v56 = vld [vmem:[%s4675_s1 + $0xa08] sm:$0xff]  ;;  %v426_v45 = vld [vmem:[%s4675_s1 + $0xb40] sm:$0xff] }
  0x9f   :  { %2688 = vmatprep.subr.bf16.mxu0 %v2687_v58  ;;  %v2771_v58 = vpack.c.bf16 %v435_v51, %v434_v50  ;;  %v2741_v1 = vpack.c.bf16 %v387_v56, %v386_v55  ;;  %v444_v50 = vld [vmem:[%s4675_s1 + $0xbd0] sm:$0xff]  ;;  %v445_v51 = vld [vmem:[%s4675_s1 + $0xbd8] sm:$0xff] }
  0xa0   :  { %2718 = vmatpush3.bf16.msra.mxu1 %v2717_v57  ;;  %v418_v57 = vld [vmem:[%s4675_s1 + $0xb00] sm:$0xff]  ;;  %v396_v55 = vld [vmem:[%s4675_s1 + $0xa50] sm:$0xff]  ;;  %v397_v56 = vld [vmem:[%s4675_s1 + $0xa58] sm:$0xff] }
  0xa1   :  { %2720 = vmatprep.subr.bf16.mxu1 %v2719_v62  ;;  %v436_v62 = vld [vmem:[%s4675_s1 + $0xb90] sm:$0xff]  ;;  %v2773_v3 = vpack.c.bf16 %v419_v59, %v418_v57  ;;  %v429_v59 = vld [vmem:[%s4675_s1 + $0xb58] sm:$0xff] }
  0xa2   :  { %2690 = vmatpush3.bf16.msra.mxu0 %v2689_v4  ;;  %v2743_v4 = vpack.c.bf16 %v405_v61, %v404_v60  ;;  %v2775_v8 = vpack.c.bf16 %v437_v63, %v436_v62  ;;  %v428_v57 = vld [vmem:[%s4675_s1 + $0xb50] sm:$0xff]  ;;  %v414_v60 = vld [vmem:[%s4675_s1 + $0xae0] sm:$0xff]  ;;  %v415_v61 = vld [vmem:[%s4675_s1 + $0xae8] sm:$0xff] }
  0xa3   :  { %2692 = vmatprep.subr.bf16.mxu0 %v2691_v6  ;;  %v389_v6 = vld [vmem:[%s4675_s1 + $0xa18] sm:$0xff]  ;;  %v446_v62 = vld [vmem:[%s4675_s1 + $0xbe0] sm:$0xff]  ;;  %v447_v63 = vld [vmem:[%s4675_s1 + $0xbe8] sm:$0xff] }
  0xa4   :  { %2722 = vmatpush3.bf16.msra.mxu1 %v2721_v5  ;;  %v388_v5 = vld [vmem:[%s4675_s1 + $0xa10] sm:$0xff] }
  0xa5   :  { %2724 = vmatprep.subr.bf16.mxu1 %v2723_v10  ;;  %v406_v10 = vld [vmem:[%s4675_s1 + $0xaa0] sm:$0xff]  ;;  %v2745_v15 = vpack.c.bf16 %v389_v6, %v388_v5  ;;  %v2795_v6 = vpack.c.bf16 %v447_v63, %v446_v62  ;;  %v504_v62 = vld [vmem:[%s4675_s1 + $0xdb0] sm:$0xff]  ;;  %v505_v63 = vld [vmem:[%s4675_s1 + $0xdb8] sm:$0xff] }
  0xa6   :  { %2694 = vmatpush3.bf16.msra.mxu0 %v2693_v16  ;;  %v57_v16 = vld [vmem:[%s4674_s0 + $0xb8] sm:$0xff]  ;;  %v430_v5 = vld [vmem:[%s4675_s1 + $0xb60] sm:$0xff] }
  0xa7   :  { %2696 = vmatprep.subr.bf16.mxu0 %v2695_v18  ;;  %v2747_v18 = vpack.c.bf16 %v407_v11, %v406_v10  ;;  %v448_v10 = vld [vmem:[%s4675_s1 + $0xbf0] sm:$0xff]  ;;  %v449_v11 = vld [vmem:[%s4675_s1 + $0xbf8] sm:$0xff] }
  0xa8   :  { %2726 = vmatpush3.bf16.msra.mxu1 %v2725_v17  ;;  %v2777_v17 = vpack.c.bf16 %v421_v9, %v420_v7  ;;  %v431_v7 = vld [vmem:[%s4675_s1 + $0xb68] sm:$0xff]  ;;  %v417_v9 = vld [vmem:[%s4675_s1 + $0xaf8] sm:$0xff] }
  0xa9   :  { %2728 = vmatprep.subr.bf16.mxu1 %v2727_v22  ;;  %v2779_v22 = vpack.c.bf16 %v439_v13, %v438_v12  ;;  %v2797_v13 = vpack.c.bf16 %v431_v7, %v430_v5  ;;  %v488_v5 = vld [vmem:[%s4675_s1 + $0xd30] sm:$0xff]  ;;  %v489_v7 = vld [vmem:[%s4675_s1 + $0xd38] sm:$0xff] }
  0xaa   :  { %2698 = vmatpush3.bf16.msra.mxu0 %v2697_v28  ;;  %v2749_v28 = vpack.c.bf16 %v391_v20, %v390_v19  ;;  %v433_v19 = vld [vmem:[%s4675_s1 + $0xb78] sm:$0xff]  ;;  %v466_v20 = vld [vmem:[%s4675_s1 + $0xc80] sm:$0xff] }
  0xab   :  { %2700 = vmatprep.subr.bf16.mxu0 %v2699_v30  ;;  %v2751_v30 = vpack.c.bf16 %v409_v25, %v408_v24 }
  0xac   :  { %2730 = vmatpush3.bf16.msra.mxu1 %v2729_v29  ;;  %v2781_v29 = vpack.c.bf16 %v423_v23, %v422_v21  ;;  %v467_v21 = vld [vmem:[%s4675_s1 + $0xc88] sm:$0xff] }
  0xad   :  { %2732 = vmatprep.subr.bf16.mxu1 %v2731_v34  ;;  %v2783_v34 = vpack.c.bf16 %v441_v27, %v440_v26  ;;  %v499_v23 = vld [vmem:[%s4675_s1 + $0xd88] sm:$0xff]  ;;  %v2803_v26 = vpack.c.bf16 %v467_v21, %v466_v20  ;;  %v450_v27 = vld [vmem:[%s4675_s1 + $0xc00] sm:$0xff]  ;;  %v476_v20 = vld [vmem:[%s4675_s1 + $0xcd0] sm:$0xff] }
  0xae   :  { %2702 = vmatpush3.bf16.msra.mxu0 %v2701_v40  ;;  %v2753_v40 = vpack.c.bf16 %v393_v32, %v392_v31  ;;  %v483_v31 = vld [vmem:[%s4675_s1 + $0xd08] sm:$0xff]  ;;  %v468_v32 = vld [vmem:[%s4675_s1 + $0xc90] sm:$0xff]  ;;  %v477_v21 = vld [vmem:[%s4675_s1 + $0xcd8] sm:$0xff] }
  0xaf   :  { %2704 = vmatprep.subr.bf16.mxu0 %v2703_v42  ;;  %v2755_v42 = vpack.c.bf16 %v411_v37, %v410_v36  ;;  %v54_v36 = vld [vmem:[%s4674_s0 + $0xa0] sm:$0xff] }
  0xb0   :  { %2734 = vmatpush3.bf16.msra.mxu1 %v2733_v41  ;;  %v2785_v41 = vpack.c.bf16 %v425_v35, %v424_v33  ;;  %v469_v33 = vld [vmem:[%s4675_s1 + $0xc98] sm:$0xff] }
  0xb1   :  { %2736 = vmatprep.subr.bf16.mxu1 %v2735_v46  ;;  %v2787_v46 = vpack.c.bf16 %v443_v39, %v442_v38  ;;  %v501_v35 = vld [vmem:[%s4675_s1 + $0xd98] sm:$0xff]  ;;  %v56_v38 = vld [vmem:[%s4674_s0 + $0xb0] sm:$0xff] }
  0xb2   :  { %2706 = vmatpush3.bf16.msra.mxu0 %v2705_v52  ;;  %v2757_v52 = vpack.c.bf16 %v395_v44, %v394_v43  ;;  %v484_v43 = vld [vmem:[%s4675_s1 + $0xd10] sm:$0xff] }
  0xb3   :  { %2740 = vmatprep.subr.bf16.mxu0 %v2739_v54  ;;  %v2759_v54 = vpack.c.bf16 %v413_v49, %v412_v48  ;;  %v502_v48 = vld [vmem:[%s4675_s1 + $0xda0] sm:$0xff]  ;;  %v503_v49 = vld [vmem:[%s4675_s1 + $0xda8] sm:$0xff] }
  0xb4   :  { %2738 = vmatpush3.bf16.msra.mxu1 %v2737_v53  ;;  %v2789_v53 = vpack.c.bf16 %v427_v47, %v426_v45  ;;  %v485_v45 = vld [vmem:[%s4675_s1 + $0xd18] sm:$0xff]  ;;  %v471_v47 = vld [vmem:[%s4675_s1 + $0xca8] sm:$0xff] }
  0xb5   :  { %2772 = vmatprep.subr.bf16.mxu1 %v2771_v58  ;;  %1210 = vmatmul.mubr.f32.vlgmr.msra.gmra.mrb[8].mxu0 %v50_v0  ;;  %v2791_v58 = vpack.c.bf16 %v445_v51, %v444_v50  ;;  %v2761_v0 = vpack.c.bf16 %v397_v56, %v396_v55  ;;  %v59_v50 = vld [vmem:[%s4674_s0 + $0xc8] sm:$0xff]  ;;  %v454_v55 = vld [vmem:[%s4675_s1 + $0xc20] sm:$0xff] }
  0xb6   :  { %2742 = vmatpush3.bf16.msra.mxu0 %v2741_v1  ;;  %1349 = vmatprep.mubr.f32.mxu0 %v55_v14  ;;  %v2793_v1 = vpack.c.bf16 %v429_v59, %v428_v57  ;;  %v455_v56 = vld [vmem:[%s4675_s1 + $0xc28] sm:$0xff]  ;;  %v486_v57 = vld [vmem:[%s4675_s1 + $0xd20] sm:$0xff] }
  0xb7   :  { %1280 = vmatmul.mubr.f32.vlgmr.msra.gmra.mrb[8].mxu1 %v52_v2  ;;  %2744 = vmatprep.subr.bf16.mxu0 %v2743_v4  ;;  %v2763_v2 = vpack.c.bf16 %v415_v61, %v414_v60  ;;  %v399_v4 = vld [vmem:[%s4675_s1 + $0xa68] sm:$0xff]  ;;  %v472_v60 = vld [vmem:[%s4675_s1 + $0xcb0] sm:$0xff]  ;;  %v473_v61 = vld [vmem:[%s4675_s1 + $0xcb8] sm:$0xff] }
  0xb8   :  { %2774 = vmatpush3.bf16.msra.mxu1 %v2773_v3  ;;  %1419 = vmatprep.mubr.f32.mxu1 %v57_v16  ;;  %v398_v3 = vld [vmem:[%s4675_s1 + $0xa60] sm:$0xff]  ;;  %v401_v16 = vld [vmem:[%s4675_s1 + $0xa78] sm:$0xff]  ;;  %v487_v59 = vld [vmem:[%s4675_s1 + $0xd28] sm:$0xff] }
  0xb9   :  { %2776 = vmatprep.subr.bf16.mxu1 %v2775_v8  ;;  %v416_v8 = vld [vmem:[%s4675_s1 + $0xaf0] sm:$0xff]  ;;  %v2765_v12 = vpack.c.bf16 %v399_v4, %v398_v3  ;;  %v457_v4 = vld [vmem:[%s4675_s1 + $0xc38] sm:$0xff] }
  0xba   :  { %2746 = vmatpush3.bf16.msra.mxu0 %v2745_v15  ;;  %v2767_v14 = vpack.c.bf16 %v417_v9, %v416_v8  ;;  %v400_v15 = vld [vmem:[%s4675_s1 + $0xa70] sm:$0xff]  ;;  %v474_v8 = vld [vmem:[%s4675_s1 + $0xcc0] sm:$0xff]  ;;  %v475_v9 = vld [vmem:[%s4675_s1 + $0xcc8] sm:$0xff] }
  0xbb   :  { %2748 = vmatprep.subr.bf16.mxu0 %v2747_v18  ;;  %v2799_v18 = vpack.c.bf16 %v449_v11, %v448_v10  ;;  %v2769_v24 = vpack.c.bf16 %v401_v16, %v400_v15  ;;  %v456_v3 = vld [vmem:[%s4675_s1 + $0xc30] sm:$0xff]  ;;  %v506_v10 = vld [vmem:[%s4675_s1 + $0xdc0] sm:$0xff]  ;;  %v507_v11 = vld [vmem:[%s4675_s1 + $0xdc8] sm:$0xff] }
  0xbc   :  { %2778 = vmatpush3.bf16.msra.mxu1 %v2777_v17  ;;  %v432_v17 = vld [vmem:[%s4675_s1 + $0xb70] sm:$0xff]  ;;  %v458_v15 = vld [vmem:[%s4675_s1 + $0xc40] sm:$0xff]  ;;  %v459_v16 = vld [vmem:[%s4675_s1 + $0xc48] sm:$0xff] }
  0xbd   :  { %2780 = vmatprep.subr.bf16.mxu1 %v2779_v22  ;;  %v498_v22 = vld [vmem:[%s4675_s1 + $0xd80] sm:$0xff]  ;;  %v2801_v25 = vpack.c.bf16 %v433_v19, %v432_v17  ;;  %v491_v19 = vld [vmem:[%s4675_s1 + $0xd48] sm:$0xff] }
  0xbe   :  { %2750 = vmatpush3.bf16.msra.mxu0 %v2749_v28  ;;  %v451_v28 = vld [vmem:[%s4675_s1 + $0xc08] sm:$0xff]  ;;  %v490_v17 = vld [vmem:[%s4675_s1 + $0xd40] sm:$0xff] }
  0xbf   :  { %2752 = vmatprep.subr.bf16.mxu0 %v2751_v30  ;;  %v2835_v30 = vpack.c.bf16 %v499_v23, %v498_v22  ;;  %v2805_v37 = vpack.c.bf16 %v451_v28, %v450_v27  ;;  %v508_v22 = vld [vmem:[%s4675_s1 + $0xdd0] sm:$0xff]  ;;  %v509_v23 = vld [vmem:[%s4675_s1 + $0xdd8] sm:$0xff] }
  0xc0   :  { %2782 = vmatpush3.bf16.msra.mxu1 %v2781_v29  ;;  %v482_v29 = vld [vmem:[%s4675_s1 + $0xd00] sm:$0xff]  ;;  %v460_v27 = vld [vmem:[%s4675_s1 + $0xc50] sm:$0xff]  ;;  %v461_v28 = vld [vmem:[%s4675_s1 + $0xc58] sm:$0xff] }
  0xc1   :  { %2784 = vmatprep.subr.bf16.mxu1 %v2783_v34  ;;  %v500_v34 = vld [vmem:[%s4675_s1 + $0xd90] sm:$0xff]  ;;  %v2837_v39 = vpack.c.bf16 %v483_v31, %v482_v29  ;;  %v493_v31 = vld [vmem:[%s4675_s1 + $0xd58] sm:$0xff] }
  0xc2   :  { %2754 = vmatpush3.bf16.msra.mxu0 %v2753_v40  ;;  %v2807_v40 = vpack.c.bf16 %v469_v33, %v468_v32  ;;  %v2839_v44 = vpack.c.bf16 %v501_v35, %v500_v34  ;;  %v492_v29 = vld [vmem:[%s4675_s1 + $0xd50] sm:$0xff]  ;;  %v478_v32 = vld [vmem:[%s4675_s1 + $0xce0] sm:$0xff]  ;;  %v479_v33 = vld [vmem:[%s4675_s1 + $0xce8] sm:$0xff] }
  0xc3   :  { %2756 = vmatprep.subr.bf16.mxu0 %v2755_v42  ;;  %v453_v42 = vld [vmem:[%s4675_s1 + $0xc18] sm:$0xff]  ;;  %v510_v34 = vld [vmem:[%s4675_s1 + $0xde0] sm:$0xff]  ;;  %v511_v35 = vld [vmem:[%s4675_s1 + $0xde8] sm:$0xff] }
  0xc4   :  { %2786 = vmatpush3.bf16.msra.mxu1 %v2785_v41  ;;  %v452_v41 = vld [vmem:[%s4675_s1 + $0xc10] sm:$0xff] }
  0xc5   :  { %2788 = vmatprep.subr.bf16.mxu1 %v2787_v46  ;;  %v470_v46 = vld [vmem:[%s4675_s1 + $0xca0] sm:$0xff]  ;;  %v2809_v51 = vpack.c.bf16 %v453_v42, %v452_v41  ;;  %v2859_v42 = vpack.c.bf16 %v511_v35, %v510_v34  ;;  %v568_v34 = vld [vmem:[%s4675_s1 + $0xfb0] sm:$0xff]  ;;  %v569_v35 = vld [vmem:[%s4675_s1 + $0xfb8] sm:$0xff] }
  0xc6   :  { %2758 = vmatpush3.bf16.msra.mxu0 %v2757_v52  ;;  %v61_v52 = vld [vmem:[%s4674_s0 + $0xd8] sm:$0xff]  ;;  %v494_v41 = vld [vmem:[%s4675_s1 + $0xd60] sm:$0xff] }
  0xc7   :  { %2760 = vmatprep.subr.bf16.mxu0 %v2759_v54  ;;  %v2811_v54 = vpack.c.bf16 %v471_v47, %v470_v46  ;;  %v512_v46 = vld [vmem:[%s4675_s1 + $0xdf0] sm:$0xff]  ;;  %v513_v47 = vld [vmem:[%s4675_s1 + $0xdf8] sm:$0xff] }
  0xc8   :  { %2790 = vmatpush3.bf16.msra.mxu1 %v2789_v53  ;;  %v2841_v53 = vpack.c.bf16 %v485_v45, %v484_v43  ;;  %v495_v43 = vld [vmem:[%s4675_s1 + $0xd68] sm:$0xff]  ;;  %v481_v45 = vld [vmem:[%s4675_s1 + $0xcf8] sm:$0xff] }
  0xc9   :  { %2792 = vmatprep.subr.bf16.mxu1 %v2791_v58  ;;  %v2843_v58 = vpack.c.bf16 %v503_v49, %v502_v48  ;;  %v2861_v49 = vpack.c.bf16 %v495_v43, %v494_v41  ;;  %v552_v41 = vld [vmem:[%s4675_s1 + $0xf30] sm:$0xff]  ;;  %v553_v43 = vld [vmem:[%s4675_s1 + $0xf38] sm:$0xff] }
  0xca   :  { %2762 = vmatpush3.bf16.msra.mxu0 %v2761_v0  ;;  %v2813_v0 = vpack.c.bf16 %v455_v56, %v454_v55  ;;  %v497_v55 = vld [vmem:[%s4675_s1 + $0xd78] sm:$0xff]  ;;  %v530_v56 = vld [vmem:[%s4675_s1 + $0xe80] sm:$0xff] }
  0xcb   :  { %2764 = vmatprep.subr.bf16.mxu0 %v2763_v2  ;;  %v2815_v2 = vpack.c.bf16 %v473_v61, %v472_v60 }
  0xcc   :  { %2794 = vmatpush3.bf16.msra.mxu1 %v2793_v1  ;;  %v2845_v1 = vpack.c.bf16 %v487_v59, %v486_v57  ;;  %v531_v57 = vld [vmem:[%s4675_s1 + $0xe88] sm:$0xff] }
  0xcd   :  { %2796 = vmatprep.subr.bf16.mxu1 %v2795_v6  ;;  %v2847_v6 = vpack.c.bf16 %v505_v63, %v504_v62  ;;  %v563_v59 = vld [vmem:[%s4675_s1 + $0xf88] sm:$0xff]  ;;  %v2867_v62 = vpack.c.bf16 %v531_v57, %v530_v56  ;;  %v514_v63 = vld [vmem:[%s4675_s1 + $0xe00] sm:$0xff]  ;;  %v540_v56 = vld [vmem:[%s4675_s1 + $0xed0] sm:$0xff] }
  0xce   :  { %2766 = vmatpush3.bf16.msra.mxu0 %v2765_v12  ;;  %v2817_v12 = vpack.c.bf16 %v457_v4, %v456_v3  ;;  %v547_v3 = vld [vmem:[%s4675_s1 + $0xf08] sm:$0xff]  ;;  %v532_v4 = vld [vmem:[%s4675_s1 + $0xe90] sm:$0xff]  ;;  %v541_v57 = vld [vmem:[%s4675_s1 + $0xed8] sm:$0xff] }
  0xcf   :  { %2768 = vmatprep.subr.bf16.mxu0 %v2767_v14  ;;  %v2819_v14 = vpack.c.bf16 %v475_v9, %v474_v8  ;;  %v58_v8 = vld [vmem:[%s4674_s0 + $0xc0] sm:$0xff] }
  0xd0   :  { %2798 = vmatpush3.bf16.msra.mxu1 %v2797_v13  ;;  %v2849_v13 = vpack.c.bf16 %v489_v7, %v488_v5  ;;  %v533_v5 = vld [vmem:[%s4675_s1 + $0xe98] sm:$0xff] }
  0xd1   :  { %2800 = vmatprep.subr.bf16.mxu1 %v2799_v18  ;;  %v2851_v18 = vpack.c.bf16 %v507_v11, %v506_v10  ;;  %v565_v7 = vld [vmem:[%s4675_s1 + $0xf98] sm:$0xff]  ;;  %v60_v10 = vld [vmem:[%s4674_s0 + $0xd0] sm:$0xff] }
  0xd2   :  { %2770 = vmatpush3.bf16.msra.mxu0 %v2769_v24  ;;  %v2821_v24 = vpack.c.bf16 %v459_v16, %v458_v15  ;;  %v548_v15 = vld [vmem:[%s4675_s1 + $0xf10] sm:$0xff] }
  0xd3   :  { %2804 = vmatprep.subr.bf16.mxu0 %v2803_v26  ;;  %v2823_v26 = vpack.c.bf16 %v477_v21, %v476_v20  ;;  %v566_v20 = vld [vmem:[%s4675_s1 + $0xfa0] sm:$0xff]  ;;  %v567_v21 = vld [vmem:[%s4675_s1 + $0xfa8] sm:$0xff] }
  0xd4   :  { %2802 = vmatpush3.bf16.msra.mxu1 %v2801_v25  ;;  %v2853_v25 = vpack.c.bf16 %v491_v19, %v490_v17  ;;  %v549_v17 = vld [vmem:[%s4675_s1 + $0xf18] sm:$0xff]  ;;  %v535_v19 = vld [vmem:[%s4675_s1 + $0xea8] sm:$0xff] }
  0xd5   :  { %2836 = vmatprep.subr.bf16.mxu1 %v2835_v30  ;;  %1350 = vmatmul.mubr.f32.vlgmr.msra.gmra.mrb[10].mxu0 %v54_v36  ;;  %v2855_v30 = vpack.c.bf16 %v509_v23, %v508_v22  ;;  %v2825_v36 = vpack.c.bf16 %v461_v28, %v460_v27  ;;  %v63_v22 = vld [vmem:[%s4674_s0 + $0xe8] sm:$0xff]  ;;  %v518_v27 = vld [vmem:[%s4675_s1 + $0xe20] sm:$0xff] }
  0xd6   :  { %2806 = vmatpush3.bf16.msra.mxu0 %v2805_v37  ;;  %1489 = vmatprep.mubr.f32.mxu0 %v59_v50  ;;  %v2857_v37 = vpack.c.bf16 %v493_v31, %v492_v29  ;;  %v519_v28 = vld [vmem:[%s4675_s1 + $0xe28] sm:$0xff]  ;;  %v550_v29 = vld [vmem:[%s4675_s1 + $0xf20] sm:$0xff] }
  0xd7   :  { %1420 = vmatmul.mubr.f32.vlgmr.msra.gmra.mrb[10].mxu1 %v56_v38  ;;  %2808 = vmatprep.subr.bf16.mxu0 %v2807_v40  ;;  %v2827_v38 = vpack.c.bf16 %v479_v33, %v478_v32  ;;  %v463_v40 = vld [vmem:[%s4675_s1 + $0xc68] sm:$0xff]  ;;  %v536_v32 = vld [vmem:[%s4675_s1 + $0xeb0] sm:$0xff]  ;;  %v537_v33 = vld [vmem:[%s4675_s1 + $0xeb8] sm:$0xff] }
  0xd8   :  { %2838 = vmatpush3.bf16.msra.mxu1 %v2837_v39  ;;  %1559 = vmatprep.mubr.f32.mxu1 %v61_v52  ;;  %v462_v39 = vld [vmem:[%s4675_s1 + $0xc60] sm:$0xff]  ;;  %v465_v52 = vld [vmem:[%s4675_s1 + $0xc78] sm:$0xff]  ;;  %v551_v31 = vld [vmem:[%s4675_s1 + $0xf28] sm:$0xff] }
  0xd9   :  { %2840 = vmatprep.subr.bf16.mxu1 %v2839_v44  ;;  %v480_v44 = vld [vmem:[%s4675_s1 + $0xcf0] sm:$0xff]  ;;  %v2829_v48 = vpack.c.bf16 %v463_v40, %v462_v39  ;;  %v521_v40 = vld [vmem:[%s4675_s1 + $0xe38] sm:$0xff] }
  0xda   :  { %2810 = vmatpush3.bf16.msra.mxu0 %v2809_v51  ;;  %v2831_v50 = vpack.c.bf16 %v481_v45, %v480_v44  ;;  %v464_v51 = vld [vmem:[%s4675_s1 + $0xc70] sm:$0xff]  ;;  %v538_v44 = vld [vmem:[%s4675_s1 + $0xec0] sm:$0xff]  ;;  %v539_v45 = vld [vmem:[%s4675_s1 + $0xec8] sm:$0xff] }
  0xdb   :  { %2812 = vmatprep.subr.bf16.mxu0 %v2811_v54  ;;  %v2863_v54 = vpack.c.bf16 %v513_v47, %v512_v46  ;;  %v2833_v60 = vpack.c.bf16 %v465_v52, %v464_v51  ;;  %v520_v39 = vld [vmem:[%s4675_s1 + $0xe30] sm:$0xff]  ;;  %v570_v46 = vld [vmem:[%s4675_s1 + $0xfc0] sm:$0xff]  ;;  %v571_v47 = vld [vmem:[%s4675_s1 + $0xfc8] sm:$0xff] }
  0xdc   :  { %2842 = vmatpush3.bf16.msra.mxu1 %v2841_v53  ;;  %v496_v53 = vld [vmem:[%s4675_s1 + $0xd70] sm:$0xff]  ;;  %v522_v51 = vld [vmem:[%s4675_s1 + $0xe40] sm:$0xff]  ;;  %v523_v52 = vld [vmem:[%s4675_s1 + $0xe48] sm:$0xff] }
  0xdd   :  { %2844 = vmatprep.subr.bf16.mxu1 %v2843_v58  ;;  %v562_v58 = vld [vmem:[%s4675_s1 + $0xf80] sm:$0xff]  ;;  %v2865_v61 = vpack.c.bf16 %v497_v55, %v496_v53  ;;  %v555_v55 = vld [vmem:[%s4675_s1 + $0xf48] sm:$0xff] }
  0xde   :  { %2814 = vmatpush3.bf16.msra.mxu0 %v2813_v0  ;;  %v515_v0 = vld [vmem:[%s4675_s1 + $0xe08] sm:$0xff]  ;;  %v554_v53 = vld [vmem:[%s4675_s1 + $0xf40] sm:$0xff] }
  0xdf   :  { %2816 = vmatprep.subr.bf16.mxu0 %v2815_v2  ;;  %v2899_v2 = vpack.c.bf16 %v563_v59, %v562_v58  ;;  %v2869_v9 = vpack.c.bf16 %v515_v0, %v514_v63  ;;  %v572_v58 = vld [vmem:[%s4675_s1 + $0xfd0] sm:$0xff]  ;;  %v573_v59 = vld [vmem:[%s4675_s1 + $0xfd8] sm:$0xff] }
  0xe0   :  { %2846 = vmatpush3.bf16.msra.mxu1 %v2845_v1  ;;  %v546_v1 = vld [vmem:[%s4675_s1 + $0xf00] sm:$0xff]  ;;  %v524_v63 = vld [vmem:[%s4675_s1 + $0xe50] sm:$0xff]  ;;  %v525_v0 = vld [vmem:[%s4675_s1 + $0xe58] sm:$0xff] }
  0xe1   :  { %2848 = vmatprep.subr.bf16.mxu1 %v2847_v6  ;;  %v564_v6 = vld [vmem:[%s4675_s1 + $0xf90] sm:$0xff]  ;;  %v2901_v11 = vpack.c.bf16 %v547_v3, %v546_v1  ;;  %v557_v3 = vld [vmem:[%s4675_s1 + $0xf58] sm:$0xff] }
  0xe2   :  { %2818 = vmatpush3.bf16.msra.mxu0 %v2817_v12  ;;  %v2871_v12 = vpack.c.bf16 %v533_v5, %v532_v4  ;;  %v2903_v16 = vpack.c.bf16 %v565_v7, %v564_v6  ;;  %v556_v1 = vld [vmem:[%s4675_s1 + $0xf50] sm:$0xff]  ;;  %v542_v4 = vld [vmem:[%s4675_s1 + $0xee0] sm:$0xff]  ;;  %v543_v5 = vld [vmem:[%s4675_s1 + $0xee8] sm:$0xff] }
  0xe3   :  { %2820 = vmatprep.subr.bf16.mxu0 %v2819_v14  ;;  %v517_v14 = vld [vmem:[%s4675_s1 + $0xe18] sm:$0xff]  ;;  %v574_v6 = vld [vmem:[%s4675_s1 + $0xfe0] sm:$0xff]  ;;  %v575_v7 = vld [vmem:[%s4675_s1 + $0xfe8] sm:$0xff] }
  0xe4   :  { %2850 = vmatpush3.bf16.msra.mxu1 %v2849_v13  ;;  %v516_v13 = vld [vmem:[%s4675_s1 + $0xe10] sm:$0xff] }
  0xe5   :  { %2852 = vmatprep.subr.bf16.mxu1 %v2851_v18  ;;  %v534_v18 = vld [vmem:[%s4675_s1 + $0xea0] sm:$0xff]  ;;  %v2873_v23 = vpack.c.bf16 %v517_v14, %v516_v13 }
  0xe6   :  { %2822 = vmatpush3.bf16.msra.mxu0 %v2821_v24  ;;  %v65_v24 = vld [vmem:[%s4674_s0 + $0xf8] sm:$0xff]  ;;  %v558_v13 = vld [vmem:[%s4675_s1 + $0xf60] sm:$0xff] }
  0xe7   :  { %2824 = vmatprep.subr.bf16.mxu0 %v2823_v26  ;;  %v2875_v26 = vpack.c.bf16 %v535_v19, %v534_v18  ;;  %v545_v18 = vld [vmem:[%s4675_s1 + $0xef8] sm:$0xff]  ;;  %v1805_v19 = vld [vmem:[%s4676_s2] ss:$0 sm:$0xff] }
  0xe8   :  { %2854 = vmatpush3.bf16.msra.mxu1 %v2853_v25  ;;  %v2905_v25 = vpack.c.bf16 %v549_v17, %v548_v15  ;;  %v2923_v15 = vpack.c.bf16 %v575_v7, %v574_v6  ;;  %v544_v17 = vld [vmem:[%s4675_s1 + $0xef0] sm:$0xff]  ;;  %v1714_v6 = vld [vmem:[#allocation2 + $0x40] sm:$0xff]  ;;  %v1715_v7 = vld [vmem:[#allocation2 + $0x48] sm:$0xff] }
  0xe9   :  { %2856 = vmatprep.subr.bf16.mxu1 %v2855_v30  ;;  %v2907_v30 = vpack.c.bf16 %v567_v21, %v566_v20 }
  0xea   :  { %2826 = vmatpush3.bf16.msra.mxu0 %v2825_v36  ;;  %v2877_v36 = vpack.c.bf16 %v519_v28, %v518_v27 }
  0xeb   :  { %2828 = vmatprep.subr.bf16.mxu0 %v2827_v38  ;;  %v2879_v38 = vpack.c.bf16 %v537_v33, %v536_v32 }
  0xec   :  { %2858 = vmatpush3.bf16.msra.mxu1 %v2857_v37  ;;  %v2909_v37 = vpack.c.bf16 %v551_v31, %v550_v29  ;;  %v2895_v29 = vpack.c.bf16 %v545_v18, %v544_v17  ;;  %v529_v31 = vld [vmem:[%s4675_s1 + $0xe78] sm:$0xff] }
  0xed   :  { %2860 = vmatprep.subr.bf16.mxu1 %v2859_v42  ;;  %v2911_v42 = vpack.c.bf16 %v569_v35, %v568_v34  ;;  %v560_v34 = vld [vmem:[%s4675_s1 + $0xf70] sm:$0xff]  ;;  %v561_v35 = vld [vmem:[%s4675_s1 + $0xf78] sm:$0xff] }
  0xee   :  { %2830 = vmatpush3.bf16.msra.mxu0 %v2829_v48  ;;  %v2881_v48 = vpack.c.bf16 %v521_v40, %v520_v39  ;;  %v62_v39 = vld [vmem:[%s4674_s0 + $0xe0] sm:$0xff]  ;;  %v64_v40 = vld [vmem:[%s4674_s0 + $0xf0] sm:$0xff] }
  0xef   :  { %2832 = vmatprep.subr.bf16.mxu0 %v2831_v50  ;;  %v2883_v50 = vpack.c.bf16 %v539_v45, %v538_v44 }
  0xf0   :  { %2862 = vmatpush3.bf16.msra.mxu1 %v2861_v49  ;;  %v2913_v49 = vpack.c.bf16 %v553_v43, %v552_v41 }
  0xf1   :  { %2864 = vmatprep.subr.bf16.mxu1 %v2863_v54  ;;  %v2915_v54 = vpack.c.bf16 %v571_v47, %v570_v46 }
  0xf2   :  { %2834 = vmatpush3.bf16.msra.mxu0 %v2833_v60  ;;  %v2885_v60 = vpack.c.bf16 %v523_v52, %v522_v51 }
  0xf3   :  { %2868 = vmatprep.subr.bf16.mxu0 %v2867_v62  ;;  %v2887_v62 = vpack.c.bf16 %v541_v57, %v540_v56  ;;  %v1706_v57 = vld [vmem:[#allocation2] sm:$0xff] }
  0xf4   :  { %2866 = vmatpush3.bf16.msra.mxu1 %v2865_v61  ;;  %v2917_v61 = vpack.c.bf16 %v555_v55, %v554_v53 }
  0xf5   :  { %2900 = vmatprep.subr.bf16.mxu1 %v2899_v2  ;;  %1490 = vmatmul.mubr.f32.vlgmr.msra.gmra.mrb[12].mxu0 %v58_v8  ;;  %v2919_v2 = vpack.c.bf16 %v573_v59, %v572_v58  ;;  %v2889_v8 = vpack.c.bf16 %v525_v0, %v524_v63  ;;  %v1707_v58 = vld [vmem:[#allocation2 + $0x8] sm:$0xff]  ;;  %v1708_v59 = vld [vmem:[#allocation2 + $0x10] sm:$0xff]  ;;  %v1710_v0 = vld [vmem:[#allocation2 + $0x20] sm:$0xff] }
  0xf6   :  { %2870 = vmatpush3.bf16.msra.mxu0 %v2869_v9  ;;  %1629 = vmatprep.mubr.f32.mxu0 %v63_v22  ;;  %v2921_v9 = vpack.c.bf16 %v557_v3, %v556_v1  ;;  %v576_v22 = vld [vmem:[%s4675_s1 + $0xff0] sm:$0xff]  ;;  %v1711_v1 = vld [vmem:[#allocation2 + $0x28] sm:$0xff] }
  0xf7   :  { %1560 = vmatmul.mubr.f32.vlgmr.msra.gmra.mrb[12].mxu1 %v60_v10  ;;  %2872 = vmatprep.subr.bf16.mxu0 %v2871_v12  ;;  %v2891_v10 = vpack.c.bf16 %v543_v5, %v542_v4  ;;  %v527_v12 = vld [vmem:[%s4675_s1 + $0xe68] sm:$0xff]  ;;  %v1712_v3 = vld [vmem:[#allocation2 + $0x30] sm:$0xff]  ;;  %v1713_v4 = vld [vmem:[#allocation2 + $0x38] sm:$0xff] }
  0xf8   :  { %2902 = vmatpush3.bf16.msra.mxu1 %v2901_v11  ;;  %1699 = vmatprep.mubr.f32.mxu1 %v65_v24  ;;  %v526_v11 = vld [vmem:[%s4675_s1 + $0xe60] sm:$0xff]  ;;  %v2941_v5 = vpack.c.bf16 %v1713_v4, %v1712_v3 }
  0xf9   :  { %2904 = vmatprep.subr.bf16.mxu1 %v2903_v16  ;;  %v559_v16 = vld [vmem:[%s4675_s1 + $0xf68] sm:$0xff] }
  0xfa   :  { %2874 = vmatpush3.bf16.msra.mxu0 %v2873_v23  ;;  %v577_v23 = vld [vmem:[%s4675_s1 + $0xff8] sm:$0xff]  ;;  %v2925_v28 = vpack.c.bf16 %v559_v16, %v558_v13  ;;  %v1718_v13 = vld [vmem:[#allocation2 + $0x60] sm:$0xff] }
  0xfb   :  { %2876 = vmatprep.subr.bf16.mxu0 %v2875_v26  ;;  %v2893_v26 = vpack.c.bf16 %v527_v12, %v526_v11  ;;  %v2927_v33 = vpack.c.bf16 %v577_v23, %v576_v22  ;;  %v1720_v22 = vld [vmem:[#allocation2 + $0x70] sm:$0xff]  ;;  %v1721_v23 = vld [vmem:[#allocation2 + $0x78] sm:$0xff] }
  0xfc   :  { %2906 = vmatpush3.bf16.msra.mxu1 %v2905_v25 }
  0xfd   :  { %2908 = vmatprep.subr.bf16.mxu1 %v2907_v30  ;;  %v528_v30 = vld [vmem:[%s4675_s1 + $0xe70] sm:$0xff] }
  0xfe   :  { %2878 = vmatpush3.bf16.msra.mxu0 %v2877_v36 }
  0xff   :  { %2880 = vmatprep.subr.bf16.mxu0 %v2879_v38  ;;  %v2929_v38 = vpack.c.bf16 %v561_v35, %v560_v34 }
 0x100   :  { %2910 = vmatpush3.bf16.msra.mxu1 %v2909_v37  ;;  %v2897_v37 = vpack.c.bf16 %v529_v31, %v528_v30 }
 0x101   :  { %2912 = vmatprep.subr.bf16.mxu1 %v2911_v42 }
 0x102   :  { %2882 = vmatpush3.bf16.msra.mxu0 %v2881_v48 }
 0x103   :  { %2884 = vmatprep.subr.bf16.mxu0 %v2883_v50 }
 0x104   :  { %2914 = vmatpush3.bf16.msra.mxu1 %v2913_v49 }
 0x105   :  { %2916 = vmatprep.subr.bf16.mxu1 %v2915_v54 }
 0x106   :  { %2886 = vmatpush3.bf16.msra.mxu0 %v2885_v60  ;;  %v2988_v60 = vmov 0.0|0.0  }
 0x107   :  { %2888 = vmatprep.subr.bf16.mxu0 %v2887_v62  ;;  %v1709_v62 = vld [vmem:[#allocation2 + $0x18] sm:$0xff] }
 0x108   :  { %2918 = vmatpush3.bf16.msra.mxu1 %v2917_v61  ;;  %v1839_v14 = vpop.f32.mrb[0].mxu0  ;;  %v2932_v61 = vpack.c.bf16 %v1707_v58, %v1706_v57  ;;  %v2935_v63 = vpack.c.bf16 %v1709_v62, %v1708_v59 }
 0x109   :  { %2920 = vmatprep.subr.bf16.mxu1 %v2919_v2  ;;  %v1840_v20 = vpop.f32.mrb[1].mxu0  ;;  %v2938_v2 = vpack.c.bf16 %v1711_v1, %v1710_v0 }
 0x10a   :  { %v1874_v21 = vpop.f32.mrb[0].mxu1  ;;  %v1841_v24 = vadd.f32 %v1840_v20, %v1839_v14  ;;  %2890 = vmatpush3.bf16.msra.mxu0 %v2889_v8  ;;  %v2944_v8 = vpack.c.bf16 %v1715_v7, %v1714_v6  ;;  %v1719_v14 = vld [vmem:[#allocation2 + $0x68] sm:$0xff] }
 0x10b   :  { %v1875_v25 = vpop.f32.mrb[1].mxu1  ;;  %2892 = vmatprep.subr.bf16.mxu0 %v2891_v10  ;;  %v1717_v10 = vld [vmem:[#allocation2 + $0x58] sm:$0xff]  ;;  %v2950_v17 = vpack.c.bf16 %v1719_v14, %v1718_v13 }
 0x10c   :  { %v1876_v27 = vadd.f32 %v1875_v25, %v1874_v21  ;;  %2922 = vmatpush3.bf16.msra.mxu1 %v2921_v9  ;;  %v652_v32 = vadd.f32 %v1841_v24, %v1805_v19  ;;  %v1716_v9 = vld [vmem:[#allocation2 + $0x50] sm:$0xff]  ;;  %v2953_v24 = vpack.c.bf16 %v1721_v23, %v1720_v22 }
 0x10d   :  { %2924 = vmatprep.subr.bf16.mxu1 %v2923_v15  ;;  %v2947_v11 = vpack.c.bf16 %v1717_v10, %v1716_v9 }
 0x10e   :  { %v722_v36 = vadd.f32 %v1876_v27, %v652_v32  ;;  %2894 = vmatpush3.bf16.msra.mxu0 %v2893_v26  ;;  %v2990_v26 = vmov 0.0  }
 0x10f   :  { %2896 = vmatprep.subr.bf16.mxu0 %v2895_v29 }
 0x110   :  { %2926 = vmatpush3.bf16.msra.mxu1 %v2925_v28 }
 0x111   :  { %2928 = vmatprep.subr.bf16.mxu1 %v2927_v33 }
 0x112   :  { %2898 = vmatpush3.bf16.msra.mxu0 %v2897_v37 }
 0x113   :  { %2931 = vmatprep.subr.bf16.mxu0 %v2988_v60 }
 0x114   :  { %2930 = vmatpush3.bf16.msra.mxu1 %v2929_v38 }
 0x115   :  { %1630 = vmatmul.mubr.f32.vlgmr.msra.gmra.mrb[14].mxu0 %v62_v39 }
 0x116   :  { %2933 = vmatpush3.bf16.msra.mxu0 %v2932_v61  ;;  %2416 = vmatprep.mubr.msk.f32.mxu0 %vm2989_vm0, %v2990_v26 }
 0x117   :  { %1700 = vmatmul.mubr.f32.vlgmr.msra.gmra.mrb[14].mxu1 %v64_v40  ;;  %2934 = vmatprep.subr.bf16.mxu0 %v2988_v60 }
 0x11a   :  { %2936 = vmatpush3.bf16.msra.mxu0 %v2935_v63 }
 0x11b   :  { %2937 = vmatprep.subr.bf16.mxu0 %v2988_v60 }
 0x11e   :  { %2939 = vmatpush3.bf16.msra.mxu0 %v2938_v2 }
 0x11f   :  { %2940 = vmatprep.subr.bf16.mxu0 %v2988_v60 }
 0x122   :  { %2942 = vmatpush3.bf16.msra.mxu0 %v2941_v5 }
 0x123   :  { %2943 = vmatprep.subr.bf16.mxu0 %v2988_v60 }
 0x126   :  { %2945 = vmatpush3.bf16.msra.mxu0 %v2944_v8 }
 0x127   :  { %2946 = vmatprep.subr.bf16.mxu0 %v2988_v60 }
 0x128   :  { %v1909_v41 = vpop.f32.mrb[2].mxu0 }
 0x129   :  { %v1910_v42 = vpop.f32.mrb[3].mxu0 }
 0x12a   :  { %v1944_v43 = vpop.f32.mrb[2].mxu1  ;;  %v1911_v44 = vadd.f32 %v1910_v42, %v1909_v41  ;;  %2948 = vmatpush3.bf16.msra.mxu0 %v2947_v11 }
 0x12b   :  { %v1945_v45 = vpop.f32.mrb[3].mxu1  ;;  %2949 = vmatprep.subr.bf16.mxu0 %v2988_v60 }
 0x12c   :  { %v1946_v46 = vadd.f32 %v1945_v45, %v1944_v43  ;;  %v792_v47 = vadd.f32 %v1911_v44, %v722_v36 }
 0x12e   :  { %v862_v48 = vadd.f32 %v1946_v46, %v792_v47  ;;  %2951 = vmatpush3.bf16.msra.mxu0 %v2950_v17 }
 0x12f   :  { %2952 = vmatprep.subr.bf16.mxu0 %v2988_v60  ;;  %v1806_v60 = vld [vmem:[%s4678_s4] ss:$0 sm:$0xff] }
 0x132   :  { %2954 = vmatpush3.bf16.msra.mxu0 %v2953_v24 }
 0x148   :  { %v1979_v49 = vpop.f32.mrb[4].mxu0 }
 0x149   :  { %v1980_v50 = vpop.f32.mrb[5].mxu0 }
 0x14a   :  { %v2014_v51 = vpop.f32.mrb[4].mxu1  ;;  %v1981_v52 = vadd.f32 %v1980_v50, %v1979_v49 }
 0x14b   :  { %v2015_v53 = vpop.f32.mrb[5].mxu1 }
 0x14c   :  { %v2016_v54 = vadd.f32 %v2015_v53, %v2014_v51  ;;  %v932_v55 = vadd.f32 %v1981_v52, %v862_v48 }
 0x14e   :  { %v1002_v56 = vadd.f32 %v2016_v54, %v932_v55 }
 0x168   :  { %v2049_v12 = vpop.f32.mrb[6].mxu0 }
 0x169   :  { %v2050_v15 = vpop.f32.mrb[7].mxu0 }
 0x16a   :  { %v2084_v16 = vpop.f32.mrb[6].mxu1  ;;  %v2051_v18 = vadd.f32 %v2050_v15, %v2049_v12 }
 0x16b   :  { %v2085_v19 = vpop.f32.mrb[7].mxu1 }
 0x16c   :  { %v2086_v20 = vadd.f32 %v2085_v19, %v2084_v16  ;;  %v1072_v21 = vadd.f32 %v2051_v18, %v1002_v56 }
 0x16e   :  { %v1142_v25 = vadd.f32 %v2086_v20, %v1072_v21 }
 0x188   :  { %v2119_v27 = vpop.f32.mrb[8].mxu0 }
 0x189   :  { %v2120_v28 = vpop.f32.mrb[9].mxu0 }
 0x18a   :  { %v2154_v29 = vpop.f32.mrb[8].mxu1  ;;  %v2121_v30 = vadd.f32 %v2120_v28, %v2119_v27 }
 0x18b   :  { %v2155_v31 = vpop.f32.mrb[9].mxu1 }
 0x18c   :  { %v2156_v32 = vadd.f32 %v2155_v31, %v2154_v29  ;;  %v1212_v33 = vadd.f32 %v2121_v30, %v1142_v25 }
 0x18e   :  { %v1282_v34 = vadd.f32 %v2156_v32, %v1212_v33 }
 0x1a8   :  { %v2189_v35 = vpop.f32.mrb[10].mxu0 }
 0x1a9   :  { %v2190_v36 = vpop.f32.mrb[11].mxu0 }
 0x1aa   :  { %v2224_v37 = vpop.f32.mrb[10].mxu1  ;;  %v2191_v38 = vadd.f32 %v2190_v36, %v2189_v35 }
 0x1ab   :  { %v2225_v39 = vpop.f32.mrb[11].mxu1 }
 0x1ac   :  { %v2226_v40 = vadd.f32 %v2225_v39, %v2224_v37  ;;  %v1352_v41 = vadd.f32 %v2191_v38, %v1282_v34 }
 0x1ae   :  { %v1422_v42 = vadd.f32 %v2226_v40, %v1352_v41 }
 0x1c8   :  { %v2259_v43 = vpop.f32.mrb[12].mxu0 }
 0x1c9   :  { %v2260_v44 = vpop.f32.mrb[13].mxu0 }
 0x1ca   :  { %v2294_v45 = vpop.f32.mrb[12].mxu1  ;;  %v2261_v46 = vadd.f32 %v2260_v44, %v2259_v43 }
 0x1cb   :  { %v2295_v47 = vpop.f32.mrb[13].mxu1 }
 0x1cc   :  { %v2296_v48 = vadd.f32 %v2295_v47, %v2294_v45  ;;  %v1492_v49 = vadd.f32 %v2261_v46, %v1422_v42 }
 0x1ce   :  { %v1562_v50 = vadd.f32 %v2296_v48, %v1492_v49 }
 0x1e8   :  { %v2329_v51 = vpop.f32.mrb[14].mxu0 }
 0x1e9   :  { %v2330_v52 = vpop.f32.mrb[15].mxu0 }
 0x1ea   :  { %v2364_v53 = vpop.f32.mrb[14].mxu1  ;;  %v2331_v54 = vadd.f32 %v2330_v52, %v2329_v51 }
 0x1eb   :  { %v2365_v55 = vpop.f32.mrb[15].mxu1 }
 0x1ec   :  { %v2366_v56 = vadd.f32 %v2365_v55, %v2364_v53  ;;  %v1632_v57 = vadd.f32 %v2331_v54, %v1562_v50 }
 0x1ee   :  { %v1702_v58 = vadd.f32 %v2366_v56, %v1632_v57 }
 0x1f0   :  { %v1705_v59 = vmax.f32 %v1702_v58, 0.0 }
 0x1f2   :  { %2417 = vmatmul.mubr.f32.vlgmr.msra.gmra.mrb[16].mxu0 %v1705_v59 }
 0x2c5   :  { %v1795_v61 = vpop.f32.mrb[16].mxu0 }
 0x2c6   :  { %v1796_v62 = vadd.f32 %v1806_v60, %v1795_v61  ;;  %v2418_v63 = vpop.f32.mrb[17].mxu0 }
 0x2c8   :  { %1799 = vst [vmem:[%s4679_s5] sm:$0xff] %v1796_v62 }
 0x2c9   :  { %1804 = vsyncpa [#allocation3], 1 }

// kernel: exercise_classifier_forward.2
= control target key start
LH: loop header
LB: loop body
LE: loop exit
PB: predicated region body
PF: predicated region fallthrough
CT: control target
= control target key end

     0   :  { %10 = vsyncpa [#allocation4], 0  ;;  %s11605_s0 = inlined_call_operand.vmem [shape: f32[1024,9], index: 0, kind: input, shape index: {}]   ;;  %s11606_s1 = inlined_call_operand.hbm [shape: f32[9,64], index: 1, kind: input, shape index: {}]   ;;  %s11607_s2 = inlined_call_operand.hbm [shape: f32[1,64], index: 2, kind: input, shape index: {}]   ;;  %s11608_s3 = inlined_call_operand.vmem [shape: f32[192,64], index: 3, kind: input, shape index: {}]   ;;  %s11609_s4 = inlined_call_operand.hbm [shape: f32[1,64], index: 4, kind: input, shape index: {}]   ;;  %s11610_s5 = inlined_call_operand.vmem [shape: f32[512,64], index: 5, kind: output, shape index: {}]  }
   0x1   :  { %11 = vsyncpa [#allocation6], 0  ;;  %s7622_s18 = smov [#allocation5]   ;;  %s7623_s20 = smov [#allocation3]  }
   0x2   :  { %s32_s19 = sshll.u32 %s7622_s18, 4  ;;  %s19_s21 = sshll.u32 %s7623_s20, 4  ;;  %s33_s19 = int_to_ptr.vmem [resolvable:$true] %s32_s19  ;;  %s7660_s21 = int_to_ptr.vmem [resolvable:$true] %s19_s21 }
   0x3   :  { %s7552_s24 = scalar_lea.hbm %s11607_s2, 16 }
   0x4   :  { %p7553_p0 = scmp.ne.s32.totalorder %s11607_s2, %s7552_s24  ;;  %p7556_p1 = scmp.lt.u32.totalorder %s7552_s24, %s11607_s2 }
   0x6   :  { %p7558_p2 = pnand %p7556_p1, %p7553_p0 }
   0x8   :  { %7561 = shalt.err (!%p7558_p2)
}
   0x9   :  { %s7562_s29 = scalar_lea.vmem %s33_s19, 16  ;;  %s7566_s30 = scalar_lea.vmem %s33_s19, 32 }
   0xa   :  { %p7563_p3 = scmp.ne.s32.totalorder %s33_s19, %s7562_s29  ;;  %p7567_p4 = scmp.lt.s32.totalorder %s33_s19, %s33_s19 }
   0xb   :  { %p7568_p5 = scmp.lt.s32.totalorder %s7566_s30, %s7562_s29 }
   0xd   :  { %p7569_p6 = por %p7568_p5, %p7567_p4 }
   0xf   :  { %p7570_p7 = pnand %p7569_p6, %p7563_p3 }
  0x11   :  { %7573 = shalt.err (!%p7570_p7)
}
  0x12   :  { %35 = dma.hbm_to_vmem [thread:$0]  %s11607_s2, 16, %s33_s19, [#allocation6]  }
  0x13   :  { %s7574_s10 = scalar_lea.hbm %s11606_s1, 256 }
  0x14   :  { %p7575_p8 = scmp.ne.s32.totalorder %s11606_s1, %s7574_s10  ;;  %p7578_p9 = scmp.lt.u32.totalorder %s7574_s10, %s11606_s1 }
  0x16   :  { %p7580_p10 = pnand %p7578_p9, %p7575_p8 }
  0x18   :  { %7583 = shalt.err (!%p7580_p10)
}
  0x19   :  { %s7584_s15 = scalar_lea.vmem %s7660_s21, 256  ;;  %p7589_p12 = scmp.lt.s32.totalorder %s7660_s21, %s7660_s21 }
  0x1a   :  { %p7585_p11 = scmp.ne.s32.totalorder %s7660_s21, %s7584_s15  ;;  %p7590_p13 = scmp.lt.s32.totalorder %s7584_s15, %s7584_s15 }
  0x1c   :  { %p7591_p0 = por %p7590_p13, %p7589_p12 }
  0x1e   :  { %p7592_p1 = pnand %p7591_p0, %p7585_p11 }
  0x20   :  { %7595 = shalt.err (!%p7592_p1)
}
  0x21   :  { %s7624_s2 = smov 128   ;;  %s7625_s16 = smov 8  }
  0x22   :  { %25 = dma.hbm_to_vmem [thread:$0]  %s11606_s1, 256, %s7660_s21, [#allocation4], %s7624_s2, %s7624_s2, %s7625_s16  }
  0x23   :  { %s7626_s19 = smov [#allocation7]   ;;  %s7596_s24 = scalar_lea.hbm %s11609_s4, 16 }
  0x24   :  { %s44_s20 = sshll.u32 %s7626_s19, 4  ;;  %p7597_p2 = scmp.ne.s32.totalorder %s11609_s4, %s7596_s24  ;;  %s45_s20 = int_to_ptr.vmem [resolvable:$true] %s44_s20 }
  0x25   :  { %p7600_p3 = scmp.lt.u32.totalorder %s7596_s24, %s11609_s4 }
  0x27   :  { %p7602_p4 = pnand %p7600_p3, %p7597_p2 }
  0x29   :  { %7605 = shalt.err (!%p7602_p4)
}
  0x2a   :  { %s7606_s29 = scalar_lea.vmem %s45_s20, 16  ;;  %s7610_s1 = scalar_lea.vmem %s45_s20, 32 }
  0x2b   :  { %p7607_p5 = scmp.ne.s32.totalorder %s45_s20, %s7606_s29  ;;  %p7611_p6 = scmp.lt.s32.totalorder %s45_s20, %s45_s20 }
  0x2c   :  { %p7612_p7 = scmp.lt.s32.totalorder %s7610_s1, %s7606_s29 }
  0x2e   :  { %p7613_p8 = por %p7612_p7, %p7611_p6 }
  0x30   :  { %p7614_p9 = pnand %p7613_p8, %p7607_p5 }
  0x32   :  { %7617 = shalt.err (!%p7614_p9)
}
  0x33   :  { %47 = dma.hbm_to_vmem [thread:$0]  %s11609_s4, 16, %s45_s20, [#allocation6]  }
  0x34   :  { %7618 = dma.done.wait [#allocation4], 256  }
  0x35   :  { %7619 = vsyncadd [#allocation4], 4294967040 }
  0x36   :  { %7620 = dma.done.wait [#allocation6], 32  }
  0x37   :  { %7621 = vsyncadd [#allocation6], 4294967264  ;;  %vm579_vm0 = vcmask 1040384   ;;  %vm194_vm1 = vcmask 72704   ;;  %vm7627_vm2 = vmmov 1   ;;  %v185_v0 = vld [vmem:[#allocation3] sm:$0xff] }
  0x38   :  { %vm7291_vm3 = vmpackc.low %vm579_vm0, %vm7627_vm2  ;;  %v186_v1 = vld [vmem:[#allocation3 + $0x8] sm:$0x1]  ;;  %v57_v2 = vld [vmem:[%s11605_s0] sm:$0xff]  ;;  %vm4619_vm5 = vcmask 523264  }
  0x39   :  { %v7290_v3 = vpack.c.bf16 %v186_v1, %v185_v0  ;;  %7098 = vmatprep.mubr.msk.f32.mxu0 %vm194_vm1, %v57_v2  ;;  %v58_v4 = vld [vmem:[%s11605_s0 + $0x8] sm:$0xff]  ;;  %v59_v5 = vld [vmem:[%s11605_s0 + $0x10] sm:$0xff]  ;;  %v60_v6 = vld [vmem:[%s11605_s0 + $0x18] sm:$0xff] }
  0x3a   :  { %v61_v7 = vld [vmem:[%s11605_s0 + $0x20] sm:$0xff]  ;;  %v62_v8 = vld [vmem:[%s11605_s0 + $0x28] sm:$0xff]  ;;  %v63_v9 = vld [vmem:[%s11605_s0 + $0x30] sm:$0xff] }
  0x3b   :  { %7292 = vmatprep.subr.msk.bf16.mxu0 %vm7291_vm3, %v7290_v3  ;;  %v64_v10 = vld [vmem:[%s11605_s0 + $0x38] sm:$0xff]  ;;  %v65_v11 = vld [vmem:[%s11605_s0 + $0x40] sm:$0xff]  ;;  %v66_v12 = vld [vmem:[%s11605_s0 + $0x48] sm:$0xff] }
  0x3c   :  { %7295 = vmatpush3.bf16.msk.msra.mxu0 %vm7291_vm3, %v7290_v3  ;;  %v67_v13 = vld [vmem:[%s11605_s0 + $0x50] sm:$0xff]  ;;  %v68_v14 = vld [vmem:[%s11605_s0 + $0x58] sm:$0xff]  ;;  %v69_v15 = vld [vmem:[%s11605_s0 + $0x60] sm:$0xff] }
  0x3d   :  { %v70_v16 = vld [vmem:[%s11605_s0 + $0x68] sm:$0xff]  ;;  %v71_v17 = vld [vmem:[%s11605_s0 + $0x70] sm:$0xff]  ;;  %v72_v18 = vld [vmem:[%s11605_s0 + $0x78] sm:$0xff] }
  0x3e   :  { %v73_v19 = vld [vmem:[%s11605_s0 + $0x80] sm:$0xff]  ;;  %v74_v20 = vld [vmem:[%s11605_s0 + $0x88] sm:$0xff]  ;;  %v75_v21 = vld [vmem:[%s11605_s0 + $0x90] sm:$0xff] }
  0x3f   :  { %7099 = vmatmul.mubr.msk.f32.vlgmr.msra.gmra.mrb[0].mxu0 %vm194_vm1, %v58_v4  ;;  %v76_v22 = vld [vmem:[%s11605_s0 + $0x98] sm:$0xff]  ;;  %v77_v23 = vld [vmem:[%s11605_s0 + $0xa0] sm:$0xff]  ;;  %v78_v24 = vld [vmem:[%s11605_s0 + $0xa8] sm:$0xff] }
  0x40   :  { %7101 = vmatprep.mubr.msk.f32.mxu0 %vm194_vm1, %v59_v5  ;;  %v79_v25 = vld [vmem:[%s11605_s0 + $0xb0] sm:$0xff]  ;;  %v80_v26 = vld [vmem:[%s11605_s0 + $0xb8] sm:$0xff]  ;;  %v81_v27 = vld [vmem:[%s11605_s0 + $0xc0] sm:$0xff] }
  0x41   :  { %v82_v28 = vld [vmem:[%s11605_s0 + $0xc8] sm:$0xff]  ;;  %v83_v29 = vld [vmem:[%s11605_s0 + $0xd0] sm:$0xff]  ;;  %v84_v30 = vld [vmem:[%s11605_s0 + $0xd8] sm:$0xff] }
  0x42   :  { %v85_v31 = vld [vmem:[%s11605_s0 + $0xe0] sm:$0xff]  ;;  %v86_v32 = vld [vmem:[%s11605_s0 + $0xe8] sm:$0xff]  ;;  %v87_v33 = vld [vmem:[%s11605_s0 + $0xf0] sm:$0xff] }
  0x43   :  { %7102 = vmatmul.mubr.msk.f32.gmra.mrb[2].mxu0 %vm194_vm1, %v60_v6  ;;  %v88_v34 = vld [vmem:[%s11605_s0 + $0xf8] sm:$0xff]  ;;  %v89_v35 = vld [vmem:[%s11605_s0 + $0x100] sm:$0xff]  ;;  %v90_v36 = vld [vmem:[%s11605_s0 + $0x108] sm:$0xff] }
  0x44   :  { %7104 = vmatprep.mubr.msk.f32.mxu0 %vm194_vm1, %v61_v7  ;;  %v91_v37 = vld [vmem:[%s11605_s0 + $0x110] sm:$0xff]  ;;  %v92_v38 = vld [vmem:[%s11605_s0 + $0x118] sm:$0xff]  ;;  %v93_v39 = vld [vmem:[%s11605_s0 + $0x120] sm:$0xff] }
  0x45   :  { %v94_v40 = vld [vmem:[%s11605_s0 + $0x128] sm:$0xff]  ;;  %v95_v41 = vld [vmem:[%s11605_s0 + $0x130] sm:$0xff]  ;;  %v96_v42 = vld [vmem:[%s11605_s0 + $0x138] sm:$0xff] }
  0x46   :  { %v97_v43 = vld [vmem:[%s11605_s0 + $0x140] sm:$0xff]  ;;  %v98_v44 = vld [vmem:[%s11605_s0 + $0x148] sm:$0xff]  ;;  %v99_v45 = vld [vmem:[%s11605_s0 + $0x150] sm:$0xff] }
  0x47   :  { %7105 = vmatmul.mubr.msk.f32.gmra.mrb[4].mxu0 %vm194_vm1, %v62_v8  ;;  %v100_v46 = vld [vmem:[%s11605_s0 + $0x158] sm:$0xff]  ;;  %v101_v47 = vld [vmem:[%s11605_s0 + $0x160] sm:$0xff]  ;;  %v102_v48 = vld [vmem:[%s11605_s0 + $0x168] sm:$0xff] }
  0x48   :  { %7107 = vmatprep.mubr.msk.f32.mxu0 %vm194_vm1, %v63_v9  ;;  %v103_v49 = vld [vmem:[%s11605_s0 + $0x170] sm:$0xff]  ;;  %v104_v50 = vld [vmem:[%s11605_s0 + $0x178] sm:$0xff]  ;;  %v105_v51 = vld [vmem:[%s11605_s0 + $0x180] sm:$0xff] }
  0x49   :  { %v106_v52 = vld [vmem:[%s11605_s0 + $0x188] sm:$0xff]  ;;  %v107_v53 = vld [vmem:[%s11605_s0 + $0x190] sm:$0xff]  ;;  %v108_v54 = vld [vmem:[%s11605_s0 + $0x198] sm:$0xff] }
  0x4a   :  { %v109_v55 = vld [vmem:[%s11605_s0 + $0x1a0] sm:$0xff]  ;;  %v110_v56 = vld [vmem:[%s11605_s0 + $0x1a8] sm:$0xff]  ;;  %v111_v57 = vld [vmem:[%s11605_s0 + $0x1b0] sm:$0xff] }
  0x4b   :  { %7108 = vmatmul.mubr.msk.f32.gmra.mrb[6].mxu0 %vm194_vm1, %v64_v10  ;;  %v112_v58 = vld [vmem:[%s11605_s0 + $0x1b8] sm:$0xff]  ;;  %v113_v59 = vld [vmem:[%s11605_s0 + $0x1c0] sm:$0xff]  ;;  %v114_v60 = vld [vmem:[%s11605_s0 + $0x1c8] sm:$0xff] }
  0x4c   :  { %7110 = vmatprep.mubr.msk.f32.mxu0 %vm194_vm1, %v65_v11  ;;  %v115_v61 = vld [vmem:[%s11605_s0 + $0x1d0] sm:$0xff]  ;;  %v116_v62 = vld [vmem:[%s11605_s0 + $0x1d8] sm:$0xff]  ;;  %v117_v63 = vld [vmem:[%s11605_s0 + $0x1e0] sm:$0xff] }
  0x4d   :  { %v118_v0 = vld [vmem:[%s11605_s0 + $0x1e8] sm:$0xff]  ;;  %v119_v1 = vld [vmem:[%s11605_s0 + $0x1f0] sm:$0xff]  ;;  %v120_v2 = vld [vmem:[%s11605_s0 + $0x1f8] sm:$0xff] }
  0x4e   :  { %v121_v3 = vld [vmem:[%s11605_s0 + $0x200] sm:$0xff]  ;;  %v122_v4 = vld [vmem:[%s11605_s0 + $0x208] sm:$0xff]  ;;  %v123_v5 = vld [vmem:[%s11605_s0 + $0x210] sm:$0xff] }
  0x4f   :  { %7111 = vmatmul.mubr.msk.f32.gmra.mrb[8].mxu0 %vm194_vm1, %v66_v12  ;;  %v124_v6 = vld [vmem:[%s11605_s0 + $0x218] sm:$0xff]  ;;  %v125_v7 = vld [vmem:[%s11605_s0 + $0x220] sm:$0xff]  ;;  %v126_v8 = vld [vmem:[%s11605_s0 + $0x228] sm:$0xff] }
  0x50   :  { %7113 = vmatprep.mubr.msk.f32.mxu0 %vm194_vm1, %v67_v13  ;;  %v127_v9 = vld [vmem:[%s11605_s0 + $0x230] sm:$0xff]  ;;  %v128_v10 = vld [vmem:[%s11605_s0 + $0x238] sm:$0xff]  ;;  %v129_v11 = vld [vmem:[%s11605_s0 + $0x240] sm:$0xff] }
  0x51   :  { %v130_v12 = vld [vmem:[%s11605_s0 + $0x248] sm:$0xff]  ;;  %v131_v13 = vld [vmem:[%s11605_s0 + $0x250] sm:$0xff] }
  0x53   :  { %7114 = vmatmul.mubr.msk.f32.gmra.mrb[10].mxu0 %vm194_vm1, %v68_v14  ;;  %v132_v14 = vld [vmem:[%s11605_s0 + $0x258] sm:$0xff] }
  0x54   :  { %7116 = vmatprep.mubr.msk.f32.mxu0 %vm194_vm1, %v69_v15  ;;  %v133_v15 = vld [vmem:[%s11605_s0 + $0x260] sm:$0xff] }
  0x57   :  { %7117 = vmatmul.mubr.msk.f32.gmra.mrb[12].mxu0 %vm194_vm1, %v70_v16  ;;  %v134_v16 = vld [vmem:[%s11605_s0 + $0x268] sm:$0xff] }
  0x58   :  { %7119 = vmatprep.mubr.msk.f32.mxu0 %vm194_vm1, %v71_v17  ;;  %v135_v17 = vld [vmem:[%s11605_s0 + $0x270] sm:$0xff] }
  0x5b   :  { %7120 = vmatmul.mubr.msk.f32.gmra.mrb[14].mxu0 %vm194_vm1, %v72_v18  ;;  %v136_v18 = vld [vmem:[%s11605_s0 + $0x278] sm:$0xff] }
  0x5c   :  { %7122 = vmatprep.mubr.msk.f32.mxu0 %vm194_vm1, %v73_v19  ;;  %v137_v19 = vld [vmem:[%s11605_s0 + $0x280] sm:$0xff] }
  0x5f   :  { %7123 = vmatmul.mubr.msk.f32.gmra.mrb[16].mxu0 %vm194_vm1, %v74_v20  ;;  %v138_v20 = vld [vmem:[%s11605_s0 + $0x288] sm:$0xff] }
  0x60   :  { %7125 = vmatprep.mubr.msk.f32.mxu0 %vm194_vm1, %v75_v21  ;;  %v139_v21 = vld [vmem:[%s11605_s0 + $0x290] sm:$0xff] }
  0x63   :  { %7126 = vmatmul.mubr.msk.f32.gmra.mrb[18].mxu0 %vm194_vm1, %v76_v22  ;;  %v140_v22 = vld [vmem:[%s11605_s0 + $0x298] sm:$0xff] }
  0x64   :  { %7128 = vmatprep.mubr.msk.f32.mxu0 %vm194_vm1, %v77_v23  ;;  %v141_v23 = vld [vmem:[%s11605_s0 + $0x2a0] sm:$0xff] }
  0x67   :  { %7129 = vmatmul.mubr.msk.f32.gmra.mrb[20].mxu0 %vm194_vm1, %v78_v24  ;;  %v142_v24 = vld [vmem:[%s11605_s0 + $0x2a8] sm:$0xff] }
  0x68   :  { %7131 = vmatprep.mubr.msk.f32.mxu0 %vm194_vm1, %v79_v25  ;;  %v143_v25 = vld [vmem:[%s11605_s0 + $0x2b0] sm:$0xff] }
  0x6b   :  { %7132 = vmatmul.mubr.msk.f32.gmra.mrb[22].mxu0 %vm194_vm1, %v80_v26  ;;  %v144_v26 = vld [vmem:[%s11605_s0 + $0x2b8] sm:$0xff] }
  0x6c   :  { %7134 = vmatprep.mubr.msk.f32.mxu0 %vm194_vm1, %v81_v27  ;;  %v145_v27 = vld [vmem:[%s11605_s0 + $0x2c0] sm:$0xff] }
  0x6f   :  { %7135 = vmatmul.mubr.msk.f32.gmra.mrb[24].mxu0 %vm194_vm1, %v82_v28  ;;  %v146_v28 = vld [vmem:[%s11605_s0 + $0x2c8] sm:$0xff] }
  0x70   :  { %7137 = vmatprep.mubr.msk.f32.mxu0 %vm194_vm1, %v83_v29  ;;  %v147_v29 = vld [vmem:[%s11605_s0 + $0x2d0] sm:$0xff] }
  0x73   :  { %7138 = vmatmul.mubr.msk.f32.gmra.mrb[26].mxu0 %vm194_vm1, %v84_v30  ;;  %v148_v30 = vld [vmem:[%s11605_s0 + $0x2d8] sm:$0xff] }
  0x74   :  { %7140 = vmatprep.mubr.msk.f32.mxu0 %vm194_vm1, %v85_v31  ;;  %v149_v31 = vld [vmem:[%s11605_s0 + $0x2e0] sm:$0xff] }
  0x77   :  { %7141 = vmatmul.mubr.msk.f32.gmra.mrb[28].mxu0 %vm194_vm1, %v86_v32  ;;  %v150_v32 = vld [vmem:[%s11605_s0 + $0x2e8] sm:$0xff] }
  0x78   :  { %7143 = vmatprep.mubr.msk.f32.mxu0 %vm194_vm1, %v87_v33  ;;  %v151_v33 = vld [vmem:[%s11605_s0 + $0x2f0] sm:$0xff] }
  0x7b   :  { %7144 = vmatmul.mubr.msk.f32.gmra.mrb[30].mxu0 %vm194_vm1, %v88_v34  ;;  %v152_v34 = vld [vmem:[%s11605_s0 + $0x2f8] sm:$0xff] }
  0x7c   :  { %7146 = vmatprep.mubr.msk.f32.mxu0 %vm194_vm1, %v89_v35  ;;  %v153_v35 = vld [vmem:[%s11605_s0 + $0x300] sm:$0xff] }
  0x7f   :  { %7147 = vmatmul.mubr.msk.f32.gmra.mrb[32].mxu0 %vm194_vm1, %v90_v36  ;;  %v154_v36 = vld [vmem:[%s11605_s0 + $0x308] sm:$0xff] }
  0x80   :  { %7149 = vmatprep.mubr.msk.f32.mxu0 %vm194_vm1, %v91_v37  ;;  %v155_v37 = vld [vmem:[%s11605_s0 + $0x310] sm:$0xff] }
  0x83   :  { %7150 = vmatmul.mubr.msk.f32.gmra.mrb[34].mxu0 %vm194_vm1, %v92_v38  ;;  %v156_v38 = vld [vmem:[%s11605_s0 + $0x318] sm:$0xff] }
  0x84   :  { %7152 = vmatprep.mubr.msk.f32.mxu0 %vm194_vm1, %v93_v39  ;;  %v157_v39 = vld [vmem:[%s11605_s0 + $0x320] sm:$0xff] }
  0x87   :  { %7153 = vmatmul.mubr.msk.f32.gmra.mrb[36].mxu0 %vm194_vm1, %v94_v40  ;;  %v158_v40 = vld [vmem:[%s11605_s0 + $0x328] sm:$0xff] }
  0x88   :  { %7155 = vmatprep.mubr.msk.f32.mxu0 %vm194_vm1, %v95_v41  ;;  %v159_v41 = vld [vmem:[%s11605_s0 + $0x330] sm:$0xff] }
  0x8b   :  { %7156 = vmatmul.mubr.msk.f32.gmra.mrb[38].mxu0 %vm194_vm1, %v96_v42  ;;  %v160_v42 = vld [vmem:[%s11605_s0 + $0x338] sm:$0xff] }
  0x8c   :  { %7158 = vmatprep.mubr.msk.f32.mxu0 %vm194_vm1, %v97_v43  ;;  %v161_v43 = vld [vmem:[%s11605_s0 + $0x340] sm:$0xff] }
  0x8f   :  { %7159 = vmatmul.mubr.msk.f32.gmra.mrb[40].mxu0 %vm194_vm1, %v98_v44  ;;  %v162_v44 = vld [vmem:[%s11605_s0 + $0x348] sm:$0xff] }
  0x90   :  { %7161 = vmatprep.mubr.msk.f32.mxu0 %vm194_vm1, %v99_v45  ;;  %v163_v45 = vld [vmem:[%s11605_s0 + $0x350] sm:$0xff] }
  0x93   :  { %7162 = vmatmul.mubr.msk.f32.gmra.mrb[42].mxu0 %vm194_vm1, %v100_v46  ;;  %v164_v46 = vld [vmem:[%s11605_s0 + $0x358] sm:$0xff] }
  0x94   :  { %7164 = vmatprep.mubr.msk.f32.mxu0 %vm194_vm1, %v101_v47  ;;  %v165_v47 = vld [vmem:[%s11605_s0 + $0x360] sm:$0xff] }
  0x97   :  { %7165 = vmatmul.mubr.msk.f32.gmra.mrb[44].mxu0 %vm194_vm1, %v102_v48 }
  0x98   :  { %7167 = vmatprep.mubr.msk.f32.mxu0 %vm194_vm1, %v103_v49 }
  0x9b   :  { %7168 = vmatmul.mubr.msk.f32.gmra.mrb[46].mxu0 %vm194_vm1, %v104_v50  ;;  %v166_v50 = vld [vmem:[%s11605_s0 + $0x368] sm:$0xff] }
  0x9c   :  { %7170 = vmatprep.mubr.msk.f32.mxu0 %vm194_vm1, %v105_v51  ;;  %v167_v51 = vld [vmem:[%s11605_s0 + $0x370] sm:$0xff] }
  0x9f   :  { %7171 = vmatmul.mubr.msk.f32.gmra.mrb[48].mxu0 %vm194_vm1, %v106_v52 }
  0xa0   :  { %7173 = vmatprep.mubr.msk.f32.mxu0 %vm194_vm1, %v107_v53 }
  0xa3   :  { %7174 = vmatmul.mubr.msk.f32.gmra.mrb[50].mxu0 %vm194_vm1, %v108_v54  ;;  %v168_v54 = vld [vmem:[%s11605_s0 + $0x378] sm:$0xff] }
  0xa4   :  { %7176 = vmatprep.mubr.msk.f32.mxu0 %vm194_vm1, %v109_v55  ;;  %v169_v55 = vld [vmem:[%s11605_s0 + $0x380] sm:$0xff] }
  0xa7   :  { %7177 = vmatmul.mubr.msk.f32.gmra.mrb[52].mxu0 %vm194_vm1, %v110_v56 }
  0xa8   :  { %7179 = vmatprep.mubr.msk.f32.mxu0 %vm194_vm1, %v111_v57 }
  0xab   :  { %7180 = vmatmul.mubr.msk.f32.gmra.mrb[54].mxu0 %vm194_vm1, %v112_v58  ;;  %v170_v58 = vld [vmem:[%s11605_s0 + $0x388] sm:$0xff] }
  0xac   :  { %7182 = vmatprep.mubr.msk.f32.mxu0 %vm194_vm1, %v113_v59  ;;  %v171_v59 = vld [vmem:[%s11605_s0 + $0x390] sm:$0xff] }
  0xaf   :  { %7183 = vmatmul.mubr.msk.f32.gmra.mrb[56].mxu0 %vm194_vm1, %v114_v60 }
  0xb0   :  { %7185 = vmatprep.mubr.msk.f32.mxu0 %vm194_vm1, %v115_v61 }
  0xb3   :  { %7186 = vmatmul.mubr.msk.f32.gmra.mrb[58].mxu0 %vm194_vm1, %v116_v62  ;;  %v172_v62 = vld [vmem:[%s11605_s0 + $0x398] sm:$0xff] }
  0xb4   :  { %7188 = vmatprep.mubr.msk.f32.mxu0 %vm194_vm1, %v117_v63  ;;  %v173_v63 = vld [vmem:[%s11605_s0 + $0x3a0] sm:$0xff] }
  0xb7   :  { %7189 = vmatmul.mubr.msk.f32.gmra.mrb[60].mxu0 %vm194_vm1, %v118_v0  ;;  %v4748_v0 = vld [vmem:[%s11608_s3] sm:$0xff] }
  0xb8   :  { %7191 = vmatprep.mubr.msk.f32.mxu0 %vm194_vm1, %v119_v1  ;;  %v4749_v1 = vld [vmem:[%s11608_s3 + $0x8] sm:$0xff] }
  0xbb   :  { %7192 = vmatmul.mubr.msk.f32.gmra.mrb[62].mxu0 %vm194_vm1, %v120_v2 }
  0xbc   :  { %7194 = vmatprep.mubr.msk.f32.mxu0 %vm194_vm1, %v121_v3  ;;  %v7297_v3 = vpack.c.bf16 %v4749_v1, %v4748_v0  ;;  %v4763_v0 = vld [vmem:[%s11608_s3 + $0x78] sm:$0xff] }
  0xbf   :  { %7195 = vmatmul.mubr.msk.f32.gmra.mrb[64].mxu0 %vm194_vm1, %v122_v4 }
  0xc0   :  { %7197 = vmatprep.mubr.msk.f32.mxu0 %vm194_vm1, %v123_v5  ;;  %v7628_v5 = vmov 0.0|0.0  }
  0xc1   :  { %7332 = vmatprep.subr.bf16.mxu1 %v7628_v5  ;;  %7296 = vmatprep.subr.bf16.mxu0 %v7628_v5 }
  0xc2   :  { %7344 = vmatpush1.bf16.msra.mxu1 %v7297_v3  ;;  %7298 = vmatpush1.bf16.msra.mxu0 %v7297_v3 }
  0xc3   :  { %7198 = vmatmul.mubr.msk.f32.gmra.mrb[66].mxu0 %vm194_vm1, %v124_v6  ;;  %v174_v6 = vld [vmem:[%s11605_s0 + $0x3a8] sm:$0xff]  ;;  %7333 = vmatprep.subr.bf16.mxu1 %v7628_v5 }
  0xc4   :  { %7200 = vmatprep.mubr.msk.f32.mxu0 %vm194_vm1, %v125_v7  ;;  %v175_v7 = vld [vmem:[%s11605_s0 + $0x3b0] sm:$0xff]  ;;  %7299 = vmatprep.subr.bf16.mxu0 %v7628_v5 }
  0xc7   :  { %7201 = vmatmul.mubr.msk.f32.gmra.mrb[68].mxu0 %vm194_vm1, %v126_v8  ;;  %v4750_v8 = vld [vmem:[%s11608_s3 + $0x10] sm:$0xff] }
  0xc8   :  { %7203 = vmatprep.mubr.msk.f32.mxu0 %vm194_vm1, %v127_v9  ;;  %v4751_v9 = vld [vmem:[%s11608_s3 + $0x18] sm:$0xff] }
  0xcb   :  { %7204 = vmatmul.mubr.msk.f32.gmra.mrb[70].mxu0 %vm194_vm1, %v128_v10 }
  0xcc   :  { %7206 = vmatprep.mubr.msk.f32.mxu0 %vm194_vm1, %v129_v11  ;;  %v7300_v11 = vpack.c.bf16 %v4751_v9, %v4750_v8  ;;  %v4765_v8 = vld [vmem:[%s11608_s3 + $0x88] sm:$0xff] }
  0xce   :  { %7345 = vmatpush1.bf16.msra.mxu1 %v7300_v11  ;;  %7301 = vmatpush1.bf16.msra.mxu0 %v7300_v11 }
  0xcf   :  { %7207 = vmatmul.mubr.msk.f32.gmra.mrb[72].mxu0 %vm194_vm1, %v130_v12  ;;  %7334 = vmatprep.subr.bf16.mxu1 %v7628_v5 }
  0xd0   :  { %7209 = vmatprep.mubr.msk.f32.mxu0 %vm194_vm1, %v131_v13  ;;  %v176_v13 = vld [vmem:[%s11605_s0 + $0x3b8] sm:$0xff]  ;;  %7302 = vmatprep.subr.bf16.mxu0 %v7628_v5 }
  0xd3   :  { %7210 = vmatmul.mubr.msk.f32.gmra.mrb[74].mxu0 %vm194_vm1, %v132_v14  ;;  %v177_v14 = vld [vmem:[%s11605_s0 + $0x3c0] sm:$0xff] }
  0xd4   :  { %7212 = vmatprep.mubr.msk.f32.mxu0 %vm194_vm1, %v133_v15  ;;  %v4752_v15 = vld [vmem:[%s11608_s3 + $0x20] sm:$0xff] }
  0xd7   :  { %7213 = vmatmul.mubr.msk.f32.gmra.mrb[76].mxu0 %vm194_vm1, %v134_v16  ;;  %v4753_v16 = vld [vmem:[%s11608_s3 + $0x28] sm:$0xff] }
  0xd8   :  { %7215 = vmatprep.mubr.msk.f32.mxu0 %vm194_vm1, %v135_v17 }
  0xdb   :  { %7216 = vmatmul.mubr.msk.f32.gmra.mrb[78].mxu0 %vm194_vm1, %v136_v18  ;;  %v7303_v18 = vpack.c.bf16 %v4753_v16, %v4752_v15  ;;  %v4767_v15 = vld [vmem:[%s11608_s3 + $0x98] sm:$0xff] }
  0xdc   :  { %7218 = vmatprep.mubr.msk.f32.mxu0 %vm194_vm1, %v137_v19 }
  0xdd   :  { %7346 = vmatpush1.bf16.msra.mxu1 %v7303_v18  ;;  %7304 = vmatpush1.bf16.msra.mxu0 %v7303_v18 }
  0xde   :  { %7335 = vmatprep.subr.bf16.mxu1 %v7628_v5  ;;  %7305 = vmatprep.subr.bf16.mxu0 %v7628_v5 }
  0xdf   :  { %7219 = vmatmul.mubr.msk.f32.gmra.mrb[80].mxu0 %vm194_vm1, %v138_v20  ;;  %v8238_v20 = vld [vmem:[#allocation5] ss:$0 sm:$0xff] }
  0xe0   :  { %7221 = vmatprep.mubr.msk.f32.mxu0 %vm194_vm1, %v139_v21  ;;  %v178_v21 = vld [vmem:[%s11605_s0 + $0x3c8] sm:$0xff] }
  0xe3   :  { %7222 = vmatmul.mubr.msk.f32.gmra.mrb[82].mxu0 %vm194_vm1, %v140_v22  ;;  %v179_v22 = vld [vmem:[%s11605_s0 + $0x3d0] sm:$0xff] }
  0xe4   :  { %7224 = vmatprep.mubr.msk.f32.mxu0 %vm194_vm1, %v141_v23  ;;  %v4754_v23 = vld [vmem:[%s11608_s3 + $0x30] sm:$0xff] }
  0xe7   :  { %7225 = vmatmul.mubr.msk.f32.gmra.mrb[84].mxu0 %vm194_vm1, %v142_v24  ;;  %v4755_v24 = vld [vmem:[%s11608_s3 + $0x38] sm:$0xff] }
  0xe8   :  { %7227 = vmatprep.mubr.msk.f32.mxu0 %vm194_vm1, %v143_v25 }
  0xeb   :  { %7228 = vmatmul.mubr.msk.f32.gmra.mrb[86].mxu0 %vm194_vm1, %v144_v26  ;;  %v7306_v26 = vpack.c.bf16 %v4755_v24, %v4754_v23  ;;  %v4769_v23 = vld [vmem:[%s11608_s3 + $0xa8] sm:$0xff] }
  0xec   :  { %7230 = vmatprep.mubr.msk.f32.mxu0 %vm194_vm1, %v145_v27 }
  0xed   :  { %7347 = vmatpush1.bf16.msra.mxu1 %v7306_v26  ;;  %7307 = vmatpush1.bf16.msra.mxu0 %v7306_v26 }
  0xee   :  { %7336 = vmatprep.subr.bf16.mxu1 %v7628_v5  ;;  %7308 = vmatprep.subr.bf16.mxu0 %v7628_v5 }
  0xef   :  { %7231 = vmatmul.mubr.msk.f32.gmra.mrb[88].mxu0 %vm194_vm1, %v146_v28 }
  0xf0   :  { %7233 = vmatprep.mubr.msk.f32.mxu0 %vm194_vm1, %v147_v29 }
  0xf3   :  { %7234 = vmatmul.mubr.msk.f32.gmra.mrb[90].mxu0 %vm194_vm1, %v148_v30  ;;  %v180_v30 = vld [vmem:[%s11605_s0 + $0x3d8] sm:$0xff] }
  0xf4   :  { %7236 = vmatprep.mubr.msk.f32.mxu0 %vm194_vm1, %v149_v31  ;;  %v1416_v31 = vlaneseq }
  0xf7   :  { %7237 = vmatmul.mubr.msk.f32.gmra.mrb[92].mxu0 %vm194_vm1, %v150_v32  ;;  %v181_v32 = vld [vmem:[%s11605_s0 + $0x3e0] sm:$0xff] }
  0xf8   :  { %7239 = vmatprep.mubr.msk.f32.mxu0 %vm194_vm1, %v151_v33  ;;  %v4756_v33 = vld [vmem:[%s11608_s3 + $0x40] sm:$0xff] }
  0xfb   :  { %7240 = vmatmul.mubr.msk.f32.gmra.mrb[94].mxu0 %vm194_vm1, %v152_v34  ;;  %v4757_v34 = vld [vmem:[%s11608_s3 + $0x48] sm:$0xff] }
  0xfc   :  { %7242 = vmatprep.mubr.msk.f32.mxu0 %vm194_vm1, %v153_v35 }
  0xff   :  { %7243 = vmatmul.mubr.msk.f32.gmra.mrb[96].mxu0 %vm194_vm1, %v154_v36  ;;  %v7309_v36 = vpack.c.bf16 %v4757_v34, %v4756_v33 }
 0x100   :  { %7245 = vmatprep.mubr.msk.f32.mxu0 %vm194_vm1, %v155_v37 }
 0x101   :  { %7348 = vmatpush1.bf16.msra.mxu1 %v7309_v36  ;;  %7310 = vmatpush1.bf16.msra.mxu0 %v7309_v36 }
 0x102   :  { %7337 = vmatprep.subr.bf16.mxu1 %v7628_v5  ;;  %7311 = vmatprep.subr.bf16.mxu0 %v7628_v5 }
 0x103   :  { %7246 = vmatmul.mubr.msk.f32.gmra.mrb[98].mxu0 %vm194_vm1, %v156_v38 }
 0x104   :  { %7248 = vmatprep.mubr.msk.f32.mxu0 %vm194_vm1, %v157_v39 }
 0x107   :  { %7249 = vmatmul.mubr.msk.f32.gmra.mrb[100].mxu0 %vm194_vm1, %v158_v40  ;;  %v182_v40 = vld [vmem:[%s11605_s0 + $0x3e8] sm:$0xff] }
 0x108   :  { %7251 = vmatprep.mubr.msk.f32.mxu0 %vm194_vm1, %v159_v41  ;;  %v8292_v41 = vshrl.u32 %v1416_v31, 7 }
 0x10a   :  { %vm3850_vm4 = vcmp.lt.s32.totalorder %v8292_v41, 7  ;;  %vm3337_vm6 = vcmp.lt.s32.totalorder %v8292_v41, 1 }
 0x10b   :  { %7252 = vmatmul.mubr.msk.f32.gmra.mrb[102].mxu0 %vm194_vm1, %v160_v42  ;;  %v183_v42 = vld [vmem:[%s11605_s0 + $0x3f0] sm:$0xff] }
 0x10c   :  { %7254 = vmatprep.mubr.msk.f32.mxu0 %vm194_vm1, %v161_v43  ;;  %v4758_v43 = vld [vmem:[%s11608_s3 + $0x50] sm:$0xff] }
 0x10f   :  { %7255 = vmatmul.mubr.msk.f32.gmra.mrb[104].mxu0 %vm194_vm1, %v162_v44  ;;  %v4759_v44 = vld [vmem:[%s11608_s3 + $0x58] sm:$0xff] }
 0x110   :  { %7257 = vmatprep.mubr.msk.f32.mxu0 %vm194_vm1, %v163_v45 }
 0x112   :  { %v8137_v48 = vpop.f32.mrb[0].mxu0 }
 0x113   :  { %v8139_v49 = vpop.f32.mrb[1].mxu0  ;;  %7258 = vmatmul.mubr.msk.f32.gmra.mrb[106].mxu0 %vm194_vm1, %v164_v46  ;;  %v655_v27 = vadd.f32 %v8137_v48, %v8238_v20  ;;  %v7312_v46 = vpack.c.bf16 %v4759_v44, %v4758_v43 }
 0x114   :  { %7260 = vmatprep.mubr.msk.f32.mxu0 %vm194_vm1, %v165_v47  ;;  %v650_v28 = vadd.f32 %v8238_v20, %v8139_v49 }
 0x115   :  { %v8280_v37 = vmax.f32 %v655_v27, 0.0  ;;  %7349 = vmatpush1.bf16.msra.mxu1 %v7312_v46  ;;  %7313 = vmatpush1.bf16.msra.mxu0 %v7312_v46 }
 0x116   :  { %v8149_v52 = vpop.f32.mrb[2].mxu0  ;;  %v8282_v38 = vmax.f32 %v650_v28, 0.0  ;;  %7338 = vmatprep.subr.bf16.mxu1 %v7628_v5  ;;  %7314 = vmatprep.subr.bf16.mxu0 %v7628_v5  ;;  %v4770_v28 = vld [vmem:[%s11608_s3 + $0xb0] sm:$0xff] }
 0x117   :  { %v8151_v53 = vpop.f32.mrb[3].mxu0  ;;  %7261 = vmatmul.mubr.msk.f32.gmra.mrb[108].mxu0 %vm194_vm1, %v166_v50  ;;  %11685 = vst [vmem:[#allocation10_spill] sm:$0xff] %v8280_v37  ;;  %v11613_v47 = vrot.slane %v8280_v37, 1  ;;  %v184_v50 = vld [vmem:[%s11605_s0 + $0x3f8] sm:$0xff] }
 0x118   :  { %7263 = vmatprep.mubr.msk.f32.mxu0 %vm194_vm1, %v167_v51  ;;  %11686 = vst [vmem:[#allocation11_spill] sm:$0xff] %v8282_v38  ;;  %v11611_v48 = vrot.slane %v8282_v38, 1  ;;  %v4760_v51 = vld [vmem:[%s11608_s3 + $0x60] sm:$0xff] }
 0x11a   :  { %v8161_v56 = vpop.f32.mrb[4].mxu0 }
 0x11b   :  { %v8163_v57 = vpop.f32.mrb[5].mxu0  ;;  %7264 = vmatmul.mubr.msk.f32.gmra.mrb[110].mxu0 %vm194_vm1, %v168_v54  ;;  %v4761_v54 = vld [vmem:[%s11608_s3 + $0x68] sm:$0xff] }
 0x11c   :  { %7266 = vmatprep.mubr.msk.f32.mxu0 %vm194_vm1, %v169_v55 }
 0x11e   :  { %v8173_v60 = vpop.f32.mrb[6].mxu0 }
 0x11f   :  { %v8175_v61 = vpop.f32.mrb[7].mxu0  ;;  %7267 = vmatmul.mubr.msk.f32.gmra.mrb[112].mxu0 %vm194_vm1, %v170_v58  ;;  %v7315_v58 = vpack.c.bf16 %v4761_v54, %v4760_v51 }
 0x120   :  { %7269 = vmatprep.mubr.msk.f32.mxu0 %vm194_vm1, %v171_v59 }
 0x121   :  { %7350 = vmatpush1.bf16.msra.mxu1 %v7315_v58  ;;  %7316 = vmatpush1.bf16.msra.mxu0 %v7315_v58 }
 0x122   :  { %v8191_v2 = vpop.f32.mrb[8].mxu0  ;;  %7339 = vmatprep.subr.bf16.mxu1 %v7628_v5  ;;  %7317 = vmatprep.subr.bf16.mxu0 %v7628_v5 }
 0x123   :  { %v8193_v4 = vpop.f32.mrb[9].mxu0  ;;  %7270 = vmatmul.mubr.msk.f32.gmra.mrb[114].mxu0 %vm194_vm1, %v172_v62  ;;  %v3977_v62 = vsel %vm3850_vm4, %v11611_v48, %v11613_v47 }
 0x124   :  { %7272 = vmatprep.mubr.msk.f32.mxu0 %vm194_vm1, %v173_v63  ;;  %v4762_v63 = vld [vmem:[%s11608_s3 + $0x70] sm:$0xff] }
 0x125   :  { %v7318_v3 = vpack.c.bf16 %v4763_v0, %v4762_v63 }
 0x126   :  { %v8212_v10 = vpop.f32.mrb[10].mxu0 }
 0x127   :  { %v8214_v12 = vpop.f32.mrb[11].mxu0  ;;  %7273 = vmatmul.mubr.msk.f32.gmra.mrb[116].mxu0 %vm194_vm1, %v174_v6  ;;  %7351 = vmatpush1.bf16.msra.mxu1 %v7318_v3 }
 0x128   :  { %7275 = vmatprep.mubr.msk.f32.mxu0 %vm194_vm1, %v175_v7  ;;  %7340 = vmatprep.subr.bf16.mxu1 %v7628_v5  ;;  %v4764_v7 = vld [vmem:[%s11608_s3 + $0x80] sm:$0xff] }
 0x129   :  { %v7321_v11 = vpack.c.bf16 %v4765_v8, %v4764_v7  ;;  %7319 = vmatpush1.bf16.msra.mxu0 %v7318_v3 }
 0x12a   :  { %v8232_v17 = vpop.f32.mrb[12].mxu0  ;;  %7320 = vmatprep.subr.bf16.mxu0 %v7628_v5 }
 0x12b   :  { %v8234_v19 = vpop.f32.mrb[13].mxu0  ;;  %7276 = vmatmul.mubr.msk.f32.gmra.mrb[118].mxu0 %vm194_vm1, %v176_v13  ;;  %7352 = vmatpush1.bf16.msra.mxu1 %v7321_v11 }
 0x12c   :  { %7278 = vmatprep.mubr.msk.f32.mxu0 %vm194_vm1, %v177_v14  ;;  %7341 = vmatprep.subr.bf16.mxu1 %v7628_v5  ;;  %v4766_v14 = vld [vmem:[%s11608_s3 + $0x90] sm:$0xff] }
 0x12d   :  { %v7324_v18 = vpack.c.bf16 %v4767_v15, %v4766_v14  ;;  %7322 = vmatpush1.bf16.msra.mxu0 %v7321_v11 }
 0x12e   :  { %v8254_v25 = vpop.f32.mrb[14].mxu0  ;;  %7323 = vmatprep.subr.bf16.mxu0 %v7628_v5 }
 0x12f   :  { %v8260_v29 = vpop.f32.mrb[15].mxu0  ;;  %7279 = vmatmul.mubr.msk.f32.gmra.mrb[120].mxu0 %vm194_vm1, %v178_v21  ;;  %7353 = vmatpush1.bf16.msra.mxu1 %v7324_v18 }
 0x130   :  { %7281 = vmatprep.mubr.msk.f32.mxu0 %vm194_vm1, %v179_v22  ;;  %7342 = vmatprep.subr.bf16.mxu1 %v7628_v5  ;;  %v4768_v22 = vld [vmem:[%s11608_s3 + $0xa0] sm:$0xff] }
 0x131   :  { %v7327_v26 = vpack.c.bf16 %v4769_v23, %v4768_v22  ;;  %7325 = vmatpush1.bf16.msra.mxu0 %v7324_v18 }
 0x132   :  { %v8278_v35 = vpop.f32.mrb[16].mxu0  ;;  %7326 = vmatprep.subr.bf16.mxu0 %v7628_v5 }
 0x133   :  { %v8284_v39 = vpop.f32.mrb[17].mxu0  ;;  %7282 = vmatmul.mubr.msk.f32.gmra.mrb[122].mxu0 %vm194_vm1, %v180_v30  ;;  %7354 = vmatpush1.bf16.msra.mxu1 %v7327_v26  ;;  %v4771_v30 = vld [vmem:[%s11608_s3 + $0xb8] sm:$0xff]  ;;  %s7629_s3 = smov 64  }
 0x134   :  { %7284 = vmatprep.mubr.msk.f32.mxu0 %vm194_vm1, %v181_v32  ;;  %7343 = vmatprep.subr.bf16.mxu1 %v7628_v5  ;;  %v7330_v32 = vpack.c.bf16 %v4771_v30, %v4770_v28 }
 0x135   :  { %7328 = vmatpush1.bf16.msra.mxu0 %v7327_v26 }
 0x136   :  { %v8304_v45 = vpop.f32.mrb[18].mxu0  ;;  %7329 = vmatprep.subr.bf16.mxu0 %v7628_v5 }
 0x137   :  { %v8308_v49 = vpop.f32.mrb[19].mxu0  ;;  %7285 = vmatmul.mubr.msk.f32.gmra.mrb[124].mxu0 %vm194_vm1, %v182_v40  ;;  %7355 = vmatpush1.bf16.msra.mxu1 %v7330_v32 }
 0x138   :  { %7287 = vmatprep.mubr.msk.f32.mxu0 %vm194_vm1, %v183_v42 }
 0x139   :  { %7331 = vmatpush1.bf16.msra.mxu0 %v7330_v32 }
 0x13a   :  { %v8324_v55 = vpop.f32.mrb[20].mxu0 }
 0x13b   :  { %v8326_v59 = vpop.f32.mrb[21].mxu0  ;;  %7288 = vmatmul.mubr.msk.f32.gmra.mrb[126].mxu0 %vm194_vm1, %v184_v50 }
 0x13c   :  { %6836 = vmatprep.mubr.msk.f32.mxu0 %vm4619_vm5, %v3977_v62 }
 0x13e   :  { %v8344_v1 = vpop.f32.mrb[22].mxu0 }
 0x13f   :  { %v8346_v6 = vpop.f32.mrb[23].mxu0 }
 0x142   :  { %v8356_v9 = vpop.f32.mrb[24].mxu0 }
 0x143   :  { %v8358_v13 = vpop.f32.mrb[25].mxu0 }
 0x144   :  { %11687 = vst [vmem:[#allocation12_spill] sm:$0xff] %v8358_v13 }
 0x146   :  { %v8368_v16 = vpop.f32.mrb[26].mxu0 }
 0x147   :  { %11688 = vst [vmem:[#allocation13_spill] sm:$0xff] %v8368_v16  ;;  %v8370_v21 = vpop.f32.mrb[27].mxu0 }
 0x148   :  { %11689 = vst [vmem:[#allocation14_spill] sm:$0xff] %v8370_v21 }
 0x14a   :  { %v8380_v24 = vpop.f32.mrb[28].mxu0 }
 0x14b   :  { %11690 = vst [vmem:[#allocation15_spill] sm:$0xff] %v8380_v24  ;;  %v8382_v27 = vpop.f32.mrb[29].mxu0 }
 0x14c   :  { %11691 = vst [vmem:[#allocation16_spill] sm:$0xff] %v8382_v27 }
 0x14e   :  { %v8392_v31 = vpop.f32.mrb[30].mxu0 }
 0x14f   :  { %11692 = vst [vmem:[#allocation17_spill] sm:$0xff] %v8392_v31  ;;  %v8394_v33 = vpop.f32.mrb[31].mxu0 }
 0x150   :  { %11693 = vst [vmem:[#allocation18_spill] sm:$0xff] %v8394_v33 }
 0x152   :  { %v8397_v34 = vpop.f32.mrb[32].mxu0 }
 0x153   :  { %11694 = vst [vmem:[#allocation19_spill] sm:$0xff] %v8397_v34  ;;  %v8399_v36 = vpop.f32.mrb[33].mxu0 }
 0x154   :  { %11695 = vst [vmem:[#allocation20_spill] sm:$0xff] %v8399_v36 }
 0x156   :  { %v8401_v40 = vpop.f32.mrb[34].mxu0 }
 0x157   :  { %11696 = vst [vmem:[#allocation21_spill] sm:$0xff] %v8401_v40  ;;  %v8403_v42 = vpop.f32.mrb[35].mxu0 }
 0x158   :  { %11697 = vst [vmem:[#allocation22_spill] sm:$0xff] %v8403_v42 }
 0x15a   :  { %v7154_v43 = vpop.f32.mrb[36].mxu0 }
 0x15b   :  { %v835_v44 = vadd.f32 %v7154_v43, %v8238_v20  ;;  %v8406_v46 = vpop.f32.mrb[37].mxu0 }
 0x15d   :  { %v8408_v50 = vmax.f32 %v835_v44, 0.0 }
 0x15e   :  { %v7157_v51 = vpop.f32.mrb[38].mxu0 }
 0x15f   :  { %11698 = vst [vmem:[#allocation23_spill] sm:$0xff] %v8408_v50  ;;  %v845_v5 = vadd.f32 %v7157_v51, %v8238_v20  ;;  %4309 = vrot.lane.b32.xlu0 %v8408_v50, %s7629_s3  ;;  %v839_v54 = vpop.f32.mrb[39].mxu0  ;;  %v11614_v3 = vrot.slane %v8408_v50, 7  ;;  %v11612_v22 = vrot.slane %v8408_v50, 1 }
 0x160   :  { %v840_v58 = vadd.f32 %v8238_v20, %v839_v54 }
 0x161   :  { %v1327_v62 = vmax.f32 %v845_v5, 0.0 }
 0x162   :  { %v1326_v63 = vmax.f32 %v840_v58, 0.0  ;;  %v7160_v0 = vpop.f32.mrb[40].mxu0 }
 0x163   :  { %v3248_v7 = vrot.slane %v1327_v62, 7  ;;  %v3761_v8 = vrot.slane %v1327_v62, 1  ;;  %v855_v11 = vadd.f32 %v7160_v0, %v8238_v20  ;;  %4313 = vrot.lane.b32.xlu1 %v1327_v62, %s7629_s3  ;;  %v849_v14 = vpop.f32.mrb[41].mxu0 }
 0x164   :  { %v3247_v15 = vrot.slane %v1326_v63, 7  ;;  %v850_v18 = vadd.f32 %v8238_v20, %v849_v14  ;;  %4311 = vrot.lane.b32.xlu0 %v1326_v63, %s7629_s3  ;;  %v3760_v23 = vrot.slane %v1326_v63, 1 }
 0x165   :  { %v1329_v26 = vmax.f32 %v855_v11, 0.0 }
 0x166   :  { %v1328_v28 = vmax.f32 %v850_v18, 0.0  ;;  %v7163_v30 = vpop.f32.mrb[42].mxu0  ;;  %v3940_v32 = vsel %vm3850_vm4, %v11612_v22, %v3760_v23  ;;  %v8427_v43 = vsel %vm3850_vm4, %v3760_v23, %v3761_v8  ;;  %v8433_v44 = vsel %vm3337_vm6, %v11614_v3, %v3247_v15 }
 0x167   :  { %v3250_v51 = vrot.slane %v1329_v26, 7  ;;  %v3763_v5 = vrot.slane %v1329_v26, 1  ;;  %v865_v54 = vadd.f32 %v7163_v30, %v8238_v20  ;;  %v859_v58 = vpop.f32.mrb[43].mxu0  ;;  %6873 = vmatprep.mubr.msk.f32.mxu1 %vm4619_vm5, %v3940_v32  ;;  %v8439_v62 = vsel %vm3337_vm6, %v3247_v15, %v3248_v7 }
 0x168   :  { %v3249_v63 = vrot.slane %v1328_v28, 7  ;;  %v3762_v0 = vrot.slane %v1328_v28, 1  ;;  %v860_v11 = vadd.f32 %v8238_v20, %v859_v58  ;;  %4315 = vrot.lane.b32.xlu1 %v1328_v28, %s7629_s3  ;;  %4317 = vrot.lane.b32.xlu0 %v1329_v26, %s7629_s3 }
 0x169   :  { %v1331_v14 = vmax.f32 %v865_v54, 0.0 }
 0x16a   :  { %v1330_v18 = vmax.f32 %v860_v11, 0.0  ;;  %v7166_v23 = vpop.f32.mrb[44].mxu0  ;;  %v8446_v30 = vsel %vm3850_vm4, %v3761_v8, %v3762_v0  ;;  %v8450_v32 = vsel %vm3850_vm4, %v3762_v0, %v3763_v5  ;;  %v8454_v15 = vsel %vm3337_vm6, %v3248_v7, %v3249_v63 }
 0x16b   :  { %v3252_v58 = vrot.slane %v1331_v14, 7  ;;  %v3765_v48 = vrot.slane %v1331_v14, 1  ;;  %v875_v28 = vadd.f32 %v7166_v23, %v8238_v20  ;;  %v869_v26 = vpop.f32.mrb[45].mxu0  ;;  %v8459_v54 = vsel %vm3337_vm6, %v3249_v63, %v3250_v51 }
 0x16c   :  { %v3251_v11 = vrot.slane %v1330_v18, 7  ;;  %v3764_v8 = vrot.slane %v1330_v18, 1  ;;  %v870_v22 = vadd.f32 %v8238_v20, %v869_v26  ;;  %4319 = vrot.lane.b32.xlu1 %v1330_v18, %s7629_s3  ;;  %4321 = vrot.lane.b32.xlu0 %v1331_v14, %s7629_s3 }
 0x16d   :  { %v1333_v0 = vmax.f32 %v875_v28, 0.0 }
 0x16e   :  { %v1332_v7 = vmax.f32 %v870_v22, 0.0  ;;  %v7169_v47 = vpop.f32.mrb[46].mxu0  ;;  %v8466_v3 = vsel %vm3850_vm4, %v3763_v5, %v3764_v8  ;;  %v8470_v23 = vsel %vm3850_vm4, %v3764_v8, %v3765_v48  ;;  %v8474_v63 = vsel %vm3337_vm6, %v3250_v51, %v3251_v11 }
 0x16f   :  { %v3254_v26 = vrot.slane %v1333_v0, 7  ;;  %v3767_v40 = vrot.slane %v1333_v0, 1  ;;  %v885_v18 = vadd.f32 %v7169_v47, %v8238_v20  ;;  %v879_v14 = vpop.f32.mrb[47].mxu0  ;;  %v8479_v22 = vsel %vm3337_vm6, %v3251_v11, %v3252_v58 }
 0x170   :  { %v3253_v28 = vrot.slane %v1332_v7, 7  ;;  %v3766_v5 = vrot.slane %v1332_v7, 1  ;;  %v880_v42 = vadd.f32 %v8238_v20, %v879_v14  ;;  %4323 = vrot.lane.b32.xlu1 %v1332_v7, %s7629_s3  ;;  %4325 = vrot.lane.b32.xlu0 %v1333_v0, %s7629_s3 }
 0x171   :  { %v1335_v8 = vmax.f32 %v885_v18, 0.0 }
 0x172   :  { %v1334_v51 = vmax.f32 %v880_v42, 0.0  ;;  %v7172_v36 = vpop.f32.mrb[48].mxu0  ;;  %v8486_v34 = vsel %vm3850_vm4, %v3765_v48, %v3766_v5  ;;  %v8490_v47 = vsel %vm3850_vm4, %v3766_v5, %v3767_v40  ;;  %v8494_v11 = vsel %vm3337_vm6, %v3252_v58, %v3253_v28 }
 0x173   :  { %v3256_v14 = vrot.slane %v1335_v8, 7  ;;  %v3769_v33 = vrot.slane %v1335_v8, 1  ;;  %v895_v7 = vadd.f32 %v7172_v36, %v8238_v20  ;;  %v889_v0 = vpop.f32.mrb[49].mxu0  ;;  %v8499_v42 = vsel %vm3337_vm6, %v3253_v28, %v3254_v26 }
 0x174   :  { %11699 = vst [vmem:[#allocation24_spill] sm:$0xff] %v8499_v42  ;;  %v3255_v18 = vrot.slane %v1334_v51, 7  ;;  %v3768_v48 = vrot.slane %v1334_v51, 1  ;;  %v890_v31 = vadd.f32 %v8238_v20, %v889_v0  ;;  %4327 = vrot.lane.b32.xlu1 %v1334_v51, %s7629_s3  ;;  %4329 = vrot.lane.b32.xlu0 %v1335_v8, %s7629_s3 }
 0x175   :  { %v1337_v5 = vmax.f32 %v895_v7, 0.0 }
 0x176   :  { %v1336_v58 = vmax.f32 %v890_v31, 0.0  ;;  %v7175_v24 = vpop.f32.mrb[50].mxu0  ;;  %v8506_v27 = vsel %vm3850_vm4, %v3767_v40, %v3768_v48  ;;  %v8510_v36 = vsel %vm3850_vm4, %v3768_v48, %v3769_v33  ;;  %v8514_v28 = vsel %vm3337_vm6, %v3254_v26, %v3255_v18 }
 0x177   :  { %11700 = vst [vmem:[#allocation25_spill] sm:$0xff] %v8506_v27  ;;  %11701 = vst [vmem:[#allocation26_spill] sm:$0xff] %v8510_v36  ;;  %v3771_v0 = vrot.slane %v1337_v5, 1  ;;  %v905_v51 = vadd.f32 %v7175_v24, %v8238_v20  ;;  %v899_v21 = vpop.f32.mrb[51].mxu0  ;;  %v8519_v31 = vsel %vm3337_vm6, %v3255_v18, %v3256_v14  ;;  %v3258_v48 = vrot.slane %v1337_v5, 7 }
 0x178   :  { %11702 = vst [vmem:[#allocation27_spill] sm:$0xff] %v8514_v28  ;;  %11703 = vst [vmem:[#allocation28_spill] sm:$0xff] %v8519_v31  ;;  %v3257_v8 = vrot.slane %v1336_v58, 7  ;;  %v3770_v7 = vrot.slane %v1336_v58, 1  ;;  %v900_v40 = vadd.f32 %v8238_v20, %v899_v21  ;;  %4331 = vrot.lane.b32.xlu1 %v1336_v58, %s7629_s3  ;;  %4333 = vrot.lane.b32.xlu0 %v1337_v5, %s7629_s3 }
 0x179   :  { %v1339_v36 = vmax.f32 %v905_v51, 0.0 }
 0x17a   :  { %v1338_v26 = vmax.f32 %v900_v40, 0.0  ;;  %v7178_v28 = vpop.f32.mrb[52].mxu0  ;;  %v8526_v24 = vsel %vm3850_vm4, %v3769_v33, %v3770_v7  ;;  %v8530_v18 = vsel %vm3850_vm4, %v3770_v7, %v3771_v0  ;;  %v8534_v31 = vsel %vm3337_vm6, %v3256_v14, %v3257_v8 }
 0x17b   :  { %11704 = vst [vmem:[#allocation29_spill] sm:$0xff] %v8526_v24  ;;  %11705 = vst [vmem:[#allocation30_spill] sm:$0xff] %v8530_v18  ;;  %v3260_v21 = vrot.slane %v1339_v36, 7  ;;  %v3773_v58 = vrot.slane %v1339_v36, 1  ;;  %v915_v16 = vadd.f32 %v7178_v28, %v8238_v20  ;;  %v909_v5 = vpop.f32.mrb[53].mxu0  ;;  %v8542_v7 = vsel %vm3337_vm6, %v3257_v8, %v3258_v48 }
 0x17c   :  { %11706 = vst [vmem:[#allocation31_spill] sm:$0xff] %v8534_v31  ;;  %v3259_v51 = vrot.slane %v1338_v26, 7  ;;  %v3772_v40 = vrot.slane %v1338_v26, 1  ;;  %v910_v13 = vadd.f32 %v8238_v20, %v909_v5  ;;  %4335 = vrot.lane.b32.xlu1 %v1338_v26, %s7629_s3  ;;  %4337 = vrot.lane.b32.xlu0 %v1339_v36, %s7629_s3  ;;  %11707 = vst [vmem:[#allocation32_spill] sm:$0xff] %v8542_v7 }
 0x17d   :  { %v1341_v33 = vmax.f32 %v915_v16, 0.0 }
 0x17e   :  { %v1340_v14 = vmax.f32 %v910_v13, 0.0  ;;  %v7181_v31 = vpop.f32.mrb[54].mxu0  ;;  %v8546_v18 = vsel %vm3850_vm4, %v3771_v0, %v3772_v40  ;;  %v8550_v28 = vsel %vm3850_vm4, %v3772_v40, %v3773_v58  ;;  %v8554_v26 = vsel %vm3337_vm6, %v3258_v48, %v3259_v51 }
 0x17f   :  { %11708 = vst [vmem:[#allocation33_spill] sm:$0xff] %v8546_v18  ;;  %11709 = vst [vmem:[#allocation34_spill] sm:$0xff] %v8550_v28  ;;  %v3262_v36 = vrot.slane %v1341_v33, 7  ;;  %v3775_v16 = vrot.slane %v1341_v33, 1  ;;  %v925_v5 = vadd.f32 %v7181_v31, %v8238_v20  ;;  %v919_v8 = vpop.f32.mrb[55].mxu0  ;;  %v8559_v13 = vsel %vm3337_vm6, %v3259_v51, %v3260_v21 }
 0x180   :  { %11710 = vst [vmem:[#allocation35_spill] sm:$0xff] %v8554_v26  ;;  %11711 = vst [vmem:[#allocation36_spill] sm:$0xff] %v8559_v13  ;;  %v3261_v7 = vrot.slane %v1340_v14, 7  ;;  %v3774_v0 = vrot.slane %v1340_v14, 1  ;;  %v920_v18 = vadd.f32 %v8238_v20, %v919_v8  ;;  %4339 = vrot.lane.b32.xlu1 %v1340_v14, %s7629_s3  ;;  %4341 = vrot.lane.b32.xlu0 %v1341_v33, %s7629_s3 }
 0x181   :  { %v1343_v40 = vmax.f32 %v925_v5, 0.0 }
 0x182   :  { %v1342_v48 = vmax.f32 %v920_v18, 0.0  ;;  %v7184_v26 = vpop.f32.mrb[56].mxu0  ;;  %v8566_v28 = vsel %vm3850_vm4, %v3773_v58, %v3774_v0  ;;  %v8570_v31 = vsel %vm3850_vm4, %v3774_v0, %v3775_v16  ;;  %v8574_v51 = vsel %vm3337_vm6, %v3260_v21, %v3261_v7 }
 0x183   :  { %11712 = vst [vmem:[#allocation37_spill] sm:$0xff] %v8566_v28  ;;  %11713 = vst [vmem:[#allocation38_spill] sm:$0xff] %v8570_v31  ;;  %v3264_v8 = vrot.slane %v1343_v40, 7  ;;  %v3777_v13 = vrot.slane %v1343_v40, 1  ;;  %v935_v14 = vadd.f32 %v7184_v26, %v8238_v20  ;;  %v929_v33 = vpop.f32.mrb[57].mxu0  ;;  %v8579_v18 = vsel %vm3337_vm6, %v3261_v7, %v3262_v36 }
 0x184   :  { %11714 = vst [vmem:[#allocation39_spill] sm:$0xff] %v8574_v51  ;;  %11715 = vst [vmem:[#allocation40_spill] sm:$0xff] %v8579_v18  ;;  %v3263_v5 = vrot.slane %v1342_v48, 7  ;;  %v3776_v58 = vrot.slane %v1342_v48, 1  ;;  %v930_v28 = vadd.f32 %v8238_v20, %v929_v33  ;;  %4343 = vrot.lane.b32.xlu1 %v1342_v48, %s7629_s3  ;;  %4345 = vrot.lane.b32.xlu0 %v1343_v40, %s7629_s3 }
 0x185   :  { %v1345_v0 = vmax.f32 %v935_v14, 0.0 }
 0x186   :  { %v1344_v21 = vmax.f32 %v930_v28, 0.0  ;;  %v7187_v51 = vpop.f32.mrb[58].mxu0  ;;  %v8586_v31 = vsel %vm3850_vm4, %v3775_v16, %v3776_v58  ;;  %v8590_v26 = vsel %vm3850_vm4, %v3776_v58, %v3777_v13  ;;  %v8594_v7 = vsel %vm3337_vm6, %v3262_v36, %v3263_v5 }
 0x187   :  { %11716 = vst [vmem:[#allocation41_spill] sm:$0xff] %v8586_v31  ;;  %11717 = vst [vmem:[#allocation42_spill] sm:$0xff] %v8590_v26  ;;  %v3266_v33 = vrot.slane %v1345_v0, 7  ;;  %v3779_v18 = vrot.slane %v1345_v0, 1  ;;  %v945_v48 = vadd.f32 %v7187_v51, %v8238_v20  ;;  %v939_v40 = vpop.f32.mrb[59].mxu0  ;;  %v8599_v28 = vsel %vm3337_vm6, %v3263_v5, %v3264_v8 }
 0x188   :  { %11718 = vst [vmem:[#allocation43_spill] sm:$0xff] %v8594_v7  ;;  %11719 = vst [vmem:[#allocation44_spill] sm:$0xff] %v8599_v28  ;;  %v3265_v14 = vrot.slane %v1344_v21, 7  ;;  %v3778_v16 = vrot.slane %v1344_v21, 1  ;;  %v940_v31 = vadd.f32 %v8238_v20, %v939_v40  ;;  %4347 = vrot.lane.b32.xlu1 %v1344_v21, %s7629_s3  ;;  %4349 = vrot.lane.b32.xlu0 %v1345_v0, %s7629_s3 }
 0x189   :  { %v1347_v58 = vmax.f32 %v945_v48, 0.0 }
 0x18a   :  { %v1346_v36 = vmax.f32 %v940_v31, 0.0  ;;  %v7190_v7 = vpop.f32.mrb[60].mxu0  ;;  %v8606_v26 = vsel %vm3850_vm4, %v3777_v13, %v3778_v16  ;;  %v8610_v51 = vsel %vm3850_vm4, %v3778_v16, %v3779_v18  ;;  %v8614_v5 = vsel %vm3337_vm6, %v3264_v8, %v3265_v14 }
 0x18b   :  { %11720 = vst [vmem:[#allocation45_spill] sm:$0xff] %v8606_v26  ;;  %11721 = vst [vmem:[#allocation46_spill] sm:$0xff] %v8610_v51  ;;  %v3268_v40 = vrot.slane %v1347_v58, 7  ;;  %v3781_v28 = vrot.slane %v1347_v58, 1  ;;  %v955_v21 = vadd.f32 %v7190_v7, %v8238_v20  ;;  %v949_v0 = vpop.f32.mrb[61].mxu0  ;;  %v8619_v31 = vsel %vm3337_vm6, %v3265_v14, %v3266_v33 }
 0x18c   :  { %11722 = vst [vmem:[#allocation47_spill] sm:$0xff] %v8614_v5  ;;  %11723 = vst [vmem:[#allocation48_spill] sm:$0xff] %v8619_v31  ;;  %v3267_v48 = vrot.slane %v1346_v36, 7  ;;  %v3780_v13 = vrot.slane %v1346_v36, 1  ;;  %v950_v26 = vadd.f32 %v8238_v20, %v949_v0  ;;  %4351 = vrot.lane.b32.xlu1 %v1346_v36, %s7629_s3  ;;  %4353 = vrot.lane.b32.xlu0 %v1347_v58, %s7629_s3 }
 0x18d   :  { %v1349_v16 = vmax.f32 %v955_v21, 0.0 }
 0x18e   :  { %v1348_v8 = vmax.f32 %v950_v26, 0.0  ;;  %v7193_v5 = vpop.f32.mrb[62].mxu0  ;;  %v8626_v51 = vsel %vm3850_vm4, %v3779_v18, %v3780_v13  ;;  %v8630_v7 = vsel %vm3850_vm4, %v3780_v13, %v3781_v28  ;;  %v8634_v14 = vsel %vm3337_vm6, %v3266_v33, %v3267_v48 }
 0x18f   :  { %11724 = vst [vmem:[#allocation49_spill] sm:$0xff] %v8626_v51  ;;  %11725 = vst [vmem:[#allocation50_spill] sm:$0xff] %v8630_v7  ;;  %v3270_v0 = vrot.slane %v1349_v16, 7  ;;  %v3783_v31 = vrot.slane %v1349_v16, 1  ;;  %v965_v36 = vadd.f32 %v7193_v5, %v8238_v20  ;;  %v959_v58 = vpop.f32.mrb[63].mxu0  ;;  %v8639_v26 = vsel %vm3337_vm6, %v3267_v48, %v3268_v40 }
 0x190   :  { %11726 = vst [vmem:[#allocation51_spill] sm:$0xff] %v8634_v14  ;;  %11727 = vst [vmem:[#allocation52_spill] sm:$0xff] %v8639_v26  ;;  %v3269_v21 = vrot.slane %v1348_v8, 7  ;;  %v3782_v18 = vrot.slane %v1348_v8, 1  ;;  %v960_v51 = vadd.f32 %v8238_v20, %v959_v58  ;;  %4355 = vrot.lane.b32.xlu1 %v1348_v8, %s7629_s3  ;;  %4357 = vrot.lane.b32.xlu0 %v1349_v16, %s7629_s3 }
 0x191   :  { %v1351_v13 = vmax.f32 %v965_v36, 0.0 }
 0x192   :  { %v1350_v33 = vmax.f32 %v960_v51, 0.0  ;;  %v7196_v14 = vpop.f32.mrb[64].mxu0  ;;  %v8646_v7 = vsel %vm3850_vm4, %v3781_v28, %v3782_v18  ;;  %v8650_v5 = vsel %vm3850_vm4, %v3782_v18, %v3783_v31  ;;  %v8654_v48 = vsel %vm3337_vm6, %v3268_v40, %v3269_v21 }
 0x193   :  { %11728 = vst [vmem:[#allocation53_spill] sm:$0xff] %v8646_v7  ;;  %11729 = vst [vmem:[#allocation54_spill] sm:$0xff] %v8650_v5  ;;  %v3272_v58 = vrot.slane %v1351_v13, 7  ;;  %v3785_v26 = vrot.slane %v1351_v13, 1  ;;  %v975_v8 = vadd.f32 %v7196_v14, %v8238_v20  ;;  %v969_v16 = vpop.f32.mrb[65].mxu0  ;;  %v8659_v51 = vsel %vm3337_vm6, %v3269_v21, %v3270_v0 }
 0x194   :  { %11730 = vst [vmem:[#allocation55_spill] sm:$0xff] %v8654_v48  ;;  %11731 = vst [vmem:[#allocation56_spill] sm:$0xff] %v8659_v51  ;;  %v3271_v36 = vrot.slane %v1350_v33, 7  ;;  %v3784_v28 = vrot.slane %v1350_v33, 1  ;;  %v970_v7 = vadd.f32 %v8238_v20, %v969_v16  ;;  %4359 = vrot.lane.b32.xlu1 %v1350_v33, %s7629_s3  ;;  %4361 = vrot.lane.b32.xlu0 %v1351_v13, %s7629_s3 }
 0x195   :  { %v1353_v18 = vmax.f32 %v975_v8, 0.0 }
 0x196   :  { %v1352_v40 = vmax.f32 %v970_v7, 0.0  ;;  %v7199_v48 = vpop.f32.mrb[66].mxu0  ;;  %v8666_v5 = vsel %vm3850_vm4, %v3783_v31, %v3784_v28  ;;  %v8670_v14 = vsel %vm3850_vm4, %v3784_v28, %v3785_v26  ;;  %v8674_v21 = vsel %vm3337_vm6, %v3270_v0, %v3271_v36 }
 0x197   :  { %11732 = vst [vmem:[#allocation57_spill] sm:$0xff] %v8666_v5  ;;  %11733 = vst [vmem:[#allocation58_spill] sm:$0xff] %v8670_v14  ;;  %v3787_v16 = vrot.slane %v1353_v18, 1  ;;  %v985_v33 = vadd.f32 %v7199_v48, %v8238_v20  ;;  %v979_v51 = vpop.f32.mrb[67].mxu0  ;;  %v8679_v7 = vsel %vm3337_vm6, %v3271_v36, %v3272_v58  ;;  %v3274_v28 = vrot.slane %v1353_v18, 7 }
 0x198   :  { %11734 = vst [vmem:[#allocation59_spill] sm:$0xff] %v8674_v21  ;;  %11735 = vst [vmem:[#allocation60_spill] sm:$0xff] %v8679_v7  ;;  %v3273_v13 = vrot.slane %v1352_v40, 7  ;;  %v3786_v8 = vrot.slane %v1352_v40, 1  ;;  %v980_v31 = vadd.f32 %v8238_v20, %v979_v51  ;;  %4363 = vrot.lane.b32.xlu1 %v1352_v40, %s7629_s3  ;;  %4365 = vrot.lane.b32.xlu0 %v1353_v18, %s7629_s3 }
 0x199   :  { %v1355_v14 = vmax.f32 %v985_v33, 0.0 }
 0x19a   :  { %v1354_v0 = vmax.f32 %v980_v31, 0.0  ;;  %v7202_v21 = vpop.f32.mrb[68].mxu0  ;;  %v8686_v48 = vsel %vm3850_vm4, %v3785_v26, %v3786_v8  ;;  %v8690_v36 = vsel %vm3850_vm4, %v3786_v8, %v3787_v16  ;;  %v8694_v7 = vsel %vm3337_vm6, %v3272_v58, %v3273_v13 }
 0x19b   :  { %11736 = vst [vmem:[#allocation61_spill] sm:$0xff] %v8686_v48  ;;  %11737 = vst [vmem:[#allocation62_spill] sm:$0xff] %v8690_v36  ;;  %v3276_v51 = vrot.slane %v1355_v14, 7  ;;  %v3789_v40 = vrot.slane %v1355_v14, 1  ;;  %v995_v5 = vadd.f32 %v7202_v21, %v8238_v20  ;;  %v989_v18 = vpop.f32.mrb[69].mxu0  ;;  %v8702_v8 = vsel %vm3337_vm6, %v3273_v13, %v3274_v28 }
 0x19c   :  { %11738 = vst [vmem:[#allocation63_spill] sm:$0xff] %v8694_v7  ;;  %v3275_v33 = vrot.slane %v1354_v0, 7  ;;  %v3788_v31 = vrot.slane %v1354_v0, 1  ;;  %v990_v24 = vadd.f32 %v8238_v20, %v989_v18  ;;  %4367 = vrot.lane.b32.xlu1 %v1354_v0, %s7629_s3  ;;  %4369 = vrot.lane.b32.xlu0 %v1355_v14, %s7629_s3  ;;  %11739 = vst [vmem:[#allocation64_spill] sm:$0xff] %v8702_v8 }
 0x19d   :  { %v1357_v26 = vmax.f32 %v995_v5, 0.0 }
 0x19e   :  { %v1356_v58 = vmax.f32 %v990_v24, 0.0  ;;  %v7205_v7 = vpop.f32.mrb[70].mxu0  ;;  %v8706_v36 = vsel %vm3850_vm4, %v3787_v16, %v3788_v31  ;;  %v8710_v21 = vsel %vm3850_vm4, %v3788_v31, %v3789_v40  ;;  %v8714_v0 = vsel %vm3337_vm6, %v3274_v28, %v3275_v33 }
 0x19f   :  { %11740 = vst [vmem:[#allocation65_spill] sm:$0xff] %v8706_v36  ;;  %11741 = vst [vmem:[#allocation66_spill] sm:$0xff] %v8710_v21  ;;  %v3278_v14 = vrot.slane %v1357_v26, 7  ;;  %v3791_v5 = vrot.slane %v1357_v26, 1  ;;  %v1005_v18 = vadd.f32 %v7205_v7, %v8238_v20  ;;  %v999_v13 = vpop.f32.mrb[71].mxu0  ;;  %v8719_v24 = vsel %vm3337_vm6, %v3275_v33, %v3276_v51 }
 0x1a0   :  { %11742 = vst [vmem:[#allocation67_spill] sm:$0xff] %v8714_v0  ;;  %11743 = vst [vmem:[#allocation68_spill] sm:$0xff] %v8719_v24  ;;  %v3277_v8 = vrot.slane %v1356_v58, 7  ;;  %v3790_v16 = vrot.slane %v1356_v58, 1  ;;  %v1000_v36 = vadd.f32 %v8238_v20, %v999_v13  ;;  %4371 = vrot.lane.b32.xlu1 %v1356_v58, %s7629_s3  ;;  %4373 = vrot.lane.b32.xlu0 %v1357_v26, %s7629_s3 }
 0x1a1   :  { %v1359_v31 = vmax.f32 %v1005_v18, 0.0 }
 0x1a2   :  { %v1358_v28 = vmax.f32 %v1000_v36, 0.0  ;;  %v7208_v0 = vpop.f32.mrb[72].mxu0  ;;  %v8726_v21 = vsel %vm3850_vm4, %v3789_v40, %v3790_v16  ;;  %v8730_v7 = vsel %vm3850_vm4, %v3790_v16, %v3791_v5  ;;  %v8734_v33 = vsel %vm3337_vm6, %v3276_v51, %v3277_v8 }
 0x1a3   :  { %11744 = vst [vmem:[#allocation69_spill] sm:$0xff] %v8726_v21  ;;  %11745 = vst [vmem:[#allocation70_spill] sm:$0xff] %v8730_v7  ;;  %v3280_v13 = vrot.slane %v1359_v31, 7  ;;  %v3793_v24 = vrot.slane %v1359_v31, 1  ;;  %v1015_v58 = vadd.f32 %v7208_v0, %v8238_v20  ;;  %v1009_v26 = vpop.f32.mrb[73].mxu0  ;;  %v8739_v36 = vsel %vm3337_vm6, %v3277_v8, %v3278_v14 }
 0x1a4   :  { %11746 = vst [vmem:[#allocation71_spill] sm:$0xff] %v8734_v33  ;;  %11747 = vst [vmem:[#allocation72_spill] sm:$0xff] %v8739_v36  ;;  %v3279_v18 = vrot.slane %v1358_v28, 7  ;;  %v3792_v40 = vrot.slane %v1358_v28, 1  ;;  %v1010_v21 = vadd.f32 %v8238_v20, %v1009_v26  ;;  %4375 = vrot.lane.b32.xlu1 %v1358_v28, %s7629_s3  ;;  %4377 = vrot.lane.b32.xlu0 %v1359_v31, %s7629_s3  ;;  %v8745_v51 = vadd.s32 376, %v8292_v41 }
 0x1a5   :  { %v1361_v16 = vmax.f32 %v1015_v58, 0.0 }
 0x1a6   :  { %v1360_v33 = vmax.f32 %v1010_v21, 0.0  ;;  %v7211_v7 = vpop.f32.mrb[74].mxu0  ;;  %v8749_v0 = vsel %vm3850_vm4, %v3791_v5, %v3792_v40  ;;  %v8753_v8 = vsel %vm3850_vm4, %v3792_v40, %v3793_v24  ;;  %v8757_v26 = vsel %vm3337_vm6, %v3278_v14, %v3279_v18 }
 0x1a7   :  { %11748 = vst [vmem:[#allocation73_spill] sm:$0xff] %v8749_v0  ;;  %11749 = vst [vmem:[#allocation74_spill] sm:$0xff] %v8753_v8  ;;  %v3282_v28 = vrot.slane %v1361_v16, 7  ;;  %v3795_v31 = vrot.slane %v1361_v16, 1  ;;  %v1025_v58 = vadd.f32 %v7211_v7, %v8238_v20  ;;  %v1019_v36 = vpop.f32.mrb[75].mxu0  ;;  %v8762_v21 = vsel %vm3337_vm6, %v3279_v18, %v3280_v13 }
 0x1a8   :  { %11750 = vst [vmem:[#allocation75_spill] sm:$0xff] %v8757_v26  ;;  %11751 = vst [vmem:[#allocation76_spill] sm:$0xff] %v8762_v21  ;;  %v3281_v48 = vrot.slane %v1360_v33, 7  ;;  %v3794_v5 = vrot.slane %v1360_v33, 1  ;;  %v1020_v0 = vadd.f32 %v8238_v20, %v1019_v36  ;;  %4379 = vrot.lane.b32.xlu1 %v1360_v33, %s7629_s3  ;;  %4381 = vrot.lane.b32.xlu0 %v1361_v16, %s7629_s3  ;;  %v8768_v14 = vadd.s32 384, %v8292_v41 }
 0x1a9   :  { %v665_v40 = vadd.f32 %v8149_v52, %v8238_v20  ;;  %v660_v7 = vadd.f32 %v8238_v20, %v8151_v53  ;;  %v1363_v26 = vmax.f32 %v1025_v58, 0.0 }
 0x1aa   :  { %v1362_v8 = vmax.f32 %v1020_v0, 0.0  ;;  %v7214_v21 = vpop.f32.mrb[76].mxu0  ;;  %v8777_v36 = vsel %vm3850_vm4, %v3793_v24, %v3794_v5  ;;  %v8781_v33 = vsel %vm3850_vm4, %v3794_v5, %v3795_v31  ;;  %v8785_v16 = vsel %vm3337_vm6, %v3280_v13, %v3281_v48 }
 0x1ab   :  { %11752 = vst [vmem:[#allocation77_spill] sm:$0xff] %v8777_v36  ;;  %11753 = vst [vmem:[#allocation78_spill] sm:$0xff] %v8781_v33  ;;  %v3284_v52 = vrot.slane %v1363_v26, 7  ;;  %v3797_v42 = vrot.slane %v1363_v26, 1  ;;  %v1035_v53 = vadd.f32 %v7214_v21, %v8238_v20  ;;  %v1029_v58 = vpop.f32.mrb[77].mxu0  ;;  %v8790_v0 = vsel %vm3337_vm6, %v3281_v48, %v3282_v28 }
 0x1ac   :  { %11754 = vst [vmem:[#allocation79_spill] sm:$0xff] %v8785_v16  ;;  %11755 = vst [vmem:[#allocation80_spill] sm:$0xff] %v8790_v0  ;;  %v3283_v18 = vrot.slane %v1362_v8, 7  ;;  %v3796_v24 = vrot.slane %v1362_v8, 1  ;;  %v1030_v36 = vadd.f32 %v8238_v20, %v1029_v58  ;;  %4383 = vrot.lane.b32.xlu1 %v1362_v8, %s7629_s3  ;;  %4385 = vrot.lane.b32.xlu0 %v1363_v26, %s7629_s3  ;;  %v8796_v5 = vmax.f32 %v665_v40, 0.0 }
 0x1ad   :  { %v8798_v33 = vmax.f32 %v660_v7, 0.0  ;;  %v675_v21 = vadd.f32 %v8161_v56, %v8238_v20  ;;  %v1365_v16 = vmax.f32 %v1035_v53, 0.0 }
 0x1ae   :  { %v1364_v48 = vmax.f32 %v1030_v36, 0.0  ;;  %v7217_v0 = vpop.f32.mrb[78].mxu0  ;;  %v8804_v27 = vsel %vm3850_vm4, %v3795_v31, %v3796_v24  ;;  %v8808_v8 = vsel %vm3850_vm4, %v3796_v24, %v3797_v42  ;;  %v8812_v26 = vsel %vm3337_vm6, %v3282_v28, %v3283_v18 }
 0x1af   :  { %11756 = vst [vmem:[#allocation81_spill] sm:$0xff] %v8798_v33  ;;  %11757 = vst [vmem:[#allocation82_spill] sm:$0xff] %v8804_v27  ;;  %v3286_v40 = vrot.slane %v1365_v16, 7  ;;  %v3799_v7 = vrot.slane %v1365_v16, 1  ;;  %v1045_v58 = vadd.f32 %v7217_v0, %v8238_v20  ;;  %v1039_v56 = vpop.f32.mrb[79].mxu0  ;;  %v8817_v36 = vsel %vm3337_vm6, %v3283_v18, %v3284_v52 }
 0x1b0   :  { %11758 = vst [vmem:[#allocation83_spill] sm:$0xff] %v8808_v8  ;;  %11759 = vst [vmem:[#allocation84_spill] sm:$0xff] %v8812_v26  ;;  %v670_v31 = vadd.f32 %v8238_v20, %v8163_v57  ;;  %v3285_v53 = vrot.slane %v1364_v48, 7  ;;  %v3798_v13 = vrot.slane %v1364_v48, 1  ;;  %v1040_v24 = vadd.f32 %v8238_v20, %v1039_v56  ;;  %4387 = vrot.lane.b32.xlu1 %v1364_v48, %s7629_s3 }
 0x1b1   :  { %11760 = vst [vmem:[#allocation85_spill] sm:$0xff] %v8817_v36  ;;  %4389 = vrot.lane.b32.xlu0 %v1365_v16, %s7629_s3  ;;  %v8824_v28 = vmax.f32 %v675_v21, 0.0  ;;  %v685_v0 = vadd.f32 %v8173_v60, %v8238_v20  ;;  %v680_v18 = vadd.f32 %v8238_v20, %v8175_v61  ;;  %v1367_v8 = vmax.f32 %v1045_v58, 0.0 }
 0x1b2   :  { %v1366_v27 = vmax.f32 %v1040_v24, 0.0  ;;  %v7220_v36 = vpop.f32.mrb[80].mxu0  ;;  %v8832_v57 = vsel %vm3850_vm4, %v3797_v42, %v3798_v13  ;;  %v8836_v48 = vsel %vm3850_vm4, %v3798_v13, %v3799_v7  ;;  %v8840_v16 = vsel %vm3337_vm6, %v3284_v52, %v3285_v53 }
 0x1b3   :  { %11761 = vst [vmem:[#allocation86_spill] sm:$0xff] %v8832_v57  ;;  %11762 = vst [vmem:[#allocation87_spill] sm:$0xff] %v8836_v48  ;;  %v3288_v21 = vrot.slane %v1367_v8, 7  ;;  %v3801_v60 = vrot.slane %v1367_v8, 1  ;;  %v1055_v56 = vadd.f32 %v7220_v36, %v8238_v20  ;;  %v1049_v61 = vpop.f32.mrb[81].mxu0  ;;  %v8845_v58 = vsel %vm3337_vm6, %v3285_v53, %v3286_v40 }
 0x1b4   :  { %11763 = vst [vmem:[#allocation88_spill] sm:$0xff] %v8840_v16  ;;  %11764 = vst [vmem:[#allocation89_spill] sm:$0xff] %v8845_v58  ;;  %v8847_v24 = vmax.f32 %v670_v31, 0.0  ;;  %v3287_v42 = vrot.slane %v1366_v27, 7  ;;  %v3800_v57 = vrot.slane %v1366_v27, 1  ;;  %v1050_v13 = vadd.f32 %v8238_v20, %v1049_v61  ;;  %4391 = vrot.lane.b32.xlu1 %v1366_v27, %s7629_s3 }
 0x1b5   :  { %4393 = vrot.lane.b32.xlu0 %v1367_v8, %s7629_s3  ;;  %v8852_v52 = vmax.f32 %v685_v0, 0.0  ;;  %v8854_v48 = vmax.f32 %v680_v18, 0.0  ;;  %v695_v36 = vadd.f32 %v8191_v2, %v8238_v20  ;;  %v1369_v16 = vmax.f32 %v1055_v56, 0.0 }
 0x1b6   :  { %11765 = vst [vmem:[#allocation90_spill] sm:$0xff] %v8847_v24  ;;  %v1368_v53 = vmax.f32 %v1050_v13, 0.0  ;;  %v7223_v58 = vpop.f32.mrb[82].mxu0  ;;  %v8860_v31 = vsel %vm3850_vm4, %v3799_v7, %v3800_v57  ;;  %v8864_v61 = vsel %vm3850_vm4, %v3800_v57, %v3801_v60  ;;  %v8868_v27 = vsel %vm3337_vm6, %v3286_v40, %v3287_v42 }
 0x1b7   :  { %11766 = vst [vmem:[#allocation91_spill] sm:$0xff] %v8860_v31  ;;  %11767 = vst [vmem:[#allocation92_spill] sm:$0xff] %v8864_v61  ;;  %v690_v8 = vadd.f32 %v8238_v20, %v8193_v4  ;;  %v3803_v0 = vrot.slane %v1369_v16, 1  ;;  %v1065_v2 = vadd.f32 %v7223_v58, %v8238_v20  ;;  %v1059_v18 = vpop.f32.mrb[83].mxu0  ;;  %v8875_v56 = vsel %vm3337_vm6, %v3287_v42, %v3288_v21 }
 0x1b8   :  { %11768 = vst [vmem:[#allocation93_spill] sm:$0xff] %v8868_v27  ;;  %11769 = vst [vmem:[#allocation94_spill] sm:$0xff] %v8875_v56  ;;  %v705_v7 = vadd.f32 %v8212_v10, %v8238_v20  ;;  %v3289_v57 = vrot.slane %v1368_v53, 7  ;;  %v3802_v13 = vrot.slane %v1368_v53, 1  ;;  %v1060_v61 = vadd.f32 %v8238_v20, %v1059_v18  ;;  %4395 = vrot.lane.b32.xlu1 %v1368_v53, %s7629_s3 }
 0x1b9   :  { %4397 = vrot.lane.b32.xlu0 %v1369_v16, %s7629_s3  ;;  %v8882_v4 = vmax.f32 %v695_v36, 0.0  ;;  %v700_v40 = vadd.f32 %v8238_v20, %v8214_v12  ;;  %v3290_v58 = vrot.slane %v1369_v16, 7  ;;  %v1371_v31 = vmax.f32 %v1065_v2, 0.0 }
 0x1ba   :  { %v1370_v42 = vmax.f32 %v1060_v61, 0.0  ;;  %v7226_v56 = vpop.f32.mrb[84].mxu0  ;;  %v8888_v10 = vsel %vm3850_vm4, %v3801_v60, %v3802_v13  ;;  %v8892_v18 = vsel %vm3850_vm4, %v3802_v13, %v3803_v0  ;;  %v8896_v53 = vsel %vm3337_vm6, %v3288_v21, %v3289_v57 }
 0x1bb   :  { %11770 = vst [vmem:[#allocation95_spill] sm:$0xff] %v8882_v4  ;;  %11771 = vst [vmem:[#allocation96_spill] sm:$0xff] %v8888_v10  ;;  %v8898_v36 = vmax.f32 %v690_v8, 0.0  ;;  %v3292_v27 = vrot.slane %v1371_v31, 7  ;;  %v3805_v12 = vrot.slane %v1371_v31, 1  ;;  %v1075_v16 = vadd.f32 %v7226_v56, %v8238_v20  ;;  %v1069_v61 = vpop.f32.mrb[85].mxu0 }
 0x1bc   :  { %11772 = vst [vmem:[#allocation97_spill] sm:$0xff] %v8892_v18  ;;  %11773 = vst [vmem:[#allocation98_spill] sm:$0xff] %v8896_v53  ;;  %v8901_v2 = vmax.f32 %v705_v7, 0.0  ;;  %v3291_v26 = vrot.slane %v1370_v42, 7  ;;  %v3804_v60 = vrot.slane %v1370_v42, 1  ;;  %4399 = vrot.lane.b32.xlu1 %v1370_v42, %s7629_s3  ;;  %v8908_v21 = vmax.f32 %v700_v40, 0.0 }
 0x1bd   :  { %11774 = vst [vmem:[#allocation99_spill] sm:$0xff] %v8898_v36  ;;  %v8903_v10 = vld [vmem:[#allocation5] ss:$0 sm:$0xff]  ;;  %4401 = vrot.lane.b32.xlu0 %v1371_v31, %s7629_s3  ;;  %v1373_v18 = vmax.f32 %v1075_v16, 0.0  ;;  %v8914_v20 = vsel %vm3337_vm6, %v3289_v57, %v3290_v58 }
 0x1be   :  { %11775 = vst [vmem:[#allocation100_spill] sm:$0xff] %v8901_v2  ;;  %v1070_v13 = vadd.f32 %v8903_v10, %v1069_v61  ;;  %11776 = vst [vmem:[#allocation101_spill] sm:$0xff] %v8908_v21  ;;  %v715_v8 = vadd.f32 %v8903_v10, %v8232_v17  ;;  %v7229_v7 = vpop.f32.mrb[86].mxu0  ;;  %v8918_v53 = vsel %vm3850_vm4, %v3803_v0, %v3804_v60 }
 0x1bf   :  { %11777 = vst [vmem:[#allocation102_spill] sm:$0xff] %v8918_v53  ;;  %v8922_v42 = vsel %vm3850_vm4, %v3804_v60, %v3805_v12  ;;  %v8926_v31 = vsel %vm3337_vm6, %v3290_v58, %v3291_v26  ;;  %v3294_v17 = vrot.slane %v1373_v18, 7  ;;  %v3807_v40 = vrot.slane %v1373_v18, 1  ;;  %v1079_v57 = vpop.f32.mrb[87].mxu0 }
 0x1c0   :  { %v1372_v56 = vmax.f32 %v1070_v13, 0.0  ;;  %11778 = vst [vmem:[#allocation103_spill] sm:$0xff] %v8922_v42  ;;  %11779 = vst [vmem:[#allocation104_spill] sm:$0xff] %v8926_v31  ;;  %v1085_v16 = vadd.f32 %v8903_v10, %v7229_v7  ;;  %v8931_v61 = vsel %vm3337_vm6, %v3291_v26, %v3292_v27  ;;  %v710_v0 = vadd.f32 %v8903_v10, %v8234_v19 }
 0x1c1   :  { %11780 = vst [vmem:[#allocation105_spill] sm:$0xff] %v8931_v61  ;;  %v1080_v60 = vadd.f32 %v8903_v10, %v1079_v57  ;;  %4405 = vrot.lane.b32.xlu0 %v1373_v18, %s7629_s3  ;;  %v8938_v58 = vmax.f32 %v715_v8, 0.0  ;;  %v725_v7 = vadd.f32 %v8903_v10, %v8254_v25  ;;  %v830_v26 = vadd.f32 %v8903_v10, %v8406_v46 }
 0x1c2   :  { %v3293_v13 = vrot.slane %v1372_v56, 7  ;;  %v3806_v53 = vrot.slane %v1372_v56, 1  ;;  %4403 = vrot.lane.b32.xlu1 %v1372_v56, %s7629_s3  ;;  %v1375_v42 = vmax.f32 %v1085_v16, 0.0  ;;  %v7232_v31 = vpop.f32.mrb[88].mxu0 }
 0x1c3   :  { %11781 = vst [vmem:[#allocation106_spill] sm:$0xff] %v8938_v58  ;;  %v1374_v61 = vmax.f32 %v1080_v60, 0.0  ;;  %v1095_v57 = vadd.f32 %v8903_v10, %v7232_v31  ;;  %v1089_v46 = vpop.f32.mrb[89].mxu0  ;;  %v8961_v60 = vmax.f32 %v710_v0, 0.0  ;;  %v720_v31 = vadd.f32 %v8903_v10, %v8260_v29 }
 0x1c4   :  { %v8946_v19 = vsel %vm3850_vm4, %v3805_v12, %v3806_v53  ;;  %v8950_v56 = vsel %vm3850_vm4, %v3806_v53, %v3807_v40  ;;  %v8954_v18 = vsel %vm3337_vm6, %v3292_v27, %v3293_v13  ;;  %v3296_v8 = vrot.slane %v1375_v42, 7 }
 0x1c5   :  { %11782 = vst [vmem:[#allocation107_spill] sm:$0xff] %v8946_v19  ;;  %11783 = vst [vmem:[#allocation108_spill] sm:$0xff] %v8950_v56  ;;  %v3809_v25 = vrot.slane %v1375_v42, 1  ;;  %v8959_v16 = vsel %vm3337_vm6, %v3293_v13, %v3294_v17  ;;  %v3295_v12 = vrot.slane %v1374_v61, 7  ;;  %v3808_v19 = vrot.slane %v1374_v61, 1  ;;  %4409 = vrot.lane.b32.xlu0 %v1375_v42, %s7629_s3 }
 0x1c6   :  { %11784 = vst [vmem:[#allocation109_spill] sm:$0xff] %v8954_v18  ;;  %11785 = vst [vmem:[#allocation110_spill] sm:$0xff] %v8959_v16  ;;  %v1090_v53 = vadd.f32 %v8903_v10, %v1089_v46  ;;  %4407 = vrot.lane.b32.xlu1 %v1374_v61, %s7629_s3  ;;  %v8966_v27 = vmax.f32 %v725_v7, 0.0  ;;  %v735_v56 = vadd.f32 %v8903_v10, %v8278_v35  ;;  %v1377_v13 = vmax.f32 %v1095_v57, 0.0  ;;  %v7235_v0 = vpop.f32.mrb[90].mxu0 }
 0x1c7   :  { %11786 = vst [vmem:[#allocation111_spill] sm:$0xff] %v8961_v60  ;;  %v8974_v18 = vsel %vm3850_vm4, %v3807_v40, %v3808_v19  ;;  %v8978_v61 = vsel %vm3850_vm4, %v3808_v19, %v3809_v25  ;;  %v8982_v42 = vsel %vm3337_vm6, %v3294_v17, %v3295_v12  ;;  %v8984_v7 = vmax.f32 %v830_v26, 0.0  ;;  %v1099_v57 = vpop.f32.mrb[91].mxu0 }
 0x1c8   :  { %11787 = vst [vmem:[#allocation112_spill] sm:$0xff] %v8966_v27  ;;  %v1376_v16 = vmax.f32 %v1090_v53, 0.0  ;;  %11788 = vst [vmem:[#allocation113_spill] sm:$0xff] %v8974_v18  ;;  %v3811_v29 = vrot.slane %v1377_v13, 1  ;;  %v1105_v35 = vadd.f32 %v8903_v10, %v7235_v0  ;;  %v8989_v46 = vsel %vm3337_vm6, %v3295_v12, %v3296_v8 }
 0x1c9   :  { %11789 = vst [vmem:[#allocation114_spill] sm:$0xff] %v8978_v61  ;;  %11790 = vst [vmem:[#allocation115_spill] sm:$0xff] %v8982_v42  ;;  %v3298_v40 = vrot.slane %v1377_v13, 7  ;;  %v1100_v19 = vadd.f32 %v8903_v10, %v1099_v57  ;;  %4413 = vrot.lane.b32.xlu0 %v1377_v13, %s7629_s3  ;;  %v8994_v17 = vmax.f32 %v720_v31, 0.0  ;;  %v8996_v26 = vmax.f32 %v735_v56, 0.0 }
 0x1ca   :  { %11791 = vst [vmem:[#allocation116_spill] sm:$0xff] %v8984_v7  ;;  %11792 = vst [vmem:[#allocation117_spill] sm:$0xff] %v8989_v46  ;;  %v3297_v53 = vrot.slane %v1376_v16, 7  ;;  %v3810_v18 = vrot.slane %v1376_v16, 1  ;;  %4411 = vrot.lane.b32.xlu1 %v1376_v16, %s7629_s3  ;;  %v730_v0 = vadd.f32 %v8903_v10, %v8284_v39  ;;  %v9000_v61 = vmax.f32 %v1105_v35, 0.0  ;;  %v7238_v46 = vpop.f32.mrb[92].mxu0 }
 0x1cb   :  { %11793 = vst [vmem:[#allocation118_spill] sm:$0xff] %v8994_v17  ;;  %11794 = vst [vmem:[#allocation119_spill] sm:$0xff] %v8996_v26  ;;  %v1378_v12 = vmax.f32 %v1100_v19, 0.0  ;;  %v1115_v13 = vadd.f32 %v8903_v10, %v7238_v46  ;;  %v1109_v35 = vpop.f32.mrb[93].mxu0  ;;  %v745_v56 = vadd.f32 %v8903_v10, %v8304_v45  ;;  %v9047_v45 = vadd.f32 %v8903_v10, %v8308_v49 }
 0x1cc   :  { %v9004_v42 = vsel %vm3850_vm4, %v3809_v25, %v3810_v18  ;;  %v9008_v16 = vsel %vm3850_vm4, %v3810_v18, %v3811_v29  ;;  %v9012_v31 = vsel %vm3337_vm6, %v3296_v8, %v3297_v53  ;;  %v3813_v39 = vrot.slane %v9000_v61, 1 }
 0x1cd   :  { %11795 = vst [vmem:[#allocation120_spill] sm:$0xff] %v9004_v42  ;;  %11796 = vst [vmem:[#allocation121_spill] sm:$0xff] %v9008_v16  ;;  %v7364_v57 = vpack.i.bf16 %v9000_v61, %v8282_v38  ;;  %v3299_v25 = vrot.slane %v1378_v12, 7  ;;  %v3812_v19 = vrot.slane %v1378_v12, 1  ;;  %v1110_v42 = vadd.f32 %v8903_v10, %v1109_v35 }
 0x1ce   :  { %11797 = vst [vmem:[#allocation122_spill] sm:$0xff] %v9012_v31  ;;  %4415 = vrot.lane.b32.xlu1 %v1378_v12, %s7629_s3  ;;  %v9023_v18 = vsel %vm3337_vm6, %v3297_v53, %v3298_v40  ;;  %v9025_v8 = vmax.f32 %v730_v0, 0.0  ;;  %v3300_v46 = vrot.slane %v9000_v61, 7  ;;  %v9030_v16 = vmax.f32 %v1115_v13, 0.0  ;;  %v7241_v31 = vpop.f32.mrb[94].mxu0 }
 0x1cf   :  { %11798 = vst [vmem:[#allocation123_spill] sm:$0xff] %v9023_v18  ;;  %7365 = vrot.lane.b32.xlu0 %v7364_v57, %s7629_s3  ;;  %v1380_v38 = vmax.f32 %v1110_v42, 0.0  ;;  %v9035_v12 = vsel %vm3850_vm4, %v3811_v29, %v3812_v19  ;;  %v9039_v53 = vsel %vm3850_vm4, %v3812_v19, %v3813_v39  ;;  %v9043_v0 = vsel %vm3337_vm6, %v3298_v40, %v3299_v25  ;;  %v1119_v13 = vpop.f32.mrb[95].mxu0 }
 0x1d0   :  { %11799 = vst [vmem:[#allocation124_spill] sm:$0xff] %v9025_v8  ;;  %11800 = vst [vmem:[#allocation125_spill] sm:$0xff] %v9035_v12  ;;  %v3815_v61 = vrot.slane %v9030_v16, 1  ;;  %v1125_v42 = vadd.f32 %v8903_v10, %v7241_v31  ;;  %v7374_v29 = vpack.i.bf16 %v9030_v16, %v8798_v33  ;;  %v1120_v57 = vadd.f32 %v8903_v10, %v1119_v13 }
 0x1d1   :  { %11801 = vst [vmem:[#allocation126_spill] sm:$0xff] %v9039_v53  ;;  %11802 = vst [vmem:[#allocation127_spill] sm:$0xff] %v9043_v0  ;;  %v3814_v35 = vrot.slane %v1380_v38, 1  ;;  %v7369_v19 = vpack.i.bf16 %v1380_v38, %v8280_v37  ;;  %v11803_v40 = vrot.slane %v8408_v50, 7  ;;  %v11804_v53 = vrot.slane %v8984_v7, 7  ;;  %v4310_v18 = vpop.permute.xlu0 %4309 }
 0x1d2   :  { %v3302_v12 = vrot.slane %v9030_v16, 7  ;;  %v3301_v0 = vrot.slane %v1380_v38, 7  ;;  %v1383_v31 = vmax.f32 %v1125_v42, 0.0  ;;  %v9065_v33 = vsel %vm3337_vm6, %v3299_v25, %v3300_v46  ;;  %v7244_v37 = vpop.f32.mrb[96].mxu0 }
 0x1d3   :  { %v3428_v49 = vsel %vm3337_vm6, %v11804_v53, %v11803_v40  ;;  %7375 = vrot.lane.b32.xlu0 %v7374_v29, %s7629_s3  ;;  %v1382_v13 = vmax.f32 %v1120_v57, 0.0  ;;  %7370 = vrot.lane.b32.xlu1 %v7369_v19, %s7629_s3  ;;  %v9071_v53 = vsel %vm3850_vm4, %v3813_v39, %v3814_v35  ;;  %v9075_v38 = vsel %vm3850_vm4, %v3814_v35, %v3815_v61  ;;  %v1129_v29 = vpop.f32.mrb[97].mxu0 }
 0x1d4   :  { %v4657_v50 = vsel %vm4619_vm5, %v3428_v49, %v4310_v18  ;;  %11805 = vst [vmem:[#allocation128_spill] sm:$0xff] %v9071_v53  ;;  %11806 = vst [vmem:[#allocation129_spill] sm:$0xff] %v9075_v38  ;;  %v9077_v16 = vmax.f32 %v745_v56, 0.0  ;;  %v3817_v42 = vrot.slane %v1383_v31, 1  ;;  %v1135_v25 = vadd.f32 %v8903_v10, %v7244_v37 }
 0x1d5   :  { %5413 = vmatmul.mubr.f32.vlgmr.msra.gmra.mrb[0].mxu1 %v4657_v50  ;;  %v7384_v57 = vpack.i.bf16 %v1383_v31, %v8847_v24  ;;  %v3304_v19 = vrot.slane %v1383_v31, 7  ;;  %v3816_v40 = vrot.slane %v1382_v13, 1  ;;  %v1130_v18 = vadd.f32 %v8903_v10, %v1129_v29  ;;  %v4314_v56 = vpop.permute.xlu1 %4313 }
 0x1d6   :  { %11807 = vst [vmem:[#allocation130_spill] sm:$0xff] %v9077_v16  ;;  %6874 = vmatprep.mubr.msk.f32.mxu1 %vm4619_vm5, %v8427_v43  ;;  %v7379_v39 = vpack.i.bf16 %v1382_v13, %v8796_v5  ;;  %v3303_v35 = vrot.slane %v1382_v13, 7  ;;  %v9085_v49 = vmax.f32 %v1135_v25, 0.0  ;;  %v9090_v37 = vsel %vm3337_vm6, %v3300_v46, %v3301_v0  ;;  %v7247_v29 = vpop.f32.mrb[98].mxu0  ;;  %v4312_v13 = vpop.permute.xlu0 %4311 }
 0x1d7   :  { %7385 = vrot.lane.b32.xlu0 %v7384_v57, %s7629_s3  ;;  %v9094_v50 = vsel %vm3337_vm6, %v3301_v0, %v3302_v12  ;;  %v755_v31 = vadd.f32 %v8903_v10, %v8324_v55  ;;  %v1384_v43 = vmax.f32 %v1130_v18, 0.0  ;;  %v9101_v25 = vsel %vm3850_vm4, %v3815_v61, %v3816_v40  ;;  %v1139_v55 = vpop.f32.mrb[99].mxu0 }
 0x1d8   :  { %7380 = vrot.lane.b32.xlu1 %v7379_v39, %s7629_s3  ;;  %11808 = vst [vmem:[#allocation131_spill] sm:$0xff] %v9101_v25  ;;  %v9105_v46 = vsel %vm3850_vm4, %v3816_v40, %v3817_v42  ;;  %v3819_v0 = vrot.slane %v9085_v49, 1  ;;  %v1145_v38 = vadd.f32 %v8903_v10, %v7247_v29  ;;  %v4658_v18 = vsel %vm4619_vm5, %v8433_v44, %v4312_v13 }
 0x1d9   :  { %11809 = vst [vmem:[#allocation132_spill] sm:$0xff] %v9105_v46  ;;  %v3305_v39 = vrot.slane %v1384_v43, 7  ;;  %v3818_v53 = vrot.slane %v1384_v43, 1  ;;  %v1140_v24 = vadd.f32 %v8903_v10, %v1139_v55  ;;  %5418 = vmatmul.mubr.f32.gmra.mrb[2].mxu1 %v4658_v18  ;;  %v7394_v61 = vpack.i.bf16 %v9085_v49, %v8854_v48 }
 0x1da   :  { %v9115_v40 = vmax.f32 %v1145_v38, 0.0  ;;  %6875 = vmatprep.mubr.msk.f32.mxu1 %vm4619_vm5, %v8446_v30  ;;  %v7389_v57 = vpack.i.bf16 %v1384_v43, %v8824_v28  ;;  %v9122_v29 = vsel %vm3337_vm6, %v3302_v12, %v3303_v35  ;;  %v9126_v44 = vsel %vm3337_vm6, %v3303_v35, %v3304_v19  ;;  %v7250_v55 = vpop.f32.mrb[100].mxu0  ;;  %v4316_v18 = vpop.permute.xlu1 %4315 }
 0x1db   :  { %v1386_v13 = vmax.f32 %v1140_v24, 0.0  ;;  %7395 = vrot.lane.b32.xlu0 %v7394_v61, %s7629_s3  ;;  %v9131_v38 = vsel %vm3850_vm4, %v3817_v42, %v3818_v53  ;;  %v9135_v30 = vsel %vm3850_vm4, %v3818_v53, %v3819_v0  ;;  %v9139_v12 = vsel %vm3337_vm6, %v3304_v19, %v3305_v39  ;;  %v4318_v43 = vpop.permute.xlu0 %4317  ;;  %v1149_v61 = vpop.f32.mrb[101].mxu0 }
 0x1dc   :  { %11810 = vst [vmem:[#allocation133_spill] sm:$0xff] %v9131_v38  ;;  %11811 = vst [vmem:[#allocation134_spill] sm:$0xff] %v9135_v30  ;;  %v750_v35 = vadd.f32 %v8903_v10, %v8326_v59  ;;  %v1155_v24 = vadd.f32 %v8903_v10, %v7250_v55  ;;  %7390 = vrot.lane.b32.xlu1 %v7389_v57, %s7629_s3  ;;  %v4659_v42 = vsel %vm4619_vm5, %v8439_v62, %v4314_v56 }
 0x1dd   :  { %v7404_v53 = vpack.i.bf16 %v9115_v40, %v8898_v36  ;;  %v9150_v30 = vmax.f32 %v9047_v45, 0.0  ;;  %v3820_v19 = vrot.slane %v1386_v13, 1  ;;  %v1150_v38 = vadd.f32 %v8903_v10, %v1149_v61  ;;  %5423 = vmatmul.mubr.f32.gmra.mrb[4].mxu1 %v4659_v42 }
 0x1de   :  { %v7399_v59 = vpack.i.bf16 %v1386_v13, %v8852_v52  ;;  %v9154_v55 = vmax.f32 %v755_v31, 0.0  ;;  %v3308_v57 = vrot.slane %v9115_v40, 7  ;;  %v3821_v46 = vrot.slane %v9115_v40, 1  ;;  %6876 = vmatprep.mubr.msk.f32.mxu1 %vm4619_vm5, %v8450_v32  ;;  %v7253_v56 = vpop.f32.mrb[102].mxu0  ;;  %v4320_v61 = vpop.permute.xlu1 %4319 }
 0x1df   :  { %11812 = vst [vmem:[#allocation135_spill] sm:$0xff] %v9150_v30  ;;  %v9158_v25 = vmax.f32 %v1155_v24, 0.0  ;;  %v3307_v62 = vrot.slane %v1386_v13, 7  ;;  %v1388_v45 = vmax.f32 %v1150_v38, 0.0  ;;  %7405 = vrot.lane.b32.xlu0 %v7404_v53, %s7629_s3  ;;  %v9165_v42 = vsel %vm3850_vm4, %v3819_v0, %v3820_v19  ;;  %v9177_v13 = vpop.permute.xlu0 %4321  ;;  %v1159_v38 = vpop.f32.mrb[103].mxu0 }
 0x1e0   :  { %11813 = vst [vmem:[#allocation136_spill] sm:$0xff] %v9154_v55  ;;  %11814 = vst [vmem:[#allocation137_spill] sm:$0xff] %v9165_v42  ;;  %v11815_v31 = vrot.slane %v9085_v49, 7  ;;  %v9173_v24 = vmax.f32 %v750_v35, 0.0  ;;  %v1165_v32 = vadd.f32 %v8903_v10, %v7253_v56  ;;  %7400 = vrot.lane.b32.xlu1 %v7399_v59, %s7629_s3  ;;  %v4660_v53 = vsel %vm4619_vm5, %v8454_v15, %v4316_v18 }
 0x1e1   :  { %v7414_v0 = vpack.i.bf16 %v9158_v25, %v8908_v21  ;;  %v3822_v36 = vrot.slane %v1388_v45, 1  ;;  %5428 = vmatmul.mubr.f32.gmra.mrb[6].mxu1 %v4660_v53  ;;  %v7409_v35 = vpack.i.bf16 %v1388_v45, %v8882_v4  ;;  %v3823_v56 = vrot.slane %v9158_v25, 1 }
 0x1e2   :  { %v9171_v40 = vsel %vm3337_vm6, %v3305_v39, %v11815_v31  ;;  %11816 = vst [vmem:[#allocation138_spill] sm:$0xff] %v9173_v24  ;;  %v1160_v39 = vadd.f32 %v8903_v10, %v1159_v38  ;;  %v3309_v59 = vrot.slane %v1388_v45, 7  ;;  %v9187_v31 = vmax.f32 %v1165_v32, 0.0  ;;  %6877 = vmatprep.mubr.msk.f32.mxu1 %vm4619_vm5, %v8466_v3  ;;  %v7256_v42 = vpop.f32.mrb[104].mxu0  ;;  %v9196_v38 = vpop.permute.xlu1 %4323 }
 0x1e3   :  { %v9193_v15 = vsel %vm3850_vm4, %v3820_v19, %v3821_v46  ;;  %7415 = vrot.lane.b32.xlu0 %v7414_v0, %s7629_s3  ;;  %v11818_v53 = vrot.slane %v9085_v49, 7  ;;  %v9206_v32 = vsel %vm3850_vm4, %v3821_v46, %v3822_v36  ;;  %v9210_v3 = vsel %vm3337_vm6, %v3307_v62, %v3308_v57  ;;  %v9216_v49 = vpop.permute.xlu0 %4325 }
 0x1e4   :  { %11817 = vst [vmem:[#allocation139_spill] sm:$0xff] %v9193_v15  ;;  %v1390_v18 = vmax.f32 %v1160_v39, 0.0  ;;  %11819 = vst [vmem:[#allocation140_spill] sm:$0xff] %v9206_v32  ;;  %v765_v19 = vadd.f32 %v8903_v10, %v8344_v1  ;;  %v1175_v0 = vadd.f32 %v8903_v10, %v7256_v42  ;;  %7410 = vrot.lane.b32.xlu1 %v7409_v35, %s7629_s3  ;;  %v1169_v39 = vpop.f32.mrb[105].mxu0  ;;  %v3825_v42 = vrot.slane %v9187_v31, 1 }
 0x1e5   :  { %v9202_v45 = vsel %vm3337_vm6, %v11818_v53, %v3307_v62  ;;  %v4661_v53 = vsel %vm4619_vm5, %v8459_v54, %v4318_v43  ;;  %v7424_v46 = vpack.i.bf16 %v9187_v31, %v8961_v60  ;;  %v1170_v15 = vadd.f32 %v8903_v10, %v1169_v39 }
 0x1e6   :  { %v3824_v62 = vrot.slane %v1390_v18, 1  ;;  %5433 = vmatmul.mubr.f32.gmra.mrb[8].mxu1 %v4661_v53  ;;  %v7419_v1 = vpack.i.bf16 %v1390_v18, %v8901_v2  ;;  %v3311_v35 = vrot.slane %v1390_v18, 7  ;;  %v9226_v21 = vmax.f32 %v1175_v0, 0.0  ;;  %v7259_v32 = vpop.f32.mrb[106].mxu0  ;;  %v9235_v39 = vpop.permute.xlu1 %4327  ;;  %v11869_v2 = vld [vmem:[#allocation30_spill] sm:$0xff] }
 0x1e7   :  { %6878 = vmatprep.mubr.msk.f32.mxu1 %vm4619_vm5, %v8470_v23  ;;  %v9232_v54 = vsel %vm3850_vm4, %v3822_v36, %v3823_v56  ;;  %v1392_v43 = vmax.f32 %v1170_v15, 0.0  ;;  %7425 = vrot.lane.b32.xlu0 %v7424_v46, %s7629_s3  ;;  %v9239_v53 = vsel %vm3337_vm6, %v3308_v57, %v3309_v59  ;;  %v11823_v23 = vrot.slane %v9158_v25, 7  ;;  %v9255_v46 = vpop.permute.xlu0 %4329  ;;  %v1179_v57 = vpop.f32.mrb[107].mxu0 }
 0x1e8   :  { %11820 = vst [vmem:[#allocation141_spill] sm:$0xff] %v9232_v54  ;;  %11821 = vst [vmem:[#allocation142_spill] sm:$0xff] %v9239_v53  ;;  %v9243_v18 = vsel %vm3850_vm4, %v3823_v56, %v3824_v62  ;;  %v760_v15 = vadd.f32 %v8903_v10, %v8346_v6  ;;  %v1185_v0 = vadd.f32 %v8903_v10, %v7259_v32  ;;  %7420 = vrot.lane.b32.xlu1 %v7419_v1, %s7629_s3 }
 0x1e9   :  { %11822 = vst [vmem:[#allocation143_spill] sm:$0xff] %v9243_v18  ;;  %v9249_v36 = vsel %vm3337_vm6, %v3309_v59, %v11823_v23  ;;  %v4662_v56 = vsel %vm4619_vm5, %v8474_v63, %v4320_v61  ;;  %v7434_v18 = vpack.i.bf16 %v9226_v21, %v8994_v17  ;;  %v3314_v54 = vrot.slane %v9226_v21, 7 }
 0x1ea   :  { %11824 = vst [vmem:[#allocation144_spill] sm:$0xff] %v9249_v36  ;;  %v3826_v59 = vrot.slane %v1392_v43, 1  ;;  %v1180_v23 = vadd.f32 %v8903_v10, %v1179_v57  ;;  %5438 = vmatmul.mubr.f32.gmra.mrb[10].mxu1 %v4662_v56  ;;  %v7429_v6 = vpack.i.bf16 %v1392_v43, %v8938_v58  ;;  %v3827_v32 = vrot.slane %v9226_v21, 1  ;;  %v7262_v57 = vpop.f32.mrb[108].mxu0  ;;  %v9276_v56 = vpop.permute.xlu1 %4331 }
 0x1eb   :  { %v3313_v1 = vrot.slane %v1392_v43, 7  ;;  %v9265_v60 = vmax.f32 %v1185_v0, 0.0  ;;  %6879 = vmatprep.mubr.msk.f32.mxu1 %vm4619_vm5, %v8486_v34  ;;  %v9271_v63 = vsel %vm3850_vm4, %v3824_v62, %v3825_v42  ;;  %7435 = vrot.lane.b32.xlu0 %v7434_v18, %s7629_s3  ;;  %v11826_v17 = vrot.slane %v9158_v25, 7  ;;  %v9298_v25 = vpop.permute.xlu0 %4333 }
 0x1ec   :  { %11825 = vst [vmem:[#allocation145_spill] sm:$0xff] %v9271_v63  ;;  %v9273_v61 = vmax.f32 %v1180_v23, 0.0  ;;  %v9286_v34 = vsel %vm3850_vm4, %v3825_v42, %v3826_v59  ;;  %v11829_v62 = vrot.slane %v9187_v31, 7  ;;  %v9294_v18 = vmax.f32 %v765_v19, 0.0  ;;  %7430 = vrot.lane.b32.xlu1 %v7429_v6, %s7629_s3 }
 0x1ed   :  { %v9282_v21 = vsel %vm3337_vm6, %v11826_v17, %v3311_v35  ;;  %11828 = vst [vmem:[#allocation147_spill] sm:$0xff] %v9286_v34  ;;  %v1195_v0 = vadd.f32 %v8903_v10, %v7262_v57  ;;  %v1189_v17 = vpop.f32.mrb[109].mxu0  ;;  %v4663_v42 = vsel %vm4619_vm5, %v8479_v22, %v9177_v13  ;;  %v7444_v23 = vpack.i.bf16 %v9265_v60, %v9025_v8 }
 0x1ee   :  { %11827 = vst [vmem:[#allocation146_spill] sm:$0xff] %v9282_v21  ;;  %v9292_v43 = vsel %vm3337_vm6, %v3311_v35, %v11829_v62  ;;  %11831 = vst [vmem:[#allocation149_spill] sm:$0xff] %v9294_v18  ;;  %v9305_v34 = vmax.f32 %v760_v15, 0.0  ;;  %v3828_v35 = vrot.slane %v9273_v61, 1  ;;  %v1190_v19 = vadd.f32 %v8903_v10, %v1189_v17  ;;  %5443 = vmatmul.mubr.f32.gmra.mrb[12].mxu1 %v4663_v42 }
 0x1ef   :  { %11830 = vst [vmem:[#allocation148_spill] sm:$0xff] %v9292_v43  ;;  %v7439_v6 = vpack.i.bf16 %v9273_v61, %v8966_v27  ;;  %v3316_v57 = vrot.slane %v9265_v60, 7  ;;  %v3315_v62 = vrot.slane %v9273_v61, 7  ;;  %v9313_v63 = vmax.f32 %v1195_v0, 0.0  ;;  %6880 = vmatprep.mubr.msk.f32.mxu1 %vm4619_vm5, %v8490_v47  ;;  %7445 = vrot.lane.b32.xlu0 %v7444_v23, %s7629_s3  ;;  %v7265_v61 = vpop.f32.mrb[110].mxu0  ;;  %v9330_v0 = vpop.permute.xlu1 %4335  ;;  %v11904_v43 = vld [vmem:[#allocation36_spill] sm:$0xff] }
 0x1f0   :  { %11832 = vst [vmem:[#allocation150_spill] sm:$0xff] %v9305_v34  ;;  %v11833_v22 = vand.u32 127, %v8745_v51  ;;  %v9325_v15 = vsel %vm3850_vm4, %v3826_v59, %v3827_v32  ;;  %v9327_v17 = vmax.f32 %v1190_v19, 0.0  ;;  %v11837_v42 = vrot.slane %v9187_v31, 7  ;;  %v1199_v31 = vpop.f32.mrb[111].mxu0 }
 0x1f1   :  { %11836 = vst [vmem:[#allocation151_spill] sm:$0xff] %v9325_v15  ;;  %v9340_v51 = vsel %vm3850_vm4, %v3827_v32, %v3828_v35  ;;  %v9344_v59 = vsel %vm3337_vm6, %v3313_v1, %v3314_v54  ;;  %v3318_v19 = vrot.slane %v9313_v63, 7  ;;  %v1205_v23 = vadd.f32 %v8903_v10, %v7265_v61  ;;  %7440 = vrot.lane.b32.xlu1 %v7439_v6, %s7629_s3 }
 0x1f2   :  { %vm9319_vm7 = vcmp.eq.s32.totalorder %v11833_v22, 127  ;;  %v9336_v47 = vsel %vm3337_vm6, %v11837_v42, %v3313_v1  ;;  %11839 = vst [vmem:[#allocation153_spill] sm:$0xff] %v9340_v51  ;;  %11840 = vst [vmem:[#allocation154_spill] sm:$0xff] %v9344_v59  ;;  %v9349_v22 = vpop.permute.xlu0 %4337  ;;  %v4664_v42 = vsel %vm4619_vm5, %v8494_v11, %v9196_v38  ;;  %v7454_v32 = vpack.i.bf16 %v9313_v63, %v9150_v30  ;;  %v11841_v11 = vld [vmem:[#allocation25_spill] sm:$0xff] }
 0x1f3   :  { %11838 = vst [vmem:[#allocation152_spill] sm:$0xff] %v9336_v47  ;;  %v775_v1 = vadd.f32 %v8903_v10, %v8356_v9  ;;  %v3317_v51 = vrot.slane %v9327_v17, 7  ;;  %v1200_v15 = vadd.f32 %v8903_v10, %v1199_v31  ;;  %5448 = vmatmul.mubr.f32.gmra.mrb[14].mxu1 %v4664_v42  ;;  %v7449_v6 = vpack.i.bf16 %v9327_v17, %v8996_v26  ;;  %v7268_v31 = vpop.f32.mrb[112].mxu0  ;;  %v9375_v42 = vpop.permute.xlu1 %4339  ;;  %v11850_v26 = vld [vmem:[#allocation12_spill] sm:$0xff] }
 0x1f4   :  { %v3829_v61 = vrot.slane %v9265_v60, 1  ;;  %v9364_v27 = vmax.f32 %v1205_v23, 0.0  ;;  %6881 = vmatprep.mubr.msk.f32.mxu1 %vm4619_vm5, %v11841_v11  ;;  %v9370_v9 = vsel %vm3337_vm6, %v3314_v54, %v3315_v62  ;;  %7455 = vrot.lane.b32.xlu0 %v7454_v32, %s7629_s3  ;;  %v11843_v60 = vand.u32 127, %v8768_v14 }
 0x1f5   :  { %11842 = vst [vmem:[#allocation25_spill] sm:$0xff] %v9370_v9  ;;  %v9372_v38 = vmax.f32 %v1200_v15, 0.0  ;;  %v9385_v23 = vsel %vm3337_vm6, %v3315_v62, %v3316_v57  ;;  %v9389_v54 = vsel %vm3337_vm6, %v3316_v57, %v3317_v51  ;;  %v9393_v15 = vsel %vm3337_vm6, %v3317_v51, %v3318_v19  ;;  %7450 = vrot.lane.b32.xlu1 %v7449_v6, %s7629_s3  ;;  %v11849_v62 = vld [vmem:[#allocation24_spill] sm:$0xff] }
 0x1f6   :  { %vm9379_vm8 = vcmp.eq.s32.totalorder %v11843_v60, 0  ;;  %11846 = vst [vmem:[#allocation155_spill] sm:$0xff] %v9385_v23  ;;  %11847 = vst [vmem:[#allocation156_spill] sm:$0xff] %v9389_v54  ;;  %v3320_v32 = vrot.slane %v9364_v27, 7  ;;  %v1215_v14 = vadd.f32 %v8903_v10, %v7268_v31  ;;  %v9398_v11 = vpop.permute.xlu0 %4341  ;;  %v1209_v60 = vpop.f32.mrb[113].mxu0  ;;  %v4665_v30 = vsel %vm4619_vm5, %v11849_v62, %v9216_v49  ;;  %v11853_v62 = vld [vmem:[#allocation26_spill] sm:$0xff] }
 0x1f7   :  { %11848 = vst [vmem:[#allocation157_spill] sm:$0xff] %v9393_v15  ;;  %v7464_v57 = vpack.i.bf16 %v9364_v27, %v9173_v24  ;;  %v770_v51 = vadd.f32 %v8903_v10, %v11850_v26  ;;  %v3319_v58 = vrot.slane %v9372_v38, 7  ;;  %v1210_v54 = vadd.f32 %v8903_v10, %v1209_v60  ;;  %5453 = vmatmul.mubr.f32.gmra.mrb[16].mxu1 %v4665_v30  ;;  %v11852_v15 = vld [vmem:[#allocation13_spill] sm:$0xff]  ;;  %v7271_v30 = vpop.f32.mrb[114].mxu0  ;;  %v9426_v60 = vpop.permute.xlu1 %4343 }
 0x1f8   :  { %v7459_v6 = vpack.i.bf16 %v9372_v38, %v9077_v16  ;;  %v9411_v31 = vmax.f32 %v775_v1, 0.0  ;;  %v785_v9 = vadd.f32 %v8903_v10, %v11852_v15  ;;  %v9415_v49 = vmax.f32 %v1215_v14, 0.0  ;;  %6882 = vmatprep.mubr.msk.f32.mxu1 %vm4619_vm5, %v11853_v62  ;;  %v11860_v16 = vld [vmem:[#allocation29_spill] sm:$0xff] }
 0x1f9   :  { %v9421_v26 = vsel %vm3850_vm4, %v3828_v35, %v3829_v61  ;;  %v9423_v24 = vmax.f32 %v1210_v54, 0.0  ;;  %7465 = vrot.lane.b32.xlu0 %v7464_v57, %s7629_s3  ;;  %v11855_v1 = vrot.slane %v9327_v17, 1  ;;  %v9436_v14 = vsel %vm3337_vm6, %v3318_v19, %v3319_v58 }
 0x1fa   :  { %11851 = vst [vmem:[#allocation24_spill] sm:$0xff] %v9411_v31  ;;  %11854 = vst [vmem:[#allocation12_spill] sm:$0xff] %v9421_v26  ;;  %v9440_v35 = vsel %vm3337_vm6, %v3319_v58, %v3320_v32  ;;  %v3322_v54 = vrot.slane %v9415_v49, 7  ;;  %v1225_v57 = vadd.f32 %v8903_v10, %v7271_v30  ;;  %7460 = vrot.lane.b32.xlu1 %v7459_v6, %s7629_s3  ;;  %v9445_v62 = vpop.permute.xlu0 %4345  ;;  %v1219_v26 = vpop.f32.mrb[115].mxu0  ;;  %v4026_v30 = vsel %vm9319_vm7, 0.0, %v11860_v16 }
 0x1fb   :  { %v9432_v15 = vsel %vm3850_vm4, %v3829_v61, %v11855_v1  ;;  %11857 = vst [vmem:[#allocation26_spill] sm:$0xff] %v9436_v14  ;;  %11858 = vst [vmem:[#allocation158_spill] sm:$0xff] %v9440_v35  ;;  %v11859_v61 = vld [vmem:[#allocation27_spill] sm:$0xff]  ;;  %v7474_v19 = vpack.i.bf16 %v9415_v49, %v9305_v34  ;;  %v1220_v58 = vadd.f32 %v8903_v10, %v1219_v26  ;;  %v9459_v14 = vmax.f32 %v770_v51, 0.0  ;;  %v11862_v35 = vld [vmem:[#allocation14_spill] sm:$0xff]  ;;  %v7274_v16 = vpop.f32.mrb[116].mxu0  ;;  %v9471_v13 = vpop.permute.xlu1 %4347 }
 0x1fc   :  { %11856 = vst [vmem:[#allocation13_spill] sm:$0xff] %v9432_v15  ;;  %v4666_v1 = vsel %vm4619_vm5, %v11859_v61, %v9235_v39  ;;  %v3321_v15 = vrot.slane %v9423_v24, 7  ;;  %v7469_v6 = vpack.i.bf16 %v9423_v24, %v9154_v55  ;;  %v780_v39 = vadd.f32 %v8903_v10, %v11862_v35  ;;  %v11867_v55 = vld [vmem:[#allocation16_spill] sm:$0xff] }
 0x1fd   :  { %5458 = vmatmul.mubr.f32.gmra.mrb[18].mxu1 %v4666_v1  ;;  %11861 = vst [vmem:[#allocation27_spill] sm:$0xff] %v9459_v14  ;;  %v3831_v61 = vrot.slane %v9313_v63, 1  ;;  %v9464_v34 = vmax.f32 %v1225_v57, 0.0  ;;  %v9468_v1 = vmax.f32 %v1220_v58, 0.0  ;;  %7475 = vrot.lane.b32.xlu0 %v7474_v19, %s7629_s3  ;;  %v9481_v35 = vmax.f32 %v785_v9, 0.0  ;;  %v1229_v19 = vpop.f32.mrb[117].mxu0 }
 0x1fe   :  { %6883 = vmatprep.mubr.msk.f32.mxu1 %vm4619_vm5, %v4026_v30  ;;  %v9475_v51 = vsel %vm3337_vm6, %v3320_v32, %v3321_v15  ;;  %v9479_v63 = vsel %vm3337_vm6, %v3321_v15, %v3322_v54  ;;  %v1235_v57 = vadd.f32 %v8903_v10, %v7274_v16  ;;  %7470 = vrot.lane.b32.xlu1 %v7469_v6, %s7629_s3  ;;  %v9485_v58 = vpop.permute.xlu0 %4349  ;;  %v11866_v30 = vld [vmem:[#allocation28_spill] sm:$0xff]  ;;  %v9498_v16 = vmax.f32 %v780_v39, 0.0  ;;  %v7277_v39 = vpop.f32.mrb[118].mxu0 }
 0x1ff   :  { %11863 = vst [vmem:[#allocation29_spill] sm:$0xff] %v9475_v51  ;;  %11864 = vst [vmem:[#allocation14_spill] sm:$0xff] %v9479_v63  ;;  %v4667_v26 = vsel %vm4619_vm5, %v11866_v30, %v9255_v46  ;;  %v7484_v32 = vpack.i.bf16 %v9464_v34, %v9459_v14  ;;  %v790_v15 = vadd.f32 %v8903_v10, %v11867_v55  ;;  %v3323_v9 = vrot.slane %v9468_v1, 7  ;;  %v11870_v46 = vld [vmem:[#allocation31_spill] sm:$0xff] }
 0x200   :  { %11865 = vst [vmem:[#allocation159_spill] sm:$0xff] %v9481_v35  ;;  %v1230_v63 = vadd.f32 %v8903_v10, %v1229_v19  ;;  %v7479_v6 = vpack.i.bf16 %v9468_v1, %v9294_v18  ;;  %11868 = vst [vmem:[#allocation28_spill] sm:$0xff] %v9498_v16  ;;  %v9500_v51 = vmax.f32 %v1235_v57, 0.0  ;;  %v3514_v30 = vsel %vm9379_vm8, 0.0, %v11870_v46  ;;  %v9517_v57 = vpop.permute.xlu1 %4351  ;;  %v11876_v46 = vld [vmem:[#allocation15_spill] sm:$0xff] }
 0x201   :  { %5463 = vmatmul.mubr.f32.gmra.mrb[20].mxu1 %v4667_v26  ;;  %v11871_v55 = vrot.slane %v9327_v17, 1  ;;  %v3324_v26 = vrot.slane %v9464_v34, 7  ;;  %7485 = vrot.lane.b32.xlu0 %v7484_v32, %s7629_s3  ;;  %v9527_v17 = vsel %vm3337_vm6, %v3322_v54, %v3323_v9  ;;  %v4668_v18 = vsel %vm4619_vm5, %v3514_v30, %v9276_v56 }
 0x202   :  { %6884 = vmatprep.mubr.msk.f32.mxu1 %vm4619_vm5, %v11869_v2  ;;  %v9514_v14 = vmax.f32 %v1230_v63, 0.0  ;;  %v11873_v2 = vrot.slane %v9372_v38, 1  ;;  %11875 = vst [vmem:[#allocation31_spill] sm:$0xff] %v9527_v17  ;;  %v1245_v63 = vadd.f32 %v8903_v10, %v7277_v39  ;;  %7480 = vrot.lane.b32.xlu1 %v7479_v6, %s7629_s3  ;;  %v9533_v32 = vpop.permute.xlu0 %4353  ;;  %v11878_v6 = vld [vmem:[#allocation17_spill] sm:$0xff]  ;;  %v11879_v17 = vld [vmem:[#allocation18_spill] sm:$0xff]  ;;  %v3833_v56 = vrot.slane %v9364_v27, 1 }
 0x203   :  { %v9511_v19 = vsel %vm3850_vm4, %v11871_v55, %v3831_v61  ;;  %v795_v55 = vadd.f32 %v8903_v10, %v11876_v46  ;;  %v805_v46 = vadd.f32 %v8903_v10, %v11878_v6  ;;  %v800_v23 = vadd.f32 %v8903_v10, %v11879_v17 }
 0x204   :  { %11872 = vst [vmem:[#allocation16_spill] sm:$0xff] %v9511_v19  ;;  %v9523_v8 = vsel %vm3850_vm4, %v3831_v61, %v11873_v2  ;;  %v1239_v19 = vpop.f32.mrb[119].mxu0  ;;  %v7494_v61 = vpack.i.bf16 %v9500_v51, %v9498_v16  ;;  %v9539_v2 = vmax.f32 %v790_v15, 0.0  ;;  %v7489_v39 = vpack.i.bf16 %v9514_v14, %v9411_v31  ;;  %v11880_v15 = vld [vmem:[#allocation33_spill] sm:$0xff]  ;;  %v9558_v16 = vpop.permute.xlu1 %4355  ;;  %v11885_v31 = vld [vmem:[#allocation32_spill] sm:$0xff] }
 0x205   :  { %11874 = vst [vmem:[#allocation30_spill] sm:$0xff] %v9523_v8  ;;  %v1240_v8 = vadd.f32 %v8903_v10, %v1239_v19  ;;  %5468 = vmatmul.mubr.f32.gmra.mrb[22].mxu1 %v4668_v18  ;;  %v9550_v30 = vmax.f32 %v1245_v63, 0.0  ;;  %v7280_v18 = vpop.f32.mrb[120].mxu0  ;;  %v9562_v6 = vsel %vm3337_vm6, %v3323_v9, %v3324_v26  ;;  %v11882_v27 = vrot.slane %v9514_v14, 7  ;;  %v11884_v63 = vld [vmem:[#allocation19_spill] sm:$0xff] }
 0x206   :  { %11877 = vst [vmem:[#allocation15_spill] sm:$0xff] %v9539_v2  ;;  %6885 = vmatprep.mubr.msk.f32.mxu1 %vm4619_vm5, %v11880_v15  ;;  %7495 = vrot.lane.b32.xlu0 %v7494_v61, %s7629_s3  ;;  %11881 = vst [vmem:[#allocation17_spill] sm:$0xff] %v9562_v6  ;;  %v815_v15 = vadd.f32 %v8903_v10, %v11884_v63  ;;  %v9574_v61 = vpop.permute.xlu0 %4357  ;;  %v1249_v54 = vpop.f32.mrb[121].mxu0  ;;  %v4669_v9 = vsel %vm4619_vm5, %v11885_v31, %v9298_v25  ;;  %v9581_v47 = vmax.f32 %v795_v55, 0.0  ;;  %v11890_v25 = vld [vmem:[#allocation34_spill] sm:$0xff] }
 0x207   :  { %v9555_v19 = vmax.f32 %v1240_v8, 0.0  ;;  %v9568_v17 = vsel %vm3337_vm6, %v3324_v26, %v11882_v27  ;;  %v1255_v8 = vadd.f32 %v8903_v10, %v7280_v18  ;;  %7490 = vrot.lane.b32.xlu1 %v7489_v39, %s7629_s3  ;;  %v7504_v6 = vpack.i.bf16 %v9550_v30, %v9539_v2  ;;  %v11887_v26 = vld [vmem:[#allocation20_spill] sm:$0xff] }
 0x208   :  { %11883 = vst [vmem:[#allocation18_spill] sm:$0xff] %v9568_v17  ;;  %11886 = vst [vmem:[#allocation33_spill] sm:$0xff] %v9581_v47  ;;  %v810_v27 = vadd.f32 %v8903_v10, %v11887_v26  ;;  %v1250_v63 = vadd.f32 %v8903_v10, %v1249_v54  ;;  %v9588_v18 = vmax.f32 %v805_v46, 0.0  ;;  %v9590_v17 = vmax.f32 %v800_v23, 0.0  ;;  %v7283_v23 = vpop.f32.mrb[122].mxu0  ;;  %v9607_v46 = vpop.permute.xlu1 %4359 }
 0x209   :  { %5473 = vmatmul.mubr.f32.gmra.mrb[24].mxu1 %v4669_v9  ;;  %v7499_v39 = vpack.i.bf16 %v9555_v19, %v9481_v35  ;;  %v9592_v59 = vmax.f32 %v1255_v8, 0.0  ;;  %v11891_v31 = vrot.slane %v9372_v38, 1  ;;  %v3326_v54 = vrot.slane %v9500_v51, 7 }
 0x20a   :  { %11888 = vst [vmem:[#allocation19_spill] sm:$0xff] %v9588_v18  ;;  %11889 = vst [vmem:[#allocation32_spill] sm:$0xff] %v9590_v17  ;;  %6886 = vmatprep.mubr.msk.f32.mxu1 %vm4619_vm5, %v11890_v25  ;;  %v3327_v9 = vrot.slane %v9555_v19, 7  ;;  %v9604_v26 = vmax.f32 %v1250_v63, 0.0  ;;  %7505 = vrot.lane.b32.xlu0 %v7504_v6, %s7629_s3  ;;  %v11893_v8 = vrot.slane %v9423_v24, 1  ;;  %v9615_v25 = vmax.f32 %v815_v15, 0.0 }
 0x20b   :  { %v9600_v55 = vsel %vm3850_vm4, %v11891_v31, %v3833_v56  ;;  %v1265_v31 = vadd.f32 %v8903_v10, %v7283_v23  ;;  %7500 = vrot.lane.b32.xlu1 %v7499_v39, %s7629_s3  ;;  %v1259_v63 = vpop.f32.mrb[123].mxu0  ;;  %v11896_v6 = vld [vmem:[#allocation35_spill] sm:$0xff]  ;;  %v7514_v35 = vpack.i.bf16 %v9592_v59, %v9590_v17  ;;  %v9626_v21 = vmax.f32 %v810_v27, 0.0  ;;  %v11899_v17 = vld [vmem:[#allocation37_spill] sm:$0xff] }
 0x20c   :  { %11892 = vst [vmem:[#allocation20_spill] sm:$0xff] %v9600_v55  ;;  %v9613_v38 = vsel %vm3850_vm4, %v3833_v56, %v11893_v8  ;;  %11895 = vst [vmem:[#allocation160_spill] sm:$0xff] %v9615_v25  ;;  %v9619_v55 = vpop.permute.xlu0 %4361  ;;  %v4670_v2 = vsel %vm4619_vm5, %v11896_v6, %v9330_v0  ;;  %v11898_v56 = vld [vmem:[#allocation22_spill] sm:$0xff]  ;;  %v1260_v8 = vadd.f32 %v8903_v10, %v1259_v63  ;;  %v3835_v23 = vrot.slane %v9415_v49, 1  ;;  %v9644_v63 = vpop.permute.xlu1 %4363 }
 0x20d   :  { %11894 = vst [vmem:[#allocation34_spill] sm:$0xff] %v9613_v38  ;;  %11897 = vst [vmem:[#allocation35_spill] sm:$0xff] %v9626_v21  ;;  %v820_v15 = vadd.f32 %v8903_v10, %v11898_v56  ;;  %5478 = vmatmul.mubr.f32.gmra.mrb[26].mxu1 %v4670_v2  ;;  %v7509_v39 = vpack.i.bf16 %v9604_v26, %v9581_v47  ;;  %v3328_v0 = vrot.slane %v9550_v30, 7  ;;  %v9636_v6 = vmax.f32 %v1265_v31, 0.0  ;;  %v7286_v2 = vpop.f32.mrb[124].mxu0 }
 0x20e   :  { %6887 = vmatprep.mubr.msk.f32.mxu1 %vm4619_vm5, %v11899_v17  ;;  %v3329_v27 = vrot.slane %v9604_v26, 7  ;;  %v9641_v56 = vmax.f32 %v1260_v8, 0.0  ;;  %7515 = vrot.lane.b32.xlu0 %v7514_v35, %s7629_s3  ;;  %v11900_v49 = vrot.slane %v9514_v14, 7  ;;  %v9654_v31 = vsel %vm3337_vm6, %v3326_v54, %v3327_v9  ;;  %v11903_v17 = vld [vmem:[#allocation21_spill] sm:$0xff]  ;;  %v1269_v4 = vpop.f32.mrb[125].mxu0 }
 0x20f   :  { %11902 = vst [vmem:[#allocation37_spill] sm:$0xff] %v9654_v31  ;;  %v825_v47 = vadd.f32 %v8903_v10, %v11903_v17  ;;  %v1275_v8 = vadd.f32 %v8903_v10, %v7286_v2  ;;  %7510 = vrot.lane.b32.xlu1 %v7509_v39, %s7629_s3  ;;  %v4671_v53 = vsel %vm4619_vm5, %v11904_v43, %v9349_v22  ;;  %v3332_v2 = vrot.slane %v9636_v6, 7  ;;  %v11906_v43 = vld [vmem:[#allocation38_spill] sm:$0xff] }
 0x210   :  { %v9650_v38 = vsel %vm3337_vm6, %v11900_v49, %v3326_v54  ;;  %v9660_v35 = vpop.permute.xlu0 %4365  ;;  %v7524_v49 = vpack.i.bf16 %v9636_v6, %v9626_v21  ;;  %v3330_v54 = vrot.slane %v9592_v59, 7  ;;  %v1270_v17 = vadd.f32 %v8903_v10, %v1269_v4  ;;  %v9688_v21 = vpop.permute.xlu1 %4367 }
 0x211   :  { %11901 = vst [vmem:[#allocation22_spill] sm:$0xff] %v9650_v38  ;;  %v9667_v38 = vmax.f32 %v820_v15, 0.0  ;;  %5483 = vmatmul.mubr.f32.gmra.mrb[28].mxu1 %v4671_v53  ;;  %v7519_v39 = vpack.i.bf16 %v9641_v56, %v9588_v18  ;;  %v3331_v31 = vrot.slane %v9641_v56, 7  ;;  %v9675_v36 = vmax.f32 %v1275_v8, 0.0  ;;  %v7289_v53 = vpop.f32.mrb[126].mxu0 }
 0x212   :  { %6888 = vmatprep.mubr.msk.f32.mxu1 %vm4619_vm5, %v11906_v43  ;;  %v11907_v22 = vrot.slane %v9423_v24, 1  ;;  %v9685_v4 = vmax.f32 %v1270_v17, 0.0  ;;  %7525 = vrot.lane.b32.xlu0 %v7524_v49, %s7629_s3  ;;  %v11909_v18 = vrot.slane %v9468_v1, 1  ;;  %v9698_v24 = vsel %vm3337_vm6, %v3327_v9, %v3328_v0 }
 0x213   :  { %11905 = vst [vmem:[#allocation21_spill] sm:$0xff] %v9667_v38  ;;  %11911 = vst [vmem:[#allocation161_spill] sm:$0xff] %v9698_v24  ;;  %v9702_v43 = vsel %vm3337_vm6, %v3328_v0, %v3329_v27  ;;  %v9704_v17 = vmax.f32 %v825_v47, 0.0  ;;  %v1285_v49 = vadd.f32 %v8903_v10, %v7289_v53  ;;  %7520 = vrot.lane.b32.xlu1 %v7519_v39, %s7629_s3  ;;  %v3838_v53 = vrot.slane %v9514_v14, 1 }
 0x214   :  { %v9683_v15 = vsel %vm3850_vm4, %v11907_v22, %v3835_v23  ;;  %v9694_v8 = vsel %vm3850_vm4, %v3835_v23, %v11909_v18  ;;  %11912 = vst [vmem:[#allocation162_spill] sm:$0xff] %v9702_v43  ;;  %v9708_v22 = vpop.permute.xlu0 %4369  ;;  %v11914_v18 = vld [vmem:[#allocation39_spill] sm:$0xff]  ;;  %v7534_v9 = vpack.i.bf16 %v9675_v36, %v9667_v38  ;;  %v3333_v0 = vrot.slane %v9685_v4, 7 }
 0x215   :  { %11908 = vst [vmem:[#allocation36_spill] sm:$0xff] %v9683_v15  ;;  %11910 = vst [vmem:[#allocation38_spill] sm:$0xff] %v9694_v8  ;;  %v1279_v15 = vpop.f32.mrb[127].mxu0  ;;  %v4672_v23 = vsel %vm4619_vm5, %v11914_v18, %v9375_v42  ;;  %v3837_v8 = vrot.slane %v9464_v34, 1  ;;  %v7529_v39 = vpack.i.bf16 %v9685_v4, %v9615_v25  ;;  %v3334_v43 = vrot.slane %v9675_v36, 7  ;;  %v11916_v42 = vld [vmem:[#allocation41_spill] sm:$0xff] }
 0x216   :  { %11913 = vst [vmem:[#allocation163_spill] sm:$0xff] %v9704_v17  ;;  %v1280_v47 = vadd.f32 %v8903_v10, %v1279_v15  ;;  %5488 = vmatmul.mubr.f32.gmra.mrb[30].mxu1 %v4672_v23  ;;  %v9722_v24 = vmax.f32 %v1285_v49, 0.0  ;;  %v9728_v34 = vsel %vm3337_vm6, %v3329_v27, %v3330_v54  ;;  %7535 = vrot.lane.b32.xlu0 %v7534_v9, %s7629_s3  ;;  %v9733_v10 = vpop.permute.xlu1 %4371  ;;  %v3839_v27 = vrot.slane %v9500_v51, 1  ;;  %v11917_v9 = vld [vmem:[#allocation40_spill] sm:$0xff] }
 0x217   :  { %6889 = vmatprep.mubr.msk.f32.mxu1 %vm4619_vm5, %v11916_v42  ;;  %v9737_v14 = vsel %vm3337_vm6, %v3330_v54, %v3331_v31  ;;  %v9741_v15 = vsel %vm3337_vm6, %v3331_v31, %v3332_v2  ;;  %v9745_v49 = vsel %vm3337_vm6, %v3332_v2, %v3333_v0  ;;  %7530 = vrot.lane.b32.xlu1 %v7529_v39, %s7629_s3  ;;  %v3840_v31 = vrot.slane %v9555_v19, 1  ;;  %v11918_v39 = vld [vmem:[#allocation42_spill] sm:$0xff] }
 0x218   :  { %11915 = vst [vmem:[#allocation39_spill] sm:$0xff] %v9722_v24  ;;  %v9730_v18 = vmax.f32 %v1280_v47, 0.0  ;;  %v9749_v23 = vpop.permute.xlu0 %4373  ;;  %v4673_v47 = vsel %vm4619_vm5, %v11917_v9, %v9398_v11  ;;  %v7544_v54 = vpack.i.bf16 %v9722_v24, %v8984_v7  ;;  %v11676_v42 = vrot.slane %v9722_v24, 7  ;;  %v11974_v7 = vld [vmem:[#allocation63_spill] sm:$0xff] }
 0x219   :  { %v11919_v38 = vrot.slane %v9468_v1, 1  ;;  %v9771_v19 = vsel %vm3850_vm4, %v3837_v8, %v3838_v53  ;;  %v9775_v9 = vsel %vm3337_vm6, %v3333_v0, %v3334_v43  ;;  %v11922_v0 = vld [vmem:[#allocation43_spill] sm:$0xff] }
 0x21a   :  { %v3335_v2 = vrot.slane %v9730_v18, 7  ;;  %5493 = vmatmul.mubr.f32.gmra.mrb[32].mxu1 %v4673_v47  ;;  %v7539_v51 = vpack.i.bf16 %v9730_v18, %v9704_v17  ;;  %11921 = vst [vmem:[#allocation40_spill] sm:$0xff] %v9771_v19  ;;  %7545 = vrot.lane.b32.xlu0 %v7544_v54, %s7629_s3  ;;  %v9778_v47 = vpop.permute.xlu1 %4375  ;;  %v4674_v54 = vsel %vm4619_vm5, %v11922_v0, %v9426_v60  ;;  %v3842_v19 = vrot.slane %v9604_v26, 1  ;;  %v11927_v0 = vld [vmem:[#allocation44_spill] sm:$0xff] }
 0x21b   :  { %6890 = vmatprep.mubr.msk.f32.mxu1 %vm4619_vm5, %v11918_v39  ;;  %v9767_v11 = vsel %vm3850_vm4, %v11919_v38, %v3837_v8  ;;  %v3841_v38 = vrot.slane %v9550_v30, 1  ;;  %v9806_v30 = vsel %vm3850_vm4, %v3839_v27, %v3840_v31  ;;  %v3843_v60 = vrot.slane %v9592_v59, 1 }
 0x21c   :  { %11920 = vst [vmem:[#allocation41_spill] sm:$0xff] %v9767_v11  ;;  %v9782_v39 = vsel %vm3337_vm6, %v3334_v43, %v3335_v2  ;;  %v9788_v1 = vsel %vm3337_vm6, %v3335_v2, %v11676_v42  ;;  %7540 = vrot.lane.b32.xlu1 %v7539_v51, %s7629_s3  ;;  %v4378_v8 = vpop.permute.xlu0 %4377  ;;  %v11923_v43 = vld [vmem:[#allocation76_spill] sm:$0xff]  ;;  %v9802_v2 = vsel %vm3850_vm4, %v3838_v53, %v3839_v27  ;;  %11925 = vst [vmem:[#allocation43_spill] sm:$0xff] %v9806_v30  ;;  %v11926_v51 = vld [vmem:[#allocation45_spill] sm:$0xff] }
 0x21d   :  { %v9798_v11 = vsel %vm4619_vm5, %v11923_v43, %v4378_v8  ;;  %11924 = vst [vmem:[#allocation42_spill] sm:$0xff] %v9802_v2  ;;  %v4675_v8 = vsel %vm4619_vm5, %v11927_v0, %v9445_v62  ;;  %v3844_v53 = vrot.slane %v9641_v56, 1  ;;  %v11929_v27 = vld [vmem:[#allocation80_spill] sm:$0xff]  ;;  %v9829_v59 = vsel %vm3850_vm4, %v3841_v38, %v3842_v19  ;;  %v11932_v62 = vld [vmem:[#allocation46_spill] sm:$0xff] }
 0x21e   :  { %5498 = vmatmul.mubr.f32.gmra.mrb[34].mxu1 %v4674_v54  ;;  %v4380_v42 = vpop.permute.xlu1 %4379  ;;  %v11928_v54 = vld [vmem:[#allocation79_spill] sm:$0xff]  ;;  %11931 = vst [vmem:[#allocation45_spill] sm:$0xff] %v9829_v59  ;;  %v3845_v0 = vrot.slane %v9636_v6, 1  ;;  %v11935_v59 = vld [vmem:[#allocation85_spill] sm:$0xff]  ;;  %v9849_v6 = vsel %vm3850_vm4, %v3842_v19, %v3843_v60 }
 0x21f   :  { %6891 = vmatprep.mubr.msk.f32.mxu1 %vm4619_vm5, %v11926_v51  ;;  %v9816_v43 = vsel %vm4619_vm5, %v11928_v54, %v4380_v42  ;;  %v9825_v51 = vsel %vm3850_vm4, %v3840_v31, %v3841_v38  ;;  %v11934_v54 = vld [vmem:[#allocation84_spill] sm:$0xff]  ;;  %v1497_v31 = vadd.s32 640, %v8292_v41  ;;  %v3846_v38 = vrot.slane %v9685_v4, 1  ;;  %11936 = vst [vmem:[#allocation44_spill] sm:$0xff] %v9849_v6 }
 0x220   :  { %v4382_v26 = vpop.permute.xlu0 %4381  ;;  %11930 = vst [vmem:[#allocation76_spill] sm:$0xff] %v9825_v51  ;;  %v3848_v6 = vrot.slane %v9730_v18, 1  ;;  %v11945_v18 = vld [vmem:[#allocation51_spill] sm:$0xff] }
 0x221   :  { %v9821_v30 = vsel %vm4619_vm5, %v11929_v27, %v4382_v26  ;;  %v2109_v19 = vand.u32 127, %v1497_v31 }
 0x222   :  { %5503 = vmatmul.mubr.f32.gmra.mrb[36].mxu1 %v4675_v8  ;;  %v4384_v42 = vpop.permute.xlu1 %4383  ;;  %v11933_v8 = vld [vmem:[#allocation47_spill] sm:$0xff] }
 0x223   :  { %6892 = vmatprep.mubr.msk.f32.mxu1 %vm4619_vm5, %v11932_v62  ;;  %v4676_v26 = vsel %vm4619_vm5, %v11933_v8, %v9471_v13  ;;  %v9839_v27 = vsel %vm4619_vm5, %v11934_v54, %v4384_v42  ;;  %v9853_v13 = vsel %vm3850_vm4, %v3843_v60, %v3844_v53  ;;  %v11938_v8 = vld [vmem:[#allocation49_spill] sm:$0xff]  ;;  %v3847_v54 = vrot.slane %v9675_v36, 1 }
 0x224   :  { %v4386_v56 = vpop.permute.xlu0 %4385  ;;  %11937 = vst [vmem:[#allocation79_spill] sm:$0xff] %v9853_v13  ;;  %v11941_v60 = vld [vmem:[#allocation89_spill] sm:$0xff]  ;;  %v9872_v36 = vsel %vm3850_vm4, %v3844_v53, %v3845_v0  ;;  %vm3161_vm9 = vcmp.eq.s32.totalorder %v2109_v19, 0  ;;  %v11947_v53 = vld [vmem:[#allocation94_spill] sm:$0xff] }
 0x225   :  { %v9845_v62 = vsel %vm4619_vm5, %v11935_v59, %v4386_v56  ;;  %v11940_v56 = vld [vmem:[#allocation88_spill] sm:$0xff]  ;;  %11942 = vst [vmem:[#allocation80_spill] sm:$0xff] %v9872_v36  ;;  %v11951_v19 = vld [vmem:[#allocation98_spill] sm:$0xff]  ;;  %v11964_v36 = vld [vmem:[#allocation115_spill] sm:$0xff] }
 0x226   :  { %5508 = vmatmul.mubr.f32.gmra.mrb[38].mxu1 %v4676_v26  ;;  %v4388_v42 = vpop.permute.xlu1 %4387  ;;  %v11939_v26 = vld [vmem:[#allocation48_spill] sm:$0xff] }
 0x227   :  { %6893 = vmatprep.mubr.msk.f32.mxu1 %vm4619_vm5, %v11938_v8  ;;  %v4677_v59 = vsel %vm4619_vm5, %v11939_v26, %v9485_v58  ;;  %v9863_v51 = vsel %vm4619_vm5, %v11940_v56, %v4388_v42  ;;  %v9876_v8 = vsel %vm3850_vm4, %v3845_v0, %v3846_v38  ;;  %v11944_v58 = vld [vmem:[#allocation50_spill] sm:$0xff]  ;;  %v4678_v26 = vsel %vm4619_vm5, %v11945_v18, %v9517_v57 }
 0x228   :  { %v4390_v4 = vpop.permute.xlu0 %4389  ;;  %11943 = vst [vmem:[#allocation46_spill] sm:$0xff] %v9876_v8  ;;  %v9893_v0 = vsel %vm3850_vm4, %v3846_v38, %v3847_v54  ;;  %v11677_v57 = vrot.slane %v9722_v24, 1  ;;  %v3546_v18 = vsel %vm3161_vm9, 0.0, %v11951_v19  ;;  %v1480_v19 = vadd.s32 504, %v8292_v41 }
 0x229   :  { %v9868_v13 = vsel %vm4619_vm5, %v11941_v60, %v4390_v4  ;;  %11948 = vst [vmem:[#allocation47_spill] sm:$0xff] %v9893_v0  ;;  %v9897_v60 = vsel %vm3850_vm4, %v3847_v54, %v3848_v6  ;;  %v11959_v0 = vld [vmem:[#allocation56_spill] sm:$0xff] }
 0x22a   :  { %5513 = vmatmul.mubr.f32.gmra.mrb[40].mxu1 %v4677_v59  ;;  %v4392_v42 = vpop.permute.xlu1 %4391  ;;  %v11946_v59 = vld [vmem:[#allocation93_spill] sm:$0xff]  ;;  %11949 = vst [vmem:[#allocation84_spill] sm:$0xff] %v9897_v60  ;;  %v4681_v8 = vsel %vm4619_vm5, %v11959_v0, %v9574_v61 }
 0x22b   :  { %6894 = vmatprep.mubr.msk.f32.mxu1 %vm4619_vm5, %v11944_v58  ;;  %v9885_v4 = vsel %vm4619_vm5, %v11946_v59, %v4392_v42  ;;  %v11950_v58 = vld [vmem:[#allocation53_spill] sm:$0xff] }
 0x22c   :  { %v4394_v31 = vpop.permute.xlu0 %4393 }
 0x22d   :  { %v9889_v56 = vsel %vm4619_vm5, %v11947_v53, %v4394_v31  ;;  %v11952_v31 = vld [vmem:[#allocation52_spill] sm:$0xff]  ;;  %v9917_v53 = vsel %vm3850_vm4, %v3848_v6, %v11677_v57  ;;  %v11958_v57 = vld [vmem:[#allocation57_spill] sm:$0xff] }
 0x22e   :  { %5518 = vmatmul.mubr.f32.gmra.mrb[42].mxu1 %v4678_v26  ;;  %v4396_v42 = vpop.permute.xlu1 %4395  ;;  %v4679_v59 = vsel %vm4619_vm5, %v11952_v31, %v9533_v32  ;;  %11953 = vst [vmem:[#allocation85_spill] sm:$0xff] %v9917_v53 }
 0x22f   :  { %6895 = vmatprep.mubr.msk.f32.mxu1 %vm4619_vm5, %v11950_v58  ;;  %v9907_v38 = vsel %vm4619_vm5, %v3546_v18, %v4396_v42  ;;  %v11954_v58 = vld [vmem:[#allocation54_spill] sm:$0xff]  ;;  %v11955_v42 = vld [vmem:[#allocation55_spill] sm:$0xff] }
 0x230   :  { %v4398_v26 = vpop.permute.xlu0 %4397  ;;  %v4680_v18 = vsel %vm4619_vm5, %v11955_v42, %v9558_v16  ;;  %v1481_v16 = vadd.s32 512, %v8292_v41  ;;  %v11960_v42 = vld [vmem:[#allocation109_spill] sm:$0xff] }
 0x231   :  { %v9911_v54 = vsel %vm4619_vm5, %v8914_v20, %v4398_v26  ;;  %v11957_v26 = vld [vmem:[#allocation105_spill] sm:$0xff] }
 0x232   :  { %5523 = vmatmul.mubr.f32.gmra.mrb[44].mxu1 %v4679_v59  ;;  %v4400_v32 = vpop.permute.xlu1 %4399  ;;  %v11956_v59 = vld [vmem:[#allocation104_spill] sm:$0xff]  ;;  %v1997_v0 = vand.u32 127, %v1481_v16 }
 0x233   :  { %6896 = vmatprep.mubr.msk.f32.mxu1 %vm4619_vm5, %v11954_v58  ;;  %v9927_v20 = vsel %vm4619_vm5, %v11956_v59, %v4400_v32  ;;  %v1990_v58 = vand.u32 127, %v1480_v19  ;;  %v11962_v59 = vld [vmem:[#allocation58_spill] sm:$0xff] }
 0x234   :  { %v4402_v31 = vpop.permute.xlu0 %4401  ;;  %vm3145_vm11 = vcmp.eq.s32.totalorder %v1997_v0, 0 }
 0x235   :  { %v9931_v6 = vsel %vm4619_vm5, %v11957_v26, %v4402_v31  ;;  %vm3657_vm10 = vcmp.eq.s32.totalorder %v1990_v58, 127  ;;  %v11963_v26 = vld [vmem:[#allocation59_spill] sm:$0xff]  ;;  %v3530_v17 = vsel %vm3145_vm11, 0.0, %v11974_v7  ;;  %v11979_v7 = vld [vmem:[#allocation65_spill] sm:$0xff] }
 0x236   :  { %5528 = vmatmul.mubr.f32.gmra.mrb[46].mxu1 %v4680_v18  ;;  %v4404_v53 = vpop.permute.xlu1 %4403  ;;  %v11961_v18 = vld [vmem:[#allocation110_spill] sm:$0xff]  ;;  %v4682_v61 = vsel %vm4619_vm5, %v11963_v26, %v9607_v46  ;;  %v11967_v46 = vld [vmem:[#allocation60_spill] sm:$0xff]  ;;  %v11970_v26 = vld [vmem:[#allocation11_spill] sm:$0xff] }
 0x237   :  { %6897 = vmatprep.mubr.msk.f32.mxu1 %vm4619_vm5, %v11958_v57  ;;  %v9941_v32 = vsel %vm4619_vm5, %v11960_v42, %v4404_v53  ;;  %v4683_v16 = vsel %vm4619_vm5, %v11967_v46, %v9619_v55  ;;  %v11975_v55 = vrot.slane %v9722_v24, 7  ;;  %v11980_v24 = vld [vmem:[#allocation10_spill] sm:$0xff] }
 0x238   :  { %v4406_v60 = vpop.permute.xlu0 %4405  ;;  %v3210_v25 = vrot.slane %v11980_v24, 7 }
 0x239   :  { %v9945_v31 = vsel %vm4619_vm5, %v11961_v18, %v4406_v60  ;;  %v11966_v60 = vld [vmem:[#allocation117_spill] sm:$0xff] }
 0x23a   :  { %5533 = vmatmul.mubr.f32.gmra.mrb[48].mxu1 %v4681_v8  ;;  %v4408_v57 = vpop.permute.xlu1 %4407  ;;  %v11965_v8 = vld [vmem:[#allocation61_spill] sm:$0xff] }
 0x23b   :  { %6898 = vmatprep.mubr.msk.f32.mxu1 %vm4619_vm5, %v11962_v59  ;;  %v9954_v53 = vsel %vm4619_vm5, %v11964_v36, %v4408_v57  ;;  %v4042_v42 = vsel %vm3657_vm10, 0.0, %v11965_v8  ;;  %v1549_v59 = vand.u32 127, %v8292_v41  ;;  %v11968_v36 = vld [vmem:[#allocation122_spill] sm:$0xff] }
 0x23c   :  { %v4410_v19 = vpop.permute.xlu0 %4409 }
 0x23d   :  { %v9959_v18 = vsel %vm4619_vm5, %v11966_v60, %v4410_v19  ;;  %v11971_v19 = vld [vmem:[#allocation123_spill] sm:$0xff]  ;;  %vm3081_vm12 = vcmp.eq.s32.totalorder %v1549_v59, 0 }
 0x23e   :  { %5538 = vmatmul.mubr.f32.gmra.mrb[50].mxu1 %v4682_v61  ;;  %v4412_v58 = vpop.permute.xlu1 %4411  ;;  %v3209_v61 = vrot.slane %v11970_v26, 7 }
 0x23f   :  { %6899 = vmatprep.mubr.msk.f32.mxu1 %vm4619_vm5, %v4042_v42  ;;  %v9968_v57 = vsel %vm4619_vm5, %v11968_v36, %v4412_v58  ;;  %v11973_v42 = vld [vmem:[#allocation62_spill] sm:$0xff]  ;;  %v11976_v58 = vld [vmem:[#allocation81_spill] sm:$0xff] }
 0x240   :  { %v4414_v2 = vpop.permute.xlu0 %4413  ;;  %11969 = vst [vmem:[#allocation49_spill] sm:$0xff] %v9968_v57  ;;  %v3465_v0 = vsel %vm3337_vm6, %v11975_v55, %v3209_v61  ;;  %v3724_v46 = vrot.slane %v11976_v58, 1 }
 0x241   :  { %v9973_v8 = vsel %vm4619_vm5, %v11971_v19, %v4414_v2  ;;  %v11977_v2 = vld [vmem:[#allocation127_spill] sm:$0xff]  ;;  %v3466_v59 = vsel %vm3081_vm12, 0.0, %v3465_v0 }
 0x242   :  { %5543 = vmatmul.mubr.f32.gmra.mrb[52].mxu1 %v4683_v16  ;;  %11972 = vst [vmem:[#allocation48_spill] sm:$0xff] %v9973_v8  ;;  %v4416_v60 = vpop.permute.xlu1 %4415  ;;  %v4684_v16 = vsel %vm4619_vm5, %v3530_v17, %v9644_v63  ;;  %v1513_v63 = vadd.s32 768, %v8292_v41 }
 0x243   :  { %6900 = vmatprep.mubr.msk.f32.mxu1 %vm4619_vm5, %v11973_v42  ;;  %v9987_v19 = vsel %vm4619_vm5, %v11977_v2, %v4416_v60  ;;  %v11982_v60 = vrot.slane %v11980_v24, 1  ;;  %v3725_v2 = vrot.slane %v8796_v5, 1  ;;  %v3211_v24 = vrot.slane %v11976_v58, 7  ;;  %v11986_v58 = vld [vmem:[#allocation90_spill] sm:$0xff] }
 0x244   :  { %v7366_v36 = vpop.permute.xlu0 %7365  ;;  %11978 = vst [vmem:[#allocation88_spill] sm:$0xff] %v9987_v19  ;;  %v3726_v19 = vrot.slane %v11986_v58, 1 }
 0x245   :  { %v7368_v42 = vunpack.i.h.bf16 %v7366_v36  ;;  %v7367_v26 = vunpack.i.l.bf16 %v7366_v36  ;;  %v3976_v36 = vsel %vm3850_vm4, %v11982_v60, %v3724_v46  ;;  %v2221_v60 = vand.u32 127, %v1513_v63 }
 0x246   :  { %5548 = vmatmul.mubr.f32.gmra.mrb[54].mxu1 %v4684_v16  ;;  %v11983_v16 = vld [vmem:[#allocation64_spill] sm:$0xff] }
 0x247   :  { %6901 = vmatprep.mubr.msk.f32.mxu1 %vm4619_vm5, %v11979_v7  ;;  %v4620_v55 = vsel %vm4619_vm5, %v3466_v59, %v7367_v26  ;;  %v9995_v8 = vsel %vm4619_vm5, %v9065_v33, %v7368_v42  ;;  %v4685_v0 = vsel %vm4619_vm5, %v11983_v16, %v9660_v35  ;;  %v7371_v7 = vpop.permute.xlu1 %7370  ;;  %v11984_v59 = vld [vmem:[#allocation66_spill] sm:$0xff]  ;;  %vm10037_vm13 = vcmp.eq.s32.totalorder %v2221_v60, 0 }
 0x248   :  { %11981 = vst [vmem:[#allocation89_spill] sm:$0xff] %v9995_v8  ;;  %v7376_v17 = vpop.permute.xlu0 %7375  ;;  %5228 = vmatmul.mubr.f32.vlgmr.msra.gmra.mrb[128].mxu0 %v4620_v55  ;;  %v7373_v33 = vunpack.i.h.bf16 %v7371_v7  ;;  %v7372_v42 = vunpack.i.l.bf16 %v7371_v7  ;;  %v3464_v55 = vsel %vm3337_vm6, %v3209_v61, %v3210_v25 }
 0x249   :  { %v7378_v26 = vunpack.i.h.bf16 %v7376_v17  ;;  %6837 = vmatprep.mubr.msk.f32.mxu0 %vm4619_vm5, %v3976_v36  ;;  %v7377_v16 = vunpack.i.l.bf16 %v7376_v17  ;;  %v11987_v17 = vld [vmem:[#allocation69_spill] sm:$0xff] }
 0x24a   :  { %5553 = vmatmul.mubr.f32.gmra.mrb[56].mxu1 %v4685_v0  ;;  %v4621_v36 = vsel %vm4619_vm5, %v3464_v55, %v7372_v42  ;;  %v11985_v0 = vld [vmem:[#allocation67_spill] sm:$0xff]  ;;  %v11990_v55 = vld [vmem:[#allocation68_spill] sm:$0xff] }
 0x24b   :  { %6902 = vmatprep.mubr.msk.f32.mxu1 %vm4619_vm5, %v11984_v59  ;;  %v10014_v35 = vsel %vm4619_vm5, %v9094_v50, %v7378_v26  ;;  %v4686_v7 = vsel %vm4619_vm5, %v11985_v0, %v9688_v21  ;;  %v10022_v59 = vsel %vm4619_vm5, %v9090_v37, %v7373_v33  ;;  %v7381_v57 = vpop.permute.xlu1 %7380  ;;  %v3975_v50 = vsel %vm3850_vm4, %v3724_v46, %v3725_v2 }
 0x24c   :  { %v7386_v8 = vpop.permute.xlu0 %7385  ;;  %5233 = vmatmul.mubr.f32.gmra.mrb[130].mxu0 %v4621_v36  ;;  %v7383_v63 = vunpack.i.h.bf16 %v7381_v57  ;;  %v3212_v21 = vrot.slane %v8796_v5, 7  ;;  %v3463_v37 = vsel %vm3337_vm6, %v3210_v25, %v3211_v24  ;;  %v7382_v46 = vunpack.i.l.bf16 %v7381_v57 }
 0x24d   :  { %v7388_v61 = vunpack.i.h.bf16 %v7386_v8  ;;  %6838 = vmatprep.mubr.msk.f32.mxu0 %vm4619_vm5, %v3975_v50  ;;  %v4622_v42 = vsel %vm4619_vm5, %v3463_v37, %v7377_v16  ;;  %v4687_v36 = vsel %vm4619_vm5, %v11990_v55, %v9708_v22  ;;  %v3727_v25 = vrot.slane %v8824_v28, 1  ;;  %v11991_v16 = vld [vmem:[#allocation70_spill] sm:$0xff] }
 0x24e   :  { %5558 = vmatmul.mubr.f32.gmra.mrb[58].mxu1 %v4686_v7  ;;  %v10047_v5 = vsel %vm4619_vm5, %v9122_v29, %v7383_v63  ;;  %v3213_v29 = vrot.slane %v11986_v58, 7  ;;  %v3462_v7 = vsel %vm3337_vm6, %v3211_v24, %v3212_v21  ;;  %v7387_v50 = vunpack.i.l.bf16 %v7386_v8  ;;  %v11992_v63 = vld [vmem:[#allocation71_spill] sm:$0xff] }
 0x24f   :  { %6903 = vmatprep.mubr.msk.f32.mxu1 %vm4619_vm5, %v11987_v17  ;;  %v10035_v26 = vsel %vm4619_vm5, %v9126_v44, %v7388_v61  ;;  %v3974_v44 = vsel %vm3850_vm4, %v3725_v2, %v3726_v19  ;;  %v7391_v60 = vpop.permute.xlu1 %7390  ;;  %v3562_v61 = vsel %vm10037_vm13, 0.0, %v9139_v12  ;;  %v4623_v2 = vsel %vm4619_vm5, %v3462_v7, %v7382_v46 }
 0x250   :  { %v10050_v0 = vpop.permute.xlu0 %7395  ;;  %5238 = vmatmul.mubr.f32.gmra.mrb[132].mxu0 %v4622_v42  ;;  %v7393_v22 = vunpack.i.h.bf16 %v7391_v60  ;;  %v4688_v17 = vsel %vm4619_vm5, %v11992_v63, %v9733_v10  ;;  %v3728_v58 = vrot.slane %v8854_v48, 1  ;;  %v3973_v12 = vsel %vm3850_vm4, %v3726_v19, %v3727_v25  ;;  %v11993_v10 = vld [vmem:[#allocation73_spill] sm:$0xff]  ;;  %v11996_v63 = vld [vmem:[#allocation75_spill] sm:$0xff] }
 0x251   :  { %v7398_v57 = vunpack.i.h.bf16 %v10050_v0  ;;  %6839 = vmatprep.mubr.msk.f32.mxu0 %vm4619_vm5, %v3974_v44  ;;  %v3461_v55 = vsel %vm3337_vm6, %v3212_v21, %v3213_v29  ;;  %v11994_v44 = vld [vmem:[#allocation72_spill] sm:$0xff] }
 0x252   :  { %5563 = vmatmul.mubr.f32.gmra.mrb[60].mxu1 %v4687_v36  ;;  %v10078_v8 = vsel %vm4619_vm5, %v3562_v61, %v7393_v22  ;;  %v7392_v36 = vunpack.i.l.bf16 %v7391_v60  ;;  %v4624_v19 = vsel %vm4619_vm5, %v3461_v55, %v7387_v50  ;;  %v3729_v22 = vrot.slane %v8852_v52, 1 }
 0x253   :  { %6904 = vmatprep.mubr.msk.f32.mxu1 %vm4619_vm5, %v11991_v16  ;;  %v10070_v37 = vsel %vm4619_vm5, %v9171_v40, %v7398_v57  ;;  %v7401_v33 = vpop.permute.xlu1 %7400  ;;  %v3214_v40 = vrot.slane %v8824_v28, 7  ;;  %v4689_v57 = vsel %vm4619_vm5, %v11994_v44, %v9749_v23  ;;  %v3972_v28 = vsel %vm3850_vm4, %v3727_v25, %v3728_v58 }
 0x254   :  { %v10073_v42 = vpop.permute.xlu0 %7405  ;;  %5243 = vmatmul.mubr.f32.gmra.mrb[134].mxu0 %v4623_v2  ;;  %v7403_v46 = vunpack.i.h.bf16 %v7401_v33  ;;  %v3215_v61 = vrot.slane %v8854_v48, 7  ;;  %v7397_v2 = vunpack.i.l.bf16 %v10050_v0  ;;  %v11999_v0 = vld [vmem:[#allocation142_spill] sm:$0xff]  ;;  %v3216_v44 = vrot.slane %v8852_v52, 7 }
 0x255   :  { %v7408_v24 = vunpack.i.h.bf16 %v10073_v42  ;;  %6840 = vmatprep.mubr.msk.f32.mxu0 %vm4619_vm5, %v3973_v12  ;;  %v3460_v25 = vsel %vm3337_vm6, %v3213_v29, %v3214_v40  ;;  %v11997_v12 = vld [vmem:[#allocation144_spill] sm:$0xff]  ;;  %v3971_v29 = vsel %vm3850_vm4, %v3728_v58, %v3729_v22 }
 0x256   :  { %5568 = vmatmul.mubr.f32.gmra.mrb[62].mxu1 %v4688_v17  ;;  %v10102_v21 = vsel %vm4619_vm5, %v9202_v45, %v7403_v46  ;;  %v4625_v45 = vsel %vm4619_vm5, %v3460_v25, %v7392_v36  ;;  %v4690_v17 = vsel %vm4619_vm5, %v11996_v63, %v9778_v47  ;;  %v3459_v58 = vsel %vm3337_vm6, %v3214_v40, %v3215_v61  ;;  %v12003_v25 = vld [vmem:[#allocation95_spill] sm:$0xff] }
 0x257   :  { %6905 = vmatprep.mubr.msk.f32.mxu1 %vm4619_vm5, %v11993_v10  ;;  %v10093_v16 = vsel %vm4619_vm5, %v9210_v3, %v7408_v24  ;;  %v10105_v23 = vpop.permute.xlu1 %7410  ;;  %v11995_v3 = vld [vmem:[#allocation74_spill] sm:$0xff]  ;;  %v11998_v10 = vld [vmem:[#allocation99_spill] sm:$0xff] }
 0x258   :  { %v10096_v7 = vpop.permute.xlu0 %7415  ;;  %5248 = vmatmul.mubr.f32.gmra.mrb[136].mxu0 %v4624_v19  ;;  %v7413_v50 = vunpack.i.h.bf16 %v10105_v23  ;;  %v3730_v46 = vrot.slane %v11998_v10, 1  ;;  %v12000_v19 = vld [vmem:[#allocation77_spill] sm:$0xff] }
 0x259   :  { %v7418_v60 = vunpack.i.h.bf16 %v10096_v7  ;;  %6841 = vmatprep.mubr.msk.f32.mxu0 %vm4619_vm5, %v3972_v28  ;;  %v7402_v28 = vunpack.i.l.bf16 %v7401_v33 }
 0x25a   :  { %5573 = vmatmul.mubr.f32.gmra.mrb[64].mxu1 %v4689_v57  ;;  %v10130_v55 = vsel %vm4619_vm5, %v11999_v0, %v7413_v50  ;;  %v3970_v52 = vsel %vm3850_vm4, %v3729_v22, %v3730_v46  ;;  %v3458_v22 = vsel %vm3337_vm6, %v3215_v61, %v3216_v44  ;;  %v7407_v0 = vunpack.i.l.bf16 %v10073_v42 }
 0x25b   :  { %6906 = vmatprep.mubr.msk.f32.mxu1 %vm4619_vm5, %v11995_v3  ;;  %v10121_v24 = vsel %vm4619_vm5, %v11997_v12, %v7418_v60  ;;  %v10133_v47 = vpop.permute.xlu1 %7420  ;;  %v4626_v60 = vsel %vm4619_vm5, %v3459_v58, %v7397_v2  ;;  %v12001_v3 = vld [vmem:[#allocation148_spill] sm:$0xff]  ;;  %v12006_v12 = vld [vmem:[#allocation78_spill] sm:$0xff]  ;;  %v12009_v58 = vld [vmem:[#allocation101_spill] sm:$0xff] }
 0x25c   :  { %v10124_v48 = vpop.permute.xlu0 %7425  ;;  %5253 = vmatmul.mubr.f32.gmra.mrb[138].mxu0 %v4625_v45  ;;  %v7423_v57 = vunpack.i.h.bf16 %v10133_v47  ;;  %v3731_v45 = vrot.slane %v12003_v25, 1 }
 0x25d   :  { %v7428_v36 = vunpack.i.h.bf16 %v10124_v48  ;;  %6842 = vmatprep.mubr.msk.f32.mxu0 %vm4619_vm5, %v3971_v29  ;;  %v3217_v29 = vrot.slane %v11998_v10, 7 }
 0x25e   :  { %5578 = vmatmul.mubr.f32.gmra.mrb[66].mxu1 %v4690_v17  ;;  %v12004_v17 = vld [vmem:[#allocation146_spill] sm:$0xff]  ;;  %v3969_v10 = vsel %vm3850_vm4, %v3730_v46, %v3731_v45 }
 0x25f   :  { %6907 = vmatprep.mubr.msk.f32.mxu1 %vm4619_vm5, %v12000_v19  ;;  %v10145_v50 = vsel %vm4619_vm5, %v12001_v3, %v7428_v36  ;;  %v10155_v40 = vsel %vm4619_vm5, %v12004_v17, %v7423_v57  ;;  %v10158_v2 = vpop.permute.xlu1 %7430  ;;  %v4627_v36 = vsel %vm4619_vm5, %v3458_v22, %v7402_v28  ;;  %v12007_v19 = vld [vmem:[#allocation154_spill] sm:$0xff]  ;;  %v3457_v46 = vsel %vm3337_vm6, %v3216_v44, %v3217_v29 }
 0x260   :  { %12002 = vst [vmem:[#allocation50_spill] sm:$0xff] %v10145_v50  ;;  %v10148_v63 = vpop.permute.xlu0 %7435  ;;  %5258 = vmatmul.mubr.f32.gmra.mrb[140].mxu0 %v4626_v60  ;;  %12005 = vst [vmem:[#allocation51_spill] sm:$0xff] %v10155_v40  ;;  %v3732_v60 = vrot.slane %v12009_v58, 1  ;;  %v12012_v17 = vld [vmem:[#allocation82_spill] sm:$0xff]  ;;  %v4628_v22 = vsel %vm4619_vm5, %v3457_v46, %v7407_v0  ;;  %v3219_v46 = vrot.slane %v12009_v58, 7 }
 0x261   :  { %v7438_v33 = vunpack.i.h.bf16 %v10148_v63  ;;  %6843 = vmatprep.mubr.msk.f32.mxu0 %vm4619_vm5, %v3970_v52  ;;  %v12010_v52 = vld [vmem:[#allocation152_spill] sm:$0xff]  ;;  %v12051_v40 = vld [vmem:[#allocation18_spill] sm:$0xff] }
 0x262   :  { %5583 = vmatmul.mubr.f32.gmra.mrb[68].mxu1 %v9798_v11  ;;  %v7433_v11 = vunpack.i.h.bf16 %v10158_v2  ;;  %v3968_v44 = vsel %vm3850_vm4, %v3731_v45, %v3732_v60 }
 0x263   :  { %6908 = vmatprep.mubr.msk.f32.mxu1 %vm4619_vm5, %v12006_v12  ;;  %v10171_v57 = vsel %vm4619_vm5, %v12007_v19, %v7438_v33  ;;  %v10184_v28 = vpop.permute.xlu1 %7440  ;;  %v3218_v33 = vrot.slane %v12003_v25, 7  ;;  %v1529_v12 = vadd.s32 896, %v8292_v41  ;;  %v12016_v25 = vld [vmem:[#allocation25_spill] sm:$0xff] }
 0x264   :  { %12008 = vst [vmem:[#allocation93_spill] sm:$0xff] %v10171_v57  ;;  %v10174_v3 = vpop.permute.xlu0 %7445  ;;  %5263 = vmatmul.mubr.f32.gmra.mrb[142].mxu0 %v4627_v36  ;;  %v10181_v61 = vsel %vm4619_vm5, %v12010_v52, %v7433_v11  ;;  %v7412_v11 = vunpack.i.l.bf16 %v10105_v23  ;;  %v12013_v36 = vld [vmem:[#allocation155_spill] sm:$0xff] }
 0x265   :  { %12011 = vst [vmem:[#allocation94_spill] sm:$0xff] %v10181_v61  ;;  %v7448_v42 = vunpack.i.h.bf16 %v10174_v3  ;;  %6844 = vmatprep.mubr.msk.f32.mxu0 %vm4619_vm5, %v3969_v10  ;;  %v12015_v10 = vld [vmem:[#allocation100_spill] sm:$0xff]  ;;  %v3456_v45 = vsel %vm3337_vm6, %v3217_v29, %v3218_v33 }
 0x266   :  { %5588 = vmatmul.mubr.f32.gmra.mrb[70].mxu1 %v9816_v43  ;;  %v7443_v43 = vunpack.i.h.bf16 %v10184_v28  ;;  %v3733_v52 = vrot.slane %v12015_v10, 1  ;;  %v12022_v29 = vld [vmem:[#allocation156_spill] sm:$0xff] }
 0x267   :  { %6909 = vmatprep.mubr.msk.f32.mxu1 %vm4619_vm5, %v12012_v17  ;;  %v10198_v19 = vsel %vm4619_vm5, %v12013_v36, %v7448_v42  ;;  %v10211_v0 = vpop.permute.xlu1 %7450  ;;  %v12018_v42 = vld [vmem:[#allocation83_spill] sm:$0xff]  ;;  %v4629_v36 = vsel %vm4619_vm5, %v3456_v45, %v7412_v11 }
 0x268   :  { %12014 = vst [vmem:[#allocation53_spill] sm:$0xff] %v10198_v19  ;;  %v10201_v17 = vpop.permute.xlu0 %7455  ;;  %5268 = vmatmul.mubr.f32.gmra.mrb[144].mxu0 %v4628_v22  ;;  %v10208_v57 = vsel %vm4619_vm5, %v12016_v25, %v7443_v43  ;;  %v2333_v22 = vand.u32 127, %v1529_v12  ;;  %v7417_v43 = vunpack.i.l.bf16 %v10096_v7  ;;  %v12019_v25 = vld [vmem:[#allocation157_spill] sm:$0xff]  ;;  %v3967_v58 = vsel %vm3850_vm4, %v3732_v60, %v3733_v52 }
 0x269   :  { %12017 = vst [vmem:[#allocation98_spill] sm:$0xff] %v10208_v57  ;;  %v7458_v23 = vunpack.i.h.bf16 %v10201_v17  ;;  %6845 = vmatprep.mubr.msk.f32.mxu0 %vm4619_vm5, %v3968_v44  ;;  %v12021_v44 = vld [vmem:[#allocation111_spill] sm:$0xff]  ;;  %v3455_v60 = vsel %vm3337_vm6, %v3218_v33, %v3219_v46 }
 0x26a   :  { %5593 = vmatmul.mubr.f32.gmra.mrb[72].mxu1 %v9821_v30  ;;  %v7453_v30 = vunpack.i.h.bf16 %v10211_v0  ;;  %v3734_v57 = vrot.slane %v12021_v44, 1  ;;  %vm10246_vm14 = vcmp.eq.s32.totalorder %v2333_v22, 0  ;;  %v12030_v22 = vld [vmem:[#allocation26_spill] sm:$0xff] }
 0x26b   :  { %6910 = vmatprep.mubr.msk.f32.mxu1 %vm4619_vm5, %v12018_v42  ;;  %v10224_v19 = vsel %vm4619_vm5, %v12019_v25, %v7458_v23  ;;  %v12024_v23 = vld [vmem:[#allocation86_spill] sm:$0xff]  ;;  %v3220_v42 = vrot.slane %v12015_v10, 7 }
 0x26c   :  { %12020 = vst [vmem:[#allocation52_spill] sm:$0xff] %v10224_v19  ;;  %v10227_v61 = vpop.permute.xlu0 %7465  ;;  %5273 = vmatmul.mubr.f32.gmra.mrb[146].mxu0 %v4629_v36  ;;  %v10234_v12 = vsel %vm4619_vm5, %v12022_v29, %v7453_v30  ;;  %v10237_v11 = vpop.permute.xlu1 %7460  ;;  %v7422_v30 = vunpack.i.l.bf16 %v10133_v47  ;;  %v4630_v36 = vsel %vm4619_vm5, %v3455_v60, %v7417_v43  ;;  %v12027_v25 = vld [vmem:[#allocation158_spill] sm:$0xff]  ;;  %v3966_v33 = vsel %vm3850_vm4, %v3733_v52, %v3734_v57 }
 0x26d   :  { %12023 = vst [vmem:[#allocation54_spill] sm:$0xff] %v10234_v12  ;;  %v7468_v7 = vunpack.i.h.bf16 %v10227_v61  ;;  %6846 = vmatprep.mubr.msk.f32.mxu0 %vm4619_vm5, %v3967_v58  ;;  %v12029_v29 = vld [vmem:[#allocation106_spill] sm:$0xff]  ;;  %v1496_v60 = vadd.s32 632, %v8292_v41  ;;  %v3221_v52 = vrot.slane %v12021_v44, 7 }
 0x26e   :  { %5598 = vmatmul.mubr.f32.gmra.mrb[74].mxu1 %v9839_v27  ;;  %v7463_v27 = vunpack.i.h.bf16 %v10237_v11 }
 0x26f   :  { %6911 = vmatprep.mubr.msk.f32.mxu1 %vm4619_vm5, %v12024_v23  ;;  %v10254_v58 = vsel %vm4619_vm5, %v12027_v25, %v7468_v7  ;;  %v3735_v23 = vrot.slane %v12029_v29, 1  ;;  %v12032_v7 = vld [vmem:[#allocation87_spill] sm:$0xff]  ;;  %v3454_v25 = vsel %vm3337_vm6, %v3219_v46, %v3220_v42 }
 0x270   :  { %12028 = vst [vmem:[#allocation55_spill] sm:$0xff] %v10254_v58  ;;  %v10257_v10 = vpop.permute.xlu0 %7475  ;;  %5278 = vmatmul.mubr.f32.gmra.mrb[148].mxu0 %v4630_v36  ;;  %v10264_v19 = vsel %vm4619_vm5, %v12030_v22, %v7463_v27  ;;  %v10267_v43 = vpop.permute.xlu1 %7470  ;;  %v12033_v36 = vld [vmem:[#allocation29_spill] sm:$0xff]  ;;  %v7427_v22 = vunpack.i.l.bf16 %v10124_v48  ;;  %v12034_v58 = vld [vmem:[#allocation14_spill] sm:$0xff] }
 0x271   :  { %12031 = vst [vmem:[#allocation104_spill] sm:$0xff] %v10264_v19  ;;  %v7478_v47 = vunpack.i.h.bf16 %v10257_v10  ;;  %6847 = vmatprep.mubr.msk.f32.mxu0 %vm4619_vm5, %v3966_v33  ;;  %v7473_v27 = vunpack.i.h.bf16 %v10267_v43  ;;  %v4631_v33 = vsel %vm4619_vm5, %v3454_v25, %v7422_v30  ;;  %v12036_v19 = vld [vmem:[#allocation118_spill] sm:$0xff]  ;;  %v3965_v44 = vsel %vm3850_vm4, %v3734_v57, %v3735_v23  ;;  %v12038_v30 = vld [vmem:[#allocation91_spill] sm:$0xff]  ;;  %v12039_v25 = vld [vmem:[#allocation17_spill] sm:$0xff] }
 0x272   :  { %5603 = vmatmul.mubr.f32.gmra.mrb[76].mxu1 %v9845_v62  ;;  %v3578_v62 = vsel %vm10246_vm14, 0.0, %v12033_v36  ;;  %v3736_v12 = vrot.slane %v12036_v19, 1  ;;  %v3453_v57 = vsel %vm3337_vm6, %v3220_v42, %v3221_v52 }
 0x273   :  { %6912 = vmatprep.mubr.msk.f32.mxu1 %vm4619_vm5, %v12032_v7  ;;  %v10284_v7 = vsel %vm4619_vm5, %v12034_v58, %v7478_v47  ;;  %v10293_v46 = vsel %vm4619_vm5, %v3578_v62, %v7473_v27  ;;  %v2102_v58 = vand.u32 127, %v1496_v60  ;;  %v1432_v47 = vadd.s32 120, %v8292_v41 }
 0x274   :  { %12035 = vst [vmem:[#allocation105_spill] sm:$0xff] %v10284_v7  ;;  %v10287_v50 = vpop.permute.xlu0 %7485  ;;  %5283 = vmatmul.mubr.f32.gmra.mrb[150].mxu0 %v4631_v33  ;;  %12037 = vst [vmem:[#allocation57_spill] sm:$0xff] %v10293_v46  ;;  %v10296_v45 = vpop.permute.xlu1 %7480  ;;  %v7432_v62 = vunpack.i.l.bf16 %v10158_v2  ;;  %v4632_v27 = vsel %vm4619_vm5, %v3453_v57, %v7427_v22  ;;  %v12042_v7 = vld [vmem:[#allocation31_spill] sm:$0xff]  ;;  %v12044_v2 = vld [vmem:[#allocation124_spill] sm:$0xff] }
 0x275   :  { %v7488_v48 = vunpack.i.h.bf16 %v10287_v50  ;;  %6848 = vmatprep.mubr.msk.f32.mxu0 %vm4619_vm5, %v3965_v44  ;;  %v7483_v36 = vunpack.i.h.bf16 %v10296_v45  ;;  %v12041_v44 = vld [vmem:[#allocation112_spill] sm:$0xff]  ;;  %v3738_v22 = vrot.slane %v12044_v2, 1  ;;  %vm10329_vm15 = vcmp.eq.s32.totalorder %v2102_v58, 127  ;;  %v12048_v46 = vld [vmem:[#allocation22_spill] sm:$0xff] }
 0x276   :  { %5608 = vmatmul.mubr.f32.gmra.mrb[78].mxu1 %v9863_v51  ;;  %v3222_v51 = vrot.slane %v12029_v29, 7  ;;  %v3964_v29 = vsel %vm3850_vm4, %v3735_v23, %v3736_v12  ;;  %v1654_v23 = vand.u32 127, %v1432_v47  ;;  %v12050_v47 = vld [vmem:[#allocation96_spill] sm:$0xff] }
 0x277   :  { %6913 = vmatprep.mubr.msk.f32.mxu1 %vm4619_vm5, %v12038_v30  ;;  %v10310_v33 = vsel %vm4619_vm5, %v12039_v25, %v7488_v48  ;;  %v3737_v30 = vrot.slane %v12041_v44, 1  ;;  %v10320_v42 = vsel %vm4619_vm5, %v12042_v7, %v7483_v36  ;;  %v12045_v25 = vld [vmem:[#allocation92_spill] sm:$0xff] }
 0x278   :  { %12040 = vst [vmem:[#allocation56_spill] sm:$0xff] %v10310_v33  ;;  %v10313_v60 = vpop.permute.xlu0 %7495  ;;  %5288 = vmatmul.mubr.f32.gmra.mrb[152].mxu0 %v4632_v27  ;;  %12043 = vst [vmem:[#allocation109_spill] sm:$0xff] %v10320_v42  ;;  %v3223_v27 = vrot.slane %v12036_v19, 7  ;;  %v3452_v36 = vsel %vm3337_vm6, %v3221_v52, %v3222_v51  ;;  %v1433_v33 = vadd.s32 128, %v8292_v41  ;;  %v7437_v42 = vunpack.i.l.bf16 %v10148_v63 }
 0x279   :  { %v7498_v57 = vunpack.i.h.bf16 %v10313_v60  ;;  %v10324_v48 = vpop.permute.xlu1 %7490  ;;  %6849 = vmatprep.mubr.msk.f32.mxu0 %vm4619_vm5, %v3964_v29  ;;  %v4633_v29 = vsel %vm4619_vm5, %v3452_v36, %v7432_v62  ;;  %v3963_v19 = vsel %vm3850_vm4, %v3736_v12, %v3737_v30  ;;  %v4058_v52 = vsel %vm10329_vm15, 0.0, %v12050_v47 }
 0x27a   :  { %5613 = vmatmul.mubr.f32.gmra.mrb[80].mxu1 %v9868_v13  ;;  %v7493_v7 = vunpack.i.h.bf16 %v10324_v48  ;;  %vm10361_vm0 = vcmp.eq.s32.totalorder %v1654_v23, 127  ;;  %v3962_v12 = vsel %vm3850_vm4, %v3737_v30, %v3738_v22  ;;  %v3451_v13 = vsel %vm3337_vm6, %v3222_v51, %v3223_v27 }
 0x27b   :  { %6914 = vmatprep.mubr.msk.f32.mxu1 %vm4619_vm5, %v12045_v25  ;;  %v10342_v58 = vsel %vm4619_vm5, %v12048_v46, %v7498_v57  ;;  %v3224_v57 = vrot.slane %v12041_v44, 7  ;;  %v3225_v36 = vrot.slane %v12044_v2, 7  ;;  %v4634_v23 = vsel %vm4619_vm5, %v3451_v13, %v7437_v42  ;;  %v12057_v2 = vld [vmem:[#allocation97_spill] sm:$0xff] }
 0x27c   :  { %12049 = vst [vmem:[#allocation110_spill] sm:$0xff] %v10342_v58  ;;  %v10344_v25 = vpop.permute.xlu0 %7505  ;;  %5293 = vmatmul.mubr.f32.gmra.mrb[154].mxu0 %v4633_v29  ;;  %v10354_v63 = vsel %vm4619_vm5, %v12051_v40, %v7493_v7  ;;  %v1661_v7 = vand.u32 127, %v1433_v33  ;;  %v7442_v29 = vunpack.i.l.bf16 %v10184_v28  ;;  %v3994_v51 = vsel %vm10361_vm0, 0.0, %v3962_v12  ;;  %v12056_v33 = vld [vmem:[#allocation37_spill] sm:$0xff] }
 0x27d   :  { %v7508_v62 = vunpack.i.h.bf16 %v10344_v25  ;;  %v10357_v46 = vpop.permute.xlu1 %7500  ;;  %6850 = vmatprep.mubr.msk.f32.mxu0 %vm4619_vm5, %v3963_v19  ;;  %v12054_v19 = vld [vmem:[#allocation161_spill] sm:$0xff]  ;;  %v7447_v12 = vunpack.i.l.bf16 %v10174_v3  ;;  %v3449_v13 = vsel %vm3337_vm6, %v3224_v57, %v3225_v36  ;;  %v12061_v3 = vld [vmem:[#allocation162_spill] sm:$0xff] }
 0x27e   :  { %5618 = vmatmul.mubr.f32.gmra.mrb[82].mxu1 %v9885_v4  ;;  %v7503_v40 = vunpack.i.h.bf16 %v10357_v46  ;;  %vm10397_vm1 = vcmp.eq.s32.totalorder %v1661_v7, 0 }
 0x27f   :  { %6915 = vmatprep.mubr.msk.f32.mxu1 %vm4619_vm5, %v4058_v52  ;;  %v10376_v47 = vsel %vm4619_vm5, %v12054_v19, %v7508_v62  ;;  %v12055_v52 = vld [vmem:[#allocation119_spill] sm:$0xff] }
 0x280   :  { %v3739_v30 = vrot.slane %v12055_v52, 1  ;;  %v10379_v58 = vpop.permute.xlu0 %7515  ;;  %5298 = vmatmul.mubr.f32.gmra.mrb[156].mxu0 %v4634_v23  ;;  %v10386_v44 = vsel %vm4619_vm5, %v12056_v33, %v7503_v40  ;;  %v12060_v19 = vld [vmem:[#allocation135_spill] sm:$0xff] }
 0x281   :  { %v7518_v28 = vunpack.i.h.bf16 %v10379_v58  ;;  %v10389_v42 = vpop.permute.xlu1 %7510  ;;  %6851 = vmatprep.mubr.msk.f32.mxu0 %vm4619_vm5, %v3994_v51  ;;  %v3740_v51 = vrot.slane %v12060_v19, 1 }
 0x282   :  { %5623 = vmatmul.mubr.f32.gmra.mrb[84].mxu1 %v9889_v56  ;;  %v7513_v62 = vunpack.i.h.bf16 %v10389_v42  ;;  %v3450_v56 = vsel %vm3337_vm6, %v3223_v27, %v3224_v57  ;;  %v3961_v27 = vsel %vm3850_vm4, %v3738_v22, %v3739_v30  ;;  %v3482_v22 = vsel %vm10397_vm1, 0.0, %v3449_v13 }
 0x283   :  { %6916 = vmatprep.mubr.msk.f32.mxu1 %vm4619_vm5, %v12057_v2  ;;  %v4635_v40 = vsel %vm4619_vm5, %v3450_v56, %v7442_v29  ;;  %v10407_v23 = vsel %vm4619_vm5, %v9728_v34, %v7518_v28  ;;  %v12062_v34 = vld [vmem:[#allocation102_spill] sm:$0xff]  ;;  %v3226_v28 = vrot.slane %v12055_v52, 7  ;;  %v7452_v2 = vunpack.i.l.bf16 %v10211_v0 }
 0x284   :  { %v10410_v33 = vpop.permute.xlu0 %7525  ;;  %5303 = vmatmul.mubr.f32.gmra.mrb[158].mxu0 %v4635_v40  ;;  %v10417_v7 = vsel %vm4619_vm5, %v12061_v3, %v7513_v62  ;;  %v4636_v62 = vsel %vm4619_vm5, %v3482_v22, %v7447_v12  ;;  %v12063_v40 = vld [vmem:[#allocation130_spill] sm:$0xff]  ;;  %v3960_v52 = vsel %vm3850_vm4, %v3739_v30, %v3740_v51  ;;  %v3227_v13 = vrot.slane %v12060_v19, 7 }
 0x285   :  { %v7528_v57 = vunpack.i.h.bf16 %v10410_v33  ;;  %v10420_v29 = vpop.permute.xlu1 %7520  ;;  %6852 = vmatprep.mubr.msk.f32.mxu0 %vm4619_vm5, %v3961_v27  ;;  %v3741_v27 = vrot.slane %v12063_v40, 1  ;;  %v3448_v30 = vsel %vm3337_vm6, %v3225_v36, %v3226_v28 }
 0x286   :  { %5628 = vmatmul.mubr.f32.gmra.mrb[86].mxu1 %v9907_v38  ;;  %v7523_v38 = vunpack.i.h.bf16 %v10420_v29 }
 0x287   :  { %6917 = vmatprep.mubr.msk.f32.mxu1 %vm4619_vm5, %v12062_v34  ;;  %v10433_v56 = vsel %vm4619_vm5, %v9741_v15, %v7528_v57  ;;  %v12064_v15 = vld [vmem:[#allocation103_spill] sm:$0xff]  ;;  %v7457_v57 = vunpack.i.l.bf16 %v10201_v17  ;;  %v3959_v19 = vsel %vm3850_vm4, %v3740_v51, %v3741_v27  ;;  %v3447_v51 = vsel %vm3337_vm6, %v3226_v28, %v3227_v13 }
 0x288   :  { %v10436_v3 = vpop.permute.xlu0 %7535  ;;  %5308 = vmatmul.mubr.f32.gmra.mrb[160].mxu0 %v4636_v62  ;;  %v10443_v4 = vsel %vm4619_vm5, %v9737_v14, %v7523_v38  ;;  %v4637_v14 = vsel %vm4619_vm5, %v3448_v30, %v7452_v2  ;;  %v12065_v38 = vld [vmem:[#allocation138_spill] sm:$0xff] }
 0x289   :  { %v7538_v0 = vunpack.i.h.bf16 %v10436_v3  ;;  %v10446_v12 = vpop.permute.xlu1 %7530  ;;  %6853 = vmatprep.mubr.msk.f32.mxu0 %vm4619_vm5, %v3960_v52  ;;  %v3742_v22 = vrot.slane %v12065_v38, 1  ;;  %v3228_v52 = vrot.slane %v12063_v40, 7 }
 0x28a   :  { %5633 = vmatmul.mubr.f32.gmra.mrb[88].mxu1 %v9911_v54  ;;  %v7533_v54 = vunpack.i.h.bf16 %v10446_v12 }
 0x28b   :  { %6918 = vmatprep.mubr.msk.f32.mxu1 %vm4619_vm5, %v12064_v15  ;;  %v10459_v34 = vsel %vm4619_vm5, %v9775_v9, %v7538_v0  ;;  %v12066_v9 = vld [vmem:[#allocation107_spill] sm:$0xff]  ;;  %v7462_v0 = vunpack.i.l.bf16 %v10237_v11  ;;  %v3958_v40 = vsel %vm3850_vm4, %v3741_v27, %v3742_v22  ;;  %v12068_v11 = vld [vmem:[#allocation108_spill] sm:$0xff]  ;;  %v3446_v28 = vsel %vm3337_vm6, %v3227_v13, %v3228_v52 }
 0x28c   :  { %v10462_v62 = vpop.permute.xlu0 %7545  ;;  %5313 = vmatmul.mubr.f32.gmra.mrb[162].mxu0 %v4637_v14  ;;  %v10469_v36 = vsel %vm4619_vm5, %v9745_v49, %v7533_v54  ;;  %v4638_v49 = vsel %vm4619_vm5, %v3447_v51, %v7457_v57  ;;  %v12067_v54 = vld [vmem:[#allocation136_spill] sm:$0xff]  ;;  %v7467_v57 = vunpack.i.l.bf16 %v10227_v61  ;;  %v7472_v13 = vunpack.i.l.bf16 %v10267_v43 }
 0x28d   :  { %v7548_v17 = vunpack.i.h.bf16 %v10462_v62  ;;  %6854 = vmatprep.mubr.msk.f32.mxu0 %vm4619_vm5, %v3959_v19  ;;  %v3743_v30 = vrot.slane %v12067_v54, 1  ;;  %v12069_v19 = vld [vmem:[#allocation150_spill] sm:$0xff] }
 0x28e   :  { %5638 = vmatmul.mubr.f32.gmra.mrb[90].mxu1 %v9927_v20  ;;  %v10472_v2 = vpop.permute.xlu1 %7540  ;;  %v3744_v27 = vrot.slane %v12069_v19, 1 }
 0x28f   :  { %6919 = vmatprep.mubr.msk.f32.mxu1 %vm4619_vm5, %v12066_v9  ;;  %v7543_v20 = vunpack.i.h.bf16 %v10472_v2  ;;  %v10485_v15 = vsel %vm4619_vm5, %v9788_v1, %v7548_v17  ;;  %v3229_v1 = vrot.slane %v12065_v38, 7  ;;  %v12070_v17 = vld [vmem:[#allocation113_spill] sm:$0xff]  ;;  %v3230_v38 = vrot.slane %v12067_v54, 7  ;;  %v12073_v54 = vld [vmem:[#allocation27_spill] sm:$0xff] }
 0x290   :  { %5318 = vmatmul.mubr.f32.gmra.mrb[164].mxu0 %v4638_v49 }
 0x291   :  { %v10493_v14 = vsel %vm4619_vm5, %v9782_v39, %v7543_v20  ;;  %6855 = vmatprep.mubr.msk.f32.mxu0 %vm4619_vm5, %v3958_v40  ;;  %v3957_v39 = vsel %vm3850_vm4, %v3742_v22, %v3743_v30  ;;  %v3445_v61 = vsel %vm3337_vm6, %v3228_v52, %v3229_v1  ;;  %v12071_v20 = vld [vmem:[#allocation149_spill] sm:$0xff]  ;;  %v12072_v22 = vld [vmem:[#allocation114_spill] sm:$0xff]  ;;  %v3444_v43 = vsel %vm3337_vm6, %v3229_v1, %v3230_v38 }
 0x292   :  { %5643 = vmatmul.mubr.f32.gmra.mrb[92].mxu1 %v9931_v6  ;;  %v4639_v6 = vsel %vm4619_vm5, %v3446_v28, %v7462_v0  ;;  %v4640_v9 = vsel %vm4619_vm5, %v3445_v61, %v7467_v57  ;;  %v3745_v51 = vrot.slane %v12071_v20, 1  ;;  %v3231_v0 = vrot.slane %v12069_v19, 7  ;;  %v12075_v57 = vld [vmem:[#allocation24_spill] sm:$0xff]  ;;  %v12076_v19 = vld [vmem:[#allocation121_spill] sm:$0xff] }
 0x293   :  { %6920 = vmatprep.mubr.msk.f32.mxu1 %vm4619_vm5, %v12068_v11  ;;  %v7477_v52 = vunpack.i.l.bf16 %v10257_v10  ;;  %v4641_v49 = vsel %vm4619_vm5, %v3444_v43, %v7472_v13  ;;  %v3746_v40 = vrot.slane %v12073_v54, 1  ;;  %v3232_v11 = vrot.slane %v12071_v20, 7  ;;  %v12081_v43 = vld [vmem:[#allocation48_spill] sm:$0xff] }
 0x294   :  { %5323 = vmatmul.mubr.f32.gmra.mrb[166].mxu0 %v4639_v6  ;;  %v3443_v10 = vsel %vm3337_vm6, %v3230_v38, %v3231_v0  ;;  %v7482_v1 = vunpack.i.l.bf16 %v10296_v45  ;;  %v3747_v6 = vrot.slane %v12075_v57, 1  ;;  %v12077_v38 = vld [vmem:[#allocation28_spill] sm:$0xff]  ;;  %v3234_v20 = vrot.slane %v12075_v57, 7 }
 0x295   :  { %6856 = vmatprep.mubr.msk.f32.mxu0 %vm4619_vm5, %v3957_v39  ;;  %v4642_v28 = vsel %vm4619_vm5, %v3443_v10, %v7477_v52  ;;  %v3442_v45 = vsel %vm3337_vm6, %v3231_v0, %v3232_v11  ;;  %v7487_v39 = vunpack.i.l.bf16 %v10287_v50  ;;  %v3748_v61 = vrot.slane %v12077_v38, 1 }
 0x296   :  { %5648 = vmatmul.mubr.f32.gmra.mrb[94].mxu1 %v9941_v32  ;;  %v3956_v32 = vsel %vm3850_vm4, %v3743_v30, %v3744_v27  ;;  %v12074_v30 = vld [vmem:[#allocation120_spill] sm:$0xff]  ;;  %v3953_v13 = vsel %vm3850_vm4, %v3746_v40, %v3747_v6 }
 0x297   :  { %6921 = vmatprep.mubr.msk.f32.mxu1 %vm4619_vm5, %v12070_v17  ;;  %v4643_v17 = vsel %vm4619_vm5, %v3442_v45, %v7482_v1  ;;  %v3952_v52 = vsel %vm3850_vm4, %v3747_v6, %v3748_v61  ;;  %v12083_v1 = vld [vmem:[#allocation15_spill] sm:$0xff]  ;;  %v12084_v6 = vld [vmem:[#allocation88_spill] sm:$0xff]  ;;  %v12086_v45 = vld [vmem:[#allocation33_spill] sm:$0xff] }
 0x298   :  { %5328 = vmatmul.mubr.f32.gmra.mrb[168].mxu0 %v4640_v9  ;;  %v12079_v9 = vld [vmem:[#allocation125_spill] sm:$0xff] }
 0x299   :  { %6857 = vmatprep.mubr.msk.f32.mxu0 %vm4619_vm5, %v3956_v32 }
 0x29a   :  { %5653 = vmatmul.mubr.f32.gmra.mrb[96].mxu1 %v9945_v31  ;;  %v3955_v31 = vsel %vm3850_vm4, %v3744_v27, %v3745_v51  ;;  %v3233_v27 = vrot.slane %v12073_v54, 7  ;;  %v10570_v54 = vld [vmem:[#allocation7] ss:$0 sm:$0xff] }
 0x29b   :  { %6922 = vmatprep.mubr.msk.f32.mxu1 %vm4619_vm5, %v12072_v22  ;;  %v12080_v22 = vld [vmem:[#allocation159_spill] sm:$0xff] }
 0x29c   :  { %5333 = vmatmul.mubr.f32.gmra.mrb[170].mxu0 %v4641_v49  ;;  %v3441_v50 = vsel %vm3337_vm6, %v3232_v11, %v3233_v27  ;;  %v3749_v0 = vrot.slane %v12080_v22, 1  ;;  %v12082_v49 = vld [vmem:[#allocation126_spill] sm:$0xff] }
 0x29d   :  { %6858 = vmatprep.mubr.msk.f32.mxu0 %vm4619_vm5, %v3955_v31  ;;  %v4644_v32 = vsel %vm4619_vm5, %v3441_v50, %v7487_v39  ;;  %v3440_v31 = vsel %vm3337_vm6, %v3233_v27, %v3234_v20  ;;  %v3751_v39 = vrot.slane %v12086_v45, 1  ;;  %v12087_v50 = vld [vmem:[#allocation89_spill] sm:$0xff] }
 0x29e   :  { %5658 = vmatmul.mubr.f32.gmra.mrb[98].mxu1 %v9954_v53  ;;  %v3954_v53 = vsel %vm3850_vm4, %v3745_v51, %v3746_v40  ;;  %v7492_v51 = vunpack.i.l.bf16 %v10324_v48  ;;  %v3235_v40 = vrot.slane %v12077_v38, 7 }
 0x29f   :  { %6923 = vmatprep.mubr.msk.f32.mxu1 %vm4619_vm5, %v12074_v30  ;;  %v7497_v30 = vunpack.i.l.bf16 %v10313_v60  ;;  %v3236_v60 = vrot.slane %v12080_v22, 7 }
 0x2a0   :  { %5338 = vmatmul.mubr.f32.gmra.mrb[172].mxu0 %v4642_v28  ;;  %v4645_v10 = vsel %vm4619_vm5, %v3440_v31, %v7492_v51  ;;  %v3750_v28 = vrot.slane %v12083_v1, 1  ;;  %v3439_v27 = vsel %vm3337_vm6, %v3234_v20, %v3235_v40  ;;  %v12088_v20 = vld [vmem:[#allocation129_spill] sm:$0xff]  ;;  %v12089_v31 = vld [vmem:[#allocation32_spill] sm:$0xff] }
 0x2a1   :  { %6859 = vmatprep.mubr.msk.f32.mxu0 %vm4619_vm5, %v3954_v53  ;;  %v3951_v53 = vsel %vm3850_vm4, %v3748_v61, %v3749_v0 }
 0x2a2   :  { %5663 = vmatmul.mubr.f32.gmra.mrb[100].mxu1 %v9959_v18  ;;  %v12078_v18 = vld [vmem:[#allocation49_spill] sm:$0xff]  ;;  %v3950_v51 = vsel %vm3850_vm4, %v3749_v0, %v3750_v28  ;;  %v3949_v0 = vsel %vm3850_vm4, %v3750_v28, %v3751_v39  ;;  %v3238_v28 = vrot.slane %v12086_v45, 7 }
 0x2a3   :  { %6924 = vmatprep.mubr.msk.f32.mxu1 %vm4619_vm5, %v12076_v19  ;;  %v12085_v19 = vld [vmem:[#allocation128_spill] sm:$0xff] }
 0x2a4   :  { %5343 = vmatmul.mubr.f32.gmra.mrb[174].mxu0 %v4643_v17  ;;  %v7502_v17 = vunpack.i.l.bf16 %v10357_v46  ;;  %v1512_v46 = vadd.s32 760, %v8292_v41 }
 0x2a5   :  { %6860 = vmatprep.mubr.msk.f32.mxu0 %vm4619_vm5, %v3953_v13 }
 0x2a6   :  { %5668 = vmatmul.mubr.f32.gmra.mrb[102].mxu1 %v12078_v18  ;;  %v4646_v18 = vsel %vm4619_vm5, %v3439_v27, %v7497_v30  ;;  %v3752_v30 = vrot.slane %v12089_v31, 1 }
 0x2a7   :  { %6925 = vmatprep.mubr.msk.f32.mxu1 %vm4619_vm5, %v12079_v9 }
 0x2a8   :  { %5348 = vmatmul.mubr.f32.gmra.mrb[176].mxu0 %v4644_v32  ;;  %v5414_v48 = vpop.f32.mrb[0].mxu1  ;;  %v3237_v32 = vrot.slane %v12083_v1, 7 }
 0x2a9   :  { %6861 = vmatprep.mubr.msk.f32.mxu0 %vm4619_vm5, %v3952_v52  ;;  %v5416_v11 = vpop.f32.mrb[1].mxu1  ;;  %v5415_v57 = vadd.f32 %v10570_v54, %v5414_v48  ;;  %v7507_v52 = vunpack.i.l.bf16 %v10344_v25  ;;  %v12090_v25 = vld [vmem:[#allocation131_spill] sm:$0xff] }
 0x2aa   :  { %5673 = vmatmul.mubr.f32.gmra.mrb[104].mxu1 %v12081_v43  ;;  %v3438_v43 = vsel %vm3337_vm6, %v3235_v40, %v3236_v60  ;;  %v2214_v40 = vand.u32 127, %v1512_v46  ;;  %v3437_v27 = vsel %vm3337_vm6, %v3236_v60, %v3237_v32  ;;  %v12092_v46 = vld [vmem:[#allocation35_spill] sm:$0xff] }
 0x2ab   :  { %6926 = vmatprep.mubr.msk.f32.mxu1 %vm4619_vm5, %v12082_v49  ;;  %v5905_v13 = vmax.f32 %v5415_v57, 0.0  ;;  %v4647_v48 = vsel %vm4619_vm5, %v3438_v43, %v7502_v17  ;;  %v3754_v60 = vrot.slane %v12092_v46, 1 }
 0x2ac   :  { %5353 = vmatmul.mubr.f32.gmra.mrb[178].mxu0 %v4645_v10  ;;  %v5419_v38 = vpop.f32.mrb[2].mxu1  ;;  %vm10633_vm2 = vcmp.eq.s32.totalorder %v2214_v40, 127 }
 0x2ad   :  { %6862 = vmatprep.mubr.msk.f32.mxu0 %vm4619_vm5, %v3951_v53  ;;  %v5420_v61 = vadd.f32 %v10570_v54, %v5419_v38  ;;  %v5421_v9 = vpop.f32.mrb[3].mxu1  ;;  %v10607_v11 = vrot.slane %v5905_v13, 1 }
 0x2ae   :  { %5678 = vmatmul.mubr.f32.gmra.mrb[106].mxu1 %v12084_v6  ;;  %v1448_v6 = vadd.s32 248, %v8292_v41 }
 0x2af   :  { %6927 = vmatprep.mubr.msk.f32.mxu1 %vm4619_vm5, %v12085_v19  ;;  %v5906_v22 = vmax.f32 %v5420_v61, 0.0  ;;  %v12091_v61 = vld [vmem:[#allocation19_spill] sm:$0xff] }
 0x2b0   :  { %5358 = vmatmul.mubr.f32.gmra.mrb[180].mxu0 %v4646_v18  ;;  %v5424_v49 = vpop.f32.mrb[4].mxu1  ;;  %v4648_v18 = vsel %vm4619_vm5, %v3437_v27, %v7507_v52  ;;  %v3753_v9 = vrot.slane %v12091_v61, 1  ;;  %v1766_v43 = vand.u32 127, %v1448_v6  ;;  %v1449_v52 = vadd.s32 256, %v8292_v41 }
 0x2b1   :  { %6863 = vmatprep.mubr.msk.f32.mxu0 %vm4619_vm5, %v3950_v51  ;;  %v6034_v10 = vrot.slane %v5906_v22, 1  ;;  %v5425_v57 = vadd.f32 %v10570_v54, %v5424_v49  ;;  %v5426_v1 = vpop.f32.mrb[5].mxu1 }
 0x2b2   :  { %5683 = vmatmul.mubr.f32.gmra.mrb[108].mxu1 %v12087_v50  ;;  %vm10655_vm3 = vcmp.eq.s32.totalorder %v1766_v43, 127 }
 0x2b3   :  { %6928 = vmatprep.mubr.msk.f32.mxu1 %vm4619_vm5, %v12088_v20  ;;  %v6213_v53 = vsel %vm3850_vm4, %v10607_v11, %v6034_v10  ;;  %v5907_v19 = vmax.f32 %v5425_v57, 0.0  ;;  %v3948_v20 = vsel %vm3850_vm4, %v3751_v39, %v3752_v30 }
 0x2b4   :  { %5363 = vmatmul.mubr.f32.gmra.mrb[182].mxu0 %v4647_v48  ;;  %v6289_v17 = vmax.f32 %v5905_v13, %v6213_v53  ;;  %v5429_v38 = vpop.f32.mrb[6].mxu1  ;;  %v3436_v48 = vsel %vm3337_vm6, %v3237_v32, %v3238_v28 }
 0x2b5   :  { %6864 = vmatprep.mubr.msk.f32.mxu0 %vm4619_vm5, %v3949_v0  ;;  %v6035_v50 = vrot.slane %v5907_v19, 1  ;;  %v5430_v51 = vadd.f32 %v10570_v54, %v5429_v38  ;;  %v5431_v45 = vpop.f32.mrb[7].mxu1  ;;  %v7517_v0 = vunpack.i.l.bf16 %v10379_v58  ;;  %v3241_v38 = vrot.slane %v12092_v46, 7 }
 0x2b6   :  { %5688 = vmatmul.mubr.f32.gmra.mrb[110].mxu1 %v10022_v59  ;;  %v7512_v59 = vunpack.i.l.bf16 %v10389_v42  ;;  %6417 = vst.msk [vmem:[#allocation2 + $0x128] sm:$0xff] %vm4619_vm5, %v6289_v17  ;;  %v12093_v42 = vld [vmem:[#allocation132_spill] sm:$0xff]  ;;  %v7532_v46 = vunpack.i.l.bf16 %v10446_v12  ;;  %v12106_v12 = vld [vmem:[#allocation139_spill] sm:$0xff] }
 0x2b7   :  { %6929 = vmatprep.mubr.msk.f32.mxu1 %vm4619_vm5, %v12090_v25  ;;  %v6212_v39 = vsel %vm3850_vm4, %v6034_v10, %v6035_v50  ;;  %v5908_v49 = vmax.f32 %v5430_v51, 0.0  ;;  %v12096_v10 = vld [vmem:[#allocation133_spill] sm:$0xff] }
 0x2b8   :  { %5368 = vmatmul.mubr.f32.gmra.mrb[184].mxu0 %v4648_v18  ;;  %v6290_v57 = vmax.f32 %v5906_v22, %v6212_v39  ;;  %v4649_v25 = vsel %vm4619_vm5, %v3436_v48, %v7512_v59  ;;  %v4074_v32 = vsel %vm10633_vm2, 0.0, %v12096_v10  ;;  %v1773_v22 = vand.u32 127, %v1449_v52 }
 0x2b9   :  { %6865 = vmatprep.mubr.msk.f32.mxu0 %vm4619_vm5, %v3948_v20  ;;  %v5434_v1 = vpop.f32.mrb[8].mxu1  ;;  %v6036_v40 = vrot.slane %v5908_v49, 1  ;;  %v7522_v18 = vunpack.i.l.bf16 %v10420_v29  ;;  %v12100_v29 = vld [vmem:[#allocation134_spill] sm:$0xff] }
 0x2ba   :  { %5693 = vmatmul.mubr.f32.gmra.mrb[112].mxu1 %v10014_v35  ;;  %v3239_v35 = vrot.slane %v12089_v31, 7  ;;  %v5435_v6 = vadd.f32 %v10570_v54, %v5434_v1  ;;  %v5436_v53 = vpop.f32.mrb[9].mxu1  ;;  %v3947_v31 = vsel %vm3850_vm4, %v3752_v30, %v3753_v9  ;;  %6418 = vst.msk [vmem:[#allocation2 + $0x130] sm:$0xff] %vm4619_vm5, %v6290_v57  ;;  %v3240_v30 = vrot.slane %v12091_v61, 7 }
 0x2bb   :  { %6930 = vmatprep.mubr.msk.f32.mxu1 %vm4619_vm5, %v12093_v42  ;;  %v6211_v27 = vsel %vm3850_vm4, %v6035_v50, %v6036_v40  ;;  %v12099_v42 = vld [vmem:[#allocation160_spill] sm:$0xff]  ;;  %vm10684_vm7 = vcmp.eq.s32.totalorder %v1773_v22, 0  ;;  %v12105_v22 = vld [vmem:[#allocation163_spill] sm:$0xff] }
 0x2bc   :  { %5373 = vmatmul.mubr.f32.gmra.mrb[186].mxu0 %v4649_v25  ;;  %v5909_v59 = vmax.f32 %v5435_v6, 0.0  ;;  %v3435_v17 = vsel %vm3337_vm6, %v3238_v28, %v3239_v35  ;;  %v6291_v51 = vmax.f32 %v5907_v19, %v6211_v27  ;;  %v3434_v52 = vsel %vm3337_vm6, %v3239_v35, %v3240_v30  ;;  %v12103_v25 = vld [vmem:[#allocation21_spill] sm:$0xff] }
 0x2bd   :  { %6866 = vmatprep.mubr.msk.f32.mxu0 %vm4619_vm5, %v3947_v31  ;;  %v5439_v45 = vpop.f32.mrb[10].mxu1  ;;  %v4650_v20 = vsel %vm4619_vm5, %v3435_v17, %v7517_v0  ;;  %v4651_v57 = vsel %vm4619_vm5, %v3434_v52, %v7522_v18  ;;  %v3433_v1 = vsel %vm3337_vm6, %v3240_v30, %v3241_v38  ;;  %v3756_v6 = vrot.slane %v12103_v25, 1 }
 0x2be   :  { %5698 = vmatmul.mubr.f32.gmra.mrb[114].mxu1 %v10047_v5  ;;  %v3946_v5 = vsel %vm3850_vm4, %v3753_v9, %v3754_v60  ;;  %v3755_v9 = vrot.slane %v12099_v42, 1  ;;  %v6037_v13 = vrot.slane %v5909_v59, 1  ;;  %v5440_v61 = vadd.f32 %v10570_v54, %v5439_v45  ;;  %v5441_v43 = vpop.f32.mrb[11].mxu1  ;;  %6419 = vst.msk [vmem:[#allocation2 + $0x138] sm:$0xff] %vm4619_vm5, %v6291_v51 }
 0x2bf   :  { %6931 = vmatprep.mubr.msk.f32.mxu1 %vm4619_vm5, %v4074_v32  ;;  %v4010_v28 = vsel %vm10655_vm3, 0.0, %v3946_v5  ;;  %v3242_v31 = vrot.slane %v12099_v42, 7  ;;  %v3757_v30 = vrot.slane %v12105_v22, 1 }
 0x2c0   :  { %5378 = vmatmul.mubr.f32.gmra.mrb[188].mxu0 %v4650_v20  ;;  %v6210_v19 = vsel %vm3850_vm4, %v6036_v40, %v6037_v13  ;;  %v5910_v50 = vmax.f32 %v5440_v61, 0.0  ;;  %v3944_v45 = vsel %vm3850_vm4, %v3755_v9, %v3756_v6 }
 0x2c1   :  { %6867 = vmatprep.mubr.msk.f32.mxu0 %vm4619_vm5, %v4010_v28  ;;  %v6292_v48 = vmax.f32 %v5908_v49, %v6210_v19  ;;  %v5444_v0 = vpop.f32.mrb[12].mxu1  ;;  %v12104_v49 = vld [vmem:[#allocation137_spill] sm:$0xff]  ;;  %v3432_v42 = vsel %vm3337_vm6, %v3241_v38, %v3242_v31  ;;  %v12107_v28 = vld [vmem:[#allocation116_spill] sm:$0xff]  ;;  %v3244_v38 = vrot.slane %v12105_v22, 7  ;;  %v12110_v22 = vld [vmem:[#allocation23_spill] sm:$0xff] }
 0x2c2   :  { %5703 = vmatmul.mubr.f32.gmra.mrb[116].mxu1 %v10035_v26  ;;  %v7527_v26 = vunpack.i.l.bf16 %v10410_v33  ;;  %v6038_v40 = vrot.slane %v5910_v50, 1  ;;  %v5445_v53 = vadd.f32 %v10570_v54, %v5444_v0  ;;  %v5446_v35 = vpop.f32.mrb[13].mxu1  ;;  %v3945_v33 = vsel %vm3850_vm4, %v3754_v60, %v3755_v9 }
 0x2c3   :  { %6932 = vmatprep.mubr.msk.f32.mxu1 %vm4619_vm5, %v12100_v29  ;;  %6420 = vst.msk [vmem:[#allocation2 + $0x140] sm:$0xff] %vm4619_vm5, %v6292_v48  ;;  %v7537_v9 = vunpack.i.l.bf16 %v10436_v3  ;;  %v4653_v43 = vsel %vm4619_vm5, %v3432_v42, %v7532_v46  ;;  %v3758_v29 = vrot.slane %v12107_v28, 1  ;;  %v12108_v3 = vld [vmem:[#allocation140_spill] sm:$0xff] }
 0x2c4   :  { %5383 = vmatmul.mubr.f32.gmra.mrb[190].mxu0 %v4651_v57  ;;  %v6209_v10 = vsel %vm3850_vm4, %v6037_v13, %v6038_v40  ;;  %v5911_v32 = vmax.f32 %v5445_v53, 0.0 }
 0x2c5   :  { %6868 = vmatprep.mubr.msk.f32.mxu0 %vm4619_vm5, %v3945_v33  ;;  %v6293_v58 = vmax.f32 %v5909_v59, %v6209_v10  ;;  %v6546_v27 = vld [vmem:[#allocation2 + $0x130] ss:$2 sm:$0xff]  ;;  %v3243_v59 = vrot.slane %v12103_v25, 7  ;;  %v3942_v33 = vsel %vm3850_vm4, %v3757_v30, %v3758_v29  ;;  %v7547_v10 = vunpack.i.l.bf16 %v10462_v62 }
 0x2c6   :  { %5708 = vmatmul.mubr.f32.gmra.mrb[118].mxu1 %v10078_v8  ;;  %v3498_v8 = vsel %vm10684_vm7, 0.0, %v3433_v1  ;;  %v5449_v60 = vpop.f32.mrb[14].mxu1  ;;  %v6039_v17 = vrot.slane %v5911_v32, 1  ;;  %6654 = vst.msk [vmem:[%s11610_s5 + $0x98] sm:$0xff] %vm4619_vm5, %v6546_v27  ;;  %v12112_v62 = vld [vmem:[#allocation143_spill] sm:$0xff] }
 0x2c7   :  { %6933 = vmatprep.mubr.msk.f32.mxu1 %vm4619_vm5, %v12104_v49  ;;  %v4652_v5 = vsel %vm4619_vm5, %v3498_v8, %v7527_v26  ;;  %v5450_v18 = vadd.f32 %v10570_v54, %v5449_v60  ;;  %v5451_v51 = vpop.f32.mrb[15].mxu1  ;;  %6421 = vst.msk [vmem:[#allocation2 + $0x148] sm:$0xff] %vm4619_vm5, %v6293_v58  ;;  %v3943_v26 = vsel %vm3850_vm4, %v3756_v6, %v3757_v30  ;;  %v12111_v30 = vrot.slane %v12110_v22, 1 }
 0x2c8   :  { %5388 = vmatmul.mubr.f32.gmra.mrb[192].mxu0 %v4652_v5  ;;  %v3431_v0 = vsel %vm3337_vm6, %v3242_v31, %v3243_v59  ;;  %v12113_v51 = vrot.slane %v12107_v28, 7 }
 0x2c9   :  { %6869 = vmatprep.mubr.msk.f32.mxu0 %vm4619_vm5, %v3944_v45  ;;  %v5912_v20 = vmax.f32 %v5450_v18, 0.0  ;;  %v4654_v25 = vsel %vm4619_vm5, %v3431_v0, %v7537_v9  ;;  %v3941_v27 = vsel %vm3850_vm4, %v3758_v29, %v12111_v30 }
 0x2ca   :  { %5713 = vmatmul.mubr.f32.gmra.mrb[120].mxu1 %v10070_v37  ;;  %v6208_v37 = vsel %vm3850_vm4, %v6038_v40, %v6039_v17  ;;  %v5454_v61 = vpop.f32.mrb[16].mxu1 }
 0x2cb   :  { %6934 = vmatprep.mubr.msk.f32.mxu1 %vm4619_vm5, %v12106_v12  ;;  %v6294_v13 = vmax.f32 %v5910_v50, %v6208_v37  ;;  %v6040_v19 = vrot.slane %v5912_v20, 1  ;;  %v5455_v52 = vadd.f32 %v10570_v54, %v5454_v61  ;;  %v5456_v39 = vpop.f32.mrb[17].mxu1 }
 0x2cc   :  { %5393 = vmatmul.mubr.f32.gmra.mrb[194].mxu0 %v4653_v43  ;;  %v12115_v39 = vld [vmem:[#allocation51_spill] sm:$0xff] }
 0x2cd   :  { %6422 = vst.msk [vmem:[#allocation2 + $0x150] sm:$0xff] %vm4619_vm5, %v6294_v13  ;;  %6870 = vmatprep.mubr.msk.f32.mxu0 %vm4619_vm5, %v3943_v26  ;;  %v6207_v50 = vsel %vm3850_vm4, %v6039_v17, %v6040_v19  ;;  %v5913_v48 = vmax.f32 %v5455_v52, 0.0  ;;  %v12114_v13 = vld [vmem:[#allocation145_spill] sm:$0xff]  ;;  %v12116_v26 = vld [vmem:[#allocation147_spill] sm:$0xff] }
 0x2ce   :  { %5718 = vmatmul.mubr.f32.gmra.mrb[122].mxu1 %v10102_v21  ;;  %v7542_v21 = vunpack.i.l.bf16 %v10472_v2  ;;  %v6295_v57 = vmax.f32 %v5911_v32, %v6207_v50  ;;  %v6548_v6 = vld [vmem:[#allocation2 + $0x140] ss:$2 sm:$0xff] }
 0x2cf   :  { %6935 = vmatprep.mubr.msk.f32.mxu1 %vm4619_vm5, %v12108_v3  ;;  %v6041_v40 = vrot.slane %v5913_v48, 1  ;;  %6655 = vst.msk [vmem:[%s11610_s5 + $0xa0] sm:$0xff] %vm4619_vm5, %v6548_v6  ;;  %v12109_v2 = vld [vmem:[#allocation141_spill] sm:$0xff]  ;;  %v12118_v6 = vld [vmem:[#allocation151_spill] sm:$0xff] }
 0x2d0   :  { %v5459_v1 = vpop.f32.mrb[18].mxu1  ;;  %5398 = vmatmul.mubr.f32.gmra.mrb[196].mxu0 %v4654_v25  ;;  %6423 = vst.msk [vmem:[#allocation2 + $0x158] sm:$0xff] %vm4619_vm5, %v6295_v57  ;;  %v12117_v25 = vld [vmem:[#allocation50_spill] sm:$0xff] }
 0x2d1   :  { %v5460_v53 = vadd.f32 %v10570_v54, %v5459_v1  ;;  %v5461_v35 = vpop.f32.mrb[19].mxu1  ;;  %6871 = vmatprep.mubr.msk.f32.mxu0 %vm4619_vm5, %v3942_v33  ;;  %v6206_v49 = vsel %vm3850_vm4, %v6040_v19, %v6041_v40 }
 0x2d2   :  { %5723 = vmatmul.mubr.f32.gmra.mrb[124].mxu1 %v10093_v16  ;;  %v3430_v16 = vsel %vm3337_vm6, %v3243_v59, %v3244_v38  ;;  %v6296_v32 = vmax.f32 %v5912_v20, %v6206_v49 }
 0x2d3   :  { %6936 = vmatprep.mubr.msk.f32.mxu1 %vm4619_vm5, %v12109_v2  ;;  %v5914_v31 = vmax.f32 %v5460_v53, 0.0  ;;  %v4655_v46 = vsel %vm4619_vm5, %v3430_v16, %v7542_v21  ;;  %v12119_v16 = vld [vmem:[#allocation94_spill] sm:$0xff] }
 0x2d4   :  { %v5464_v8 = vpop.f32.mrb[20].mxu1  ;;  %5403 = vmatmul.mubr.f32.gmra.mrb[198].mxu0 %v4655_v46  ;;  %6424 = vst.msk [vmem:[#allocation2 + $0x160] sm:$0xff] %vm4619_vm5, %v6296_v32 }
 0x2d5   :  { %v6042_v58 = vrot.slane %v5914_v31, 1  ;;  %v5465_v60 = vadd.f32 %v10570_v54, %v5464_v8  ;;  %v5466_v5 = vpop.f32.mrb[21].mxu1  ;;  %6872 = vmatprep.mubr.msk.f32.mxu0 %vm4619_vm5, %v3941_v27  ;;  %v12121_v27 = vld [vmem:[#allocation93_spill] sm:$0xff] }
 0x2d6   :  { %5728 = vmatmul.mubr.f32.gmra.mrb[126].mxu1 %v10130_v55  ;;  %v3429_v55 = vsel %vm3337_vm6, %v3244_v38, %v12113_v51 }
 0x2d7   :  { %6937 = vmatprep.mubr.msk.f32.mxu1 %vm4619_vm5, %v12112_v62  ;;  %v6205_v17 = vsel %vm3850_vm4, %v6041_v40, %v6042_v58  ;;  %v5915_v18 = vmax.f32 %v5465_v60, 0.0  ;;  %v4656_v59 = vsel %vm4619_vm5, %v3429_v55, %v7547_v10  ;;  %v6550_v37 = vld [vmem:[#allocation2 + $0x150] ss:$2 sm:$0xff]  ;;  %v12122_v62 = vld [vmem:[#allocation12_spill] sm:$0xff] }
 0x2d8   :  { %v6297_v45 = vmax.f32 %v5913_v48, %v6205_v17  ;;  %v5469_v12 = vpop.f32.mrb[22].mxu1  ;;  %5408 = vmatmul.mubr.f32.gmra.mrb[200].mxu0 %v4656_v59  ;;  %6656 = vst.msk [vmem:[%s11610_s5 + $0xa8] sm:$0xff] %vm4619_vm5, %v6550_v37  ;;  %v12120_v10 = vld [vmem:[#allocation153_spill] sm:$0xff]  ;;  %v12123_v37 = vld [vmem:[#allocation98_spill] sm:$0xff] }
 0x2d9   :  { %v6043_v20 = vrot.slane %v5915_v18, 1  ;;  %v5470_v42 = vadd.f32 %v10570_v54, %v5469_v12  ;;  %v5471_v9 = vpop.f32.mrb[23].mxu1 }
 0x2da   :  { %5733 = vmatmul.mubr.f32.gmra.mrb[128].mxu1 %v10121_v24  ;;  %6425 = vst.msk [vmem:[#allocation2 + $0x168] sm:$0xff] %vm4619_vm5, %v6297_v45 }
 0x2db   :  { %6938 = vmatprep.mubr.msk.f32.mxu1 %vm4619_vm5, %v12114_v13  ;;  %v6204_v61 = vsel %vm3850_vm4, %v6042_v58, %v6043_v20  ;;  %v5916_v43 = vmax.f32 %v5470_v42, 0.0 }
 0x2dc   :  { %v6298_v28 = vmax.f32 %v5914_v31, %v6204_v61  ;;  %v5474_v29 = vpop.f32.mrb[24].mxu1 }
 0x2dd   :  { %v6044_v19 = vrot.slane %v5916_v43, 1  ;;  %v5475_v52 = vadd.f32 %v10570_v54, %v5474_v29  ;;  %v5476_v24 = vpop.f32.mrb[25].mxu1 }
 0x2de   :  { %5738 = vmatmul.mubr.f32.gmra.mrb[130].mxu1 %v12115_v39  ;;  %6426 = vst.msk [vmem:[#allocation2 + $0x170] sm:$0xff] %vm4619_vm5, %v6298_v28  ;;  %v12126_v24 = vld [vmem:[#allocation16_spill] sm:$0xff]  ;;  %v1528_v39 = vadd.s32 888, %v8292_v41 }
 0x2df   :  { %6939 = vmatprep.mubr.msk.f32.mxu1 %vm4619_vm5, %v12116_v26  ;;  %v6203_v3 = vsel %vm3850_vm4, %v6043_v20, %v6044_v19  ;;  %v5917_v38 = vmax.f32 %v5475_v52, 0.0  ;;  %v12124_v20 = vld [vmem:[#allocation13_spill] sm:$0xff] }
 0x2e0   :  { %v6299_v50 = vmax.f32 %v5915_v18, %v6203_v3  ;;  %v5479_v48 = vpop.f32.mrb[26].mxu1  ;;  %v12125_v52 = vld [vmem:[#allocation53_spill] sm:$0xff] }
 0x2e1   :  { %v6552_v0 = vld [vmem:[#allocation2 + $0x160] ss:$2 sm:$0xff]  ;;  %v6045_v21 = vrot.slane %v5917_v38, 1  ;;  %v5480_v57 = vadd.f32 %v10570_v54, %v5479_v48  ;;  %v5481_v1 = vpop.f32.mrb[27].mxu1 }
 0x2e2   :  { %5743 = vmatmul.mubr.f32.gmra.mrb[132].mxu1 %v12117_v25  ;;  %6657 = vst.msk [vmem:[%s11610_s5 + $0xb0] sm:$0xff] %vm4619_vm5, %v6552_v0  ;;  %6427 = vst.msk [vmem:[#allocation2 + $0x178] sm:$0xff] %vm4619_vm5, %v6299_v50  ;;  %v12128_v1 = vld [vmem:[#allocation30_spill] sm:$0xff]  ;;  %v2326_v25 = vand.u32 127, %v1528_v39 }
 0x2e3   :  { %6940 = vmatprep.mubr.msk.f32.mxu1 %vm4619_vm5, %v12118_v6  ;;  %v6202_v40 = vsel %vm3850_vm4, %v6044_v19, %v6045_v21  ;;  %v5918_v53 = vmax.f32 %v5480_v57, 0.0  ;;  %v12127_v57 = vld [vmem:[#allocation54_spill] sm:$0xff] }
 0x2e4   :  { %v6300_v35 = vmax.f32 %v5916_v43, %v6202_v40  ;;  %v5484_v33 = vpop.f32.mrb[28].mxu1  ;;  %vm3705_vm6 = vcmp.eq.s32.totalorder %v2326_v25, 127 }
 0x2e5   :  { %v6046_v2 = vrot.slane %v5918_v53, 1  ;;  %v5485_v49 = vadd.f32 %v10570_v54, %v5484_v33  ;;  %v5486_v31 = vpop.f32.mrb[29].mxu1 }
 0x2e6   :  { %5748 = vmatmul.mubr.f32.gmra.mrb[134].mxu1 %v12119_v16  ;;  %6428 = vst.msk [vmem:[#allocation2 + $0x180] sm:$0xff] %vm4619_vm5, %v6300_v35  ;;  %v12129_v16 = vld [vmem:[#allocation52_spill] sm:$0xff] }
 0x2e7   :  { %6941 = vmatprep.mubr.msk.f32.mxu1 %vm4619_vm5, %v12120_v10  ;;  %v6201_v32 = vsel %vm3850_vm4, %v6045_v21, %v6046_v2  ;;  %v5919_v8 = vmax.f32 %v5485_v49, 0.0  ;;  %v12130_v10 = vld [vmem:[#allocation20_spill] sm:$0xff] }
 0x2e8   :  { %v6301_v46 = vmax.f32 %v5917_v38, %v6201_v32 }
 0x2e9   :  { %v5489_v58 = vpop.f32.mrb[30].mxu1  ;;  %v6554_v60 = vld [vmem:[#allocation2 + $0x170] ss:$2 sm:$0xff]  ;;  %v6047_v5 = vrot.slane %v5919_v8, 1 }
 0x2ea   :  { %v5490_v22 = vadd.f32 %v10570_v54, %v5489_v58  ;;  %v5491_v30 = vpop.f32.mrb[31].mxu1  ;;  %5753 = vmatmul.mubr.f32.gmra.mrb[136].mxu1 %v12121_v27  ;;  %6658 = vst.msk [vmem:[%s11610_s5 + $0xb8] sm:$0xff] %vm4619_vm5, %v6554_v60  ;;  %6429 = vst.msk [vmem:[#allocation2 + $0x188] sm:$0xff] %vm4619_vm5, %v6301_v46  ;;  %v12132_v27 = vld [vmem:[#allocation34_spill] sm:$0xff] }
 0x2eb   :  { %6942 = vmatprep.mubr.msk.f32.mxu1 %vm4619_vm5, %v12122_v62  ;;  %v6200_v17 = vsel %vm3850_vm4, %v6046_v2, %v6047_v5  ;;  %v12131_v30 = vld [vmem:[#allocation104_spill] sm:$0xff]  ;;  %v4090_v62 = vsel %vm3705_vm6, 0.0, %v12132_v27 }
 0x2ec   :  { %v5920_v18 = vmax.f32 %v5490_v22, 0.0  ;;  %v6302_v51 = vmax.f32 %v5918_v53, %v6200_v17 }
 0x2ed   :  { %v5494_v55 = vpop.f32.mrb[32].mxu1 }
 0x2ee   :  { %v6048_v45 = vrot.slane %v5920_v18, 1  ;;  %v5495_v12 = vadd.f32 %v10570_v54, %v5494_v55  ;;  %v5496_v59 = vpop.f32.mrb[33].mxu1  ;;  %5758 = vmatmul.mubr.f32.gmra.mrb[138].mxu1 %v12123_v37  ;;  %6430 = vst.msk [vmem:[#allocation2 + $0x190] sm:$0xff] %vm4619_vm5, %v6302_v51 }
 0x2ef   :  { %6943 = vmatprep.mubr.msk.f32.mxu1 %vm4619_vm5, %v12124_v20  ;;  %v12133_v20 = vld [vmem:[#allocation55_spill] sm:$0xff] }
 0x2f0   :  { %v6199_v42 = vsel %vm3850_vm4, %v6047_v5, %v6048_v45  ;;  %v5921_v9 = vmax.f32 %v5495_v12, 0.0 }
 0x2f1   :  { %v6303_v13 = vmax.f32 %v5919_v8, %v6199_v42  ;;  %v5499_v61 = vpop.f32.mrb[34].mxu1  ;;  %v6556_v43 = vld [vmem:[#allocation2 + $0x180] ss:$2 sm:$0xff] }
 0x2f2   :  { %v6049_v28 = vrot.slane %v5921_v9, 1  ;;  %v5500_v29 = vadd.f32 %v10570_v54, %v5499_v61  ;;  %v5501_v19 = vpop.f32.mrb[35].mxu1  ;;  %5763 = vmatmul.mubr.f32.gmra.mrb[140].mxu1 %v12125_v52  ;;  %6659 = vst.msk [vmem:[%s11610_s5 + $0xc0] sm:$0xff] %vm4619_vm5, %v6556_v43  ;;  %v12134_v42 = vld [vmem:[#allocation36_spill] sm:$0xff]  ;;  %v12135_v52 = vld [vmem:[#allocation57_spill] sm:$0xff] }
 0x2f3   :  { %6431 = vst.msk [vmem:[#allocation2 + $0x198] sm:$0xff] %vm4619_vm5, %v6303_v13  ;;  %6944 = vmatprep.mubr.msk.f32.mxu1 %vm4619_vm5, %v12126_v24  ;;  %v12136_v24 = vld [vmem:[#allocation38_spill] sm:$0xff] }
 0x2f4   :  { %v6198_v26 = vsel %vm3850_vm4, %v6048_v45, %v6049_v28  ;;  %v5922_v3 = vmax.f32 %v5500_v29, 0.0 }
 0x2f5   :  { %v6304_v38 = vmax.f32 %v5920_v18, %v6198_v26  ;;  %v5504_v50 = vpop.f32.mrb[36].mxu1 }
 0x2f6   :  { %v6050_v48 = vrot.slane %v5922_v3, 1  ;;  %v5505_v0 = vadd.f32 %v10570_v54, %v5504_v50  ;;  %v5506_v21 = vpop.f32.mrb[37].mxu1  ;;  %5768 = vmatmul.mubr.f32.gmra.mrb[142].mxu1 %v12127_v57  ;;  %v12137_v57 = vld [vmem:[#allocation105_spill] sm:$0xff] }
 0x2f7   :  { %6432 = vst.msk [vmem:[#allocation2 + $0x1a0] sm:$0xff] %vm4619_vm5, %v6304_v38  ;;  %6945 = vmatprep.mubr.msk.f32.mxu1 %vm4619_vm5, %v12128_v1  ;;  %v12138_v1 = vld [vmem:[#allocation41_spill] sm:$0xff] }
 0x2f8   :  { %v6197_v6 = vsel %vm3850_vm4, %v6049_v28, %v6050_v48  ;;  %v5923_v40 = vmax.f32 %v5505_v0, 0.0 }
 0x2f9   :  { %v6305_v53 = vmax.f32 %v5921_v9, %v6197_v6  ;;  %v5509_v35 = vpop.f32.mrb[38].mxu1 }
 0x2fa   :  { %v6558_v33 = vld [vmem:[#allocation2 + $0x190] ss:$2 sm:$0xff]  ;;  %v6051_v2 = vrot.slane %v5923_v40, 1  ;;  %v5510_v49 = vadd.f32 %v10570_v54, %v5509_v35  ;;  %v5511_v31 = vpop.f32.mrb[39].mxu1  ;;  %5773 = vmatmul.mubr.f32.gmra.mrb[144].mxu1 %v12129_v16 }
 0x2fb   :  { %6660 = vst.msk [vmem:[%s11610_s5 + $0xc8] sm:$0xff] %vm4619_vm5, %v6558_v33  ;;  %6433 = vst.msk [vmem:[#allocation2 + $0x1a8] sm:$0xff] %vm4619_vm5, %v6305_v53  ;;  %6946 = vmatprep.mubr.msk.f32.mxu1 %vm4619_vm5, %v12130_v10  ;;  %v12140_v31 = vld [vmem:[#allocation40_spill] sm:$0xff] }
 0x2fc   :  { %v6196_v32 = vsel %vm3850_vm4, %v6050_v48, %v6051_v2  ;;  %v5924_v8 = vmax.f32 %v5510_v49, 0.0  ;;  %v12139_v49 = vld [vmem:[#allocation109_spill] sm:$0xff] }
 0x2fd   :  { %v6306_v46 = vmax.f32 %v5922_v3, %v6196_v32  ;;  %v5514_v58 = vpop.f32.mrb[40].mxu1 }
 0x2fe   :  { %v6052_v60 = vrot.slane %v5924_v8, 1  ;;  %v5515_v5 = vadd.f32 %v10570_v54, %v5514_v58  ;;  %v5516_v22 = vpop.f32.mrb[41].mxu1  ;;  %5778 = vmatmul.mubr.f32.gmra.mrb[146].mxu1 %v12131_v30  ;;  %v12142_v30 = vld [vmem:[#allocation42_spill] sm:$0xff] }
 0x2ff   :  { %6434 = vst.msk [vmem:[#allocation2 + $0x1b0] sm:$0xff] %vm4619_vm5, %v6306_v46  ;;  %6947 = vmatprep.mubr.msk.f32.mxu1 %vm4619_vm5, %v4090_v62  ;;  %v12141_v22 = vld [vmem:[#allocation56_spill] sm:$0xff] }
 0x300   :  { %v6195_v17 = vsel %vm3850_vm4, %v6051_v2, %v6052_v60  ;;  %v5925_v18 = vmax.f32 %v5515_v5, 0.0 }
 0x301   :  { %v6307_v51 = vmax.f32 %v5923_v40, %v6195_v17  ;;  %v5519_v55 = vpop.f32.mrb[42].mxu1 }
 0x302   :  { %v6560_v45 = vld [vmem:[#allocation2 + $0x1a0] ss:$2 sm:$0xff]  ;;  %v6053_v12 = vrot.slane %v5925_v18, 1  ;;  %v5520_v59 = vadd.f32 %v10570_v54, %v5519_v55  ;;  %v5521_v37 = vpop.f32.mrb[43].mxu1  ;;  %5783 = vmatmul.mubr.f32.gmra.mrb[148].mxu1 %v12133_v20 }
 0x303   :  { %6661 = vst.msk [vmem:[%s11610_s5 + $0xd0] sm:$0xff] %vm4619_vm5, %v6560_v45  ;;  %6435 = vst.msk [vmem:[#allocation2 + $0x1b8] sm:$0xff] %vm4619_vm5, %v6307_v51  ;;  %6948 = vmatprep.mubr.msk.f32.mxu1 %vm4619_vm5, %v12134_v42 }
 0x304   :  { %v6194_v9 = vsel %vm3850_vm4, %v6052_v60, %v6053_v12  ;;  %v5926_v13 = vmax.f32 %v5520_v59, 0.0 }
 0x305   :  { %v6308_v61 = vmax.f32 %v5924_v8, %v6194_v9  ;;  %v5524_v43 = vpop.f32.mrb[44].mxu1 }
 0x306   :  { %v6054_v28 = vrot.slane %v5926_v13, 1  ;;  %v5525_v29 = vadd.f32 %v10570_v54, %v5524_v43  ;;  %v5526_v19 = vpop.f32.mrb[45].mxu1  ;;  %5788 = vmatmul.mubr.f32.gmra.mrb[150].mxu1 %v12135_v52 }
 0x307   :  { %6436 = vst.msk [vmem:[#allocation2 + $0x1c0] sm:$0xff] %vm4619_vm5, %v6308_v61  ;;  %6949 = vmatprep.mubr.msk.f32.mxu1 %vm4619_vm5, %v12136_v24 }
 0x308   :  { %v6193_v39 = vsel %vm3850_vm4, %v6053_v12, %v6054_v28  ;;  %v5927_v26 = vmax.f32 %v5525_v29, 0.0  ;;  %v12143_v12 = vld [vmem:[#allocation43_spill] sm:$0xff] }
 0x309   :  { %v6309_v3 = vmax.f32 %v5925_v18, %v6193_v39  ;;  %v5529_v38 = vpop.f32.mrb[46].mxu1 }
 0x30a   :  { %v6562_v50 = vld [vmem:[#allocation2 + $0x1b0] ss:$2 sm:$0xff]  ;;  %v6055_v48 = vrot.slane %v5927_v26, 1  ;;  %v5530_v0 = vadd.f32 %v10570_v54, %v5529_v38  ;;  %v5531_v21 = vpop.f32.mrb[47].mxu1  ;;  %5793 = vmatmul.mubr.f32.gmra.mrb[152].mxu1 %v12137_v57 }
 0x30b   :  { %6662 = vst.msk [vmem:[%s11610_s5 + $0xd8] sm:$0xff] %vm4619_vm5, %v6562_v50  ;;  %6437 = vst.msk [vmem:[#allocation2 + $0x1c8] sm:$0xff] %vm4619_vm5, %v6309_v3  ;;  %6950 = vmatprep.mubr.msk.f32.mxu1 %vm4619_vm5, %v12138_v1 }
 0x30c   :  { %v6192_v25 = vsel %vm3850_vm4, %v6054_v28, %v6055_v48  ;;  %v5928_v6 = vmax.f32 %v5530_v0, 0.0  ;;  %v12144_v28 = vld [vmem:[#allocation110_spill] sm:$0xff]  ;;  %v12146_v0 = vld [vmem:[#allocation45_spill] sm:$0xff] }
 0x30d   :  { %v6310_v40 = vmax.f32 %v5926_v13, %v6192_v25  ;;  %v5534_v53 = vpop.f32.mrb[48].mxu1 }
 0x30e   :  { %v6056_v35 = vrot.slane %v5928_v6, 1  ;;  %v5535_v33 = vadd.f32 %v10570_v54, %v5534_v53  ;;  %v5536_v2 = vpop.f32.mrb[49].mxu1  ;;  %5798 = vmatmul.mubr.f32.gmra.mrb[154].mxu1 %v12139_v49 }
 0x30f   :  { %6438 = vst.msk [vmem:[#allocation2 + $0x1d0] sm:$0xff] %vm4619_vm5, %v6310_v40  ;;  %6951 = vmatprep.mubr.msk.f32.mxu1 %vm4619_vm5, %v12140_v31  ;;  %v12147_v31 = vld [vmem:[#allocation44_spill] sm:$0xff] }
 0x310   :  { %v6191_v16 = vsel %vm3850_vm4, %v6055_v48, %v6056_v35  ;;  %v5929_v10 = vmax.f32 %v5535_v33, 0.0 }
 0x311   :  { %v6311_v32 = vmax.f32 %v5927_v26, %v6191_v16  ;;  %v5539_v8 = vpop.f32.mrb[50].mxu1 }
 0x312   :  { %v6564_v46 = vld [vmem:[#allocation2 + $0x1c0] ss:$2 sm:$0xff]  ;;  %v6057_v58 = vrot.slane %v5929_v10, 1  ;;  %v5540_v60 = vadd.f32 %v10570_v54, %v5539_v8  ;;  %v5541_v5 = vpop.f32.mrb[51].mxu1  ;;  %5803 = vmatmul.mubr.f32.gmra.mrb[156].mxu1 %v12141_v22 }
 0x313   :  { %6663 = vst.msk [vmem:[%s11610_s5 + $0xe0] sm:$0xff] %vm4619_vm5, %v6564_v46  ;;  %6439 = vst.msk [vmem:[#allocation2 + $0x1d8] sm:$0xff] %vm4619_vm5, %v6311_v32  ;;  %6952 = vmatprep.mubr.msk.f32.mxu1 %vm4619_vm5, %v12142_v30 }
 0x314   :  { %v6190_v27 = vsel %vm3850_vm4, %v6056_v35, %v6057_v58  ;;  %v5930_v62 = vmax.f32 %v5540_v60, 0.0 }
 0x315   :  { %v6312_v17 = vmax.f32 %v5928_v6, %v6190_v27  ;;  %v5544_v18 = vpop.f32.mrb[52].mxu1 }
 0x316   :  { %v6058_v51 = vrot.slane %v5930_v62, 1  ;;  %v5545_v55 = vadd.f32 %v10570_v54, %v5544_v18  ;;  %v5546_v45 = vpop.f32.mrb[53].mxu1  ;;  %5808 = vmatmul.mubr.f32.gmra.mrb[158].mxu1 %v10354_v63  ;;  %v12145_v63 = vld [vmem:[#allocation76_spill] sm:$0xff] }
 0x317   :  { %6440 = vst.msk [vmem:[#allocation2 + $0x1e0] sm:$0xff] %vm4619_vm5, %v6312_v17  ;;  %6953 = vmatprep.mubr.msk.f32.mxu1 %vm4619_vm5, %v12143_v12  ;;  %v12148_v17 = vld [vmem:[#allocation79_spill] sm:$0xff] }
 0x318   :  { %v6189_v59 = vsel %vm3850_vm4, %v6057_v58, %v6058_v51  ;;  %v5931_v37 = vmax.f32 %v5545_v55, 0.0 }
 0x319   :  { %v6313_v20 = vmax.f32 %v5929_v10, %v6189_v59  ;;  %v5549_v42 = vpop.f32.mrb[54].mxu1 }
 0x31a   :  { %v6566_v9 = vld [vmem:[#allocation2 + $0x1d0] ss:$2 sm:$0xff]  ;;  %v6059_v13 = vrot.slane %v5931_v37, 1  ;;  %v5550_v61 = vadd.f32 %v10570_v54, %v5549_v42  ;;  %v5551_v43 = vpop.f32.mrb[55].mxu1  ;;  %5813 = vmatmul.mubr.f32.gmra.mrb[160].mxu1 %v12144_v28 }
 0x31b   :  { %6664 = vst.msk [vmem:[%s11610_s5 + $0xe8] sm:$0xff] %vm4619_vm5, %v6566_v9  ;;  %6441 = vst.msk [vmem:[#allocation2 + $0x1e8] sm:$0xff] %vm4619_vm5, %v6313_v20  ;;  %6954 = vmatprep.mubr.msk.f32.mxu1 %vm4619_vm5, %v12145_v63  ;;  %v5229_v52 = vpop.f32.mrb[128].mxu0  ;;  %v12149_v63 = vld [vmem:[#allocation80_spill] sm:$0xff] }
 0x31c   :  { %v6188_v29 = vsel %vm3850_vm4, %v6058_v51, %v6059_v13  ;;  %v5932_v19 = vmax.f32 %v5550_v61, 0.0  ;;  %v5230_v39 = vadd.f32 %v10570_v54, %v5229_v52  ;;  %v5231_v26 = vpop.f32.mrb[129].mxu0 }
 0x31d   :  { %v6314_v24 = vmax.f32 %v5930_v62, %v6188_v29  ;;  %v5554_v3 = vpop.f32.mrb[56].mxu1 }
 0x31e   :  { %v6060_v38 = vrot.slane %v5932_v19, 1  ;;  %v5555_v50 = vadd.f32 %v10570_v54, %v5554_v3  ;;  %v5556_v48 = vpop.f32.mrb[57].mxu1  ;;  %5818 = vmatmul.mubr.f32.gmra.mrb[162].mxu1 %v10386_v44  ;;  %v5868_v25 = vmax.f32 %v5230_v39, 0.0 }
 0x31f   :  { %6442 = vst.msk [vmem:[#allocation2 + $0x1f0] sm:$0xff] %vm4619_vm5, %v6314_v24  ;;  %6955 = vmatprep.mubr.msk.f32.mxu1 %vm4619_vm5, %v12146_v0  ;;  %v5234_v6 = vpop.f32.mrb[130].mxu0 }
 0x320   :  { %v6187_v21 = vsel %vm3850_vm4, %v6059_v13, %v6060_v38  ;;  %v5933_v57 = vmax.f32 %v5555_v50, 0.0  ;;  %v5235_v33 = vadd.f32 %v10570_v54, %v5234_v6  ;;  %v5236_v44 = vpop.f32.mrb[131].mxu0  ;;  %v10957_v8 = vrot.slane %v5868_v25, 1 }
 0x321   :  { %v6315_v1 = vmax.f32 %v5931_v37, %v6187_v21  ;;  %v5559_v40 = vpop.f32.mrb[58].mxu1 }
 0x322   :  { %v6568_v53 = vld [vmem:[#allocation2 + $0x1e0] ss:$2 sm:$0xff]  ;;  %v6061_v35 = vrot.slane %v5933_v57, 1  ;;  %v5560_v2 = vadd.f32 %v10570_v54, %v5559_v40  ;;  %v5561_v49 = vpop.f32.mrb[59].mxu1  ;;  %5823 = vmatmul.mubr.f32.gmra.mrb[164].mxu1 %v10376_v47  ;;  %v5869_v10 = vmax.f32 %v5235_v33, 0.0 }
 0x323   :  { %6665 = vst.msk [vmem:[%s11610_s5 + $0xf0] sm:$0xff] %vm4619_vm5, %v6568_v53  ;;  %6443 = vst.msk [vmem:[#allocation2 + $0x1f8] sm:$0xff] %vm4619_vm5, %v6315_v1  ;;  %6956 = vmatprep.mubr.msk.f32.mxu1 %vm4619_vm5, %v12147_v31  ;;  %v5239_v58 = vpop.f32.mrb[132].mxu0  ;;  %v12150_v1 = vld [vmem:[#allocation46_spill] sm:$0xff] }
 0x324   :  { %v6186_v16 = vsel %vm3850_vm4, %v6060_v38, %v6061_v35  ;;  %v5934_v32 = vmax.f32 %v5560_v2, 0.0  ;;  %v5997_v60 = vrot.slane %v5869_v10, 1  ;;  %v5240_v22 = vadd.f32 %v10570_v54, %v5239_v58  ;;  %v5241_v27 = vpop.f32.mrb[133].mxu0 }
 0x325   :  { %v6316_v46 = vmax.f32 %v5932_v19, %v6186_v16  ;;  %v5564_v47 = vpop.f32.mrb[60].mxu1 }
 0x326   :  { %v6062_v5 = vrot.slane %v5934_v32, 1  ;;  %v5565_v30 = vadd.f32 %v10570_v54, %v5564_v47  ;;  %v5566_v62 = vpop.f32.mrb[61].mxu1  ;;  %5828 = vmatmul.mubr.f32.gmra.mrb[166].mxu1 %v10417_v7  ;;  %v6250_v18 = vsel %vm3850_vm4, %v10957_v8, %v5997_v60  ;;  %v5870_v55 = vmax.f32 %v5240_v22, 0.0  ;;  %v12151_v47 = vld [vmem:[#allocation47_spill] sm:$0xff] }
 0x327   :  { %6444 = vst.msk [vmem:[#allocation2 + $0x200] sm:$0xff] %vm4619_vm5, %v6316_v46  ;;  %6957 = vmatprep.mubr.msk.f32.mxu1 %vm4619_vm5, %v12148_v17  ;;  %v6252_v12 = vmax.f32 %v5868_v25, %v6250_v18  ;;  %v5244_v37 = vpop.f32.mrb[134].mxu0 }
 0x328   :  { %v6185_v51 = vsel %vm3850_vm4, %v6061_v35, %v6062_v5  ;;  %v5935_v45 = vmax.f32 %v5565_v30, 0.0  ;;  %v5998_v7 = vrot.slane %v5870_v55, 1  ;;  %v5245_v13 = vadd.f32 %v10570_v54, %v5244_v37  ;;  %v5246_v43 = vpop.f32.mrb[135].mxu0 }
 0x329   :  { %v6317_v59 = vmax.f32 %v5933_v57, %v6185_v51  ;;  %v5569_v20 = vpop.f32.mrb[62].mxu1  ;;  %6380 = vst.msk [vmem:[#allocation2] sm:$0xff] %vm4619_vm5, %v6252_v12 }
 0x32a   :  { %v6570_v42 = vld [vmem:[#allocation2 + $0x1f0] ss:$2 sm:$0xff]  ;;  %v6063_v9 = vrot.slane %v5935_v45, 1  ;;  %v5570_v61 = vadd.f32 %v10570_v54, %v5569_v20  ;;  %v5571_v28 = vpop.f32.mrb[63].mxu1  ;;  %5833 = vmatmul.mubr.f32.gmra.mrb[168].mxu1 %v10407_v23  ;;  %v6249_v29 = vsel %vm3850_vm4, %v5997_v60, %v5998_v7  ;;  %v5871_v52 = vmax.f32 %v5245_v13, 0.0 }
 0x32b   :  { %6666 = vst.msk [vmem:[%s11610_s5 + $0xf8] sm:$0xff] %vm4619_vm5, %v6570_v42  ;;  %6445 = vst.msk [vmem:[#allocation2 + $0x208] sm:$0xff] %vm4619_vm5, %v6317_v59  ;;  %6958 = vmatprep.mubr.msk.f32.mxu1 %vm4619_vm5, %v12149_v63  ;;  %v6253_v24 = vmax.f32 %v5869_v10, %v6249_v29  ;;  %v5249_v26 = vpop.f32.mrb[136].mxu0  ;;  %v12152_v42 = vld [vmem:[#allocation84_spill] sm:$0xff] }
 0x32c   :  { %v6184_v19 = vsel %vm3850_vm4, %v6062_v5, %v6063_v9  ;;  %v5936_v23 = vmax.f32 %v5570_v61, 0.0  ;;  %v5999_v38 = vrot.slane %v5871_v52, 1  ;;  %v5250_v48 = vadd.f32 %v10570_v54, %v5249_v26  ;;  %v5251_v21 = vpop.f32.mrb[137].mxu0 }
 0x32d   :  { %v6318_v39 = vmax.f32 %v5934_v32, %v6184_v19  ;;  %v5574_v3 = vpop.f32.mrb[64].mxu1  ;;  %6381 = vst.msk [vmem:[#allocation2 + $0x8] sm:$0xff] %vm4619_vm5, %v6253_v24  ;;  %v12155_v19 = vld [vmem:[#allocation11_spill] sm:$0xff] }
 0x32e   :  { %v6064_v50 = vrot.slane %v5936_v23, 1  ;;  %v5575_v0 = vadd.f32 %v10570_v54, %v5574_v3  ;;  %v5576_v57 = vpop.f32.mrb[65].mxu1  ;;  %5838 = vmatmul.mubr.f32.gmra.mrb[170].mxu1 %v10443_v4  ;;  %v6248_v25 = vsel %vm3850_vm4, %v5998_v7, %v5999_v38  ;;  %v5872_v40 = vmax.f32 %v5250_v48, 0.0 }
 0x32f   :  { %6446 = vst.msk [vmem:[#allocation2 + $0x210] sm:$0xff] %vm4619_vm5, %v6318_v39  ;;  %6959 = vmatprep.mubr.msk.f32.mxu1 %vm4619_vm5, %v12150_v1  ;;  %v6254_v35 = vmax.f32 %v5870_v55, %v6248_v25  ;;  %v5254_v2 = vpop.f32.mrb[138].mxu0  ;;  %v1544_v4 = vadd.s32 1016, %v8292_v41  ;;  %v12159_v57 = vld [vmem:[#allocation85_spill] sm:$0xff] }
 0x330   :  { %v6183_v6 = vsel %vm3850_vm4, %v6063_v9, %v6064_v50  ;;  %v5937_v53 = vmax.f32 %v5575_v0, 0.0  ;;  %v6000_v31 = vrot.slane %v5872_v40, 1  ;;  %v5255_v10 = vadd.f32 %v10570_v54, %v5254_v2  ;;  %v5256_v46 = vpop.f32.mrb[139].mxu0 }
 0x331   :  { %v6319_v33 = vmax.f32 %v5935_v45, %v6183_v6  ;;  %v5579_v44 = vpop.f32.mrb[66].mxu1  ;;  %6382 = vst.msk [vmem:[#allocation2 + $0x10] sm:$0xff] %vm4619_vm5, %v6254_v35  ;;  %v2438_v17 = vand.u32 127, %v1544_v4  ;;  %v11012_v45 = vld [vmem:[#allocation7] ss:$0 sm:$0xff] }
 0x332   :  { %v6572_v49 = vld [vmem:[#allocation2 + $0x200] ss:$2 sm:$0xff]  ;;  %v6065_v16 = vrot.slane %v5937_v53, 1  ;;  %v5580_v32 = vadd.f32 %v10570_v54, %v5579_v44  ;;  %v5581_v58 = vpop.f32.mrb[67].mxu1  ;;  %5843 = vmatmul.mubr.f32.gmra.mrb[172].mxu1 %v10433_v56  ;;  %v6247_v60 = vsel %vm3850_vm4, %v5999_v38, %v6000_v31  ;;  %v5873_v5 = vmax.f32 %v5255_v10, 0.0 }
 0x333   :  { %6667 = vst.msk [vmem:[%s11610_s5 + $0x100] sm:$0xff] %vm4619_vm5, %v6572_v49  ;;  %6447 = vst.msk [vmem:[#allocation2 + $0x218] sm:$0xff] %vm4619_vm5, %v6319_v33  ;;  %6960 = vmatprep.mubr.msk.f32.mxu1 %vm4619_vm5, %v12151_v47  ;;  %v6255_v22 = vmax.f32 %v5871_v52, %v6247_v60  ;;  %v5259_v27 = vpop.f32.mrb[140].mxu0  ;;  %vm11029_vm8 = vcmp.eq.s32.totalorder %v2438_v17, 127  ;;  %v12156_v52 = vrot.slane %v12155_v19, 1 }
 0x334   :  { %v6182_v54 = vsel %vm3850_vm4, %v6064_v50, %v6065_v16  ;;  %v5938_v56 = vmax.f32 %v5580_v32, 0.0  ;;  %v6508_v18 = vld [vmem:[#allocation2] ss:$2 sm:$0xff]  ;;  %v6001_v51 = vrot.slane %v5873_v5, 1  ;;  %v5260_v12 = vadd.f32 %v11012_v45, %v5259_v27  ;;  %v5261_v37 = vpop.f32.mrb[141].mxu0 }
 0x335   :  { %v6320_v30 = vmax.f32 %v5936_v23, %v6182_v54  ;;  %v5584_v62 = vpop.f32.mrb[68].mxu1  ;;  %6635 = vst.msk [vmem:[%s11610_s5] sm:$0xff] %vm4619_vm5, %v6508_v18  ;;  %6383 = vst.msk [vmem:[#allocation2 + $0x18] sm:$0xff] %vm4619_vm5, %v6255_v22  ;;  %v12157_v23 = vld [vmem:[#allocation39_spill] sm:$0xff] }
 0x336   :  { %v6066_v55 = vrot.slane %v5938_v56, 1  ;;  %v5585_v59 = vadd.f32 %v11012_v45, %v5584_v62  ;;  %v5586_v20 = vpop.f32.mrb[69].mxu1  ;;  %5848 = vmatmul.mubr.f32.gmra.mrb[174].mxu1 %v10469_v36  ;;  %v6246_v7 = vsel %vm3850_vm4, %v6000_v31, %v6001_v51  ;;  %v5874_v13 = vmax.f32 %v5260_v12, 0.0 }
 0x337   :  { %6448 = vst.msk [vmem:[#allocation2 + $0x220] sm:$0xff] %vm4619_vm5, %v6320_v30  ;;  %6961 = vmatprep.mubr.msk.f32.mxu1 %vm4619_vm5, %v12152_v42  ;;  %v6256_v61 = vmax.f32 %v5872_v40, %v6246_v7  ;;  %v5264_v28 = vpop.f32.mrb[142].mxu0  ;;  %v12158_v24 = vrot.slane %v12157_v23, 1 }
 0x338   :  { %v6181_v9 = vsel %vm3850_vm4, %v6065_v16, %v6066_v55  ;;  %v5939_v36 = vmax.f32 %v5585_v59, 0.0  ;;  %v6002_v3 = vrot.slane %v5874_v13, 1  ;;  %v5265_v50 = vadd.f32 %v11012_v45, %v5264_v28  ;;  %v5266_v0 = vpop.f32.mrb[143].mxu0 }
 0x339   :  { %v6321_v43 = vmax.f32 %v5937_v53, %v6181_v9  ;;  %v5589_v63 = vpop.f32.mrb[70].mxu1  ;;  %v3978_v39 = vsel %vm3850_vm4, %v12158_v24, %v12156_v52  ;;  %6384 = vst.msk [vmem:[#allocation2 + $0x20] sm:$0xff] %vm4619_vm5, %v6256_v61 }
 0x33a   :  { %v6574_v26 = vld [vmem:[#allocation2 + $0x210] ss:$2 sm:$0xff]  ;;  %v6067_v38 = vrot.slane %v5939_v36, 1  ;;  %v5590_v48 = vadd.f32 %v11012_v45, %v5589_v63  ;;  %v5591_v21 = vpop.f32.mrb[71].mxu1  ;;  %5853 = vmatmul.mubr.f32.gmra.mrb[176].mxu1 %v10459_v34  ;;  %v6245_v1 = vsel %vm3850_vm4, %v6001_v51, %v6002_v3  ;;  %v5875_v6 = vmax.f32 %v5265_v50, 0.0 }
 0x33b   :  { %6668 = vst.msk [vmem:[%s11610_s5 + $0x108] sm:$0xff] %vm4619_vm5, %v6574_v26  ;;  %6449 = vst.msk [vmem:[#allocation2 + $0x228] sm:$0xff] %vm4619_vm5, %v6321_v43  ;;  %6962 = vmatprep.mubr.msk.f32.mxu1 %vm4619_vm5, %v12159_v57  ;;  %v6257_v40 = vmax.f32 %v5873_v5, %v6245_v1  ;;  %v5269_v35 = vpop.f32.mrb[144].mxu0  ;;  %v4106_v2 = vsel %vm11029_vm8, 0.0, %v3978_v39 }
 0x33c   :  { %v6180_v25 = vsel %vm3850_vm4, %v6066_v55, %v6067_v38  ;;  %v5940_v34 = vmax.f32 %v5590_v48, 0.0  ;;  %v6510_v44 = vld [vmem:[#allocation2 + $0x10] ss:$2 sm:$0xff]  ;;  %v6003_v4 = vrot.slane %v5875_v6, 1  ;;  %v5270_v31 = vadd.f32 %v11012_v45, %v5269_v35  ;;  %v5271_v10 = vpop.f32.mrb[145].mxu0 }
 0x33d   :  { %v6322_v53 = vmax.f32 %v5938_v56, %v6180_v25  ;;  %v5594_v33 = vpop.f32.mrb[72].mxu1  ;;  %6636 = vst.msk [vmem:[%s11610_s5 + $0x8] sm:$0xff] %vm4619_vm5, %v6510_v44  ;;  %6385 = vst.msk [vmem:[#allocation2 + $0x28] sm:$0xff] %vm4619_vm5, %v6257_v40 }
 0x33e   :  { %v6068_v49 = vrot.slane %v5940_v34, 1  ;;  %v5595_v16 = vadd.f32 %v11012_v45, %v5594_v33  ;;  %v5596_v32 = vpop.f32.mrb[73].mxu1  ;;  %5858 = vmatmul.mubr.f32.gmra.mrb[178].mxu1 %v10493_v14  ;;  %v6244_v46 = vsel %vm3850_vm4, %v6002_v3, %v6003_v4  ;;  %v5876_v47 = vmax.f32 %v5270_v31, 0.0 }
 0x33f   :  { %6450 = vst.msk [vmem:[#allocation2 + $0x230] sm:$0xff] %vm4619_vm5, %v6322_v53  ;;  %6963 = vmatprep.mubr.msk.f32.mxu1 %vm4619_vm5, %v4106_v2  ;;  %v6258_v14 = vmax.f32 %v5874_v13, %v6244_v46  ;;  %v5274_v5 = vpop.f32.mrb[146].mxu0 }
 0x340   :  { %v6179_v58 = vsel %vm3850_vm4, %v6067_v38, %v6068_v49  ;;  %v5941_v60 = vmax.f32 %v5595_v16, 0.0  ;;  %v6004_v30 = vrot.slane %v5876_v47, 1  ;;  %v5275_v62 = vadd.f32 %v11012_v45, %v5274_v5  ;;  %v5276_v18 = vpop.f32.mrb[147].mxu0 }
 0x341   :  { %v6323_v54 = vmax.f32 %v5939_v36, %v6179_v58  ;;  %v5599_v56 = vpop.f32.mrb[74].mxu1  ;;  %6386 = vst.msk [vmem:[#allocation2 + $0x30] sm:$0xff] %vm4619_vm5, %v6258_v14 }
 0x342   :  { %v6576_v22 = vld [vmem:[#allocation2 + $0x220] ss:$2 sm:$0xff]  ;;  %v6069_v27 = vrot.slane %v5941_v60, 1  ;;  %v5600_v17 = vadd.f32 %v11012_v45, %v5599_v56  ;;  %v5601_v51 = vpop.f32.mrb[75].mxu1  ;;  %5863 = vmatmul.mubr.f32.gmra.mrb[180].mxu1 %v10485_v15  ;;  %v6243_v55 = vsel %vm3850_vm4, %v6003_v4, %v6004_v30  ;;  %v5877_v59 = vmax.f32 %v5275_v62, 0.0 }
 0x343   :  { %6669 = vst.msk [vmem:[%s11610_s5 + $0x110] sm:$0xff] %vm4619_vm5, %v6576_v22  ;;  %6451 = vst.msk [vmem:[#allocation2 + $0x238] sm:$0xff] %vm4619_vm5, %v6323_v54  ;;  %v6259_v20 = vmax.f32 %v5875_v6, %v6243_v55  ;;  %v5279_v15 = vpop.f32.mrb[148].mxu0 }
 0x344   :  { %v6178_v12 = vsel %vm3850_vm4, %v6068_v49, %v6069_v27  ;;  %v5942_v37 = vmax.f32 %v5600_v17, 0.0  ;;  %v6512_v9 = vld [vmem:[#allocation2 + $0x20] ss:$2 sm:$0xff]  ;;  %v6005_v13 = vrot.slane %v5877_v59, 1  ;;  %v5280_v61 = vadd.f32 %v11012_v45, %v5279_v15  ;;  %v5281_v28 = vpop.f32.mrb[149].mxu0 }
 0x345   :  { %v6324_v42 = vmax.f32 %v5940_v34, %v6178_v12  ;;  %v5604_v7 = vpop.f32.mrb[76].mxu1  ;;  %6637 = vst.msk [vmem:[%s11610_s5 + $0x10] sm:$0xff] %vm4619_vm5, %v6512_v9  ;;  %6387 = vst.msk [vmem:[#allocation2 + $0x38] sm:$0xff] %vm4619_vm5, %v6259_v20 }
 0x346   :  { %v6070_v36 = vrot.slane %v5942_v37, 1  ;;  %v5605_v43 = vadd.f32 %v11012_v45, %v5604_v7  ;;  %v5606_v63 = vpop.f32.mrb[77].mxu1  ;;  %v6242_v29 = vsel %vm3850_vm4, %v6004_v30, %v6005_v13  ;;  %v5878_v52 = vmax.f32 %v5280_v61, 0.0 }
 0x347   :  { %6452 = vst.msk [vmem:[#allocation2 + $0x240] sm:$0xff] %vm4619_vm5, %v6324_v42  ;;  %v6260_v24 = vmax.f32 %v5876_v47, %v6242_v29  ;;  %v5284_v26 = vpop.f32.mrb[150].mxu0 }
 0x348   :  { %v6177_v19 = vsel %vm3850_vm4, %v6069_v27, %v6070_v36  ;;  %v5943_v23 = vmax.f32 %v5605_v43, 0.0  ;;  %v6006_v50 = vrot.slane %v5878_v52, 1  ;;  %v5285_v0 = vadd.f32 %v11012_v45, %v5284_v26  ;;  %v5286_v57 = vpop.f32.mrb[151].mxu0 }
 0x349   :  { %v6325_v39 = vmax.f32 %v5941_v60, %v6177_v19  ;;  %v5609_v3 = vpop.f32.mrb[78].mxu1  ;;  %6388 = vst.msk [vmem:[#allocation2 + $0x40] sm:$0xff] %vm4619_vm5, %v6260_v24 }
 0x34a   :  { %v6578_v38 = vld [vmem:[#allocation2 + $0x230] ss:$2 sm:$0xff]  ;;  %v6071_v48 = vrot.slane %v5943_v23, 1  ;;  %v5610_v21 = vadd.f32 %v11012_v45, %v5609_v3  ;;  %v5611_v1 = vpop.f32.mrb[79].mxu1  ;;  %v6241_v25 = vsel %vm3850_vm4, %v6005_v13, %v6006_v50  ;;  %v5879_v34 = vmax.f32 %v5285_v0, 0.0 }
 0x34b   :  { %6670 = vst.msk [vmem:[%s11610_s5 + $0x118] sm:$0xff] %vm4619_vm5, %v6578_v38  ;;  %6453 = vst.msk [vmem:[#allocation2 + $0x248] sm:$0xff] %vm4619_vm5, %v6325_v39  ;;  %v6261_v53 = vmax.f32 %v5877_v59, %v6241_v25  ;;  %v5289_v33 = vpop.f32.mrb[152].mxu0 }
 0x34c   :  { %v6176_v6 = vsel %vm3850_vm4, %v6070_v36, %v6071_v48  ;;  %v5944_v40 = vmax.f32 %v5610_v21, 0.0  ;;  %v6514_v44 = vld [vmem:[#allocation2 + $0x30] ss:$2 sm:$0xff]  ;;  %v6007_v4 = vrot.slane %v5879_v34, 1  ;;  %v5290_v31 = vadd.f32 %v11012_v45, %v5289_v33  ;;  %v5291_v10 = vpop.f32.mrb[153].mxu0 }
 0x34d   :  { %v6326_v35 = vmax.f32 %v5942_v37, %v6176_v6  ;;  %v5614_v2 = vpop.f32.mrb[80].mxu1  ;;  %6638 = vst.msk [vmem:[%s11610_s5 + $0x18] sm:$0xff] %vm4619_vm5, %v6514_v44  ;;  %6389 = vst.msk [vmem:[#allocation2 + $0x48] sm:$0xff] %vm4619_vm5, %v6261_v53 }
 0x34e   :  { %v6072_v49 = vrot.slane %v5944_v40, 1  ;;  %v5615_v16 = vadd.f32 %v11012_v45, %v5614_v2  ;;  %v5616_v32 = vpop.f32.mrb[81].mxu1  ;;  %v6240_v46 = vsel %vm3850_vm4, %v6006_v50, %v6007_v4  ;;  %v5880_v47 = vmax.f32 %v5290_v31, 0.0 }
 0x34f   :  { %6454 = vst.msk [vmem:[#allocation2 + $0x250] sm:$0xff] %vm4619_vm5, %v6326_v35  ;;  %v6262_v14 = vmax.f32 %v5878_v52, %v6240_v46  ;;  %v5294_v5 = vpop.f32.mrb[154].mxu0 }
 0x350   :  { %v6175_v58 = vsel %vm3850_vm4, %v6071_v48, %v6072_v49  ;;  %v5945_v60 = vmax.f32 %v5615_v16, 0.0  ;;  %v6008_v30 = vrot.slane %v5880_v47, 1  ;;  %v5295_v62 = vadd.f32 %v11012_v45, %v5294_v5  ;;  %v5296_v18 = vpop.f32.mrb[155].mxu0 }
 0x351   :  { %v6327_v54 = vmax.f32 %v5943_v23, %v6175_v58  ;;  %v5619_v56 = vpop.f32.mrb[82].mxu1  ;;  %6390 = vst.msk [vmem:[#allocation2 + $0x50] sm:$0xff] %vm4619_vm5, %v6262_v14 }
 0x352   :  { %v6580_v22 = vld [vmem:[#allocation2 + $0x240] ss:$2 sm:$0xff]  ;;  %v6073_v27 = vrot.slane %v5945_v60, 1  ;;  %v5620_v17 = vadd.f32 %v11012_v45, %v5619_v56  ;;  %v5621_v51 = vpop.f32.mrb[83].mxu1  ;;  %v6239_v55 = vsel %vm3850_vm4, %v6007_v4, %v6008_v30  ;;  %v5881_v59 = vmax.f32 %v5295_v62, 0.0 }
 0x353   :  { %6671 = vst.msk [vmem:[%s11610_s5 + $0x120] sm:$0xff] %vm4619_vm5, %v6580_v22  ;;  %6455 = vst.msk [vmem:[#allocation2 + $0x258] sm:$0xff] %vm4619_vm5, %v6327_v54  ;;  %v6263_v20 = vmax.f32 %v5879_v34, %v6239_v55  ;;  %v5299_v15 = vpop.f32.mrb[156].mxu0 }
 0x354   :  { %v6174_v12 = vsel %vm3850_vm4, %v6072_v49, %v6073_v27  ;;  %v5946_v37 = vmax.f32 %v5620_v17, 0.0  ;;  %v6516_v9 = vld [vmem:[#allocation2 + $0x40] ss:$2 sm:$0xff]  ;;  %v6009_v13 = vrot.slane %v5881_v59, 1  ;;  %v5300_v61 = vadd.f32 %v11012_v45, %v5299_v15  ;;  %v5301_v28 = vpop.f32.mrb[157].mxu0 }
 0x355   :  { %v6328_v42 = vmax.f32 %v5944_v40, %v6174_v12  ;;  %v5624_v7 = vpop.f32.mrb[84].mxu1  ;;  %6639 = vst.msk [vmem:[%s11610_s5 + $0x20] sm:$0xff] %vm4619_vm5, %v6516_v9  ;;  %6391 = vst.msk [vmem:[#allocation2 + $0x58] sm:$0xff] %vm4619_vm5, %v6263_v20 }
 0x356   :  { %v6074_v36 = vrot.slane %v5946_v37, 1  ;;  %v5625_v43 = vadd.f32 %v11012_v45, %v5624_v7  ;;  %v5626_v63 = vpop.f32.mrb[85].mxu1  ;;  %v6238_v29 = vsel %vm3850_vm4, %v6008_v30, %v6009_v13  ;;  %v5882_v52 = vmax.f32 %v5300_v61, 0.0 }
 0x357   :  { %6456 = vst.msk [vmem:[#allocation2 + $0x260] sm:$0xff] %vm4619_vm5, %v6328_v42  ;;  %v6264_v24 = vmax.f32 %v5880_v47, %v6238_v29  ;;  %v5304_v26 = vpop.f32.mrb[158].mxu0 }
 0x358   :  { %v6173_v19 = vsel %vm3850_vm4, %v6073_v27, %v6074_v36  ;;  %v5947_v23 = vmax.f32 %v5625_v43, 0.0  ;;  %v6010_v50 = vrot.slane %v5882_v52, 1  ;;  %v5305_v0 = vadd.f32 %v11012_v45, %v5304_v26  ;;  %v5306_v57 = vpop.f32.mrb[159].mxu0 }
 0x359   :  { %v6329_v39 = vmax.f32 %v5945_v60, %v6173_v19  ;;  %v5629_v3 = vpop.f32.mrb[86].mxu1  ;;  %6392 = vst.msk [vmem:[#allocation2 + $0x60] sm:$0xff] %vm4619_vm5, %v6264_v24 }
 0x35a   :  { %v6582_v38 = vld [vmem:[#allocation2 + $0x250] ss:$2 sm:$0xff]  ;;  %v6075_v48 = vrot.slane %v5947_v23, 1  ;;  %v5630_v21 = vadd.f32 %v11012_v45, %v5629_v3  ;;  %v5631_v1 = vpop.f32.mrb[87].mxu1  ;;  %v6237_v25 = vsel %vm3850_vm4, %v6009_v13, %v6010_v50  ;;  %v5883_v34 = vmax.f32 %v5305_v0, 0.0 }
 0x35b   :  { %6672 = vst.msk [vmem:[%s11610_s5 + $0x128] sm:$0xff] %vm4619_vm5, %v6582_v38  ;;  %6457 = vst.msk [vmem:[#allocation2 + $0x268] sm:$0xff] %vm4619_vm5, %v6329_v39  ;;  %v6265_v53 = vmax.f32 %v5881_v59, %v6237_v25  ;;  %v5309_v33 = vpop.f32.mrb[160].mxu0 }
 0x35c   :  { %v6172_v6 = vsel %vm3850_vm4, %v6074_v36, %v6075_v48  ;;  %v5948_v40 = vmax.f32 %v5630_v21, 0.0  ;;  %v6518_v44 = vld [vmem:[#allocation2 + $0x50] ss:$2 sm:$0xff]  ;;  %v6011_v4 = vrot.slane %v5883_v34, 1  ;;  %v5310_v31 = vadd.f32 %v11012_v45, %v5309_v33  ;;  %v5311_v10 = vpop.f32.mrb[161].mxu0 }
 0x35d   :  { %v6330_v35 = vmax.f32 %v5946_v37, %v6172_v6  ;;  %v5634_v2 = vpop.f32.mrb[88].mxu1  ;;  %6640 = vst.msk [vmem:[%s11610_s5 + $0x28] sm:$0xff] %vm4619_vm5, %v6518_v44  ;;  %6393 = vst.msk [vmem:[#allocation2 + $0x68] sm:$0xff] %vm4619_vm5, %v6265_v53 }
 0x35e   :  { %v6076_v49 = vrot.slane %v5948_v40, 1  ;;  %v5635_v16 = vadd.f32 %v11012_v45, %v5634_v2  ;;  %v5636_v32 = vpop.f32.mrb[89].mxu1  ;;  %v6236_v46 = vsel %vm3850_vm4, %v6010_v50, %v6011_v4  ;;  %v5884_v47 = vmax.f32 %v5310_v31, 0.0 }
 0x35f   :  { %6458 = vst.msk [vmem:[#allocation2 + $0x270] sm:$0xff] %vm4619_vm5, %v6330_v35  ;;  %v6266_v14 = vmax.f32 %v5882_v52, %v6236_v46  ;;  %v5314_v5 = vpop.f32.mrb[162].mxu0 }
 0x360   :  { %v6171_v58 = vsel %vm3850_vm4, %v6075_v48, %v6076_v49  ;;  %v5949_v60 = vmax.f32 %v5635_v16, 0.0  ;;  %v6012_v30 = vrot.slane %v5884_v47, 1  ;;  %v5315_v62 = vadd.f32 %v11012_v45, %v5314_v5  ;;  %v5316_v18 = vpop.f32.mrb[163].mxu0 }
 0x361   :  { %v6331_v54 = vmax.f32 %v5947_v23, %v6171_v58  ;;  %v5639_v56 = vpop.f32.mrb[90].mxu1  ;;  %6394 = vst.msk [vmem:[#allocation2 + $0x70] sm:$0xff] %vm4619_vm5, %v6266_v14 }
 0x362   :  { %v6584_v22 = vld [vmem:[#allocation2 + $0x260] ss:$2 sm:$0xff]  ;;  %v6077_v27 = vrot.slane %v5949_v60, 1  ;;  %v5640_v17 = vadd.f32 %v11012_v45, %v5639_v56  ;;  %v5641_v51 = vpop.f32.mrb[91].mxu1  ;;  %v6235_v55 = vsel %vm3850_vm4, %v6011_v4, %v6012_v30  ;;  %v5885_v59 = vmax.f32 %v5315_v62, 0.0 }
 0x363   :  { %6673 = vst.msk [vmem:[%s11610_s5 + $0x130] sm:$0xff] %vm4619_vm5, %v6584_v22  ;;  %6459 = vst.msk [vmem:[#allocation2 + $0x278] sm:$0xff] %vm4619_vm5, %v6331_v54  ;;  %v6267_v20 = vmax.f32 %v5883_v34, %v6235_v55  ;;  %v5319_v15 = vpop.f32.mrb[164].mxu0 }
 0x364   :  { %v6170_v12 = vsel %vm3850_vm4, %v6076_v49, %v6077_v27  ;;  %v5950_v37 = vmax.f32 %v5640_v17, 0.0  ;;  %v6520_v9 = vld [vmem:[#allocation2 + $0x60] ss:$2 sm:$0xff]  ;;  %v6013_v13 = vrot.slane %v5885_v59, 1  ;;  %v5320_v61 = vadd.f32 %v11012_v45, %v5319_v15  ;;  %v5321_v28 = vpop.f32.mrb[165].mxu0 }
 0x365   :  { %v6332_v42 = vmax.f32 %v5948_v40, %v6170_v12  ;;  %v5644_v7 = vpop.f32.mrb[92].mxu1  ;;  %6641 = vst.msk [vmem:[%s11610_s5 + $0x30] sm:$0xff] %vm4619_vm5, %v6520_v9  ;;  %6395 = vst.msk [vmem:[#allocation2 + $0x78] sm:$0xff] %vm4619_vm5, %v6267_v20 }
 0x366   :  { %v6078_v36 = vrot.slane %v5950_v37, 1  ;;  %v5645_v43 = vadd.f32 %v11012_v45, %v5644_v7  ;;  %v5646_v63 = vpop.f32.mrb[93].mxu1  ;;  %v6234_v29 = vsel %vm3850_vm4, %v6012_v30, %v6013_v13  ;;  %v5886_v52 = vmax.f32 %v5320_v61, 0.0 }
 0x367   :  { %6460 = vst.msk [vmem:[#allocation2 + $0x280] sm:$0xff] %vm4619_vm5, %v6332_v42  ;;  %v6268_v24 = vmax.f32 %v5884_v47, %v6234_v29  ;;  %v5324_v26 = vpop.f32.mrb[166].mxu0 }
 0x368   :  { %v6169_v19 = vsel %vm3850_vm4, %v6077_v27, %v6078_v36  ;;  %v5951_v23 = vmax.f32 %v5645_v43, 0.0  ;;  %v6014_v50 = vrot.slane %v5886_v52, 1  ;;  %v5325_v0 = vadd.f32 %v11012_v45, %v5324_v26  ;;  %v5326_v57 = vpop.f32.mrb[167].mxu0 }
 0x369   :  { %v6333_v39 = vmax.f32 %v5949_v60, %v6169_v19  ;;  %v5649_v3 = vpop.f32.mrb[94].mxu1  ;;  %6396 = vst.msk [vmem:[#allocation2 + $0x80] sm:$0xff] %vm4619_vm5, %v6268_v24 }
 0x36a   :  { %v6586_v38 = vld [vmem:[#allocation2 + $0x270] ss:$2 sm:$0xff]  ;;  %v6079_v48 = vrot.slane %v5951_v23, 1  ;;  %v5650_v21 = vadd.f32 %v11012_v45, %v5649_v3  ;;  %v5651_v1 = vpop.f32.mrb[95].mxu1  ;;  %v6233_v25 = vsel %vm3850_vm4, %v6013_v13, %v6014_v50  ;;  %v5887_v34 = vmax.f32 %v5325_v0, 0.0 }
 0x36b   :  { %6674 = vst.msk [vmem:[%s11610_s5 + $0x138] sm:$0xff] %vm4619_vm5, %v6586_v38  ;;  %6461 = vst.msk [vmem:[#allocation2 + $0x288] sm:$0xff] %vm4619_vm5, %v6333_v39  ;;  %v6269_v53 = vmax.f32 %v5885_v59, %v6233_v25  ;;  %v5329_v33 = vpop.f32.mrb[168].mxu0 }
 0x36c   :  { %v6168_v6 = vsel %vm3850_vm4, %v6078_v36, %v6079_v48  ;;  %v5952_v40 = vmax.f32 %v5650_v21, 0.0  ;;  %v6522_v44 = vld [vmem:[#allocation2 + $0x70] ss:$2 sm:$0xff]  ;;  %v6015_v4 = vrot.slane %v5887_v34, 1  ;;  %v5330_v31 = vadd.f32 %v11012_v45, %v5329_v33  ;;  %v5331_v10 = vpop.f32.mrb[169].mxu0 }
 0x36d   :  { %v6334_v35 = vmax.f32 %v5950_v37, %v6168_v6  ;;  %v5654_v2 = vpop.f32.mrb[96].mxu1  ;;  %6642 = vst.msk [vmem:[%s11610_s5 + $0x38] sm:$0xff] %vm4619_vm5, %v6522_v44  ;;  %6397 = vst.msk [vmem:[#allocation2 + $0x88] sm:$0xff] %vm4619_vm5, %v6269_v53 }
 0x36e   :  { %v6080_v49 = vrot.slane %v5952_v40, 1  ;;  %v5655_v16 = vadd.f32 %v11012_v45, %v5654_v2  ;;  %v5656_v32 = vpop.f32.mrb[97].mxu1  ;;  %v6232_v46 = vsel %vm3850_vm4, %v6014_v50, %v6015_v4  ;;  %v5888_v47 = vmax.f32 %v5330_v31, 0.0 }
 0x36f   :  { %6462 = vst.msk [vmem:[#allocation2 + $0x290] sm:$0xff] %vm4619_vm5, %v6334_v35  ;;  %v6270_v14 = vmax.f32 %v5886_v52, %v6232_v46  ;;  %v5334_v5 = vpop.f32.mrb[170].mxu0 }
 0x370   :  { %v6167_v58 = vsel %vm3850_vm4, %v6079_v48, %v6080_v49  ;;  %v5953_v60 = vmax.f32 %v5655_v16, 0.0  ;;  %v6016_v30 = vrot.slane %v5888_v47, 1  ;;  %v5335_v62 = vadd.f32 %v11012_v45, %v5334_v5  ;;  %v5336_v18 = vpop.f32.mrb[171].mxu0 }
 0x371   :  { %v6335_v54 = vmax.f32 %v5951_v23, %v6167_v58  ;;  %v5659_v56 = vpop.f32.mrb[98].mxu1  ;;  %6398 = vst.msk [vmem:[#allocation2 + $0x90] sm:$0xff] %vm4619_vm5, %v6270_v14 }
 0x372   :  { %v6588_v22 = vld [vmem:[#allocation2 + $0x280] ss:$2 sm:$0xff]  ;;  %v6081_v27 = vrot.slane %v5953_v60, 1  ;;  %v5660_v17 = vadd.f32 %v11012_v45, %v5659_v56  ;;  %v5661_v51 = vpop.f32.mrb[99].mxu1  ;;  %v6231_v55 = vsel %vm3850_vm4, %v6015_v4, %v6016_v30  ;;  %v5889_v59 = vmax.f32 %v5335_v62, 0.0 }
 0x373   :  { %6675 = vst.msk [vmem:[%s11610_s5 + $0x140] sm:$0xff] %vm4619_vm5, %v6588_v22  ;;  %6463 = vst.msk [vmem:[#allocation2 + $0x298] sm:$0xff] %vm4619_vm5, %v6335_v54  ;;  %v6271_v20 = vmax.f32 %v5887_v34, %v6231_v55  ;;  %v5339_v15 = vpop.f32.mrb[172].mxu0 }
 0x374   :  { %v6166_v12 = vsel %vm3850_vm4, %v6080_v49, %v6081_v27  ;;  %v5954_v37 = vmax.f32 %v5660_v17, 0.0  ;;  %v6524_v9 = vld [vmem:[#allocation2 + $0x80] ss:$2 sm:$0xff]  ;;  %v6017_v13 = vrot.slane %v5889_v59, 1  ;;  %v5340_v61 = vadd.f32 %v11012_v45, %v5339_v15  ;;  %v5341_v28 = vpop.f32.mrb[173].mxu0 }
 0x375   :  { %v6336_v42 = vmax.f32 %v5952_v40, %v6166_v12  ;;  %v5664_v7 = vpop.f32.mrb[100].mxu1  ;;  %6643 = vst.msk [vmem:[%s11610_s5 + $0x40] sm:$0xff] %vm4619_vm5, %v6524_v9  ;;  %6399 = vst.msk [vmem:[#allocation2 + $0x98] sm:$0xff] %vm4619_vm5, %v6271_v20 }
 0x376   :  { %v6082_v36 = vrot.slane %v5954_v37, 1  ;;  %v5665_v43 = vadd.f32 %v11012_v45, %v5664_v7  ;;  %v5666_v63 = vpop.f32.mrb[101].mxu1  ;;  %v6230_v29 = vsel %vm3850_vm4, %v6016_v30, %v6017_v13  ;;  %v5890_v52 = vmax.f32 %v5340_v61, 0.0 }
 0x377   :  { %6464 = vst.msk [vmem:[#allocation2 + $0x2a0] sm:$0xff] %vm4619_vm5, %v6336_v42  ;;  %v6272_v24 = vmax.f32 %v5888_v47, %v6230_v29  ;;  %v5344_v26 = vpop.f32.mrb[174].mxu0 }
 0x378   :  { %v6165_v19 = vsel %vm3850_vm4, %v6081_v27, %v6082_v36  ;;  %v5955_v23 = vmax.f32 %v5665_v43, 0.0  ;;  %v6018_v50 = vrot.slane %v5890_v52, 1  ;;  %v5345_v0 = vadd.f32 %v11012_v45, %v5344_v26  ;;  %v5346_v57 = vpop.f32.mrb[175].mxu0 }
 0x379   :  { %v6337_v39 = vmax.f32 %v5953_v60, %v6165_v19  ;;  %v5669_v3 = vpop.f32.mrb[102].mxu1  ;;  %6400 = vst.msk [vmem:[#allocation2 + $0xa0] sm:$0xff] %vm4619_vm5, %v6272_v24 }
 0x37a   :  { %v6590_v38 = vld [vmem:[#allocation2 + $0x290] ss:$2 sm:$0xff]  ;;  %v6083_v48 = vrot.slane %v5955_v23, 1  ;;  %v5670_v21 = vadd.f32 %v11012_v45, %v5669_v3  ;;  %v5671_v1 = vpop.f32.mrb[103].mxu1  ;;  %v6229_v25 = vsel %vm3850_vm4, %v6017_v13, %v6018_v50  ;;  %v5891_v34 = vmax.f32 %v5345_v0, 0.0 }
 0x37b   :  { %6676 = vst.msk [vmem:[%s11610_s5 + $0x148] sm:$0xff] %vm4619_vm5, %v6590_v38  ;;  %6465 = vst.msk [vmem:[#allocation2 + $0x2a8] sm:$0xff] %vm4619_vm5, %v6337_v39  ;;  %v6273_v53 = vmax.f32 %v5889_v59, %v6229_v25  ;;  %v5349_v33 = vpop.f32.mrb[176].mxu0 }
 0x37c   :  { %v6164_v6 = vsel %vm3850_vm4, %v6082_v36, %v6083_v48  ;;  %v5956_v40 = vmax.f32 %v5670_v21, 0.0  ;;  %v6526_v44 = vld [vmem:[#allocation2 + $0x90] ss:$2 sm:$0xff]  ;;  %v6019_v4 = vrot.slane %v5891_v34, 1  ;;  %v5350_v31 = vadd.f32 %v11012_v45, %v5349_v33  ;;  %v5351_v10 = vpop.f32.mrb[177].mxu0 }
 0x37d   :  { %v6338_v35 = vmax.f32 %v5954_v37, %v6164_v6  ;;  %v5674_v2 = vpop.f32.mrb[104].mxu1  ;;  %6644 = vst.msk [vmem:[%s11610_s5 + $0x48] sm:$0xff] %vm4619_vm5, %v6526_v44  ;;  %6401 = vst.msk [vmem:[#allocation2 + $0xa8] sm:$0xff] %vm4619_vm5, %v6273_v53 }
 0x37e   :  { %v6084_v49 = vrot.slane %v5956_v40, 1  ;;  %v5675_v16 = vadd.f32 %v11012_v45, %v5674_v2  ;;  %v5676_v32 = vpop.f32.mrb[105].mxu1  ;;  %v6228_v46 = vsel %vm3850_vm4, %v6018_v50, %v6019_v4  ;;  %v5892_v47 = vmax.f32 %v5350_v31, 0.0 }
 0x37f   :  { %6466 = vst.msk [vmem:[#allocation2 + $0x2b0] sm:$0xff] %vm4619_vm5, %v6338_v35  ;;  %v6274_v14 = vmax.f32 %v5890_v52, %v6228_v46  ;;  %v5354_v5 = vpop.f32.mrb[178].mxu0 }
 0x380   :  { %v6163_v58 = vsel %vm3850_vm4, %v6083_v48, %v6084_v49  ;;  %v5957_v60 = vmax.f32 %v5675_v16, 0.0  ;;  %v6020_v30 = vrot.slane %v5892_v47, 1  ;;  %v5355_v62 = vadd.f32 %v11012_v45, %v5354_v5  ;;  %v5356_v18 = vpop.f32.mrb[179].mxu0 }
 0x381   :  { %v6339_v54 = vmax.f32 %v5955_v23, %v6163_v58  ;;  %v5679_v56 = vpop.f32.mrb[106].mxu1  ;;  %6402 = vst.msk [vmem:[#allocation2 + $0xb0] sm:$0xff] %vm4619_vm5, %v6274_v14 }
 0x382   :  { %v6592_v22 = vld [vmem:[#allocation2 + $0x2a0] ss:$2 sm:$0xff]  ;;  %v6085_v27 = vrot.slane %v5957_v60, 1  ;;  %v5680_v17 = vadd.f32 %v11012_v45, %v5679_v56  ;;  %v5681_v51 = vpop.f32.mrb[107].mxu1  ;;  %v6227_v55 = vsel %vm3850_vm4, %v6019_v4, %v6020_v30  ;;  %v5893_v59 = vmax.f32 %v5355_v62, 0.0 }
 0x383   :  { %6677 = vst.msk [vmem:[%s11610_s5 + $0x150] sm:$0xff] %vm4619_vm5, %v6592_v22  ;;  %6467 = vst.msk [vmem:[#allocation2 + $0x2b8] sm:$0xff] %vm4619_vm5, %v6339_v54  ;;  %v6275_v20 = vmax.f32 %v5891_v34, %v6227_v55  ;;  %v5359_v15 = vpop.f32.mrb[180].mxu0 }
 0x384   :  { %v6162_v12 = vsel %vm3850_vm4, %v6084_v49, %v6085_v27  ;;  %v5958_v37 = vmax.f32 %v5680_v17, 0.0  ;;  %v6528_v9 = vld [vmem:[#allocation2 + $0xa0] ss:$2 sm:$0xff]  ;;  %v6021_v13 = vrot.slane %v5893_v59, 1  ;;  %v5360_v61 = vadd.f32 %v11012_v45, %v5359_v15  ;;  %v5361_v28 = vpop.f32.mrb[181].mxu0 }
 0x385   :  { %v6340_v42 = vmax.f32 %v5956_v40, %v6162_v12  ;;  %v5684_v7 = vpop.f32.mrb[108].mxu1  ;;  %6645 = vst.msk [vmem:[%s11610_s5 + $0x50] sm:$0xff] %vm4619_vm5, %v6528_v9  ;;  %6403 = vst.msk [vmem:[#allocation2 + $0xb8] sm:$0xff] %vm4619_vm5, %v6275_v20 }
 0x386   :  { %v6086_v36 = vrot.slane %v5958_v37, 1  ;;  %v5685_v43 = vadd.f32 %v11012_v45, %v5684_v7  ;;  %v5686_v63 = vpop.f32.mrb[109].mxu1  ;;  %v6226_v29 = vsel %vm3850_vm4, %v6020_v30, %v6021_v13  ;;  %v5894_v52 = vmax.f32 %v5360_v61, 0.0 }
 0x387   :  { %6468 = vst.msk [vmem:[#allocation2 + $0x2c0] sm:$0xff] %vm4619_vm5, %v6340_v42  ;;  %v6276_v24 = vmax.f32 %v5892_v47, %v6226_v29  ;;  %v5364_v26 = vpop.f32.mrb[182].mxu0 }
 0x388   :  { %v6161_v19 = vsel %vm3850_vm4, %v6085_v27, %v6086_v36  ;;  %v5959_v23 = vmax.f32 %v5685_v43, 0.0  ;;  %v6022_v50 = vrot.slane %v5894_v52, 1  ;;  %v5365_v0 = vadd.f32 %v11012_v45, %v5364_v26  ;;  %v5366_v57 = vpop.f32.mrb[183].mxu0 }
 0x389   :  { %v6341_v39 = vmax.f32 %v5957_v60, %v6161_v19  ;;  %v5689_v3 = vpop.f32.mrb[110].mxu1  ;;  %6404 = vst.msk [vmem:[#allocation2 + $0xc0] sm:$0xff] %vm4619_vm5, %v6276_v24 }
 0x38a   :  { %v6594_v38 = vld [vmem:[#allocation2 + $0x2b0] ss:$2 sm:$0xff]  ;;  %v6087_v48 = vrot.slane %v5959_v23, 1  ;;  %v5690_v21 = vadd.f32 %v11012_v45, %v5689_v3  ;;  %v5691_v1 = vpop.f32.mrb[111].mxu1  ;;  %v6225_v25 = vsel %vm3850_vm4, %v6021_v13, %v6022_v50  ;;  %v5895_v34 = vmax.f32 %v5365_v0, 0.0 }
 0x38b   :  { %6678 = vst.msk [vmem:[%s11610_s5 + $0x158] sm:$0xff] %vm4619_vm5, %v6594_v38  ;;  %6469 = vst.msk [vmem:[#allocation2 + $0x2c8] sm:$0xff] %vm4619_vm5, %v6341_v39  ;;  %v6277_v53 = vmax.f32 %v5893_v59, %v6225_v25  ;;  %v5369_v33 = vpop.f32.mrb[184].mxu0 }
 0x38c   :  { %v6160_v6 = vsel %vm3850_vm4, %v6086_v36, %v6087_v48  ;;  %v5960_v40 = vmax.f32 %v5690_v21, 0.0  ;;  %v6530_v44 = vld [vmem:[#allocation2 + $0xb0] ss:$2 sm:$0xff]  ;;  %v6023_v4 = vrot.slane %v5895_v34, 1  ;;  %v5370_v31 = vadd.f32 %v11012_v45, %v5369_v33  ;;  %v5371_v10 = vpop.f32.mrb[185].mxu0 }
 0x38d   :  { %v6342_v35 = vmax.f32 %v5958_v37, %v6160_v6  ;;  %v5694_v2 = vpop.f32.mrb[112].mxu1  ;;  %6646 = vst.msk [vmem:[%s11610_s5 + $0x58] sm:$0xff] %vm4619_vm5, %v6530_v44  ;;  %6405 = vst.msk [vmem:[#allocation2 + $0xc8] sm:$0xff] %vm4619_vm5, %v6277_v53 }
 0x38e   :  { %v6088_v49 = vrot.slane %v5960_v40, 1  ;;  %v5695_v16 = vadd.f32 %v11012_v45, %v5694_v2  ;;  %v5696_v32 = vpop.f32.mrb[113].mxu1  ;;  %v6224_v46 = vsel %vm3850_vm4, %v6022_v50, %v6023_v4  ;;  %v5896_v47 = vmax.f32 %v5370_v31, 0.0 }
 0x38f   :  { %6470 = vst.msk [vmem:[#allocation2 + $0x2d0] sm:$0xff] %vm4619_vm5, %v6342_v35  ;;  %v6278_v14 = vmax.f32 %v5894_v52, %v6224_v46  ;;  %v5374_v5 = vpop.f32.mrb[186].mxu0 }
 0x390   :  { %v6159_v58 = vsel %vm3850_vm4, %v6087_v48, %v6088_v49  ;;  %v5961_v60 = vmax.f32 %v5695_v16, 0.0  ;;  %v6024_v30 = vrot.slane %v5896_v47, 1  ;;  %v5375_v62 = vadd.f32 %v11012_v45, %v5374_v5  ;;  %v5376_v18 = vpop.f32.mrb[187].mxu0 }
 0x391   :  { %v6343_v54 = vmax.f32 %v5959_v23, %v6159_v58  ;;  %v5699_v56 = vpop.f32.mrb[114].mxu1  ;;  %6406 = vst.msk [vmem:[#allocation2 + $0xd0] sm:$0xff] %vm4619_vm5, %v6278_v14 }
 0x392   :  { %v6596_v22 = vld [vmem:[#allocation2 + $0x2c0] ss:$2 sm:$0xff]  ;;  %v6089_v27 = vrot.slane %v5961_v60, 1  ;;  %v5700_v17 = vadd.f32 %v11012_v45, %v5699_v56  ;;  %v5701_v51 = vpop.f32.mrb[115].mxu1  ;;  %v6223_v55 = vsel %vm3850_vm4, %v6023_v4, %v6024_v30  ;;  %v5897_v59 = vmax.f32 %v5375_v62, 0.0 }
 0x393   :  { %6679 = vst.msk [vmem:[%s11610_s5 + $0x160] sm:$0xff] %vm4619_vm5, %v6596_v22  ;;  %6471 = vst.msk [vmem:[#allocation2 + $0x2d8] sm:$0xff] %vm4619_vm5, %v6343_v54  ;;  %v6279_v20 = vmax.f32 %v5895_v34, %v6223_v55  ;;  %v5379_v15 = vpop.f32.mrb[188].mxu0 }
 0x394   :  { %v6158_v12 = vsel %vm3850_vm4, %v6088_v49, %v6089_v27  ;;  %v5962_v37 = vmax.f32 %v5700_v17, 0.0  ;;  %v6532_v9 = vld [vmem:[#allocation2 + $0xc0] ss:$2 sm:$0xff]  ;;  %v6025_v13 = vrot.slane %v5897_v59, 1  ;;  %v5380_v61 = vadd.f32 %v11012_v45, %v5379_v15  ;;  %v5381_v28 = vpop.f32.mrb[189].mxu0 }
 0x395   :  { %v6344_v42 = vmax.f32 %v5960_v40, %v6158_v12  ;;  %v5704_v7 = vpop.f32.mrb[116].mxu1  ;;  %6647 = vst.msk [vmem:[%s11610_s5 + $0x60] sm:$0xff] %vm4619_vm5, %v6532_v9  ;;  %6407 = vst.msk [vmem:[#allocation2 + $0xd8] sm:$0xff] %vm4619_vm5, %v6279_v20 }
 0x396   :  { %v6090_v36 = vrot.slane %v5962_v37, 1  ;;  %v5705_v43 = vadd.f32 %v11012_v45, %v5704_v7  ;;  %v5706_v63 = vpop.f32.mrb[117].mxu1  ;;  %v6222_v29 = vsel %vm3850_vm4, %v6024_v30, %v6025_v13  ;;  %v5898_v52 = vmax.f32 %v5380_v61, 0.0 }
 0x397   :  { %6472 = vst.msk [vmem:[#allocation2 + $0x2e0] sm:$0xff] %vm4619_vm5, %v6344_v42  ;;  %v6280_v24 = vmax.f32 %v5896_v47, %v6222_v29  ;;  %v5384_v26 = vpop.f32.mrb[190].mxu0 }
 0x398   :  { %v6157_v19 = vsel %vm3850_vm4, %v6089_v27, %v6090_v36  ;;  %v5963_v23 = vmax.f32 %v5705_v43, 0.0  ;;  %v6026_v50 = vrot.slane %v5898_v52, 1  ;;  %v5385_v0 = vadd.f32 %v11012_v45, %v5384_v26  ;;  %v5386_v57 = vpop.f32.mrb[191].mxu0 }
 0x399   :  { %v6345_v39 = vmax.f32 %v5961_v60, %v6157_v19  ;;  %v5709_v3 = vpop.f32.mrb[118].mxu1  ;;  %6408 = vst.msk [vmem:[#allocation2 + $0xe0] sm:$0xff] %vm4619_vm5, %v6280_v24 }
 0x39a   :  { %v6598_v38 = vld [vmem:[#allocation2 + $0x2d0] ss:$2 sm:$0xff]  ;;  %v6091_v48 = vrot.slane %v5963_v23, 1  ;;  %v5710_v21 = vadd.f32 %v11012_v45, %v5709_v3  ;;  %v5711_v1 = vpop.f32.mrb[119].mxu1  ;;  %v6221_v25 = vsel %vm3850_vm4, %v6025_v13, %v6026_v50  ;;  %v5899_v34 = vmax.f32 %v5385_v0, 0.0 }
 0x39b   :  { %6680 = vst.msk [vmem:[%s11610_s5 + $0x168] sm:$0xff] %vm4619_vm5, %v6598_v38  ;;  %6473 = vst.msk [vmem:[#allocation2 + $0x2e8] sm:$0xff] %vm4619_vm5, %v6345_v39  ;;  %v6281_v53 = vmax.f32 %v5897_v59, %v6221_v25  ;;  %v5389_v33 = vpop.f32.mrb[192].mxu0 }
 0x39c   :  { %v6156_v6 = vsel %vm3850_vm4, %v6090_v36, %v6091_v48  ;;  %v5964_v40 = vmax.f32 %v5710_v21, 0.0  ;;  %v6534_v44 = vld [vmem:[#allocation2 + $0xd0] ss:$2 sm:$0xff]  ;;  %v6027_v4 = vrot.slane %v5899_v34, 1  ;;  %v5390_v31 = vadd.f32 %v11012_v45, %v5389_v33  ;;  %v5391_v10 = vpop.f32.mrb[193].mxu0 }
 0x39d   :  { %v6346_v35 = vmax.f32 %v5962_v37, %v6156_v6  ;;  %v5714_v2 = vpop.f32.mrb[120].mxu1  ;;  %6648 = vst.msk [vmem:[%s11610_s5 + $0x68] sm:$0xff] %vm4619_vm5, %v6534_v44  ;;  %6409 = vst.msk [vmem:[#allocation2 + $0xe8] sm:$0xff] %vm4619_vm5, %v6281_v53  ;;  %v11371_v36 = vld [vmem:[#allocation7] ss:$0 sm:$0xff] }
 0x39e   :  { %v6092_v49 = vrot.slane %v5964_v40, 1  ;;  %v5715_v16 = vadd.f32 %v11012_v45, %v5714_v2  ;;  %v5716_v32 = vpop.f32.mrb[121].mxu1  ;;  %v6220_v46 = vsel %vm3850_vm4, %v6026_v50, %v6027_v4  ;;  %v5900_v47 = vmax.f32 %v5390_v31, 0.0 }
 0x39f   :  { %6474 = vst.msk [vmem:[#allocation2 + $0x2f0] sm:$0xff] %vm4619_vm5, %v6346_v35  ;;  %v6282_v14 = vmax.f32 %v5898_v52, %v6220_v46  ;;  %v5394_v5 = vpop.f32.mrb[194].mxu0 }
 0x3a0   :  { %v6155_v58 = vsel %vm3850_vm4, %v6091_v48, %v6092_v49  ;;  %v5965_v60 = vmax.f32 %v5715_v16, 0.0  ;;  %v6028_v30 = vrot.slane %v5900_v47, 1  ;;  %v5395_v62 = vadd.f32 %v11012_v45, %v5394_v5  ;;  %v5396_v18 = vpop.f32.mrb[195].mxu0 }
 0x3a1   :  { %v6347_v54 = vmax.f32 %v5963_v23, %v6155_v58  ;;  %v5719_v56 = vpop.f32.mrb[122].mxu1  ;;  %6410 = vst.msk [vmem:[#allocation2 + $0xf0] sm:$0xff] %vm4619_vm5, %v6282_v14 }
 0x3a2   :  { %v6600_v22 = vld [vmem:[#allocation2 + $0x2e0] ss:$2 sm:$0xff]  ;;  %v6093_v27 = vrot.slane %v5965_v60, 1  ;;  %v5720_v17 = vadd.f32 %v11012_v45, %v5719_v56  ;;  %v5721_v51 = vpop.f32.mrb[123].mxu1  ;;  %v6219_v55 = vsel %vm3850_vm4, %v6027_v4, %v6028_v30  ;;  %v5901_v59 = vmax.f32 %v5395_v62, 0.0 }
 0x3a3   :  { %6681 = vst.msk [vmem:[%s11610_s5 + $0x170] sm:$0xff] %vm4619_vm5, %v6600_v22  ;;  %6475 = vst.msk [vmem:[#allocation2 + $0x2f8] sm:$0xff] %vm4619_vm5, %v6347_v54  ;;  %v6283_v45 = vmax.f32 %v5899_v34, %v6219_v55  ;;  %v5399_v42 = vpop.f32.mrb[196].mxu0 }
 0x3a4   :  { %v6154_v12 = vsel %vm3850_vm4, %v6092_v49, %v6093_v27  ;;  %v5966_v37 = vmax.f32 %v5720_v17, 0.0  ;;  %v6536_v7 = vld [vmem:[#allocation2 + $0xe0] ss:$2 sm:$0xff]  ;;  %v6029_v9 = vrot.slane %v5901_v59, 1  ;;  %v5400_v61 = vadd.f32 %v11371_v36, %v5399_v42  ;;  %v5401_v28 = vpop.f32.mrb[197].mxu0 }
 0x3a5   :  { %v6348_v20 = vmax.f32 %v5964_v40, %v6154_v12  ;;  %v5724_v15 = vpop.f32.mrb[124].mxu1  ;;  %6649 = vst.msk [vmem:[%s11610_s5 + $0x70] sm:$0xff] %vm4619_vm5, %v6536_v7  ;;  %6411 = vst.msk [vmem:[#allocation2 + $0xf8] sm:$0xff] %vm4619_vm5, %v6283_v45 }
 0x3a6   :  { %v6094_v13 = vrot.slane %v5966_v37, 1  ;;  %v5725_v43 = vadd.f32 %v11371_v36, %v5724_v15  ;;  %v5726_v63 = vpop.f32.mrb[125].mxu1  ;;  %v6218_v29 = vsel %vm3850_vm4, %v6028_v30, %v6029_v9  ;;  %v5902_v52 = vmax.f32 %v5400_v61, 0.0 }
 0x3a7   :  { %6476 = vst.msk [vmem:[#allocation2 + $0x300] sm:$0xff] %vm4619_vm5, %v6348_v20  ;;  %v6284_v24 = vmax.f32 %v5900_v47, %v6218_v29  ;;  %v5404_v26 = vpop.f32.mrb[198].mxu0 }
 0x3a8   :  { %v6153_v19 = vsel %vm3850_vm4, %v6093_v27, %v6094_v13  ;;  %v5967_v23 = vmax.f32 %v5725_v43, 0.0  ;;  %v6030_v50 = vrot.slane %v5902_v52, 1  ;;  %v5405_v0 = vadd.f32 %v11371_v36, %v5404_v26  ;;  %v5406_v57 = vpop.f32.mrb[199].mxu0 }
 0x3a9   :  { %v6349_v39 = vmax.f32 %v5965_v60, %v6153_v19  ;;  %v5729_v3 = vpop.f32.mrb[126].mxu1  ;;  %6412 = vst.msk [vmem:[#allocation2 + $0x100] sm:$0xff] %vm4619_vm5, %v6284_v24 }
 0x3aa   :  { %v6602_v38 = vld [vmem:[#allocation2 + $0x2f0] ss:$2 sm:$0xff]  ;;  %v6095_v48 = vrot.slane %v5967_v23, 1  ;;  %v5730_v21 = vadd.f32 %v11371_v36, %v5729_v3  ;;  %v5731_v1 = vpop.f32.mrb[127].mxu1  ;;  %v6217_v25 = vsel %vm3850_vm4, %v6029_v9, %v6030_v50  ;;  %v5903_v34 = vmax.f32 %v5405_v0, 0.0 }
 0x3ab   :  { %6682 = vst.msk [vmem:[%s11610_s5 + $0x178] sm:$0xff] %vm4619_vm5, %v6602_v38  ;;  %6477 = vst.msk [vmem:[#allocation2 + $0x308] sm:$0xff] %vm4619_vm5, %v6349_v39  ;;  %v6285_v53 = vmax.f32 %v5901_v59, %v6217_v25  ;;  %v5409_v33 = vpop.f32.mrb[200].mxu0 }
 0x3ac   :  { %v6152_v6 = vsel %vm3850_vm4, %v6094_v13, %v6095_v48  ;;  %v5968_v40 = vmax.f32 %v5730_v21, 0.0  ;;  %v6538_v44 = vld [vmem:[#allocation2 + $0xf0] ss:$2 sm:$0xff]  ;;  %v6031_v4 = vrot.slane %v5903_v34, 1  ;;  %v5410_v31 = vadd.f32 %v11371_v36, %v5409_v33  ;;  %v5411_v10 = vpop.f32.mrb[201].mxu0 }
 0x3ad   :  { %v6350_v35 = vmax.f32 %v5966_v37, %v6152_v6  ;;  %v5734_v2 = vpop.f32.mrb[128].mxu1  ;;  %6650 = vst.msk [vmem:[%s11610_s5 + $0x78] sm:$0xff] %vm4619_vm5, %v6538_v44  ;;  %6413 = vst.msk [vmem:[#allocation2 + $0x108] sm:$0xff] %vm4619_vm5, %v6285_v53 }
 0x3ae   :  { %v6096_v49 = vrot.slane %v5968_v40, 1  ;;  %v5735_v16 = vadd.f32 %v11371_v36, %v5734_v2  ;;  %v5736_v32 = vpop.f32.mrb[129].mxu1  ;;  %v6216_v46 = vsel %vm3850_vm4, %v6030_v50, %v6031_v4  ;;  %v5904_v47 = vmax.f32 %v5410_v31, 0.0 }
 0x3af   :  { %6478 = vst.msk [vmem:[#allocation2 + $0x310] sm:$0xff] %vm4619_vm5, %v6350_v35  ;;  %v6286_v14 = vmax.f32 %v5902_v52, %v6216_v46 }
 0x3b0   :  { %v6151_v58 = vsel %vm3850_vm4, %v6095_v48, %v6096_v49  ;;  %v5969_v60 = vmax.f32 %v5735_v16, 0.0  ;;  %v6032_v22 = vrot.slane %v5904_v47, 1 }
 0x3b1   :  { %v6351_v54 = vmax.f32 %v5967_v23, %v6151_v58  ;;  %v5739_v5 = vpop.f32.mrb[130].mxu1  ;;  %6414 = vst.msk [vmem:[#allocation2 + $0x110] sm:$0xff] %vm4619_vm5, %v6286_v14 }
 0x3b2   :  { %v6604_v56 = vld [vmem:[#allocation2 + $0x300] ss:$2 sm:$0xff]  ;;  %v6097_v30 = vrot.slane %v5969_v60, 1  ;;  %v5740_v27 = vadd.f32 %v11371_v36, %v5739_v5  ;;  %v5741_v62 = vpop.f32.mrb[131].mxu1  ;;  %v6214_v17 = vsel %vm3850_vm4, %v6032_v22, %v10607_v11  ;;  %v6215_v18 = vsel %vm3850_vm4, %v6031_v4, %v6032_v22 }
 0x3b3   :  { %6683 = vst.msk [vmem:[%s11610_s5 + $0x180] sm:$0xff] %vm4619_vm5, %v6604_v56  ;;  %6479 = vst.msk [vmem:[#allocation2 + $0x318] sm:$0xff] %vm4619_vm5, %v6351_v54  ;;  %v6287_v12 = vmax.f32 %v5903_v34, %v6215_v18  ;;  %v6288_v59 = vmax.f32 %v5904_v47, %v6214_v17 }
 0x3b4   :  { %v6150_v51 = vsel %vm3850_vm4, %v6096_v49, %v6097_v30  ;;  %v5970_v55 = vmax.f32 %v5740_v27, 0.0  ;;  %v6540_v20 = vld [vmem:[#allocation2 + $0x100] ss:$2 sm:$0xff] }
 0x3b5   :  { %v6352_v37 = vmax.f32 %v5968_v40, %v6150_v51  ;;  %v5744_v45 = vpop.f32.mrb[132].mxu1  ;;  %6651 = vst.msk [vmem:[%s11610_s5 + $0x80] sm:$0xff] %vm4619_vm5, %v6540_v20  ;;  %6415 = vst.msk [vmem:[#allocation2 + $0x118] sm:$0xff] %vm4619_vm5, %v6287_v12 }
 0x3b6   :  { %v6098_v42 = vrot.slane %v5970_v55, 1  ;;  %v5745_v15 = vadd.f32 %v11371_v36, %v5744_v45  ;;  %v5746_v7 = vpop.f32.mrb[133].mxu1  ;;  %6416 = vst.msk [vmem:[#allocation2 + $0x120] sm:$0xff] %vm4619_vm5, %v6288_v59 }
 0x3b7   :  { %6480 = vst.msk [vmem:[#allocation2 + $0x320] sm:$0xff] %vm4619_vm5, %v6352_v37 }
 0x3b8   :  { %v6149_v11 = vsel %vm3850_vm4, %v6097_v30, %v6098_v42  ;;  %v5971_v9 = vmax.f32 %v5745_v15, 0.0 }
 0x3b9   :  { %v6353_v13 = vmax.f32 %v5969_v60, %v6149_v11  ;;  %v5749_v61 = vpop.f32.mrb[134].mxu1 }
 0x3ba   :  { %v6606_v43 = vld [vmem:[#allocation2 + $0x310] ss:$2 sm:$0xff]  ;;  %v6099_v28 = vrot.slane %v5971_v9, 1  ;;  %v5750_v63 = vadd.f32 %v11371_v36, %v5749_v61  ;;  %v5751_v29 = vpop.f32.mrb[135].mxu1 }
 0x3bb   :  { %6684 = vst.msk [vmem:[%s11610_s5 + $0x188] sm:$0xff] %vm4619_vm5, %v6606_v43  ;;  %6481 = vst.msk [vmem:[#allocation2 + $0x328] sm:$0xff] %vm4619_vm5, %v6353_v13 }
 0x3bc   :  { %v6148_v19 = vsel %vm3850_vm4, %v6098_v42, %v6099_v28  ;;  %v5972_v52 = vmax.f32 %v5750_v63, 0.0  ;;  %v6542_v39 = vld [vmem:[#allocation2 + $0x110] ss:$2 sm:$0xff] }
 0x3bd   :  { %v6354_v23 = vmax.f32 %v5970_v55, %v6148_v19  ;;  %v5754_v24 = vpop.f32.mrb[136].mxu1  ;;  %v6544_v26 = vld [vmem:[#allocation2 + $0x120] ss:$2 sm:$0xff]  ;;  %6652 = vst.msk [vmem:[%s11610_s5 + $0x88] sm:$0xff] %vm4619_vm5, %v6542_v39 }
 0x3be   :  { %v6100_v3 = vrot.slane %v5972_v52, 1  ;;  %v5755_v38 = vadd.f32 %v11371_v36, %v5754_v24  ;;  %v5756_v50 = vpop.f32.mrb[137].mxu1  ;;  %6653 = vst.msk [vmem:[%s11610_s5 + $0x90] sm:$0xff] %vm4619_vm5, %v6544_v26 }
 0x3bf   :  { %6482 = vst.msk [vmem:[#allocation2 + $0x330] sm:$0xff] %vm4619_vm5, %v6354_v23 }
 0x3c0   :  { %v6147_v48 = vsel %vm3850_vm4, %v6099_v28, %v6100_v3  ;;  %v5973_v0 = vmax.f32 %v5755_v38, 0.0 }
 0x3c1   :  { %v6355_v21 = vmax.f32 %v5971_v9, %v6147_v48  ;;  %v5759_v57 = vpop.f32.mrb[138].mxu1 }
 0x3c2   :  { %v6608_v1 = vld [vmem:[#allocation2 + $0x320] ss:$2 sm:$0xff]  ;;  %v6101_v25 = vrot.slane %v5973_v0, 1  ;;  %v5760_v6 = vadd.f32 %v11371_v36, %v5759_v57  ;;  %v5761_v34 = vpop.f32.mrb[139].mxu1 }
 0x3c3   :  { %6685 = vst.msk [vmem:[%s11610_s5 + $0x190] sm:$0xff] %vm4619_vm5, %v6608_v1  ;;  %6483 = vst.msk [vmem:[#allocation2 + $0x338] sm:$0xff] %vm4619_vm5, %v6355_v21 }
 0x3c4   :  { %v6146_v40 = vsel %vm3850_vm4, %v6100_v3, %v6101_v25  ;;  %v5974_v53 = vmax.f32 %v5760_v6, 0.0 }
 0x3c5   :  { %v6356_v35 = vmax.f32 %v5972_v52, %v6146_v40  ;;  %v5764_v33 = vpop.f32.mrb[140].mxu1 }
 0x3c6   :  { %v6102_v2 = vrot.slane %v5974_v53, 1  ;;  %v5765_v44 = vadd.f32 %v11371_v36, %v5764_v33  ;;  %v5766_v4 = vpop.f32.mrb[141].mxu1 }
 0x3c7   :  { %6484 = vst.msk [vmem:[#allocation2 + $0x340] sm:$0xff] %vm4619_vm5, %v6356_v35 }
 0x3c8   :  { %v6145_v49 = vsel %vm3850_vm4, %v6101_v25, %v6102_v2  ;;  %v5975_v31 = vmax.f32 %v5765_v44, 0.0 }
 0x3c9   :  { %v6357_v16 = vmax.f32 %v5973_v0, %v6145_v49  ;;  %v5769_v10 = vpop.f32.mrb[142].mxu1 }
 0x3ca   :  { %v6610_v32 = vld [vmem:[#allocation2 + $0x330] ss:$2 sm:$0xff]  ;;  %v6103_v46 = vrot.slane %v5975_v31, 1  ;;  %v5770_v58 = vadd.f32 %v11371_v36, %v5769_v10  ;;  %v5771_v47 = vpop.f32.mrb[143].mxu1 }
 0x3cb   :  { %6686 = vst.msk [vmem:[%s11610_s5 + $0x198] sm:$0xff] %vm4619_vm5, %v6610_v32  ;;  %6485 = vst.msk [vmem:[#allocation2 + $0x348] sm:$0xff] %vm4619_vm5, %v6357_v16 }
 0x3cc   :  { %v6144_v60 = vsel %vm3850_vm4, %v6102_v2, %v6103_v46  ;;  %v5976_v14 = vmax.f32 %v5770_v58, 0.0 }
 0x3cd   :  { %v6358_v54 = vmax.f32 %v5974_v53, %v6144_v60  ;;  %v5774_v5 = vpop.f32.mrb[144].mxu1 }
 0x3ce   :  { %v6104_v56 = vrot.slane %v5976_v14, 1  ;;  %v5775_v22 = vadd.f32 %v11371_v36, %v5774_v5  ;;  %v5776_v30 = vpop.f32.mrb[145].mxu1 }
 0x3cf   :  { %6486 = vst.msk [vmem:[#allocation2 + $0x350] sm:$0xff] %vm4619_vm5, %v6358_v54 }
 0x3d0   :  { %v6143_v27 = vsel %vm3850_vm4, %v6103_v46, %v6104_v56  ;;  %v5977_v62 = vmax.f32 %v5775_v22, 0.0 }
 0x3d1   :  { %v6359_v17 = vmax.f32 %v5975_v31, %v6143_v27  ;;  %v5779_v18 = vpop.f32.mrb[146].mxu1 }
 0x3d2   :  { %v6612_v51 = vld [vmem:[#allocation2 + $0x340] ss:$2 sm:$0xff]  ;;  %v6105_v55 = vrot.slane %v5977_v62, 1  ;;  %v5780_v12 = vadd.f32 %v11371_v36, %v5779_v18  ;;  %v5781_v59 = vpop.f32.mrb[147].mxu1 }
 0x3d3   :  { %6687 = vst.msk [vmem:[%s11610_s5 + $0x1a0] sm:$0xff] %vm4619_vm5, %v6612_v51  ;;  %6487 = vst.msk [vmem:[#allocation2 + $0x358] sm:$0xff] %vm4619_vm5, %v6359_v17 }
 0x3d4   :  { %v6142_v37 = vsel %vm3850_vm4, %v6104_v56, %v6105_v55  ;;  %v5978_v45 = vmax.f32 %v5780_v12, 0.0 }
 0x3d5   :  { %v6360_v20 = vmax.f32 %v5976_v14, %v6142_v37  ;;  %v5784_v42 = vpop.f32.mrb[148].mxu1 }
 0x3d6   :  { %v6106_v15 = vrot.slane %v5978_v45, 1  ;;  %v5785_v7 = vadd.f32 %v11371_v36, %v5784_v42  ;;  %v5786_v11 = vpop.f32.mrb[149].mxu1 }
 0x3d7   :  { %6488 = vst.msk [vmem:[#allocation2 + $0x360] sm:$0xff] %vm4619_vm5, %v6360_v20 }
 0x3d8   :  { %v6141_v9 = vsel %vm3850_vm4, %v6105_v55, %v6106_v15  ;;  %v5979_v13 = vmax.f32 %v5785_v7, 0.0 }
 0x3d9   :  { %v6361_v61 = vmax.f32 %v5977_v62, %v6141_v9  ;;  %v5789_v43 = vpop.f32.mrb[150].mxu1 }
 0x3da   :  { %v6614_v28 = vld [vmem:[#allocation2 + $0x350] ss:$2 sm:$0xff]  ;;  %v6107_v63 = vrot.slane %v5979_v13, 1  ;;  %v5790_v29 = vadd.f32 %v11371_v36, %v5789_v43  ;;  %v5791_v19 = vpop.f32.mrb[151].mxu1 }
 0x3db   :  { %6688 = vst.msk [vmem:[%s11610_s5 + $0x1a8] sm:$0xff] %vm4619_vm5, %v6614_v28  ;;  %6489 = vst.msk [vmem:[#allocation2 + $0x368] sm:$0xff] %vm4619_vm5, %v6361_v61 }
 0x3dc   :  { %v6140_v52 = vsel %vm3850_vm4, %v6106_v15, %v6107_v63  ;;  %v5980_v23 = vmax.f32 %v5790_v29, 0.0 }
 0x3dd   :  { %v6362_v24 = vmax.f32 %v5978_v45, %v6140_v52  ;;  %v5794_v39 = vpop.f32.mrb[152].mxu1 }
 0x3de   :  { %v6108_v26 = vrot.slane %v5980_v23, 1  ;;  %v5795_v3 = vadd.f32 %v11371_v36, %v5794_v39  ;;  %v5796_v38 = vpop.f32.mrb[153].mxu1 }
 0x3df   :  { %6490 = vst.msk [vmem:[#allocation2 + $0x370] sm:$0xff] %vm4619_vm5, %v6362_v24 }
 0x3e0   :  { %v6139_v50 = vsel %vm3850_vm4, %v6107_v63, %v6108_v26  ;;  %v5981_v48 = vmax.f32 %v5795_v3, 0.0 }
 0x3e1   :  { %v6363_v0 = vmax.f32 %v5979_v13, %v6139_v50  ;;  %v5799_v21 = vpop.f32.mrb[154].mxu1 }
 0x3e2   :  { %v6616_v57 = vld [vmem:[#allocation2 + $0x360] ss:$2 sm:$0xff]  ;;  %v6109_v1 = vrot.slane %v5981_v48, 1  ;;  %v5800_v25 = vadd.f32 %v11371_v36, %v5799_v21  ;;  %v5801_v6 = vpop.f32.mrb[155].mxu1 }
 0x3e3   :  { %6689 = vst.msk [vmem:[%s11610_s5 + $0x1b0] sm:$0xff] %vm4619_vm5, %v6616_v57  ;;  %6491 = vst.msk [vmem:[#allocation2 + $0x378] sm:$0xff] %vm4619_vm5, %v6363_v0 }
 0x3e4   :  { %v6138_v34 = vsel %vm3850_vm4, %v6108_v26, %v6109_v1  ;;  %v5982_v40 = vmax.f32 %v5800_v25, 0.0 }
 0x3e5   :  { %v6364_v53 = vmax.f32 %v5980_v23, %v6138_v34  ;;  %v5804_v35 = vpop.f32.mrb[156].mxu1 }
 0x3e6   :  { %v6110_v33 = vrot.slane %v5982_v40, 1  ;;  %v5805_v2 = vadd.f32 %v11371_v36, %v5804_v35  ;;  %v5806_v44 = vpop.f32.mrb[157].mxu1 }
 0x3e7   :  { %6492 = vst.msk [vmem:[#allocation2 + $0x380] sm:$0xff] %vm4619_vm5, %v6364_v53 }
 0x3e8   :  { %v6137_v4 = vsel %vm3850_vm4, %v6109_v1, %v6110_v33  ;;  %v5983_v49 = vmax.f32 %v5805_v2, 0.0 }
 0x3e9   :  { %v6365_v31 = vmax.f32 %v5981_v48, %v6137_v4  ;;  %v5809_v16 = vpop.f32.mrb[158].mxu1 }
 0x3ea   :  { %v6618_v10 = vld [vmem:[#allocation2 + $0x370] ss:$2 sm:$0xff]  ;;  %v6111_v32 = vrot.slane %v5983_v49, 1  ;;  %v5810_v46 = vadd.f32 %v11371_v36, %v5809_v16  ;;  %v5811_v58 = vpop.f32.mrb[159].mxu1 }
 0x3eb   :  { %6690 = vst.msk [vmem:[%s11610_s5 + $0x1b8] sm:$0xff] %vm4619_vm5, %v6618_v10  ;;  %6493 = vst.msk [vmem:[#allocation2 + $0x388] sm:$0xff] %vm4619_vm5, %v6365_v31 }
 0x3ec   :  { %v6136_v47 = vsel %vm3850_vm4, %v6110_v33, %v6111_v32  ;;  %v5984_v60 = vmax.f32 %v5810_v46, 0.0 }
 0x3ed   :  { %v6366_v14 = vmax.f32 %v5982_v40, %v6136_v47  ;;  %v5814_v54 = vpop.f32.mrb[160].mxu1 }
 0x3ee   :  { %v6112_v5 = vrot.slane %v5984_v60, 1  ;;  %v5815_v56 = vadd.f32 %v11371_v36, %v5814_v54  ;;  %v5816_v22 = vpop.f32.mrb[161].mxu1 }
 0x3ef   :  { %6494 = vst.msk [vmem:[#allocation2 + $0x390] sm:$0xff] %vm4619_vm5, %v6366_v14 }
 0x3f0   :  { %v6135_v30 = vsel %vm3850_vm4, %v6111_v32, %v6112_v5  ;;  %v5985_v27 = vmax.f32 %v5815_v56, 0.0 }
 0x3f1   :  { %v6367_v62 = vmax.f32 %v5983_v49, %v6135_v30  ;;  %v5819_v17 = vpop.f32.mrb[162].mxu1 }
 0x3f2   :  { %v6620_v18 = vld [vmem:[#allocation2 + $0x380] ss:$2 sm:$0xff]  ;;  %v6113_v51 = vrot.slane %v5985_v27, 1  ;;  %v5820_v55 = vadd.f32 %v11371_v36, %v5819_v17  ;;  %v5821_v12 = vpop.f32.mrb[163].mxu1 }
 0x3f3   :  { %6691 = vst.msk [vmem:[%s11610_s5 + $0x1c0] sm:$0xff] %vm4619_vm5, %v6620_v18  ;;  %6495 = vst.msk [vmem:[#allocation2 + $0x398] sm:$0xff] %vm4619_vm5, %v6367_v62 }
 0x3f4   :  { %v6134_v59 = vsel %vm3850_vm4, %v6112_v5, %v6113_v51  ;;  %v5986_v37 = vmax.f32 %v5820_v55, 0.0 }
 0x3f5   :  { %v6368_v45 = vmax.f32 %v5984_v60, %v6134_v59  ;;  %v5824_v20 = vpop.f32.mrb[164].mxu1 }
 0x3f6   :  { %v6114_v42 = vrot.slane %v5986_v37, 1  ;;  %v5825_v15 = vadd.f32 %v11371_v36, %v5824_v20  ;;  %v5826_v7 = vpop.f32.mrb[165].mxu1 }
 0x3f7   :  { %6496 = vst.msk [vmem:[#allocation2 + $0x3a0] sm:$0xff] %vm4619_vm5, %v6368_v45 }
 0x3f8   :  { %v6133_v11 = vsel %vm3850_vm4, %v6113_v51, %v6114_v42  ;;  %v5987_v9 = vmax.f32 %v5825_v15, 0.0 }
 0x3f9   :  { %v6369_v13 = vmax.f32 %v5985_v27, %v6133_v11  ;;  %v5829_v61 = vpop.f32.mrb[166].mxu1 }
 0x3fa   :  { %v6622_v43 = vld [vmem:[#allocation2 + $0x390] ss:$2 sm:$0xff]  ;;  %v6115_v28 = vrot.slane %v5987_v9, 1  ;;  %v5830_v63 = vadd.f32 %v11371_v36, %v5829_v61  ;;  %v5831_v29 = vpop.f32.mrb[167].mxu1 }
 0x3fb   :  { %6692 = vst.msk [vmem:[%s11610_s5 + $0x1c8] sm:$0xff] %vm4619_vm5, %v6622_v43  ;;  %6497 = vst.msk [vmem:[#allocation2 + $0x3a8] sm:$0xff] %vm4619_vm5, %v6369_v13 }
 0x3fc   :  { %v6132_v19 = vsel %vm3850_vm4, %v6114_v42, %v6115_v28  ;;  %v5988_v52 = vmax.f32 %v5830_v63, 0.0 }
 0x3fd   :  { %v6370_v23 = vmax.f32 %v5986_v37, %v6132_v19  ;;  %v5834_v24 = vpop.f32.mrb[168].mxu1 }
 0x3fe   :  { %v6116_v39 = vrot.slane %v5988_v52, 1  ;;  %v5835_v26 = vadd.f32 %v11371_v36, %v5834_v24  ;;  %v5836_v3 = vpop.f32.mrb[169].mxu1 }
 0x3ff   :  { %6498 = vst.msk [vmem:[#allocation2 + $0x3b0] sm:$0xff] %vm4619_vm5, %v6370_v23 }
 0x400   :  { %v6131_v38 = vsel %vm3850_vm4, %v6115_v28, %v6116_v39  ;;  %v5989_v50 = vmax.f32 %v5835_v26, 0.0 }
 0x401   :  { %v6371_v48 = vmax.f32 %v5987_v9, %v6131_v38  ;;  %v5839_v0 = vpop.f32.mrb[170].mxu1 }
 0x402   :  { %v6624_v21 = vld [vmem:[#allocation2 + $0x3a0] ss:$2 sm:$0xff]  ;;  %v6117_v57 = vrot.slane %v5989_v50, 1  ;;  %v5840_v1 = vadd.f32 %v11371_v36, %v5839_v0  ;;  %v5841_v25 = vpop.f32.mrb[171].mxu1 }
 0x403   :  { %6693 = vst.msk [vmem:[%s11610_s5 + $0x1d0] sm:$0xff] %vm4619_vm5, %v6624_v21  ;;  %6499 = vst.msk [vmem:[#allocation2 + $0x3b8] sm:$0xff] %vm4619_vm5, %v6371_v48 }
 0x404   :  { %v6130_v6 = vsel %vm3850_vm4, %v6116_v39, %v6117_v57  ;;  %v5990_v34 = vmax.f32 %v5840_v1, 0.0 }
 0x405   :  { %v6372_v40 = vmax.f32 %v5988_v52, %v6130_v6  ;;  %v5844_v53 = vpop.f32.mrb[172].mxu1 }
 0x406   :  { %v6118_v35 = vrot.slane %v5990_v34, 1  ;;  %v5845_v33 = vadd.f32 %v11371_v36, %v5844_v53  ;;  %v5846_v2 = vpop.f32.mrb[173].mxu1 }
 0x407   :  { %6500 = vst.msk [vmem:[#allocation2 + $0x3c0] sm:$0xff] %vm4619_vm5, %v6372_v40 }
 0x408   :  { %v6129_v44 = vsel %vm3850_vm4, %v6117_v57, %v6118_v35  ;;  %v5991_v4 = vmax.f32 %v5845_v33, 0.0 }
 0x409   :  { %v6373_v49 = vmax.f32 %v5989_v50, %v6129_v44  ;;  %v5849_v31 = vpop.f32.mrb[174].mxu1 }
 0x40a   :  { %v6626_v16 = vld [vmem:[#allocation2 + $0x3b0] ss:$2 sm:$0xff]  ;;  %v6119_v10 = vrot.slane %v5991_v4, 1  ;;  %v5850_v32 = vadd.f32 %v11371_v36, %v5849_v31  ;;  %v5851_v46 = vpop.f32.mrb[175].mxu1 }
 0x40b   :  { %6694 = vst.msk [vmem:[%s11610_s5 + $0x1d8] sm:$0xff] %vm4619_vm5, %v6626_v16  ;;  %6501 = vst.msk [vmem:[#allocation2 + $0x3c8] sm:$0xff] %vm4619_vm5, %v6373_v49 }
 0x40c   :  { %v6128_v58 = vsel %vm3850_vm4, %v6118_v35, %v6119_v10  ;;  %v5992_v47 = vmax.f32 %v5850_v32, 0.0 }
 0x40d   :  { %v6374_v60 = vmax.f32 %v5990_v34, %v6128_v58  ;;  %v5854_v14 = vpop.f32.mrb[176].mxu1 }
 0x40e   :  { %v6120_v54 = vrot.slane %v5992_v47, 1  ;;  %v5855_v5 = vadd.f32 %v11371_v36, %v5854_v14  ;;  %v5856_v56 = vpop.f32.mrb[177].mxu1 }
 0x40f   :  { %6502 = vst.msk [vmem:[#allocation2 + $0x3d0] sm:$0xff] %vm4619_vm5, %v6374_v60 }
 0x410   :  { %v6127_v22 = vsel %vm3850_vm4, %v6119_v10, %v6120_v54  ;;  %v5993_v30 = vmax.f32 %v5855_v5, 0.0 }
 0x411   :  { %v6375_v27 = vmax.f32 %v5991_v4, %v6127_v22  ;;  %v5859_v62 = vpop.f32.mrb[178].mxu1 }
 0x412   :  { %v6628_v17 = vld [vmem:[#allocation2 + $0x3c0] ss:$2 sm:$0xff]  ;;  %v6121_v18 = vrot.slane %v5993_v30, 1  ;;  %v5860_v51 = vadd.f32 %v11371_v36, %v5859_v62  ;;  %v5861_v55 = vpop.f32.mrb[179].mxu1 }
 0x413   :  { %6695 = vst.msk [vmem:[%s11610_s5 + $0x1e0] sm:$0xff] %vm4619_vm5, %v6628_v17  ;;  %6503 = vst.msk [vmem:[#allocation2 + $0x3d8] sm:$0xff] %vm4619_vm5, %v6375_v27 }
 0x414   :  { %v6126_v12 = vsel %vm3850_vm4, %v6120_v54, %v6121_v18  ;;  %v5994_v59 = vmax.f32 %v5860_v51, 0.0 }
 0x415   :  { %v6376_v37 = vmax.f32 %v5992_v47, %v6126_v12  ;;  %v5864_v45 = vpop.f32.mrb[180].mxu1 }
 0x416   :  { %v6122_v20 = vrot.slane %v5994_v59, 1  ;;  %v5865_v42 = vadd.f32 %v11371_v36, %v5864_v45  ;;  %v5866_v15 = vpop.f32.mrb[181].mxu1 }
 0x417   :  { %6504 = vst.msk [vmem:[#allocation2 + $0x3e0] sm:$0xff] %vm4619_vm5, %v6376_v37 }
 0x418   :  { %v6125_v7 = vsel %vm3850_vm4, %v6121_v18, %v6122_v20  ;;  %v5995_v11 = vmax.f32 %v5865_v42, 0.0 }
 0x419   :  { %v6377_v9 = vmax.f32 %v5993_v30, %v6125_v7 }
 0x41a   :  { %v6630_v13 = vld [vmem:[#allocation2 + $0x3d0] ss:$2 sm:$0xff]  ;;  %v6123_v61 = vrot.slane %v5995_v11, 1 }
 0x41b   :  { %6696 = vst.msk [vmem:[%s11610_s5 + $0x1e8] sm:$0xff] %vm4619_vm5, %v6630_v13  ;;  %6505 = vst.msk [vmem:[#allocation2 + $0x3e8] sm:$0xff] %vm4619_vm5, %v6377_v9 }
 0x41c   :  { %v6124_v36 = vsel %vm3850_vm4, %v6122_v20, %v6123_v61  ;;  %v6251_v43 = vsel %vm3850_vm4, %v6123_v61, %v10957_v8 }
 0x41d   :  { %v6378_v28 = vmax.f32 %v5994_v59, %v6124_v36  ;;  %v6379_v63 = vmax.f32 %v5995_v11, %v6251_v43 }
 0x41f   :  { %6506 = vst.msk [vmem:[#allocation2 + $0x3f0] sm:$0xff] %vm4619_vm5, %v6378_v28  ;;  %6507 = vst.msk [vmem:[#allocation2 + $0x3f8] sm:$0xff] %vm4619_vm5, %v6379_v63 }
 0x422   :  { %v6632_v29 = vld [vmem:[#allocation2 + $0x3e0] ss:$2 sm:$0xff] }
 0x423   :  { %6697 = vst.msk [vmem:[%s11610_s5 + $0x1f0] sm:$0xff] %vm4619_vm5, %v6632_v29 }
 0x426   :  { %v6634_v19 = vld [vmem:[#allocation2 + $0x3f0] ss:$2 sm:$0xff] }
 0x427   :  { %6698 = vst.msk [vmem:[%s11610_s5 + $0x1f8] sm:$0xff] %vm4619_vm5, %v6634_v19 }
 0x428   :  { %6703 = vsyncpa [#allocation4], 1 }
 0x429   :  { %6704 = vsyncpa [#allocation6], 1 }

</bundles_post_ra>
